<compile_context>
chip_gen: v7x
topology: tpu7x:2x2x1
jax: 0.10.0
libtpu: 0.0.40
codegen_flags: <defaults>
</compile_context>

<pallas_src>
import jax
import jax.numpy as jnp
from jax.experimental import pallas as pl
from jax.experimental.pallas import tpu as pltpu

# ----------------------------- sizes ----------------------------------------
B = 2                  # batch
SEQ = 8                # sequence length
F = 1                  # n_features (forced to 1 by bmm(gate[B,1,K], o[B,K,1]))
K = 4                  # experts.num_cells
H = 4                  # expert LSTM hidden size
KH = K * H             # 16
NTRAJ = KH             # experts.num_trajectories
MEM = 20               # memory_size (rows)
ROW = NTRAJ + 1        # 17, original memory row width
ROW_P = 32             # padded memory row width
MEMW = MEM * ROW       # 340
MEMW_P = MEM * ROW_P   # 640 = 5 * 128 lanes
ENC = 64               # memory_encode hidden
AH = 16                # agent hidden / memory_encode output

# dynamic (per-call) input slab lane layout: [x(8) | pred0(1) | pad | gate0_rep(16)]
PRED0_OFF = SEQ        # lane 8
GATE0_OFF = 16         # lanes 16..31
DYN_W = 32

# weight slab row layout (all offsets multiples of 8; lane width 64)
E_WIH_OFF = 0          # (1, 64)
E_B_OFF = 8            # (1, 64)
M_B1_OFF = 16          # (1, 64)
WO_OFF = 24            # (1, 16)   flattened expert output weights
EBO_OFF = 32           # (1, 16)   expert output bias, repeated/H
M_B2_OFF = 40          # (1, 16)
G_B_OFF = 48           # (1, 16)   gate bias, expert-replicated
A_B_OFF = 56           # (2, 64)
E_WHH_OFF = 64         # (16, 64)  e_whh tiled K times (expanded recurrent weight)
G_W_OFF = 80           # (16, 16)  gate weight, expert-replicated columns
M_W2_OFF = 96          # (64, 16)
A_W_OFF = 160          # (2*32, 64) merged [wih; whh] per agent layer
M_W1_OFF = 224         # (640, 64) row-padded memory encoder weight
W_ROWS = M_W1_OFF + MEMW_P   # 864
W_COLS = 64


# ----------------------------- kernel ---------------------------------------
def mmoe_kernel(dyn_ref, w_ref, out_ref):
    # ---- per-call dynamic inputs (one tiny slab) ----------------------------
    dyn = dyn_ref[...]                             # (B, 32)
    x = dyn[:, :SEQ]                               # (B, SEQ)
    pred = dyn[:, PRED0_OFF:PRED0_OFF + 1]         # (B, 1)
    gate_rep = dyn[:, GATE0_OFF:GATE0_OFF + KH]    # (B, 16) expert-replicated gate

    # ---- small weights, hoisted (each <= 1-2 vregs; reused every step) ------
    e_wih = w_ref[E_WIH_OFF:E_WIH_OFF + 1, :]      # (1, 64)
    e_b = w_ref[E_B_OFF:E_B_OFF + 1, :]            # (1, 64)
    m_b1 = w_ref[M_B1_OFF:M_B1_OFF + 1, :]         # (1, 64)
    wo_flat = w_ref[WO_OFF:WO_OFF + 1, :KH]        # (1, 16)
    e_bo_div = w_ref[EBO_OFF:EBO_OFF + 1, :KH]     # (1, 16)
    m_b2 = w_ref[M_B2_OFF:M_B2_OFF + 1, :AH]       # (1, 16)
    g_b = w_ref[G_B_OFF:G_B_OFF + 1, :KH]          # (1, 16)
    a_b0 = w_ref[A_B_OFF:A_B_OFF + 1, :]           # (1, 64)
    a_b1 = w_ref[A_B_OFF + 1:A_B_OFF + 2, :]       # (1, 64)

    # ---- recurrent state as plain values (loop fully unrolled, SEQ=8) -------
    # gh_state = gate_rep * h_new from the previous step (its block-sum is the
    # mixed h, folded into the expanded e_whh weight), c_tiled = mixed c
    # replicated per expert (exactly the layout the LSTM update needs).
    gh_state = jnp.zeros((B, KH), jnp.float32)
    c_tiled = jnp.zeros((B, KH), jnp.float32)
    ah = [jnp.zeros((B, AH), jnp.float32) for _ in range(2)]
    ac = [jnp.zeros((B, AH), jnp.float32) for _ in range(2)]
    abs_err_sum = jnp.zeros((B, 1), jnp.float32)   # running sum(|error|) for theta

    # register_memory, padded rows: [0]*16 + [0.5] + [0]*15 per 32-lane row.
    lane = jax.lax.broadcasted_iota(jnp.int32, (B, MEMW_P), 1)
    mem = jnp.where(lane % ROW_P == NTRAJ, 0.5, 0.0).astype(jnp.float32)

    preds = []
    for t in range(SEQ):
        x_t = x[:, t:t + 1]                        # (B, 1)
        error = x_t - pred                         # (B, 1)

        # ---- experts: K LSTM cells sharing the mixed previous (h, c) --------
        # F == 1 -> x_t contribution is a VPU outer product; the recurrent
        # term uses the host-expanded (16, 64) weight so the mixed h never has
        # to be formed explicitly.
        e_whh_exp = w_ref[E_WHH_OFF:E_WHH_OFF + KH, :]          # (16, 64)
        gates = (x_t * e_wih
                 + jnp.dot(gh_state, e_whh_exp,
                           preferred_element_type=jnp.float32)
                 + e_b)                                          # (B, 64)
        sg = jax.nn.sigmoid(gates)                 # one full-width EUP pass
        tg = jnp.tanh(gates)                       # one full-width EUP pass
        i_g = sg[:, 0 * KH:1 * KH]
        f_g = sg[:, 1 * KH:2 * KH]
        g_g = tg[:, 2 * KH:3 * KH]
        o_g = sg[:, 3 * KH:4 * KH]
        c_new = f_g * c_tiled + i_g * g_g          # (B, 16)
        h_new = o_g * jnp.tanh(c_new)              # (B, 16)

        # ---- memory_step: aligned 32-lane ring rotate + masked row write ----
        # pltpu.roll matches jnp.roll (elements move toward higher lanes), so
        # old row r lands at row r+1 and the wrapped last row is overwritten.
        rolled = pltpu.roll(mem, ROW_P, 1)                       # (B, 640)
        h_pad = jnp.concatenate(
            [h_new, jnp.zeros((B, MEMW_P - NTRAJ), jnp.float32)], axis=1)
        mem = jnp.where(lane < NTRAJ, h_pad,
              jnp.where(lane == NTRAJ, error,
              jnp.where(lane < ROW_P, 0.0, rolled)))

        # ---- memory_encode: Linear(640p,64)+ReLU, Linear(64,16)+ReLU --------
        # Large weights loaded at point of use (not hoisted across the body).
        m_w1 = w_ref[M_W1_OFF:M_W1_OFF + MEMW_P, :]              # (640, 64)
        h1 = jnp.maximum(
            jnp.dot(mem, m_w1, preferred_element_type=jnp.float32) + m_b1, 0.0)
        m_w2 = w_ref[M_W2_OFF:M_W2_OFF + ENC, :]                 # (64, 64) cols>=16 zero
        layer_in = jnp.maximum(
            jnp.dot(h1, m_w2, preferred_element_type=jnp.float32)[:, :AH]
            + m_b2, 0.0)                                         # (B, 16)

        # ---- agent: 2 stacked LSTM cells, merged input/hidden matmul --------
        for l in range(2):
            a_w = w_ref[A_W_OFF + l * 2 * AH:A_W_OFF + (l + 1) * 2 * AH, :]
            cat_in = jnp.concatenate([layer_in, ah[l]], axis=1)  # (B, 32)
            ag = (jnp.dot(cat_in, a_w, preferred_element_type=jnp.float32)
                  + (a_b0 if l == 0 else a_b1))                  # (B, 64)
            sa = jax.nn.sigmoid(ag)
            ta = jnp.tanh(ag)
            ai = sa[:, 0 * AH:1 * AH]
            af = sa[:, 1 * AH:2 * AH]
            agg = ta[:, 2 * AH:3 * AH]
            ao = sa[:, 3 * AH:4 * AH]
            ac[l] = af * ac[l] + ai * agg
            ah[l] = ao * jnp.tanh(ac[l])
            layer_in = ah[l]

        # ---- gate, produced directly in expert-replicated (B, 16) layout ----
        # Host-repeated g_w/g_b give each expert's logit H times; softmax over
        # the replicated logits is the true softmax / H, so scale by H.
        g_w_rep = w_ref[G_W_OFF:G_W_OFF + AH, :]                 # (16, 64) cols>=16 zero
        glog = (jnp.dot(layer_in, g_w_rep,
                        preferred_element_type=jnp.float32)[:, :KH] + g_b)
        gate_new = jax.nn.softmax(glog, axis=1) * float(H)       # (B, 16)

        # theta = clamp(2.5 * mean(|memory[:, :10, -1]|), 0, 1) as a running
        # |error| sum plus the 0.5-init contribution of the not-yet-written
        # rows.  Valid because SEQ (8) <= window (10); add an expiring-term
        # subtraction if SEQ ever exceeds the window.
        abs_err_sum = abs_err_sum + jnp.abs(error)
        theta = jnp.minimum((abs_err_sum + 0.5 * (9 - t)) * (2.5 / 10.0), 1.0)
        gate_rep = gate_new * theta + gate_rep * (1.0 - theta)   # (B, 16)

        # ---- mix expert states / outputs with the gate (fused output head) --
        gh_state = gate_rep * h_new                              # carried h mix
        gc = gate_rep * c_new
        pred = jnp.sum(gh_state * wo_flat + gate_rep * e_bo_div,
                       axis=1, keepdims=True)                    # (B, 1)
        cmix = (gc[:, 0 * H:1 * H] + gc[:, 1 * H:2 * H]
                + gc[:, 2 * H:3 * H] + gc[:, 3 * H:4 * H])       # (B, 4)
        # concatenate (known-good lowering) rather than jnp.tile's
        # broadcast+reshape; identical op count at this width.
        c_tiled = jnp.concatenate([cmix] * K, axis=1)            # (B, 16)
        preds.append(pred)

    # single lane-dense output store
    out_ref[...] = jnp.concatenate(preds, axis=1)                # (B, SEQ)


# ----------------------------- host-side packing ----------------------------
def pack_weights(p):
    """Pack every weight into one (864, 64) f32 slab -> a single entry DMA."""
    w = jnp.zeros((W_ROWS, W_COLS), jnp.float32)

    def put(w, off, a):
        a = jnp.asarray(a, jnp.float32)
        return w.at[off:off + a.shape[0], :a.shape[1]].set(a)

    w = put(w, E_WIH_OFF, p['e_wih'])
    w = put(w, E_B_OFF, p['e_b'])
    w = put(w, M_B1_OFF, p['m_b1'])
    w = put(w, WO_OFF, p['e_wo'].reshape(1, KH))
    w = put(w, EBO_OFF, jnp.repeat(p['e_bo'], H, axis=1) / float(H))
    w = put(w, M_B2_OFF, p['m_b2'])
    w = put(w, G_B_OFF, jnp.repeat(p['g_b'], H, axis=1))
    w = put(w, A_B_OFF, p['a_b'][:, 0, :])
    w = put(w, E_WHH_OFF, jnp.tile(p['e_whh'], (K, 1)))          # (16, 64)
    w = put(w, G_W_OFF, jnp.repeat(p['g_w'], H, axis=1))         # (16, 16)
    w = put(w, M_W2_OFF, p['m_w2'])                              # (64, 16)
    for l in range(2):
        w = put(w, A_W_OFF + l * 2 * AH,
                jnp.concatenate([p['a_wih'][l], p['a_whh'][l]], axis=0))
    # m_w1 rows padded 17 -> 32 per memory row (zero rows for the pad lanes).
    m_w1_p = jnp.zeros((MEM, ROW_P, ENC), jnp.float32)
    m_w1_p = m_w1_p.at[:, :ROW, :].set(p['m_w1'].reshape(MEM, ROW, ENC))
    w = put(w, M_W1_OFF, m_w1_p.reshape(MEMW_P, ENC))
    return w


def pack_dyn(x, pred0, gate0):
    d = jnp.zeros((B, DYN_W), jnp.float32)
    d = d.at[:, :SEQ].set(x[:, :, 0])
    d = d.at[:, PRED0_OFF:PRED0_OFF + 1].set(pred0)
    d = d.at[:, GATE0_OFF:GATE0_OFF + KH].set(jnp.repeat(gate0, H, axis=1))
    return d


# ----------------------------- wrapper ---------------------------------------
def mmoe_pallas(x, params, pred0, gate0):
    dyn = pack_dyn(x, pred0, gate0)
    w = pack_weights(params)
    flops = SEQ * 2 * B * (KH * 4 * KH + MEMW_P * ENC + ENC * AH
                           + 2 * (2 * AH * 4 * AH) + AH * KH)
    cost = pl.CostEstimate(
        flops=int(flops),
        transcendentals=int(SEQ * B * 448),
        bytes_accessed=int((dyn.size + w.size + B * SEQ) * 4),
    )
    out = pl.pallas_call(
        mmoe_kernel,
        out_shape=jax.ShapeDtypeStruct((B, SEQ), jnp.float32),
        in_specs=[pl.BlockSpec(memory_space=pltpu.MemorySpace.VMEM),
                  pl.BlockSpec(memory_space=pltpu.MemorySpace.VMEM)],
        out_specs=pl.BlockSpec(memory_space=pltpu.MemorySpace.VMEM),
        cost_estimate=cost,
    )(dyn, w)
    return out[:, :, None]                                       # (B, SEQ, F)


# ----------------------------- parameters ------------------------------------
def init_params(key):
    ks = jax.random.split(key, 16)

    def u(k, shape, scale=0.3):
        return jax.random.uniform(k, shape, jnp.float32, -scale, scale)

    # per-expert output head (H -> 1), also laid out as a block matrix for ref
    e_wo = u(ks[3], (K, H))
    e_wo_blk = jnp.zeros((K * H, K), jnp.float32)
    for k in range(K):
        e_wo_blk = e_wo_blk.at[k * H:(k + 1) * H, k].set(e_wo[k])

    return dict(
        e_wih=u(ks[0], (F, 4 * KH)),       # gates layout [gate_type, k, h]
        e_whh=u(ks[1], (H, 4 * KH)),
        e_b=u(ks[2], (1, 4 * KH)),
        e_wo=e_wo,
        e_wo_blk=e_wo_blk,
        e_bo=u(ks[4], (1, K)),
        m_w1=u(ks[5], (MEMW, ENC), 0.05),
        m_b1=u(ks[6], (1, ENC), 0.05),
        m_w2=u(ks[7], (ENC, AH)),
        m_b2=u(ks[8], (1, AH)),
        a_wih=u(ks[9], (2, AH, 4 * AH)),
        a_whh=u(ks[10], (2, AH, 4 * AH)),
        a_b=u(ks[11], (2, 1, 4 * AH)),
        g_w=u(ks[12], (AH, K)),
        g_b=u(ks[13], (1, K)),
    )


# ----------------------------- plain-JAX reference ---------------------------
def _dotH(a, b):
    return jnp.dot(a, b, precision=jax.lax.Precision.HIGHEST)


def mmoe_ref(x, p, pred0, gate0):
    pred, gate_state = pred0, gate0
    hmix = jnp.zeros((B, H), jnp.float32)
    cmix = jnp.zeros((B, H), jnp.float32)
    ah = jnp.zeros((2, B, AH), jnp.float32)
    ac = jnp.zeros((2, B, AH), jnp.float32)
    idx = jnp.arange(MEMW) % (NTRAJ + 1)
    mem = jnp.broadcast_to(jnp.where(idx == NTRAJ, 0.5, 0.0),
                           (B, MEMW)).astype(jnp.float32)
    outs = []
    for t in range(SEQ):
        x_t = x[:, t, :]
        error = x_t - pred
        gates = _dotH(x_t, p['e_wih']) + _dotH(hmix, p['e_whh']) + p['e_b']
        i_g = jax.nn.sigmoid(gates[:, 0 * KH:1 * KH])
        f_g = jax.nn.sigmoid(gates[:, 1 * KH:2 * KH])
        g_g = jnp.tanh(gates[:, 2 * KH:3 * KH])
        o_g = jax.nn.sigmoid(gates[:, 3 * KH:4 * KH])
        c_new = f_g * jnp.tile(cmix, (1, K)) + i_g * g_g
        h_new = o_g * jnp.tanh(c_new)
        o_out = _dotH(h_new, p['e_wo_blk']) + p['e_bo']
        inp = jnp.concatenate([h_new, error], axis=1)
        mem = jnp.concatenate([inp, mem[:, :MEMW - (NTRAJ + 1)]], axis=1)
        h1 = jnp.maximum(_dotH(mem, p['m_w1']) + p['m_b1'], 0.0)
        layer_in = jnp.maximum(_dotH(h1, p['m_w2']) + p['m_b2'], 0.0)
        ah_new, ac_new = [], []
        for l in range(2):
            ag = (_dotH(layer_in, p['a_wih'][l]) + _dotH(ah[l], p['a_whh'][l])
                  + p['a_b'][l])
            ai = jax.nn.sigmoid(ag[:, 0 * AH:1 * AH])
            af = jax.nn.sigmoid(ag[:, 1 * AH:2 * AH])
            agg = jnp.tanh(ag[:, 2 * AH:3 * AH])
            ao = jax.nn.sigmoid(ag[:, 3 * AH:4 * AH])
            c_l = af * ac[l] + ai * agg
            h_l = ao * jnp.tanh(c_l)
            ah_new.append(h_l); ac_new.append(c_l); layer_in = h_l
        ah, ac = jnp.stack(ah_new), jnp.stack(ac_new)
        gate = jax.nn.softmax(_dotH(layer_in, p['g_w']) + p['g_b'], axis=1)
        last_col = mem[:, NTRAJ::(NTRAJ + 1)][:, :10]
        theta = jnp.mean(jnp.abs(last_col), axis=1, keepdims=True) * 2.5
        theta = jnp.maximum(theta, 0.0) - jnp.maximum(theta - 1.0, 0.0)
        gate = gate * theta + gate_state * (1.0 - theta)
        hmix = sum(gate[:, k:k + 1] * h_new[:, k * H:(k + 1) * H]
                   for k in range(K))
        cmix = sum(gate[:, k:k + 1] * c_new[:, k * H:(k + 1) * H]
                   for k in range(K))
        pred = jnp.sum(gate * o_out, axis=1, keepdims=True)
        gate_state = gate
        outs.append(pred)
    return jnp.stack(outs, axis=1)             # (B, SEQ, F)


# ----------------------------- main -------------------------------------------
if __name__ == "__main__":
    key = jax.random.PRNGKey(0)
    k_x, k_p, k_pred, k_gate = jax.random.split(key, 4)
    params = init_params(k_p)
    x = jax.random.normal(k_x, (B, SEQ, F), jnp.float32)
    # torch uses torch.rand for these; reproduced deterministically with jax.random
    pred0 = jax.random.uniform(k_pred, (B, F), jnp.float32)
    gate0 = jax.nn.softmax(jax.random.uniform(k_gate, (B, K), jnp.float32), axis=1)

    out = mmoe_pallas(x, params, pred0, gate0)
    out = jax.block_until_ready(out)

    ref = mmoe_ref(x, params, pred0, gate0)
    assert out.shape == (B, SEQ, F), out.shape
    max_diff = float(jnp.max(jnp.abs(out - ref)))
    # tightened from 5e-3; the remaining allowance covers MXU f32 multi-pass
    # rounding differences vs. the HIGHEST-precision XLA reference.
    assert max_diff < 1e-3, f"mismatch vs reference: {max_diff}"
    print("KERNEL_OK")
</pallas_src>

<mosaic_0001>
module attributes {stable_mosaic.version = 11 : i64} {
  func.func @mmoe_kernel(%arg0: memref<2x32xf32, #tpu.memory_space<vmem>>, %arg1: memref<864x64xf32, #tpu.memory_space<vmem>>, %arg2: memref<2x8xf32, #tpu.memory_space<vmem>>) attributes {dimension_semantics = [], scalar_prefetch = 0 : i64, scratch_operands = 0 : i64, tpu.core_type = #tpu.core_type<tc>} {
    %c0 = arith.constant 0 : index
    %c0_0 = arith.constant 0 : index
    %0 = vector.load %arg0[%c0, %c0_0] : memref<2x32xf32, #tpu.memory_space<vmem>>, vector<2x32xf32>
    %1 = vector.extract_strided_slice %0 {offsets = [0, 0], sizes = [2, 8], strides = [1, 1]} : vector<2x32xf32> to vector<2x8xf32>
    %2 = vector.extract_strided_slice %0 {offsets = [0, 8], sizes = [2, 1], strides = [1, 1]} : vector<2x32xf32> to vector<2x1xf32>
    %3 = vector.extract_strided_slice %0 {offsets = [0, 16], sizes = [2, 16], strides = [1, 1]} : vector<2x32xf32> to vector<2x16xf32>
    %c0_1 = arith.constant 0 : index
    %c0_2 = arith.constant 0 : index
    %4 = vector.load %arg1[%c0_1, %c0_2] : memref<864x64xf32, #tpu.memory_space<vmem>>, vector<1x64xf32>
    %c8 = arith.constant 8 : index
    %c0_3 = arith.constant 0 : index
    %5 = vector.load %arg1[%c8, %c0_3] : memref<864x64xf32, #tpu.memory_space<vmem>>, vector<1x64xf32>
    %c16 = arith.constant 16 : index
    %c0_4 = arith.constant 0 : index
    %6 = vector.load %arg1[%c16, %c0_4] : memref<864x64xf32, #tpu.memory_space<vmem>>, vector<1x64xf32>
    %c24 = arith.constant 24 : index
    %c0_5 = arith.constant 0 : index
    %7 = vector.load %arg1[%c24, %c0_5] : memref<864x64xf32, #tpu.memory_space<vmem>>, vector<1x16xf32>
    %c32 = arith.constant 32 : index
    %c0_6 = arith.constant 0 : index
    %8 = vector.load %arg1[%c32, %c0_6] : memref<864x64xf32, #tpu.memory_space<vmem>>, vector<1x16xf32>
    %c40 = arith.constant 40 : index
    %c0_7 = arith.constant 0 : index
    %9 = vector.load %arg1[%c40, %c0_7] : memref<864x64xf32, #tpu.memory_space<vmem>>, vector<1x16xf32>
    %c48 = arith.constant 48 : index
    %c0_8 = arith.constant 0 : index
    %10 = vector.load %arg1[%c48, %c0_8] : memref<864x64xf32, #tpu.memory_space<vmem>>, vector<1x16xf32>
    %c56 = arith.constant 56 : index
    %c0_9 = arith.constant 0 : index
    %11 = vector.load %arg1[%c56, %c0_9] : memref<864x64xf32, #tpu.memory_space<vmem>>, vector<1x64xf32>
    %c57 = arith.constant 57 : index
    %c0_10 = arith.constant 0 : index
    %12 = vector.load %arg1[%c57, %c0_10] : memref<864x64xf32, #tpu.memory_space<vmem>>, vector<1x64xf32>
    %cst = arith.constant 0.000000e+00 : f32
    %13 = vector.broadcast %cst : f32 to vector<2x16xf32>
    %cst_11 = arith.constant 0.000000e+00 : f32
    %14 = vector.broadcast %cst_11 : f32 to vector<2x16xf32>
    %cst_12 = arith.constant 0.000000e+00 : f32
    %15 = vector.broadcast %cst_12 : f32 to vector<2x16xf32>
    %cst_13 = arith.constant 0.000000e+00 : f32
    %16 = vector.broadcast %cst_13 : f32 to vector<2x16xf32>
    %cst_14 = arith.constant 0.000000e+00 : f32
    %17 = vector.broadcast %cst_14 : f32 to vector<2x16xf32>
    %cst_15 = arith.constant 0.000000e+00 : f32
    %18 = vector.broadcast %cst_15 : f32 to vector<2x16xf32>
    %cst_16 = arith.constant 0.000000e+00 : f32
    %19 = vector.broadcast %cst_16 : f32 to vector<2x1xf32>
    %20 = tpu.iota {dimensions = array<i32: 1>} : vector<2x640xi32>
    %c32_i32 = arith.constant 32 : i32
    %c0_i32 = arith.constant 0 : i32
    %21 = arith.cmpi eq, %c32_i32, %c0_i32 : i32
    %c1_i32 = arith.constant 1 : i32
    %22 = arith.select %21, %c1_i32, %c32_i32 : i32
    %23 = vector.broadcast %22 : i32 to vector<2x640xi32>
    %24 = arith.remsi %20, %23 : vector<2x640xi32>
    %c0_i32_17 = arith.constant 0 : i32
    %25 = vector.broadcast %c0_i32_17 : i32 to vector<2x640xi32>
    %26 = arith.cmpi ne, %24, %25 : vector<2x640xi32>
    %c0_i32_18 = arith.constant 0 : i32
    %27 = vector.broadcast %c0_i32_18 : i32 to vector<2x640xi32>
    %28 = arith.cmpi slt, %24, %27 : vector<2x640xi32>
    %c0_i32_19 = arith.constant 0 : i32
    %29 = arith.cmpi slt, %22, %c0_i32_19 : i32
    %30 = vector.broadcast %29 : i1 to vector<2x640xi1>
    %31 = vector.broadcast %30 : vector<2x640xi1> to vector<2x640xi1>
    %32 = arith.xori %28, %31 : vector<2x640xi1>
    %33 = arith.andi %32, %26 : vector<2x640xi1>
    %34 = vector.broadcast %22 : i32 to vector<2x640xi32>
    %35 = arith.addi %24, %34 : vector<2x640xi32>
    %36 = arith.select %33, %35, %24 : vector<2x640xi1>, vector<2x640xi32>
    %c16_i32 = arith.constant 16 : i32
    %37 = vector.broadcast %c16_i32 : i32 to vector<2x640xi32>
    %38 = arith.cmpi eq, %36, %37 : vector<2x640xi32>
    %cst_20 = arith.constant 5.000000e-01 : f32
    %cst_21 = arith.constant 0.000000e+00 : f32
    %39 = vector.broadcast %cst_20 : f32 to vector<2x640xf32>
    %40 = vector.broadcast %cst_21 : f32 to vector<2x640xf32>
    %41 = arith.select %38, %39, %40 : vector<2x640xi1>, vector<2x640xf32>
    %42 = vector.extract_strided_slice %1 {offsets = [0, 0], sizes = [2, 1], strides = [1, 1]} : vector<2x8xf32> to vector<2x1xf32>
    %43 = arith.subf %42, %2 : vector<2x1xf32>
    %c64 = arith.constant 64 : index
    %c0_22 = arith.constant 0 : index
    %44 = vector.load %arg1[%c64, %c0_22] : memref<864x64xf32, #tpu.memory_space<vmem>>, vector<16x64xf32>
    %45 = vector.broadcast %42 : vector<2x1xf32> to vector<2x64xf32>
    %46 = vector.broadcast %4 : vector<1x64xf32> to vector<2x64xf32>
    %47 = arith.mulf %45, %46 : vector<2x64xf32>
    %cst_23 = arith.constant dense<0.000000e+00> : vector<2x64xf32>
    %48 = tpu.matmul %13, %44, %cst_23 {dimension_numbers = #tpu.dot_dimension_numbers<[1], [0], [0], [1], [0, 0, 1, 1], [], []>} : vector<2x16xf32>, vector<16x64xf32>, vector<2x64xf32> -> vector<2x64xf32>
    %49 = arith.addf %47, %48 : vector<2x64xf32>
    %50 = vector.broadcast %5 : vector<1x64xf32> to vector<2x64xf32>
    %51 = arith.addf %49, %50 : vector<2x64xf32>
    %52 = arith.negf %51 : vector<2x64xf32>
    %53 = math.exp %52 : vector<2x64xf32>
    %cst_24 = arith.constant 1.000000e+00 : f32
    %54 = vector.broadcast %cst_24 : f32 to vector<2x64xf32>
    %55 = arith.addf %54, %53 : vector<2x64xf32>
    %56 = arith.divf %54, %55 : vector<2x64xf32>
    %57 = math.tanh %51 : vector<2x64xf32>
    %58 = vector.extract_strided_slice %56 {offsets = [0, 0], sizes = [2, 16], strides = [1, 1]} : vector<2x64xf32> to vector<2x16xf32>
    %59 = vector.extract_strided_slice %56 {offsets = [0, 16], sizes = [2, 16], strides = [1, 1]} : vector<2x64xf32> to vector<2x16xf32>
    %60 = vector.extract_strided_slice %57 {offsets = [0, 32], sizes = [2, 16], strides = [1, 1]} : vector<2x64xf32> to vector<2x16xf32>
    %61 = vector.extract_strided_slice %56 {offsets = [0, 48], sizes = [2, 16], strides = [1, 1]} : vector<2x64xf32> to vector<2x16xf32>
    %62 = arith.mulf %59, %14 : vector<2x16xf32>
    %63 = arith.mulf %58, %60 : vector<2x16xf32>
    %64 = arith.addf %62, %63 : vector<2x16xf32>
    %65 = math.tanh %64 : vector<2x16xf32>
    %66 = arith.mulf %61, %65 : vector<2x16xf32>
    %c32_i32_25 = arith.constant 32 : i32
    %67 = tpu.dynamic_rotate %41 by %c32_i32_25 dim 1 : vector<2x640xf32>, i32 -> vector<2x640xf32>
    %cst_26 = arith.constant 0.000000e+00 : f32
    %68 = vector.broadcast %cst_26 : f32 to vector<2x624xf32>
    %69 = tpu.concatenate %66, %68 in 1 : vector<2x16xf32>, vector<2x624xf32> -> vector<2x640xf32>
    %c16_i32_27 = arith.constant 16 : i32
    %70 = vector.broadcast %c16_i32_27 : i32 to vector<2x640xi32>
    %71 = arith.cmpi slt, %20, %70 : vector<2x640xi32>
    %c16_i32_28 = arith.constant 16 : i32
    %72 = vector.broadcast %c16_i32_28 : i32 to vector<2x640xi32>
    %73 = arith.cmpi eq, %20, %72 : vector<2x640xi32>
    %c32_i32_29 = arith.constant 32 : i32
    %74 = vector.broadcast %c32_i32_29 : i32 to vector<2x640xi32>
    %75 = arith.cmpi slt, %20, %74 : vector<2x640xi32>
    %cst_30 = arith.constant 0.000000e+00 : f32
    %76 = vector.broadcast %cst_30 : f32 to vector<2x640xf32>
    %77 = arith.select %75, %76, %67 : vector<2x640xi1>, vector<2x640xf32>
    %78 = vector.shape_cast %43 : vector<2x1xf32> to vector<2x1xf32>
    %79 = vector.broadcast %78 : vector<2x1xf32> to vector<2x640xf32>
    %80 = arith.select %73, %79, %77 : vector<2x640xi1>, vector<2x640xf32>
    %81 = arith.select %71, %69, %80 : vector<2x640xi1>, vector<2x640xf32>
    %c224 = arith.constant 224 : index
    %c0_31 = arith.constant 0 : index
    %82 = vector.load %arg1[%c224, %c0_31] : memref<864x64xf32, #tpu.memory_space<vmem>>, vector<640x64xf32>
    %cst_32 = arith.constant dense<0.000000e+00> : vector<2x64xf32>
    %83 = tpu.matmul %81, %82, %cst_32 {dimension_numbers = #tpu.dot_dimension_numbers<[1], [0], [0], [1], [0, 0, 1, 1], [], []>} : vector<2x640xf32>, vector<640x64xf32>, vector<2x64xf32> -> vector<2x64xf32>
    %84 = vector.broadcast %6 : vector<1x64xf32> to vector<2x64xf32>
    %85 = arith.addf %83, %84 : vector<2x64xf32>
    %cst_33 = arith.constant 0.000000e+00 : f32
    %86 = vector.broadcast %cst_33 : f32 to vector<2x64xf32>
    %87 = arith.maximumf %85, %86 : vector<2x64xf32>
    %c96 = arith.constant 96 : index
    %c0_34 = arith.constant 0 : index
    %88 = vector.load %arg1[%c96, %c0_34] : memref<864x64xf32, #tpu.memory_space<vmem>>, vector<64x64xf32>
    %cst_35 = arith.constant dense<0.000000e+00> : vector<2x64xf32>
    %89 = tpu.matmul %87, %88, %cst_35 {dimension_numbers = #tpu.dot_dimension_numbers<[1], [0], [0], [1], [0, 0, 1, 1], [], []>} : vector<2x64xf32>, vector<64x64xf32>, vector<2x64xf32> -> vector<2x64xf32>
    %90 = vector.extract_strided_slice %89 {offsets = [0, 0], sizes = [2, 16], strides = [1, 1]} : vector<2x64xf32> to vector<2x16xf32>
    %91 = vector.broadcast %9 : vector<1x16xf32> to vector<2x16xf32>
    %92 = arith.addf %90, %91 : vector<2x16xf32>
    %cst_36 = arith.constant 0.000000e+00 : f32
    %93 = vector.broadcast %cst_36 : f32 to vector<2x16xf32>
    %94 = arith.maximumf %92, %93 : vector<2x16xf32>
    %c160 = arith.constant 160 : index
    %c0_37 = arith.constant 0 : index
    %95 = vector.load %arg1[%c160, %c0_37] : memref<864x64xf32, #tpu.memory_space<vmem>>, vector<32x64xf32>
    %96 = tpu.concatenate %94, %15 in 1 : vector<2x16xf32>, vector<2x16xf32> -> vector<2x32xf32>
    %cst_38 = arith.constant dense<0.000000e+00> : vector<2x64xf32>
    %97 = tpu.matmul %96, %95, %cst_38 {dimension_numbers = #tpu.dot_dimension_numbers<[1], [0], [0], [1], [0, 0, 1, 1], [], []>} : vector<2x32xf32>, vector<32x64xf32>, vector<2x64xf32> -> vector<2x64xf32>
    %98 = vector.broadcast %11 : vector<1x64xf32> to vector<2x64xf32>
    %99 = arith.addf %97, %98 : vector<2x64xf32>
    %100 = arith.negf %99 : vector<2x64xf32>
    %101 = math.exp %100 : vector<2x64xf32>
    %cst_39 = arith.constant 1.000000e+00 : f32
    %102 = vector.broadcast %cst_39 : f32 to vector<2x64xf32>
    %103 = arith.addf %102, %101 : vector<2x64xf32>
    %104 = arith.divf %102, %103 : vector<2x64xf32>
    %105 = math.tanh %99 : vector<2x64xf32>
    %106 = vector.extract_strided_slice %104 {offsets = [0, 0], sizes = [2, 16], strides = [1, 1]} : vector<2x64xf32> to vector<2x16xf32>
    %107 = vector.extract_strided_slice %104 {offsets = [0, 16], sizes = [2, 16], strides = [1, 1]} : vector<2x64xf32> to vector<2x16xf32>
    %108 = vector.extract_strided_slice %105 {offsets = [0, 32], sizes = [2, 16], strides = [1, 1]} : vector<2x64xf32> to vector<2x16xf32>
    %109 = vector.extract_strided_slice %104 {offsets = [0, 48], sizes = [2, 16], strides = [1, 1]} : vector<2x64xf32> to vector<2x16xf32>
    %110 = arith.mulf %107, %17 : vector<2x16xf32>
    %111 = arith.mulf %106, %108 : vector<2x16xf32>
    %112 = arith.addf %110, %111 : vector<2x16xf32>
    %113 = math.tanh %112 : vector<2x16xf32>
    %114 = arith.mulf %109, %113 : vector<2x16xf32>
    %c192 = arith.constant 192 : index
    %c0_40 = arith.constant 0 : index
    %115 = vector.load %arg1[%c192, %c0_40] : memref<864x64xf32, #tpu.memory_space<vmem>>, vector<32x64xf32>
    %116 = tpu.concatenate %114, %16 in 1 : vector<2x16xf32>, vector<2x16xf32> -> vector<2x32xf32>
    %cst_41 = arith.constant dense<0.000000e+00> : vector<2x64xf32>
    %117 = tpu.matmul %116, %115, %cst_41 {dimension_numbers = #tpu.dot_dimension_numbers<[1], [0], [0], [1], [0, 0, 1, 1], [], []>} : vector<2x32xf32>, vector<32x64xf32>, vector<2x64xf32> -> vector<2x64xf32>
    %118 = vector.broadcast %12 : vector<1x64xf32> to vector<2x64xf32>
    %119 = arith.addf %117, %118 : vector<2x64xf32>
    %120 = arith.negf %119 : vector<2x64xf32>
    %121 = math.exp %120 : vector<2x64xf32>
    %cst_42 = arith.constant 1.000000e+00 : f32
    %122 = vector.broadcast %cst_42 : f32 to vector<2x64xf32>
    %123 = arith.addf %122, %121 : vector<2x64xf32>
    %124 = arith.divf %122, %123 : vector<2x64xf32>
    %125 = math.tanh %119 : vector<2x64xf32>
    %126 = vector.extract_strided_slice %124 {offsets = [0, 0], sizes = [2, 16], strides = [1, 1]} : vector<2x64xf32> to vector<2x16xf32>
    %127 = vector.extract_strided_slice %124 {offsets = [0, 16], sizes = [2, 16], strides = [1, 1]} : vector<2x64xf32> to vector<2x16xf32>
    %128 = vector.extract_strided_slice %125 {offsets = [0, 32], sizes = [2, 16], strides = [1, 1]} : vector<2x64xf32> to vector<2x16xf32>
    %129 = vector.extract_strided_slice %124 {offsets = [0, 48], sizes = [2, 16], strides = [1, 1]} : vector<2x64xf32> to vector<2x16xf32>
    %130 = arith.mulf %127, %18 : vector<2x16xf32>
    %131 = arith.mulf %126, %128 : vector<2x16xf32>
    %132 = arith.addf %130, %131 : vector<2x16xf32>
    %133 = math.tanh %132 : vector<2x16xf32>
    %134 = arith.mulf %129, %133 : vector<2x16xf32>
    %c80 = arith.constant 80 : index
    %c0_43 = arith.constant 0 : index
    %135 = vector.load %arg1[%c80, %c0_43] : memref<864x64xf32, #tpu.memory_space<vmem>>, vector<16x64xf32>
    %cst_44 = arith.constant dense<0.000000e+00> : vector<2x64xf32>
    %136 = tpu.matmul %134, %135, %cst_44 {dimension_numbers = #tpu.dot_dimension_numbers<[1], [0], [0], [1], [0, 0, 1, 1], [], []>} : vector<2x16xf32>, vector<16x64xf32>, vector<2x64xf32> -> vector<2x64xf32>
    %137 = vector.extract_strided_slice %136 {offsets = [0, 0], sizes = [2, 16], strides = [1, 1]} : vector<2x64xf32> to vector<2x16xf32>
    %138 = vector.broadcast %10 : vector<1x16xf32> to vector<2x16xf32>
    %139 = arith.addf %137, %138 : vector<2x16xf32>
    %cst_45 = arith.constant dense<0xFF800000> : vector<2xf32>
    %140 = vector.multi_reduction <maximumf>, %139, %cst_45 [1] : vector<2x16xf32> to vector<2xf32>
    %cst_46 = arith.constant 0xFF800000 : f32
    %141 = vector.broadcast %cst_46 : f32 to vector<2xf32>
    %142 = arith.maximumf %141, %140 : vector<2xf32>
    %143 = vector.shape_cast %142 : vector<2xf32> to vector<2x1xf32>
    %144 = vector.broadcast %143 : vector<2x1xf32> to vector<2x16xf32>
    %145 = arith.subf %139, %144 : vector<2x16xf32>
    %146 = math.exp %145 : vector<2x16xf32>
    %cst_47 = arith.constant dense<0.000000e+00> : vector<2xf32>
    %147 = vector.multi_reduction <add>, %146, %cst_47 [1] : vector<2x16xf32> to vector<2xf32>
    %148 = vector.shape_cast %147 : vector<2xf32> to vector<2x1xf32>
    %149 = vector.broadcast %148 : vector<2x1xf32> to vector<2x16xf32>
    %150 = arith.divf %146, %149 : vector<2x16xf32>
    %cst_48 = arith.constant 4.000000e+00 : f32
    %151 = vector.broadcast %cst_48 : f32 to vector<2x16xf32>
    %152 = arith.mulf %150, %151 : vector<2x16xf32>
    %153 = math.absf %43 : vector<2x1xf32>
    %154 = arith.addf %19, %153 : vector<2x1xf32>
    %cst_49 = arith.constant 4.500000e+00 : f32
    %155 = vector.broadcast %cst_49 : f32 to vector<2x1xf32>
    %156 = arith.addf %154, %155 : vector<2x1xf32>
    %cst_50 = arith.constant 2.500000e-01 : f32
    %157 = vector.broadcast %cst_50 : f32 to vector<2x1xf32>
    %158 = arith.mulf %156, %157 : vector<2x1xf32>
    %cst_51 = arith.constant 1.000000e+00 : f32
    %159 = vector.broadcast %cst_51 : f32 to vector<2x1xf32>
    %160 = arith.minimumf %158, %159 : vector<2x1xf32>
    %161 = vector.broadcast %160 : vector<2x1xf32> to vector<2x16xf32>
    %162 = arith.mulf %152, %161 : vector<2x16xf32>
    %cst_52 = arith.constant 1.000000e+00 : f32
    %163 = vector.broadcast %cst_52 : f32 to vector<2x1xf32>
    %164 = arith.subf %163, %160 : vector<2x1xf32>
    %165 = vector.broadcast %164 : vector<2x1xf32> to vector<2x16xf32>
    %166 = arith.mulf %3, %165 : vector<2x16xf32>
    %167 = arith.addf %162, %166 : vector<2x16xf32>
    %168 = arith.mulf %167, %66 : vector<2x16xf32>
    %169 = arith.mulf %167, %64 : vector<2x16xf32>
    %170 = vector.broadcast %7 : vector<1x16xf32> to vector<2x16xf32>
    %171 = arith.mulf %168, %170 : vector<2x16xf32>
    %172 = vector.broadcast %8 : vector<1x16xf32> to vector<2x16xf32>
    %173 = arith.mulf %167, %172 : vector<2x16xf32>
    %174 = arith.addf %171, %173 : vector<2x16xf32>
    %cst_53 = arith.constant dense<0.000000e+00> : vector<2xf32>
    %175 = vector.multi_reduction <add>, %174, %cst_53 [1] : vector<2x16xf32> to vector<2xf32>
    %176 = vector.shape_cast %175 : vector<2xf32> to vector<2x1xf32>
    %177 = vector.extract_strided_slice %169 {offsets = [0, 0], sizes = [2, 4], strides = [1, 1]} : vector<2x16xf32> to vector<2x4xf32>
    %178 = vector.extract_strided_slice %169 {offsets = [0, 4], sizes = [2, 4], strides = [1, 1]} : vector<2x16xf32> to vector<2x4xf32>
    %179 = arith.addf %177, %178 : vector<2x4xf32>
    %180 = vector.extract_strided_slice %169 {offsets = [0, 8], sizes = [2, 4], strides = [1, 1]} : vector<2x16xf32> to vector<2x4xf32>
    %181 = arith.addf %179, %180 : vector<2x4xf32>
    %182 = vector.extract_strided_slice %169 {offsets = [0, 12], sizes = [2, 4], strides = [1, 1]} : vector<2x16xf32> to vector<2x4xf32>
    %183 = arith.addf %181, %182 : vector<2x4xf32>
    %184 = tpu.concatenate %183, %183, %183, %183 in 1 : vector<2x4xf32>, vector<2x4xf32>, vector<2x4xf32>, vector<2x4xf32> -> vector<2x16xf32>
    %185 = vector.extract_strided_slice %1 {offsets = [0, 1], sizes = [2, 1], strides = [1, 1]} : vector<2x8xf32> to vector<2x1xf32>
    %186 = arith.subf %185, %176 : vector<2x1xf32>
    %c64_54 = arith.constant 64 : index
    %c0_55 = arith.constant 0 : index
    %187 = vector.load %arg1[%c64_54, %c0_55] : memref<864x64xf32, #tpu.memory_space<vmem>>, vector<16x64xf32>
    %188 = vector.broadcast %185 : vector<2x1xf32> to vector<2x64xf32>
    %189 = vector.broadcast %4 : vector<1x64xf32> to vector<2x64xf32>
    %190 = arith.mulf %188, %189 : vector<2x64xf32>
    %cst_56 = arith.constant dense<0.000000e+00> : vector<2x64xf32>
    %191 = tpu.matmul %168, %187, %cst_56 {dimension_numbers = #tpu.dot_dimension_numbers<[1], [0], [0], [1], [0, 0, 1, 1], [], []>} : vector<2x16xf32>, vector<16x64xf32>, vector<2x64xf32> -> vector<2x64xf32>
    %192 = arith.addf %190, %191 : vector<2x64xf32>
    %193 = vector.broadcast %5 : vector<1x64xf32> to vector<2x64xf32>
    %194 = arith.addf %192, %193 : vector<2x64xf32>
    %195 = arith.negf %194 : vector<2x64xf32>
    %196 = math.exp %195 : vector<2x64xf32>
    %cst_57 = arith.constant 1.000000e+00 : f32
    %197 = vector.broadcast %cst_57 : f32 to vector<2x64xf32>
    %198 = arith.addf %197, %196 : vector<2x64xf32>
    %199 = arith.divf %197, %198 : vector<2x64xf32>
    %200 = math.tanh %194 : vector<2x64xf32>
    %201 = vector.extract_strided_slice %199 {offsets = [0, 0], sizes = [2, 16], strides = [1, 1]} : vector<2x64xf32> to vector<2x16xf32>
    %202 = vector.extract_strided_slice %199 {offsets = [0, 16], sizes = [2, 16], strides = [1, 1]} : vector<2x64xf32> to vector<2x16xf32>
    %203 = vector.extract_strided_slice %200 {offsets = [0, 32], sizes = [2, 16], strides = [1, 1]} : vector<2x64xf32> to vector<2x16xf32>
    %204 = vector.extract_strided_slice %199 {offsets = [0, 48], sizes = [2, 16], strides = [1, 1]} : vector<2x64xf32> to vector<2x16xf32>
    %205 = arith.mulf %202, %184 : vector<2x16xf32>
    %206 = arith.mulf %201, %203 : vector<2x16xf32>
    %207 = arith.addf %205, %206 : vector<2x16xf32>
    %208 = math.tanh %207 : vector<2x16xf32>
    %209 = arith.mulf %204, %208 : vector<2x16xf32>
    %c32_i32_58 = arith.constant 32 : i32
    %210 = tpu.dynamic_rotate %81 by %c32_i32_58 dim 1 : vector<2x640xf32>, i32 -> vector<2x640xf32>
    %cst_59 = arith.constant 0.000000e+00 : f32
    %211 = vector.broadcast %cst_59 : f32 to vector<2x624xf32>
    %212 = tpu.concatenate %209, %211 in 1 : vector<2x16xf32>, vector<2x624xf32> -> vector<2x640xf32>
    %c16_i32_60 = arith.constant 16 : i32
    %213 = vector.broadcast %c16_i32_60 : i32 to vector<2x640xi32>
    %214 = arith.cmpi slt, %20, %213 : vector<2x640xi32>
    %c16_i32_61 = arith.constant 16 : i32
    %215 = vector.broadcast %c16_i32_61 : i32 to vector<2x640xi32>
    %216 = arith.cmpi eq, %20, %215 : vector<2x640xi32>
    %c32_i32_62 = arith.constant 32 : i32
    %217 = vector.broadcast %c32_i32_62 : i32 to vector<2x640xi32>
    %218 = arith.cmpi slt, %20, %217 : vector<2x640xi32>
    %cst_63 = arith.constant 0.000000e+00 : f32
    %219 = vector.broadcast %cst_63 : f32 to vector<2x640xf32>
    %220 = arith.select %218, %219, %210 : vector<2x640xi1>, vector<2x640xf32>
    %221 = vector.shape_cast %186 : vector<2x1xf32> to vector<2x1xf32>
    %222 = vector.broadcast %221 : vector<2x1xf32> to vector<2x640xf32>
    %223 = arith.select %216, %222, %220 : vector<2x640xi1>, vector<2x640xf32>
    %224 = arith.select %214, %212, %223 : vector<2x640xi1>, vector<2x640xf32>
    %c224_64 = arith.constant 224 : index
    %c0_65 = arith.constant 0 : index
    %225 = vector.load %arg1[%c224_64, %c0_65] : memref<864x64xf32, #tpu.memory_space<vmem>>, vector<640x64xf32>
    %cst_66 = arith.constant dense<0.000000e+00> : vector<2x64xf32>
    %226 = tpu.matmul %224, %225, %cst_66 {dimension_numbers = #tpu.dot_dimension_numbers<[1], [0], [0], [1], [0, 0, 1, 1], [], []>} : vector<2x640xf32>, vector<640x64xf32>, vector<2x64xf32> -> vector<2x64xf32>
    %227 = vector.broadcast %6 : vector<1x64xf32> to vector<2x64xf32>
    %228 = arith.addf %226, %227 : vector<2x64xf32>
    %cst_67 = arith.constant 0.000000e+00 : f32
    %229 = vector.broadcast %cst_67 : f32 to vector<2x64xf32>
    %230 = arith.maximumf %228, %229 : vector<2x64xf32>
    %c96_68 = arith.constant 96 : index
    %c0_69 = arith.constant 0 : index
    %231 = vector.load %arg1[%c96_68, %c0_69] : memref<864x64xf32, #tpu.memory_space<vmem>>, vector<64x64xf32>
    %cst_70 = arith.constant dense<0.000000e+00> : vector<2x64xf32>
    %232 = tpu.matmul %230, %231, %cst_70 {dimension_numbers = #tpu.dot_dimension_numbers<[1], [0], [0], [1], [0, 0, 1, 1], [], []>} : vector<2x64xf32>, vector<64x64xf32>, vector<2x64xf32> -> vector<2x64xf32>
    %233 = vector.extract_strided_slice %232 {offsets = [0, 0], sizes = [2, 16], strides = [1, 1]} : vector<2x64xf32> to vector<2x16xf32>
    %234 = vector.broadcast %9 : vector<1x16xf32> to vector<2x16xf32>
    %235 = arith.addf %233, %234 : vector<2x16xf32>
    %cst_71 = arith.constant 0.000000e+00 : f32
    %236 = vector.broadcast %cst_71 : f32 to vector<2x16xf32>
    %237 = arith.maximumf %235, %236 : vector<2x16xf32>
    %c160_72 = arith.constant 160 : index
    %c0_73 = arith.constant 0 : index
    %238 = vector.load %arg1[%c160_72, %c0_73] : memref<864x64xf32, #tpu.memory_space<vmem>>, vector<32x64xf32>
    %239 = tpu.concatenate %237, %114 in 1 : vector<2x16xf32>, vector<2x16xf32> -> vector<2x32xf32>
    %cst_74 = arith.constant dense<0.000000e+00> : vector<2x64xf32>
    %240 = tpu.matmul %239, %238, %cst_74 {dimension_numbers = #tpu.dot_dimension_numbers<[1], [0], [0], [1], [0, 0, 1, 1], [], []>} : vector<2x32xf32>, vector<32x64xf32>, vector<2x64xf32> -> vector<2x64xf32>
    %241 = vector.broadcast %11 : vector<1x64xf32> to vector<2x64xf32>
    %242 = arith.addf %240, %241 : vector<2x64xf32>
    %243 = arith.negf %242 : vector<2x64xf32>
    %244 = math.exp %243 : vector<2x64xf32>
    %cst_75 = arith.constant 1.000000e+00 : f32
    %245 = vector.broadcast %cst_75 : f32 to vector<2x64xf32>
    %246 = arith.addf %245, %244 : vector<2x64xf32>
    %247 = arith.divf %245, %246 : vector<2x64xf32>
    %248 = math.tanh %242 : vector<2x64xf32>
    %249 = vector.extract_strided_slice %247 {offsets = [0, 0], sizes = [2, 16], strides = [1, 1]} : vector<2x64xf32> to vector<2x16xf32>
    %250 = vector.extract_strided_slice %247 {offsets = [0, 16], sizes = [2, 16], strides = [1, 1]} : vector<2x64xf32> to vector<2x16xf32>
    %251 = vector.extract_strided_slice %248 {offsets = [0, 32], sizes = [2, 16], strides = [1, 1]} : vector<2x64xf32> to vector<2x16xf32>
    %252 = vector.extract_strided_slice %247 {offsets = [0, 48], sizes = [2, 16], strides = [1, 1]} : vector<2x64xf32> to vector<2x16xf32>
    %253 = arith.mulf %250, %112 : vector<2x16xf32>
    %254 = arith.mulf %249, %251 : vector<2x16xf32>
    %255 = arith.addf %253, %254 : vector<2x16xf32>
    %256 = math.tanh %255 : vector<2x16xf32>
    %257 = arith.mulf %252, %256 : vector<2x16xf32>
    %c192_76 = arith.constant 192 : index
    %c0_77 = arith.constant 0 : index
    %258 = vector.load %arg1[%c192_76, %c0_77] : memref<864x64xf32, #tpu.memory_space<vmem>>, vector<32x64xf32>
    %259 = tpu.concatenate %257, %134 in 1 : vector<2x16xf32>, vector<2x16xf32> -> vector<2x32xf32>
    %cst_78 = arith.constant dense<0.000000e+00> : vector<2x64xf32>
    %260 = tpu.matmul %259, %258, %cst_78 {dimension_numbers = #tpu.dot_dimension_numbers<[1], [0], [0], [1], [0, 0, 1, 1], [], []>} : vector<2x32xf32>, vector<32x64xf32>, vector<2x64xf32> -> vector<2x64xf32>
    %261 = vector.broadcast %12 : vector<1x64xf32> to vector<2x64xf32>
    %262 = arith.addf %260, %261 : vector<2x64xf32>
    %263 = arith.negf %262 : vector<2x64xf32>
    %264 = math.exp %263 : vector<2x64xf32>
    %cst_79 = arith.constant 1.000000e+00 : f32
    %265 = vector.broadcast %cst_79 : f32 to vector<2x64xf32>
    %266 = arith.addf %265, %264 : vector<2x64xf32>
    %267 = arith.divf %265, %266 : vector<2x64xf32>
    %268 = math.tanh %262 : vector<2x64xf32>
    %269 = vector.extract_strided_slice %267 {offsets = [0, 0], sizes = [2, 16], strides = [1, 1]} : vector<2x64xf32> to vector<2x16xf32>
    %270 = vector.extract_strided_slice %267 {offsets = [0, 16], sizes = [2, 16], strides = [1, 1]} : vector<2x64xf32> to vector<2x16xf32>
    %271 = vector.extract_strided_slice %268 {offsets = [0, 32], sizes = [2, 16], strides = [1, 1]} : vector<2x64xf32> to vector<2x16xf32>
    %272 = vector.extract_strided_slice %267 {offsets = [0, 48], sizes = [2, 16], strides = [1, 1]} : vector<2x64xf32> to vector<2x16xf32>
    %273 = arith.mulf %270, %132 : vector<2x16xf32>
    %274 = arith.mulf %269, %271 : vector<2x16xf32>
    %275 = arith.addf %273, %274 : vector<2x16xf32>
    %276 = math.tanh %275 : vector<2x16xf32>
    %277 = arith.mulf %272, %276 : vector<2x16xf32>
    %c80_80 = arith.constant 80 : index
    %c0_81 = arith.constant 0 : index
    %278 = vector.load %arg1[%c80_80, %c0_81] : memref<864x64xf32, #tpu.memory_space<vmem>>, vector<16x64xf32>
    %cst_82 = arith.constant dense<0.000000e+00> : vector<2x64xf32>
    %279 = tpu.matmul %277, %278, %cst_82 {dimension_numbers = #tpu.dot_dimension_numbers<[1], [0], [0], [1], [0, 0, 1, 1], [], []>} : vector<2x16xf32>, vector<16x64xf32>, vector<2x64xf32> -> vector<2x64xf32>
    %280 = vector.extract_strided_slice %279 {offsets = [0, 0], sizes = [2, 16], strides = [1, 1]} : vector<2x64xf32> to vector<2x16xf32>
    %281 = vector.broadcast %10 : vector<1x16xf32> to vector<2x16xf32>
    %282 = arith.addf %280, %281 : vector<2x16xf32>
    %cst_83 = arith.constant dense<0xFF800000> : vector<2xf32>
    %283 = vector.multi_reduction <maximumf>, %282, %cst_83 [1] : vector<2x16xf32> to vector<2xf32>
    %cst_84 = arith.constant 0xFF800000 : f32
    %284 = vector.broadcast %cst_84 : f32 to vector<2xf32>
    %285 = arith.maximumf %284, %283 : vector<2xf32>
    %286 = vector.shape_cast %285 : vector<2xf32> to vector<2x1xf32>
    %287 = vector.broadcast %286 : vector<2x1xf32> to vector<2x16xf32>
    %288 = arith.subf %282, %287 : vector<2x16xf32>
    %289 = math.exp %288 : vector<2x16xf32>
    %cst_85 = arith.constant dense<0.000000e+00> : vector<2xf32>
    %290 = vector.multi_reduction <add>, %289, %cst_85 [1] : vector<2x16xf32> to vector<2xf32>
    %291 = vector.shape_cast %290 : vector<2xf32> to vector<2x1xf32>
    %292 = vector.broadcast %291 : vector<2x1xf32> to vector<2x16xf32>
    %293 = arith.divf %289, %292 : vector<2x16xf32>
    %cst_86 = arith.constant 4.000000e+00 : f32
    %294 = vector.broadcast %cst_86 : f32 to vector<2x16xf32>
    %295 = arith.mulf %293, %294 : vector<2x16xf32>
    %296 = math.absf %186 : vector<2x1xf32>
    %297 = arith.addf %154, %296 : vector<2x1xf32>
    %cst_87 = arith.constant 4.000000e+00 : f32
    %298 = vector.broadcast %cst_87 : f32 to vector<2x1xf32>
    %299 = arith.addf %297, %298 : vector<2x1xf32>
    %cst_88 = arith.constant 2.500000e-01 : f32
    %300 = vector.broadcast %cst_88 : f32 to vector<2x1xf32>
    %301 = arith.mulf %299, %300 : vector<2x1xf32>
    %cst_89 = arith.constant 1.000000e+00 : f32
    %302 = vector.broadcast %cst_89 : f32 to vector<2x1xf32>
    %303 = arith.minimumf %301, %302 : vector<2x1xf32>
    %304 = vector.broadcast %303 : vector<2x1xf32> to vector<2x16xf32>
    %305 = arith.mulf %295, %304 : vector<2x16xf32>
    %cst_90 = arith.constant 1.000000e+00 : f32
    %306 = vector.broadcast %cst_90 : f32 to vector<2x1xf32>
    %307 = arith.subf %306, %303 : vector<2x1xf32>
    %308 = vector.broadcast %307 : vector<2x1xf32> to vector<2x16xf32>
    %309 = arith.mulf %167, %308 : vector<2x16xf32>
    %310 = arith.addf %305, %309 : vector<2x16xf32>
    %311 = arith.mulf %310, %209 : vector<2x16xf32>
    %312 = arith.mulf %310, %207 : vector<2x16xf32>
    %313 = vector.broadcast %7 : vector<1x16xf32> to vector<2x16xf32>
    %314 = arith.mulf %311, %313 : vector<2x16xf32>
    %315 = vector.broadcast %8 : vector<1x16xf32> to vector<2x16xf32>
    %316 = arith.mulf %310, %315 : vector<2x16xf32>
    %317 = arith.addf %314, %316 : vector<2x16xf32>
    %cst_91 = arith.constant dense<0.000000e+00> : vector<2xf32>
    %318 = vector.multi_reduction <add>, %317, %cst_91 [1] : vector<2x16xf32> to vector<2xf32>
    %319 = vector.shape_cast %318 : vector<2xf32> to vector<2x1xf32>
    %320 = vector.extract_strided_slice %312 {offsets = [0, 0], sizes = [2, 4], strides = [1, 1]} : vector<2x16xf32> to vector<2x4xf32>
    %321 = vector.extract_strided_slice %312 {offsets = [0, 4], sizes = [2, 4], strides = [1, 1]} : vector<2x16xf32> to vector<2x4xf32>
    %322 = arith.addf %320, %321 : vector<2x4xf32>
    %323 = vector.extract_strided_slice %312 {offsets = [0, 8], sizes = [2, 4], strides = [1, 1]} : vector<2x16xf32> to vector<2x4xf32>
    %324 = arith.addf %322, %323 : vector<2x4xf32>
    %325 = vector.extract_strided_slice %312 {offsets = [0, 12], sizes = [2, 4], strides = [1, 1]} : vector<2x16xf32> to vector<2x4xf32>
    %326 = arith.addf %324, %325 : vector<2x4xf32>
    %327 = tpu.concatenate %326, %326, %326, %326 in 1 : vector<2x4xf32>, vector<2x4xf32>, vector<2x4xf32>, vector<2x4xf32> -> vector<2x16xf32>
    %328 = vector.extract_strided_slice %1 {offsets = [0, 2], sizes = [2, 1], strides = [1, 1]} : vector<2x8xf32> to vector<2x1xf32>
    %329 = arith.subf %328, %319 : vector<2x1xf32>
    %c64_92 = arith.constant 64 : index
    %c0_93 = arith.constant 0 : index
    %330 = vector.load %arg1[%c64_92, %c0_93] : memref<864x64xf32, #tpu.memory_space<vmem>>, vector<16x64xf32>
    %331 = vector.broadcast %328 : vector<2x1xf32> to vector<2x64xf32>
    %332 = vector.broadcast %4 : vector<1x64xf32> to vector<2x64xf32>
    %333 = arith.mulf %331, %332 : vector<2x64xf32>
    %cst_94 = arith.constant dense<0.000000e+00> : vector<2x64xf32>
    %334 = tpu.matmul %311, %330, %cst_94 {dimension_numbers = #tpu.dot_dimension_numbers<[1], [0], [0], [1], [0, 0, 1, 1], [], []>} : vector<2x16xf32>, vector<16x64xf32>, vector<2x64xf32> -> vector<2x64xf32>
    %335 = arith.addf %333, %334 : vector<2x64xf32>
    %336 = vector.broadcast %5 : vector<1x64xf32> to vector<2x64xf32>
    %337 = arith.addf %335, %336 : vector<2x64xf32>
    %338 = arith.negf %337 : vector<2x64xf32>
    %339 = math.exp %338 : vector<2x64xf32>
    %cst_95 = arith.constant 1.000000e+00 : f32
    %340 = vector.broadcast %cst_95 : f32 to vector<2x64xf32>
    %341 = arith.addf %340, %339 : vector<2x64xf32>
    %342 = arith.divf %340, %341 : vector<2x64xf32>
    %343 = math.tanh %337 : vector<2x64xf32>
    %344 = vector.extract_strided_slice %342 {offsets = [0, 0], sizes = [2, 16], strides = [1, 1]} : vector<2x64xf32> to vector<2x16xf32>
    %345 = vector.extract_strided_slice %342 {offsets = [0, 16], sizes = [2, 16], strides = [1, 1]} : vector<2x64xf32> to vector<2x16xf32>
    %346 = vector.extract_strided_slice %343 {offsets = [0, 32], sizes = [2, 16], strides = [1, 1]} : vector<2x64xf32> to vector<2x16xf32>
    %347 = vector.extract_strided_slice %342 {offsets = [0, 48], sizes = [2, 16], strides = [1, 1]} : vector<2x64xf32> to vector<2x16xf32>
    %348 = arith.mulf %345, %327 : vector<2x16xf32>
    %349 = arith.mulf %344, %346 : vector<2x16xf32>
    %350 = arith.addf %348, %349 : vector<2x16xf32>
    %351 = math.tanh %350 : vector<2x16xf32>
    %352 = arith.mulf %347, %351 : vector<2x16xf32>
    %c32_i32_96 = arith.constant 32 : i32
    %353 = tpu.dynamic_rotate %224 by %c32_i32_96 dim 1 : vector<2x640xf32>, i32 -> vector<2x640xf32>
    %cst_97 = arith.constant 0.000000e+00 : f32
    %354 = vector.broadcast %cst_97 : f32 to vector<2x624xf32>
    %355 = tpu.concatenate %352, %354 in 1 : vector<2x16xf32>, vector<2x624xf32> -> vector<2x640xf32>
    %c16_i32_98 = arith.constant 16 : i32
    %356 = vector.broadcast %c16_i32_98 : i32 to vector<2x640xi32>
    %357 = arith.cmpi slt, %20, %356 : vector<2x640xi32>
    %c16_i32_99 = arith.constant 16 : i32
    %358 = vector.broadcast %c16_i32_99 : i32 to vector<2x640xi32>
    %359 = arith.cmpi eq, %20, %358 : vector<2x640xi32>
    %c32_i32_100 = arith.constant 32 : i32
    %360 = vector.broadcast %c32_i32_100 : i32 to vector<2x640xi32>
    %361 = arith.cmpi slt, %20, %360 : vector<2x640xi32>
    %cst_101 = arith.constant 0.000000e+00 : f32
    %362 = vector.broadcast %cst_101 : f32 to vector<2x640xf32>
    %363 = arith.select %361, %362, %353 : vector<2x640xi1>, vector<2x640xf32>
    %364 = vector.shape_cast %329 : vector<2x1xf32> to vector<2x1xf32>
    %365 = vector.broadcast %364 : vector<2x1xf32> to vector<2x640xf32>
    %366 = arith.select %359, %365, %363 : vector<2x640xi1>, vector<2x640xf32>
    %367 = arith.select %357, %355, %366 : vector<2x640xi1>, vector<2x640xf32>
    %c224_102 = arith.constant 224 : index
    %c0_103 = arith.constant 0 : index
    %368 = vector.load %arg1[%c224_102, %c0_103] : memref<864x64xf32, #tpu.memory_space<vmem>>, vector<640x64xf32>
    %cst_104 = arith.constant dense<0.000000e+00> : vector<2x64xf32>
    %369 = tpu.matmul %367, %368, %cst_104 {dimension_numbers = #tpu.dot_dimension_numbers<[1], [0], [0], [1], [0, 0, 1, 1], [], []>} : vector<2x640xf32>, vector<640x64xf32>, vector<2x64xf32> -> vector<2x64xf32>
    %370 = vector.broadcast %6 : vector<1x64xf32> to vector<2x64xf32>
    %371 = arith.addf %369, %370 : vector<2x64xf32>
    %cst_105 = arith.constant 0.000000e+00 : f32
    %372 = vector.broadcast %cst_105 : f32 to vector<2x64xf32>
    %373 = arith.maximumf %371, %372 : vector<2x64xf32>
    %c96_106 = arith.constant 96 : index
    %c0_107 = arith.constant 0 : index
    %374 = vector.load %arg1[%c96_106, %c0_107] : memref<864x64xf32, #tpu.memory_space<vmem>>, vector<64x64xf32>
    %cst_108 = arith.constant dense<0.000000e+00> : vector<2x64xf32>
    %375 = tpu.matmul %373, %374, %cst_108 {dimension_numbers = #tpu.dot_dimension_numbers<[1], [0], [0], [1], [0, 0, 1, 1], [], []>} : vector<2x64xf32>, vector<64x64xf32>, vector<2x64xf32> -> vector<2x64xf32>
    %376 = vector.extract_strided_slice %375 {offsets = [0, 0], sizes = [2, 16], strides = [1, 1]} : vector<2x64xf32> to vector<2x16xf32>
    %377 = vector.broadcast %9 : vector<1x16xf32> to vector<2x16xf32>
    %378 = arith.addf %376, %377 : vector<2x16xf32>
    %cst_109 = arith.constant 0.000000e+00 : f32
    %379 = vector.broadcast %cst_109 : f32 to vector<2x16xf32>
    %380 = arith.maximumf %378, %379 : vector<2x16xf32>
    %c160_110 = arith.constant 160 : index
    %c0_111 = arith.constant 0 : index
    %381 = vector.load %arg1[%c160_110, %c0_111] : memref<864x64xf32, #tpu.memory_space<vmem>>, vector<32x64xf32>
    %382 = tpu.concatenate %380, %257 in 1 : vector<2x16xf32>, vector<2x16xf32> -> vector<2x32xf32>
    %cst_112 = arith.constant dense<0.000000e+00> : vector<2x64xf32>
    %383 = tpu.matmul %382, %381, %cst_112 {dimension_numbers = #tpu.dot_dimension_numbers<[1], [0], [0], [1], [0, 0, 1, 1], [], []>} : vector<2x32xf32>, vector<32x64xf32>, vector<2x64xf32> -> vector<2x64xf32>
    %384 = vector.broadcast %11 : vector<1x64xf32> to vector<2x64xf32>
    %385 = arith.addf %383, %384 : vector<2x64xf32>
    %386 = arith.negf %385 : vector<2x64xf32>
    %387 = math.exp %386 : vector<2x64xf32>
    %cst_113 = arith.constant 1.000000e+00 : f32
    %388 = vector.broadcast %cst_113 : f32 to vector<2x64xf32>
    %389 = arith.addf %388, %387 : vector<2x64xf32>
    %390 = arith.divf %388, %389 : vector<2x64xf32>
    %391 = math.tanh %385 : vector<2x64xf32>
    %392 = vector.extract_strided_slice %390 {offsets = [0, 0], sizes = [2, 16], strides = [1, 1]} : vector<2x64xf32> to vector<2x16xf32>
    %393 = vector.extract_strided_slice %390 {offsets = [0, 16], sizes = [2, 16], strides = [1, 1]} : vector<2x64xf32> to vector<2x16xf32>
    %394 = vector.extract_strided_slice %391 {offsets = [0, 32], sizes = [2, 16], strides = [1, 1]} : vector<2x64xf32> to vector<2x16xf32>
    %395 = vector.extract_strided_slice %390 {offsets = [0, 48], sizes = [2, 16], strides = [1, 1]} : vector<2x64xf32> to vector<2x16xf32>
    %396 = arith.mulf %393, %255 : vector<2x16xf32>
    %397 = arith.mulf %392, %394 : vector<2x16xf32>
    %398 = arith.addf %396, %397 : vector<2x16xf32>
    %399 = math.tanh %398 : vector<2x16xf32>
    %400 = arith.mulf %395, %399 : vector<2x16xf32>
    %c192_114 = arith.constant 192 : index
    %c0_115 = arith.constant 0 : index
    %401 = vector.load %arg1[%c192_114, %c0_115] : memref<864x64xf32, #tpu.memory_space<vmem>>, vector<32x64xf32>
    %402 = tpu.concatenate %400, %277 in 1 : vector<2x16xf32>, vector<2x16xf32> -> vector<2x32xf32>
    %cst_116 = arith.constant dense<0.000000e+00> : vector<2x64xf32>
    %403 = tpu.matmul %402, %401, %cst_116 {dimension_numbers = #tpu.dot_dimension_numbers<[1], [0], [0], [1], [0, 0, 1, 1], [], []>} : vector<2x32xf32>, vector<32x64xf32>, vector<2x64xf32> -> vector<2x64xf32>
    %404 = vector.broadcast %12 : vector<1x64xf32> to vector<2x64xf32>
    %405 = arith.addf %403, %404 : vector<2x64xf32>
    %406 = arith.negf %405 : vector<2x64xf32>
    %407 = math.exp %406 : vector<2x64xf32>
    %cst_117 = arith.constant 1.000000e+00 : f32
    %408 = vector.broadcast %cst_117 : f32 to vector<2x64xf32>
    %409 = arith.addf %408, %407 : vector<2x64xf32>
    %410 = arith.divf %408, %409 : vector<2x64xf32>
    %411 = math.tanh %405 : vector<2x64xf32>
    %412 = vector.extract_strided_slice %410 {offsets = [0, 0], sizes = [2, 16], strides = [1, 1]} : vector<2x64xf32> to vector<2x16xf32>
    %413 = vector.extract_strided_slice %410 {offsets = [0, 16], sizes = [2, 16], strides = [1, 1]} : vector<2x64xf32> to vector<2x16xf32>
    %414 = vector.extract_strided_slice %411 {offsets = [0, 32], sizes = [2, 16], strides = [1, 1]} : vector<2x64xf32> to vector<2x16xf32>
    %415 = vector.extract_strided_slice %410 {offsets = [0, 48], sizes = [2, 16], strides = [1, 1]} : vector<2x64xf32> to vector<2x16xf32>
    %416 = arith.mulf %413, %275 : vector<2x16xf32>
    %417 = arith.mulf %412, %414 : vector<2x16xf32>
    %418 = arith.addf %416, %417 : vector<2x16xf32>
    %419 = math.tanh %418 : vector<2x16xf32>
    %420 = arith.mulf %415, %419 : vector<2x16xf32>
    %c80_118 = arith.constant 80 : index
    %c0_119 = arith.constant 0 : index
    %421 = vector.load %arg1[%c80_118, %c0_119] : memref<864x64xf32, #tpu.memory_space<vmem>>, vector<16x64xf32>
    %cst_120 = arith.constant dense<0.000000e+00> : vector<2x64xf32>
    %422 = tpu.matmul %420, %421, %cst_120 {dimension_numbers = #tpu.dot_dimension_numbers<[1], [0], [0], [1], [0, 0, 1, 1], [], []>} : vector<2x16xf32>, vector<16x64xf32>, vector<2x64xf32> -> vector<2x64xf32>
    %423 = vector.extract_strided_slice %422 {offsets = [0, 0], sizes = [2, 16], strides = [1, 1]} : vector<2x64xf32> to vector<2x16xf32>
    %424 = vector.broadcast %10 : vector<1x16xf32> to vector<2x16xf32>
    %425 = arith.addf %423, %424 : vector<2x16xf32>
    %cst_121 = arith.constant dense<0xFF800000> : vector<2xf32>
    %426 = vector.multi_reduction <maximumf>, %425, %cst_121 [1] : vector<2x16xf32> to vector<2xf32>
    %cst_122 = arith.constant 0xFF800000 : f32
    %427 = vector.broadcast %cst_122 : f32 to vector<2xf32>
    %428 = arith.maximumf %427, %426 : vector<2xf32>
    %429 = vector.shape_cast %428 : vector<2xf32> to vector<2x1xf32>
    %430 = vector.broadcast %429 : vector<2x1xf32> to vector<2x16xf32>
    %431 = arith.subf %425, %430 : vector<2x16xf32>
    %432 = math.exp %431 : vector<2x16xf32>
    %cst_123 = arith.constant dense<0.000000e+00> : vector<2xf32>
    %433 = vector.multi_reduction <add>, %432, %cst_123 [1] : vector<2x16xf32> to vector<2xf32>
    %434 = vector.shape_cast %433 : vector<2xf32> to vector<2x1xf32>
    %435 = vector.broadcast %434 : vector<2x1xf32> to vector<2x16xf32>
    %436 = arith.divf %432, %435 : vector<2x16xf32>
    %cst_124 = arith.constant 4.000000e+00 : f32
    %437 = vector.broadcast %cst_124 : f32 to vector<2x16xf32>
    %438 = arith.mulf %436, %437 : vector<2x16xf32>
    %439 = math.absf %329 : vector<2x1xf32>
    %440 = arith.addf %297, %439 : vector<2x1xf32>
    %cst_125 = arith.constant 3.500000e+00 : f32
    %441 = vector.broadcast %cst_125 : f32 to vector<2x1xf32>
    %442 = arith.addf %440, %441 : vector<2x1xf32>
    %cst_126 = arith.constant 2.500000e-01 : f32
    %443 = vector.broadcast %cst_126 : f32 to vector<2x1xf32>
    %444 = arith.mulf %442, %443 : vector<2x1xf32>
    %cst_127 = arith.constant 1.000000e+00 : f32
    %445 = vector.broadcast %cst_127 : f32 to vector<2x1xf32>
    %446 = arith.minimumf %444, %445 : vector<2x1xf32>
    %447 = vector.broadcast %446 : vector<2x1xf32> to vector<2x16xf32>
    %448 = arith.mulf %438, %447 : vector<2x16xf32>
    %cst_128 = arith.constant 1.000000e+00 : f32
    %449 = vector.broadcast %cst_128 : f32 to vector<2x1xf32>
    %450 = arith.subf %449, %446 : vector<2x1xf32>
    %451 = vector.broadcast %450 : vector<2x1xf32> to vector<2x16xf32>
    %452 = arith.mulf %310, %451 : vector<2x16xf32>
    %453 = arith.addf %448, %452 : vector<2x16xf32>
    %454 = arith.mulf %453, %352 : vector<2x16xf32>
    %455 = arith.mulf %453, %350 : vector<2x16xf32>
    %456 = vector.broadcast %7 : vector<1x16xf32> to vector<2x16xf32>
    %457 = arith.mulf %454, %456 : vector<2x16xf32>
    %458 = vector.broadcast %8 : vector<1x16xf32> to vector<2x16xf32>
    %459 = arith.mulf %453, %458 : vector<2x16xf32>
    %460 = arith.addf %457, %459 : vector<2x16xf32>
    %cst_129 = arith.constant dense<0.000000e+00> : vector<2xf32>
    %461 = vector.multi_reduction <add>, %460, %cst_129 [1] : vector<2x16xf32> to vector<2xf32>
    %462 = vector.shape_cast %461 : vector<2xf32> to vector<2x1xf32>
    %463 = vector.extract_strided_slice %455 {offsets = [0, 0], sizes = [2, 4], strides = [1, 1]} : vector<2x16xf32> to vector<2x4xf32>
    %464 = vector.extract_strided_slice %455 {offsets = [0, 4], sizes = [2, 4], strides = [1, 1]} : vector<2x16xf32> to vector<2x4xf32>
    %465 = arith.addf %463, %464 : vector<2x4xf32>
    %466 = vector.extract_strided_slice %455 {offsets = [0, 8], sizes = [2, 4], strides = [1, 1]} : vector<2x16xf32> to vector<2x4xf32>
    %467 = arith.addf %465, %466 : vector<2x4xf32>
    %468 = vector.extract_strided_slice %455 {offsets = [0, 12], sizes = [2, 4], strides = [1, 1]} : vector<2x16xf32> to vector<2x4xf32>
    %469 = arith.addf %467, %468 : vector<2x4xf32>
    %470 = tpu.concatenate %469, %469, %469, %469 in 1 : vector<2x4xf32>, vector<2x4xf32>, vector<2x4xf32>, vector<2x4xf32> -> vector<2x16xf32>
    %471 = vector.extract_strided_slice %1 {offsets = [0, 3], sizes = [2, 1], strides = [1, 1]} : vector<2x8xf32> to vector<2x1xf32>
    %472 = arith.subf %471, %462 : vector<2x1xf32>
    %c64_130 = arith.constant 64 : index
    %c0_131 = arith.constant 0 : index
    %473 = vector.load %arg1[%c64_130, %c0_131] : memref<864x64xf32, #tpu.memory_space<vmem>>, vector<16x64xf32>
    %474 = vector.broadcast %471 : vector<2x1xf32> to vector<2x64xf32>
    %475 = vector.broadcast %4 : vector<1x64xf32> to vector<2x64xf32>
    %476 = arith.mulf %474, %475 : vector<2x64xf32>
    %cst_132 = arith.constant dense<0.000000e+00> : vector<2x64xf32>
    %477 = tpu.matmul %454, %473, %cst_132 {dimension_numbers = #tpu.dot_dimension_numbers<[1], [0], [0], [1], [0, 0, 1, 1], [], []>} : vector<2x16xf32>, vector<16x64xf32>, vector<2x64xf32> -> vector<2x64xf32>
    %478 = arith.addf %476, %477 : vector<2x64xf32>
    %479 = vector.broadcast %5 : vector<1x64xf32> to vector<2x64xf32>
    %480 = arith.addf %478, %479 : vector<2x64xf32>
    %481 = arith.negf %480 : vector<2x64xf32>
    %482 = math.exp %481 : vector<2x64xf32>
    %cst_133 = arith.constant 1.000000e+00 : f32
    %483 = vector.broadcast %cst_133 : f32 to vector<2x64xf32>
    %484 = arith.addf %483, %482 : vector<2x64xf32>
    %485 = arith.divf %483, %484 : vector<2x64xf32>
    %486 = math.tanh %480 : vector<2x64xf32>
    %487 = vector.extract_strided_slice %485 {offsets = [0, 0], sizes = [2, 16], strides = [1, 1]} : vector<2x64xf32> to vector<2x16xf32>
    %488 = vector.extract_strided_slice %485 {offsets = [0, 16], sizes = [2, 16], strides = [1, 1]} : vector<2x64xf32> to vector<2x16xf32>
    %489 = vector.extract_strided_slice %486 {offsets = [0, 32], sizes = [2, 16], strides = [1, 1]} : vector<2x64xf32> to vector<2x16xf32>
    %490 = vector.extract_strided_slice %485 {offsets = [0, 48], sizes = [2, 16], strides = [1, 1]} : vector<2x64xf32> to vector<2x16xf32>
    %491 = arith.mulf %488, %470 : vector<2x16xf32>
    %492 = arith.mulf %487, %489 : vector<2x16xf32>
    %493 = arith.addf %491, %492 : vector<2x16xf32>
    %494 = math.tanh %493 : vector<2x16xf32>
    %495 = arith.mulf %490, %494 : vector<2x16xf32>
    %c32_i32_134 = arith.constant 32 : i32
    %496 = tpu.dynamic_rotate %367 by %c32_i32_134 dim 1 : vector<2x640xf32>, i32 -> vector<2x640xf32>
    %cst_135 = arith.constant 0.000000e+00 : f32
    %497 = vector.broadcast %cst_135 : f32 to vector<2x624xf32>
    %498 = tpu.concatenate %495, %497 in 1 : vector<2x16xf32>, vector<2x624xf32> -> vector<2x640xf32>
    %c16_i32_136 = arith.constant 16 : i32
    %499 = vector.broadcast %c16_i32_136 : i32 to vector<2x640xi32>
    %500 = arith.cmpi slt, %20, %499 : vector<2x640xi32>
    %c16_i32_137 = arith.constant 16 : i32
    %501 = vector.broadcast %c16_i32_137 : i32 to vector<2x640xi32>
    %502 = arith.cmpi eq, %20, %501 : vector<2x640xi32>
    %c32_i32_138 = arith.constant 32 : i32
    %503 = vector.broadcast %c32_i32_138 : i32 to vector<2x640xi32>
    %504 = arith.cmpi slt, %20, %503 : vector<2x640xi32>
    %cst_139 = arith.constant 0.000000e+00 : f32
    %505 = vector.broadcast %cst_139 : f32 to vector<2x640xf32>
    %506 = arith.select %504, %505, %496 : vector<2x640xi1>, vector<2x640xf32>
    %507 = vector.shape_cast %472 : vector<2x1xf32> to vector<2x1xf32>
    %508 = vector.broadcast %507 : vector<2x1xf32> to vector<2x640xf32>
    %509 = arith.select %502, %508, %506 : vector<2x640xi1>, vector<2x640xf32>
    %510 = arith.select %500, %498, %509 : vector<2x640xi1>, vector<2x640xf32>
    %c224_140 = arith.constant 224 : index
    %c0_141 = arith.constant 0 : index
    %511 = vector.load %arg1[%c224_140, %c0_141] : memref<864x64xf32, #tpu.memory_space<vmem>>, vector<640x64xf32>
    %cst_142 = arith.constant dense<0.000000e+00> : vector<2x64xf32>
    %512 = tpu.matmul %510, %511, %cst_142 {dimension_numbers = #tpu.dot_dimension_numbers<[1], [0], [0], [1], [0, 0, 1, 1], [], []>} : vector<2x640xf32>, vector<640x64xf32>, vector<2x64xf32> -> vector<2x64xf32>
    %513 = vector.broadcast %6 : vector<1x64xf32> to vector<2x64xf32>
    %514 = arith.addf %512, %513 : vector<2x64xf32>
    %cst_143 = arith.constant 0.000000e+00 : f32
    %515 = vector.broadcast %cst_143 : f32 to vector<2x64xf32>
    %516 = arith.maximumf %514, %515 : vector<2x64xf32>
    %c96_144 = arith.constant 96 : index
    %c0_145 = arith.constant 0 : index
    %517 = vector.load %arg1[%c96_144, %c0_145] : memref<864x64xf32, #tpu.memory_space<vmem>>, vector<64x64xf32>
    %cst_146 = arith.constant dense<0.000000e+00> : vector<2x64xf32>
    %518 = tpu.matmul %516, %517, %cst_146 {dimension_numbers = #tpu.dot_dimension_numbers<[1], [0], [0], [1], [0, 0, 1, 1], [], []>} : vector<2x64xf32>, vector<64x64xf32>, vector<2x64xf32> -> vector<2x64xf32>
    %519 = vector.extract_strided_slice %518 {offsets = [0, 0], sizes = [2, 16], strides = [1, 1]} : vector<2x64xf32> to vector<2x16xf32>
    %520 = vector.broadcast %9 : vector<1x16xf32> to vector<2x16xf32>
    %521 = arith.addf %519, %520 : vector<2x16xf32>
    %cst_147 = arith.constant 0.000000e+00 : f32
    %522 = vector.broadcast %cst_147 : f32 to vector<2x16xf32>
    %523 = arith.maximumf %521, %522 : vector<2x16xf32>
    %c160_148 = arith.constant 160 : index
    %c0_149 = arith.constant 0 : index
    %524 = vector.load %arg1[%c160_148, %c0_149] : memref<864x64xf32, #tpu.memory_space<vmem>>, vector<32x64xf32>
    %525 = tpu.concatenate %523, %400 in 1 : vector<2x16xf32>, vector<2x16xf32> -> vector<2x32xf32>
    %cst_150 = arith.constant dense<0.000000e+00> : vector<2x64xf32>
    %526 = tpu.matmul %525, %524, %cst_150 {dimension_numbers = #tpu.dot_dimension_numbers<[1], [0], [0], [1], [0, 0, 1, 1], [], []>} : vector<2x32xf32>, vector<32x64xf32>, vector<2x64xf32> -> vector<2x64xf32>
    %527 = vector.broadcast %11 : vector<1x64xf32> to vector<2x64xf32>
    %528 = arith.addf %526, %527 : vector<2x64xf32>
    %529 = arith.negf %528 : vector<2x64xf32>
    %530 = math.exp %529 : vector<2x64xf32>
    %cst_151 = arith.constant 1.000000e+00 : f32
    %531 = vector.broadcast %cst_151 : f32 to vector<2x64xf32>
    %532 = arith.addf %531, %530 : vector<2x64xf32>
    %533 = arith.divf %531, %532 : vector<2x64xf32>
    %534 = math.tanh %528 : vector<2x64xf32>
    %535 = vector.extract_strided_slice %533 {offsets = [0, 0], sizes = [2, 16], strides = [1, 1]} : vector<2x64xf32> to vector<2x16xf32>
    %536 = vector.extract_strided_slice %533 {offsets = [0, 16], sizes = [2, 16], strides = [1, 1]} : vector<2x64xf32> to vector<2x16xf32>
    %537 = vector.extract_strided_slice %534 {offsets = [0, 32], sizes = [2, 16], strides = [1, 1]} : vector<2x64xf32> to vector<2x16xf32>
    %538 = vector.extract_strided_slice %533 {offsets = [0, 48], sizes = [2, 16], strides = [1, 1]} : vector<2x64xf32> to vector<2x16xf32>
    %539 = arith.mulf %536, %398 : vector<2x16xf32>
    %540 = arith.mulf %535, %537 : vector<2x16xf32>
    %541 = arith.addf %539, %540 : vector<2x16xf32>
    %542 = math.tanh %541 : vector<2x16xf32>
    %543 = arith.mulf %538, %542 : vector<2x16xf32>
    %c192_152 = arith.constant 192 : index
    %c0_153 = arith.constant 0 : index
    %544 = vector.load %arg1[%c192_152, %c0_153] : memref<864x64xf32, #tpu.memory_space<vmem>>, vector<32x64xf32>
    %545 = tpu.concatenate %543, %420 in 1 : vector<2x16xf32>, vector<2x16xf32> -> vector<2x32xf32>
    %cst_154 = arith.constant dense<0.000000e+00> : vector<2x64xf32>
    %546 = tpu.matmul %545, %544, %cst_154 {dimension_numbers = #tpu.dot_dimension_numbers<[1], [0], [0], [1], [0, 0, 1, 1], [], []>} : vector<2x32xf32>, vector<32x64xf32>, vector<2x64xf32> -> vector<2x64xf32>
    %547 = vector.broadcast %12 : vector<1x64xf32> to vector<2x64xf32>
    %548 = arith.addf %546, %547 : vector<2x64xf32>
    %549 = arith.negf %548 : vector<2x64xf32>
    %550 = math.exp %549 : vector<2x64xf32>
    %cst_155 = arith.constant 1.000000e+00 : f32
    %551 = vector.broadcast %cst_155 : f32 to vector<2x64xf32>
    %552 = arith.addf %551, %550 : vector<2x64xf32>
    %553 = arith.divf %551, %552 : vector<2x64xf32>
    %554 = math.tanh %548 : vector<2x64xf32>
    %555 = vector.extract_strided_slice %553 {offsets = [0, 0], sizes = [2, 16], strides = [1, 1]} : vector<2x64xf32> to vector<2x16xf32>
    %556 = vector.extract_strided_slice %553 {offsets = [0, 16], sizes = [2, 16], strides = [1, 1]} : vector<2x64xf32> to vector<2x16xf32>
    %557 = vector.extract_strided_slice %554 {offsets = [0, 32], sizes = [2, 16], strides = [1, 1]} : vector<2x64xf32> to vector<2x16xf32>
    %558 = vector.extract_strided_slice %553 {offsets = [0, 48], sizes = [2, 16], strides = [1, 1]} : vector<2x64xf32> to vector<2x16xf32>
    %559 = arith.mulf %556, %418 : vector<2x16xf32>
    %560 = arith.mulf %555, %557 : vector<2x16xf32>
    %561 = arith.addf %559, %560 : vector<2x16xf32>
    %562 = math.tanh %561 : vector<2x16xf32>
    %563 = arith.mulf %558, %562 : vector<2x16xf32>
    %c80_156 = arith.constant 80 : index
    %c0_157 = arith.constant 0 : index
    %564 = vector.load %arg1[%c80_156, %c0_157] : memref<864x64xf32, #tpu.memory_space<vmem>>, vector<16x64xf32>
    %cst_158 = arith.constant dense<0.000000e+00> : vector<2x64xf32>
    %565 = tpu.matmul %563, %564, %cst_158 {dimension_numbers = #tpu.dot_dimension_numbers<[1], [0], [0], [1], [0, 0, 1, 1], [], []>} : vector<2x16xf32>, vector<16x64xf32>, vector<2x64xf32> -> vector<2x64xf32>
    %566 = vector.extract_strided_slice %565 {offsets = [0, 0], sizes = [2, 16], strides = [1, 1]} : vector<2x64xf32> to vector<2x16xf32>
    %567 = vector.broadcast %10 : vector<1x16xf32> to vector<2x16xf32>
    %568 = arith.addf %566, %567 : vector<2x16xf32>
    %cst_159 = arith.constant dense<0xFF800000> : vector<2xf32>
    %569 = vector.multi_reduction <maximumf>, %568, %cst_159 [1] : vector<2x16xf32> to vector<2xf32>
    %cst_160 = arith.constant 0xFF800000 : f32
    %570 = vector.broadcast %cst_160 : f32 to vector<2xf32>
    %571 = arith.maximumf %570, %569 : vector<2xf32>
    %572 = vector.shape_cast %571 : vector<2xf32> to vector<2x1xf32>
    %573 = vector.broadcast %572 : vector<2x1xf32> to vector<2x16xf32>
    %574 = arith.subf %568, %573 : vector<2x16xf32>
    %575 = math.exp %574 : vector<2x16xf32>
    %cst_161 = arith.constant dense<0.000000e+00> : vector<2xf32>
    %576 = vector.multi_reduction <add>, %575, %cst_161 [1] : vector<2x16xf32> to vector<2xf32>
    %577 = vector.shape_cast %576 : vector<2xf32> to vector<2x1xf32>
    %578 = vector.broadcast %577 : vector<2x1xf32> to vector<2x16xf32>
    %579 = arith.divf %575, %578 : vector<2x16xf32>
    %cst_162 = arith.constant 4.000000e+00 : f32
    %580 = vector.broadcast %cst_162 : f32 to vector<2x16xf32>
    %581 = arith.mulf %579, %580 : vector<2x16xf32>
    %582 = math.absf %472 : vector<2x1xf32>
    %583 = arith.addf %440, %582 : vector<2x1xf32>
    %cst_163 = arith.constant 3.000000e+00 : f32
    %584 = vector.broadcast %cst_163 : f32 to vector<2x1xf32>
    %585 = arith.addf %583, %584 : vector<2x1xf32>
    %cst_164 = arith.constant 2.500000e-01 : f32
    %586 = vector.broadcast %cst_164 : f32 to vector<2x1xf32>
    %587 = arith.mulf %585, %586 : vector<2x1xf32>
    %cst_165 = arith.constant 1.000000e+00 : f32
    %588 = vector.broadcast %cst_165 : f32 to vector<2x1xf32>
    %589 = arith.minimumf %587, %588 : vector<2x1xf32>
    %590 = vector.broadcast %589 : vector<2x1xf32> to vector<2x16xf32>
    %591 = arith.mulf %581, %590 : vector<2x16xf32>
    %cst_166 = arith.constant 1.000000e+00 : f32
    %592 = vector.broadcast %cst_166 : f32 to vector<2x1xf32>
    %593 = arith.subf %592, %589 : vector<2x1xf32>
    %594 = vector.broadcast %593 : vector<2x1xf32> to vector<2x16xf32>
    %595 = arith.mulf %453, %594 : vector<2x16xf32>
    %596 = arith.addf %591, %595 : vector<2x16xf32>
    %597 = arith.mulf %596, %495 : vector<2x16xf32>
    %598 = arith.mulf %596, %493 : vector<2x16xf32>
    %599 = vector.broadcast %7 : vector<1x16xf32> to vector<2x16xf32>
    %600 = arith.mulf %597, %599 : vector<2x16xf32>
    %601 = vector.broadcast %8 : vector<1x16xf32> to vector<2x16xf32>
    %602 = arith.mulf %596, %601 : vector<2x16xf32>
    %603 = arith.addf %600, %602 : vector<2x16xf32>
    %cst_167 = arith.constant dense<0.000000e+00> : vector<2xf32>
    %604 = vector.multi_reduction <add>, %603, %cst_167 [1] : vector<2x16xf32> to vector<2xf32>
    %605 = vector.shape_cast %604 : vector<2xf32> to vector<2x1xf32>
    %606 = vector.extract_strided_slice %598 {offsets = [0, 0], sizes = [2, 4], strides = [1, 1]} : vector<2x16xf32> to vector<2x4xf32>
    %607 = vector.extract_strided_slice %598 {offsets = [0, 4], sizes = [2, 4], strides = [1, 1]} : vector<2x16xf32> to vector<2x4xf32>
    %608 = arith.addf %606, %607 : vector<2x4xf32>
    %609 = vector.extract_strided_slice %598 {offsets = [0, 8], sizes = [2, 4], strides = [1, 1]} : vector<2x16xf32> to vector<2x4xf32>
    %610 = arith.addf %608, %609 : vector<2x4xf32>
    %611 = vector.extract_strided_slice %598 {offsets = [0, 12], sizes = [2, 4], strides = [1, 1]} : vector<2x16xf32> to vector<2x4xf32>
    %612 = arith.addf %610, %611 : vector<2x4xf32>
    %613 = tpu.concatenate %612, %612, %612, %612 in 1 : vector<2x4xf32>, vector<2x4xf32>, vector<2x4xf32>, vector<2x4xf32> -> vector<2x16xf32>
    %614 = vector.extract_strided_slice %1 {offsets = [0, 4], sizes = [2, 1], strides = [1, 1]} : vector<2x8xf32> to vector<2x1xf32>
    %615 = arith.subf %614, %605 : vector<2x1xf32>
    %c64_168 = arith.constant 64 : index
    %c0_169 = arith.constant 0 : index
    %616 = vector.load %arg1[%c64_168, %c0_169] : memref<864x64xf32, #tpu.memory_space<vmem>>, vector<16x64xf32>
    %617 = vector.broadcast %614 : vector<2x1xf32> to vector<2x64xf32>
    %618 = vector.broadcast %4 : vector<1x64xf32> to vector<2x64xf32>
    %619 = arith.mulf %617, %618 : vector<2x64xf32>
    %cst_170 = arith.constant dense<0.000000e+00> : vector<2x64xf32>
    %620 = tpu.matmul %597, %616, %cst_170 {dimension_numbers = #tpu.dot_dimension_numbers<[1], [0], [0], [1], [0, 0, 1, 1], [], []>} : vector<2x16xf32>, vector<16x64xf32>, vector<2x64xf32> -> vector<2x64xf32>
    %621 = arith.addf %619, %620 : vector<2x64xf32>
    %622 = vector.broadcast %5 : vector<1x64xf32> to vector<2x64xf32>
    %623 = arith.addf %621, %622 : vector<2x64xf32>
    %624 = arith.negf %623 : vector<2x64xf32>
    %625 = math.exp %624 : vector<2x64xf32>
    %cst_171 = arith.constant 1.000000e+00 : f32
    %626 = vector.broadcast %cst_171 : f32 to vector<2x64xf32>
    %627 = arith.addf %626, %625 : vector<2x64xf32>
    %628 = arith.divf %626, %627 : vector<2x64xf32>
    %629 = math.tanh %623 : vector<2x64xf32>
    %630 = vector.extract_strided_slice %628 {offsets = [0, 0], sizes = [2, 16], strides = [1, 1]} : vector<2x64xf32> to vector<2x16xf32>
    %631 = vector.extract_strided_slice %628 {offsets = [0, 16], sizes = [2, 16], strides = [1, 1]} : vector<2x64xf32> to vector<2x16xf32>
    %632 = vector.extract_strided_slice %629 {offsets = [0, 32], sizes = [2, 16], strides = [1, 1]} : vector<2x64xf32> to vector<2x16xf32>
    %633 = vector.extract_strided_slice %628 {offsets = [0, 48], sizes = [2, 16], strides = [1, 1]} : vector<2x64xf32> to vector<2x16xf32>
    %634 = arith.mulf %631, %613 : vector<2x16xf32>
    %635 = arith.mulf %630, %632 : vector<2x16xf32>
    %636 = arith.addf %634, %635 : vector<2x16xf32>
    %637 = math.tanh %636 : vector<2x16xf32>
    %638 = arith.mulf %633, %637 : vector<2x16xf32>
    %c32_i32_172 = arith.constant 32 : i32
    %639 = tpu.dynamic_rotate %510 by %c32_i32_172 dim 1 : vector<2x640xf32>, i32 -> vector<2x640xf32>
    %cst_173 = arith.constant 0.000000e+00 : f32
    %640 = vector.broadcast %cst_173 : f32 to vector<2x624xf32>
    %641 = tpu.concatenate %638, %640 in 1 : vector<2x16xf32>, vector<2x624xf32> -> vector<2x640xf32>
    %c16_i32_174 = arith.constant 16 : i32
    %642 = vector.broadcast %c16_i32_174 : i32 to vector<2x640xi32>
    %643 = arith.cmpi slt, %20, %642 : vector<2x640xi32>
    %c16_i32_175 = arith.constant 16 : i32
    %644 = vector.broadcast %c16_i32_175 : i32 to vector<2x640xi32>
    %645 = arith.cmpi eq, %20, %644 : vector<2x640xi32>
    %c32_i32_176 = arith.constant 32 : i32
    %646 = vector.broadcast %c32_i32_176 : i32 to vector<2x640xi32>
    %647 = arith.cmpi slt, %20, %646 : vector<2x640xi32>
    %cst_177 = arith.constant 0.000000e+00 : f32
    %648 = vector.broadcast %cst_177 : f32 to vector<2x640xf32>
    %649 = arith.select %647, %648, %639 : vector<2x640xi1>, vector<2x640xf32>
    %650 = vector.shape_cast %615 : vector<2x1xf32> to vector<2x1xf32>
    %651 = vector.broadcast %650 : vector<2x1xf32> to vector<2x640xf32>
    %652 = arith.select %645, %651, %649 : vector<2x640xi1>, vector<2x640xf32>
    %653 = arith.select %643, %641, %652 : vector<2x640xi1>, vector<2x640xf32>
    %c224_178 = arith.constant 224 : index
    %c0_179 = arith.constant 0 : index
    %654 = vector.load %arg1[%c224_178, %c0_179] : memref<864x64xf32, #tpu.memory_space<vmem>>, vector<640x64xf32>
    %cst_180 = arith.constant dense<0.000000e+00> : vector<2x64xf32>
    %655 = tpu.matmul %653, %654, %cst_180 {dimension_numbers = #tpu.dot_dimension_numbers<[1], [0], [0], [1], [0, 0, 1, 1], [], []>} : vector<2x640xf32>, vector<640x64xf32>, vector<2x64xf32> -> vector<2x64xf32>
    %656 = vector.broadcast %6 : vector<1x64xf32> to vector<2x64xf32>
    %657 = arith.addf %655, %656 : vector<2x64xf32>
    %cst_181 = arith.constant 0.000000e+00 : f32
    %658 = vector.broadcast %cst_181 : f32 to vector<2x64xf32>
    %659 = arith.maximumf %657, %658 : vector<2x64xf32>
    %c96_182 = arith.constant 96 : index
    %c0_183 = arith.constant 0 : index
    %660 = vector.load %arg1[%c96_182, %c0_183] : memref<864x64xf32, #tpu.memory_space<vmem>>, vector<64x64xf32>
    %cst_184 = arith.constant dense<0.000000e+00> : vector<2x64xf32>
    %661 = tpu.matmul %659, %660, %cst_184 {dimension_numbers = #tpu.dot_dimension_numbers<[1], [0], [0], [1], [0, 0, 1, 1], [], []>} : vector<2x64xf32>, vector<64x64xf32>, vector<2x64xf32> -> vector<2x64xf32>
    %662 = vector.extract_strided_slice %661 {offsets = [0, 0], sizes = [2, 16], strides = [1, 1]} : vector<2x64xf32> to vector<2x16xf32>
    %663 = vector.broadcast %9 : vector<1x16xf32> to vector<2x16xf32>
    %664 = arith.addf %662, %663 : vector<2x16xf32>
    %cst_185 = arith.constant 0.000000e+00 : f32
    %665 = vector.broadcast %cst_185 : f32 to vector<2x16xf32>
    %666 = arith.maximumf %664, %665 : vector<2x16xf32>
    %c160_186 = arith.constant 160 : index
    %c0_187 = arith.constant 0 : index
    %667 = vector.load %arg1[%c160_186, %c0_187] : memref<864x64xf32, #tpu.memory_space<vmem>>, vector<32x64xf32>
    %668 = tpu.concatenate %666, %543 in 1 : vector<2x16xf32>, vector<2x16xf32> -> vector<2x32xf32>
    %cst_188 = arith.constant dense<0.000000e+00> : vector<2x64xf32>
    %669 = tpu.matmul %668, %667, %cst_188 {dimension_numbers = #tpu.dot_dimension_numbers<[1], [0], [0], [1], [0, 0, 1, 1], [], []>} : vector<2x32xf32>, vector<32x64xf32>, vector<2x64xf32> -> vector<2x64xf32>
    %670 = vector.broadcast %11 : vector<1x64xf32> to vector<2x64xf32>
    %671 = arith.addf %669, %670 : vector<2x64xf32>
    %672 = arith.negf %671 : vector<2x64xf32>
    %673 = math.exp %672 : vector<2x64xf32>
    %cst_189 = arith.constant 1.000000e+00 : f32
    %674 = vector.broadcast %cst_189 : f32 to vector<2x64xf32>
    %675 = arith.addf %674, %673 : vector<2x64xf32>
    %676 = arith.divf %674, %675 : vector<2x64xf32>
    %677 = math.tanh %671 : vector<2x64xf32>
    %678 = vector.extract_strided_slice %676 {offsets = [0, 0], sizes = [2, 16], strides = [1, 1]} : vector<2x64xf32> to vector<2x16xf32>
    %679 = vector.extract_strided_slice %676 {offsets = [0, 16], sizes = [2, 16], strides = [1, 1]} : vector<2x64xf32> to vector<2x16xf32>
    %680 = vector.extract_strided_slice %677 {offsets = [0, 32], sizes = [2, 16], strides = [1, 1]} : vector<2x64xf32> to vector<2x16xf32>
    %681 = vector.extract_strided_slice %676 {offsets = [0, 48], sizes = [2, 16], strides = [1, 1]} : vector<2x64xf32> to vector<2x16xf32>
    %682 = arith.mulf %679, %541 : vector<2x16xf32>
    %683 = arith.mulf %678, %680 : vector<2x16xf32>
    %684 = arith.addf %682, %683 : vector<2x16xf32>
    %685 = math.tanh %684 : vector<2x16xf32>
    %686 = arith.mulf %681, %685 : vector<2x16xf32>
    %c192_190 = arith.constant 192 : index
    %c0_191 = arith.constant 0 : index
    %687 = vector.load %arg1[%c192_190, %c0_191] : memref<864x64xf32, #tpu.memory_space<vmem>>, vector<32x64xf32>
    %688 = tpu.concatenate %686, %563 in 1 : vector<2x16xf32>, vector<2x16xf32> -> vector<2x32xf32>
    %cst_192 = arith.constant dense<0.000000e+00> : vector<2x64xf32>
    %689 = tpu.matmul %688, %687, %cst_192 {dimension_numbers = #tpu.dot_dimension_numbers<[1], [0], [0], [1], [0, 0, 1, 1], [], []>} : vector<2x32xf32>, vector<32x64xf32>, vector<2x64xf32> -> vector<2x64xf32>
    %690 = vector.broadcast %12 : vector<1x64xf32> to vector<2x64xf32>
    %691 = arith.addf %689, %690 : vector<2x64xf32>
    %692 = arith.negf %691 : vector<2x64xf32>
    %693 = math.exp %692 : vector<2x64xf32>
    %cst_193 = arith.constant 1.000000e+00 : f32
    %694 = vector.broadcast %cst_193 : f32 to vector<2x64xf32>
    %695 = arith.addf %694, %693 : vector<2x64xf32>
    %696 = arith.divf %694, %695 : vector<2x64xf32>
    %697 = math.tanh %691 : vector<2x64xf32>
    %698 = vector.extract_strided_slice %696 {offsets = [0, 0], sizes = [2, 16], strides = [1, 1]} : vector<2x64xf32> to vector<2x16xf32>
    %699 = vector.extract_strided_slice %696 {offsets = [0, 16], sizes = [2, 16], strides = [1, 1]} : vector<2x64xf32> to vector<2x16xf32>
    %700 = vector.extract_strided_slice %697 {offsets = [0, 32], sizes = [2, 16], strides = [1, 1]} : vector<2x64xf32> to vector<2x16xf32>
    %701 = vector.extract_strided_slice %696 {offsets = [0, 48], sizes = [2, 16], strides = [1, 1]} : vector<2x64xf32> to vector<2x16xf32>
    %702 = arith.mulf %699, %561 : vector<2x16xf32>
    %703 = arith.mulf %698, %700 : vector<2x16xf32>
    %704 = arith.addf %702, %703 : vector<2x16xf32>
    %705 = math.tanh %704 : vector<2x16xf32>
    %706 = arith.mulf %701, %705 : vector<2x16xf32>
    %c80_194 = arith.constant 80 : index
    %c0_195 = arith.constant 0 : index
    %707 = vector.load %arg1[%c80_194, %c0_195] : memref<864x64xf32, #tpu.memory_space<vmem>>, vector<16x64xf32>
    %cst_196 = arith.constant dense<0.000000e+00> : vector<2x64xf32>
    %708 = tpu.matmul %706, %707, %cst_196 {dimension_numbers = #tpu.dot_dimension_numbers<[1], [0], [0], [1], [0, 0, 1, 1], [], []>} : vector<2x16xf32>, vector<16x64xf32>, vector<2x64xf32> -> vector<2x64xf32>
    %709 = vector.extract_strided_slice %708 {offsets = [0, 0], sizes = [2, 16], strides = [1, 1]} : vector<2x64xf32> to vector<2x16xf32>
    %710 = vector.broadcast %10 : vector<1x16xf32> to vector<2x16xf32>
    %711 = arith.addf %709, %710 : vector<2x16xf32>
    %cst_197 = arith.constant dense<0xFF800000> : vector<2xf32>
    %712 = vector.multi_reduction <maximumf>, %711, %cst_197 [1] : vector<2x16xf32> to vector<2xf32>
    %cst_198 = arith.constant 0xFF800000 : f32
    %713 = vector.broadcast %cst_198 : f32 to vector<2xf32>
    %714 = arith.maximumf %713, %712 : vector<2xf32>
    %715 = vector.shape_cast %714 : vector<2xf32> to vector<2x1xf32>
    %716 = vector.broadcast %715 : vector<2x1xf32> to vector<2x16xf32>
    %717 = arith.subf %711, %716 : vector<2x16xf32>
    %718 = math.exp %717 : vector<2x16xf32>
    %cst_199 = arith.constant dense<0.000000e+00> : vector<2xf32>
    %719 = vector.multi_reduction <add>, %718, %cst_199 [1] : vector<2x16xf32> to vector<2xf32>
    %720 = vector.shape_cast %719 : vector<2xf32> to vector<2x1xf32>
    %721 = vector.broadcast %720 : vector<2x1xf32> to vector<2x16xf32>
    %722 = arith.divf %718, %721 : vector<2x16xf32>
    %cst_200 = arith.constant 4.000000e+00 : f32
    %723 = vector.broadcast %cst_200 : f32 to vector<2x16xf32>
    %724 = arith.mulf %722, %723 : vector<2x16xf32>
    %725 = math.absf %615 : vector<2x1xf32>
    %726 = arith.addf %583, %725 : vector<2x1xf32>
    %cst_201 = arith.constant 2.500000e+00 : f32
    %727 = vector.broadcast %cst_201 : f32 to vector<2x1xf32>
    %728 = arith.addf %726, %727 : vector<2x1xf32>
    %cst_202 = arith.constant 2.500000e-01 : f32
    %729 = vector.broadcast %cst_202 : f32 to vector<2x1xf32>
    %730 = arith.mulf %728, %729 : vector<2x1xf32>
    %cst_203 = arith.constant 1.000000e+00 : f32
    %731 = vector.broadcast %cst_203 : f32 to vector<2x1xf32>
    %732 = arith.minimumf %730, %731 : vector<2x1xf32>
    %733 = vector.broadcast %732 : vector<2x1xf32> to vector<2x16xf32>
    %734 = arith.mulf %724, %733 : vector<2x16xf32>
    %cst_204 = arith.constant 1.000000e+00 : f32
    %735 = vector.broadcast %cst_204 : f32 to vector<2x1xf32>
    %736 = arith.subf %735, %732 : vector<2x1xf32>
    %737 = vector.broadcast %736 : vector<2x1xf32> to vector<2x16xf32>
    %738 = arith.mulf %596, %737 : vector<2x16xf32>
    %739 = arith.addf %734, %738 : vector<2x16xf32>
    %740 = arith.mulf %739, %638 : vector<2x16xf32>
    %741 = arith.mulf %739, %636 : vector<2x16xf32>
    %742 = vector.broadcast %7 : vector<1x16xf32> to vector<2x16xf32>
    %743 = arith.mulf %740, %742 : vector<2x16xf32>
    %744 = vector.broadcast %8 : vector<1x16xf32> to vector<2x16xf32>
    %745 = arith.mulf %739, %744 : vector<2x16xf32>
    %746 = arith.addf %743, %745 : vector<2x16xf32>
    %cst_205 = arith.constant dense<0.000000e+00> : vector<2xf32>
    %747 = vector.multi_reduction <add>, %746, %cst_205 [1] : vector<2x16xf32> to vector<2xf32>
    %748 = vector.shape_cast %747 : vector<2xf32> to vector<2x1xf32>
    %749 = vector.extract_strided_slice %741 {offsets = [0, 0], sizes = [2, 4], strides = [1, 1]} : vector<2x16xf32> to vector<2x4xf32>
    %750 = vector.extract_strided_slice %741 {offsets = [0, 4], sizes = [2, 4], strides = [1, 1]} : vector<2x16xf32> to vector<2x4xf32>
    %751 = arith.addf %749, %750 : vector<2x4xf32>
    %752 = vector.extract_strided_slice %741 {offsets = [0, 8], sizes = [2, 4], strides = [1, 1]} : vector<2x16xf32> to vector<2x4xf32>
    %753 = arith.addf %751, %752 : vector<2x4xf32>
    %754 = vector.extract_strided_slice %741 {offsets = [0, 12], sizes = [2, 4], strides = [1, 1]} : vector<2x16xf32> to vector<2x4xf32>
    %755 = arith.addf %753, %754 : vector<2x4xf32>
    %756 = tpu.concatenate %755, %755, %755, %755 in 1 : vector<2x4xf32>, vector<2x4xf32>, vector<2x4xf32>, vector<2x4xf32> -> vector<2x16xf32>
    %757 = vector.extract_strided_slice %1 {offsets = [0, 5], sizes = [2, 1], strides = [1, 1]} : vector<2x8xf32> to vector<2x1xf32>
    %758 = arith.subf %757, %748 : vector<2x1xf32>
    %c64_206 = arith.constant 64 : index
    %c0_207 = arith.constant 0 : index
    %759 = vector.load %arg1[%c64_206, %c0_207] : memref<864x64xf32, #tpu.memory_space<vmem>>, vector<16x64xf32>
    %760 = vector.broadcast %757 : vector<2x1xf32> to vector<2x64xf32>
    %761 = vector.broadcast %4 : vector<1x64xf32> to vector<2x64xf32>
    %762 = arith.mulf %760, %761 : vector<2x64xf32>
    %cst_208 = arith.constant dense<0.000000e+00> : vector<2x64xf32>
    %763 = tpu.matmul %740, %759, %cst_208 {dimension_numbers = #tpu.dot_dimension_numbers<[1], [0], [0], [1], [0, 0, 1, 1], [], []>} : vector<2x16xf32>, vector<16x64xf32>, vector<2x64xf32> -> vector<2x64xf32>
    %764 = arith.addf %762, %763 : vector<2x64xf32>
    %765 = vector.broadcast %5 : vector<1x64xf32> to vector<2x64xf32>
    %766 = arith.addf %764, %765 : vector<2x64xf32>
    %767 = arith.negf %766 : vector<2x64xf32>
    %768 = math.exp %767 : vector<2x64xf32>
    %cst_209 = arith.constant 1.000000e+00 : f32
    %769 = vector.broadcast %cst_209 : f32 to vector<2x64xf32>
    %770 = arith.addf %769, %768 : vector<2x64xf32>
    %771 = arith.divf %769, %770 : vector<2x64xf32>
    %772 = math.tanh %766 : vector<2x64xf32>
    %773 = vector.extract_strided_slice %771 {offsets = [0, 0], sizes = [2, 16], strides = [1, 1]} : vector<2x64xf32> to vector<2x16xf32>
    %774 = vector.extract_strided_slice %771 {offsets = [0, 16], sizes = [2, 16], strides = [1, 1]} : vector<2x64xf32> to vector<2x16xf32>
    %775 = vector.extract_strided_slice %772 {offsets = [0, 32], sizes = [2, 16], strides = [1, 1]} : vector<2x64xf32> to vector<2x16xf32>
    %776 = vector.extract_strided_slice %771 {offsets = [0, 48], sizes = [2, 16], strides = [1, 1]} : vector<2x64xf32> to vector<2x16xf32>
    %777 = arith.mulf %774, %756 : vector<2x16xf32>
    %778 = arith.mulf %773, %775 : vector<2x16xf32>
    %779 = arith.addf %777, %778 : vector<2x16xf32>
    %780 = math.tanh %779 : vector<2x16xf32>
    %781 = arith.mulf %776, %780 : vector<2x16xf32>
    %c32_i32_210 = arith.constant 32 : i32
    %782 = tpu.dynamic_rotate %653 by %c32_i32_210 dim 1 : vector<2x640xf32>, i32 -> vector<2x640xf32>
    %cst_211 = arith.constant 0.000000e+00 : f32
    %783 = vector.broadcast %cst_211 : f32 to vector<2x624xf32>
    %784 = tpu.concatenate %781, %783 in 1 : vector<2x16xf32>, vector<2x624xf32> -> vector<2x640xf32>
    %c16_i32_212 = arith.constant 16 : i32
    %785 = vector.broadcast %c16_i32_212 : i32 to vector<2x640xi32>
    %786 = arith.cmpi slt, %20, %785 : vector<2x640xi32>
    %c16_i32_213 = arith.constant 16 : i32
    %787 = vector.broadcast %c16_i32_213 : i32 to vector<2x640xi32>
    %788 = arith.cmpi eq, %20, %787 : vector<2x640xi32>
    %c32_i32_214 = arith.constant 32 : i32
    %789 = vector.broadcast %c32_i32_214 : i32 to vector<2x640xi32>
    %790 = arith.cmpi slt, %20, %789 : vector<2x640xi32>
    %cst_215 = arith.constant 0.000000e+00 : f32
    %791 = vector.broadcast %cst_215 : f32 to vector<2x640xf32>
    %792 = arith.select %790, %791, %782 : vector<2x640xi1>, vector<2x640xf32>
    %793 = vector.shape_cast %758 : vector<2x1xf32> to vector<2x1xf32>
    %794 = vector.broadcast %793 : vector<2x1xf32> to vector<2x640xf32>
    %795 = arith.select %788, %794, %792 : vector<2x640xi1>, vector<2x640xf32>
    %796 = arith.select %786, %784, %795 : vector<2x640xi1>, vector<2x640xf32>
    %c224_216 = arith.constant 224 : index
    %c0_217 = arith.constant 0 : index
    %797 = vector.load %arg1[%c224_216, %c0_217] : memref<864x64xf32, #tpu.memory_space<vmem>>, vector<640x64xf32>
    %cst_218 = arith.constant dense<0.000000e+00> : vector<2x64xf32>
    %798 = tpu.matmul %796, %797, %cst_218 {dimension_numbers = #tpu.dot_dimension_numbers<[1], [0], [0], [1], [0, 0, 1, 1], [], []>} : vector<2x640xf32>, vector<640x64xf32>, vector<2x64xf32> -> vector<2x64xf32>
    %799 = vector.broadcast %6 : vector<1x64xf32> to vector<2x64xf32>
    %800 = arith.addf %798, %799 : vector<2x64xf32>
    %cst_219 = arith.constant 0.000000e+00 : f32
    %801 = vector.broadcast %cst_219 : f32 to vector<2x64xf32>
    %802 = arith.maximumf %800, %801 : vector<2x64xf32>
    %c96_220 = arith.constant 96 : index
    %c0_221 = arith.constant 0 : index
    %803 = vector.load %arg1[%c96_220, %c0_221] : memref<864x64xf32, #tpu.memory_space<vmem>>, vector<64x64xf32>
    %cst_222 = arith.constant dense<0.000000e+00> : vector<2x64xf32>
    %804 = tpu.matmul %802, %803, %cst_222 {dimension_numbers = #tpu.dot_dimension_numbers<[1], [0], [0], [1], [0, 0, 1, 1], [], []>} : vector<2x64xf32>, vector<64x64xf32>, vector<2x64xf32> -> vector<2x64xf32>
    %805 = vector.extract_strided_slice %804 {offsets = [0, 0], sizes = [2, 16], strides = [1, 1]} : vector<2x64xf32> to vector<2x16xf32>
    %806 = vector.broadcast %9 : vector<1x16xf32> to vector<2x16xf32>
    %807 = arith.addf %805, %806 : vector<2x16xf32>
    %cst_223 = arith.constant 0.000000e+00 : f32
    %808 = vector.broadcast %cst_223 : f32 to vector<2x16xf32>
    %809 = arith.maximumf %807, %808 : vector<2x16xf32>
    %c160_224 = arith.constant 160 : index
    %c0_225 = arith.constant 0 : index
    %810 = vector.load %arg1[%c160_224, %c0_225] : memref<864x64xf32, #tpu.memory_space<vmem>>, vector<32x64xf32>
    %811 = tpu.concatenate %809, %686 in 1 : vector<2x16xf32>, vector<2x16xf32> -> vector<2x32xf32>
    %cst_226 = arith.constant dense<0.000000e+00> : vector<2x64xf32>
    %812 = tpu.matmul %811, %810, %cst_226 {dimension_numbers = #tpu.dot_dimension_numbers<[1], [0], [0], [1], [0, 0, 1, 1], [], []>} : vector<2x32xf32>, vector<32x64xf32>, vector<2x64xf32> -> vector<2x64xf32>
    %813 = vector.broadcast %11 : vector<1x64xf32> to vector<2x64xf32>
    %814 = arith.addf %812, %813 : vector<2x64xf32>
    %815 = arith.negf %814 : vector<2x64xf32>
    %816 = math.exp %815 : vector<2x64xf32>
    %cst_227 = arith.constant 1.000000e+00 : f32
    %817 = vector.broadcast %cst_227 : f32 to vector<2x64xf32>
    %818 = arith.addf %817, %816 : vector<2x64xf32>
    %819 = arith.divf %817, %818 : vector<2x64xf32>
    %820 = math.tanh %814 : vector<2x64xf32>
    %821 = vector.extract_strided_slice %819 {offsets = [0, 0], sizes = [2, 16], strides = [1, 1]} : vector<2x64xf32> to vector<2x16xf32>
    %822 = vector.extract_strided_slice %819 {offsets = [0, 16], sizes = [2, 16], strides = [1, 1]} : vector<2x64xf32> to vector<2x16xf32>
    %823 = vector.extract_strided_slice %820 {offsets = [0, 32], sizes = [2, 16], strides = [1, 1]} : vector<2x64xf32> to vector<2x16xf32>
    %824 = vector.extract_strided_slice %819 {offsets = [0, 48], sizes = [2, 16], strides = [1, 1]} : vector<2x64xf32> to vector<2x16xf32>
    %825 = arith.mulf %822, %684 : vector<2x16xf32>
    %826 = arith.mulf %821, %823 : vector<2x16xf32>
    %827 = arith.addf %825, %826 : vector<2x16xf32>
    %828 = math.tanh %827 : vector<2x16xf32>
    %829 = arith.mulf %824, %828 : vector<2x16xf32>
    %c192_228 = arith.constant 192 : index
    %c0_229 = arith.constant 0 : index
    %830 = vector.load %arg1[%c192_228, %c0_229] : memref<864x64xf32, #tpu.memory_space<vmem>>, vector<32x64xf32>
    %831 = tpu.concatenate %829, %706 in 1 : vector<2x16xf32>, vector<2x16xf32> -> vector<2x32xf32>
    %cst_230 = arith.constant dense<0.000000e+00> : vector<2x64xf32>
    %832 = tpu.matmul %831, %830, %cst_230 {dimension_numbers = #tpu.dot_dimension_numbers<[1], [0], [0], [1], [0, 0, 1, 1], [], []>} : vector<2x32xf32>, vector<32x64xf32>, vector<2x64xf32> -> vector<2x64xf32>
    %833 = vector.broadcast %12 : vector<1x64xf32> to vector<2x64xf32>
    %834 = arith.addf %832, %833 : vector<2x64xf32>
    %835 = arith.negf %834 : vector<2x64xf32>
    %836 = math.exp %835 : vector<2x64xf32>
    %cst_231 = arith.constant 1.000000e+00 : f32
    %837 = vector.broadcast %cst_231 : f32 to vector<2x64xf32>
    %838 = arith.addf %837, %836 : vector<2x64xf32>
    %839 = arith.divf %837, %838 : vector<2x64xf32>
    %840 = math.tanh %834 : vector<2x64xf32>
    %841 = vector.extract_strided_slice %839 {offsets = [0, 0], sizes = [2, 16], strides = [1, 1]} : vector<2x64xf32> to vector<2x16xf32>
    %842 = vector.extract_strided_slice %839 {offsets = [0, 16], sizes = [2, 16], strides = [1, 1]} : vector<2x64xf32> to vector<2x16xf32>
    %843 = vector.extract_strided_slice %840 {offsets = [0, 32], sizes = [2, 16], strides = [1, 1]} : vector<2x64xf32> to vector<2x16xf32>
    %844 = vector.extract_strided_slice %839 {offsets = [0, 48], sizes = [2, 16], strides = [1, 1]} : vector<2x64xf32> to vector<2x16xf32>
    %845 = arith.mulf %842, %704 : vector<2x16xf32>
    %846 = arith.mulf %841, %843 : vector<2x16xf32>
    %847 = arith.addf %845, %846 : vector<2x16xf32>
    %848 = math.tanh %847 : vector<2x16xf32>
    %849 = arith.mulf %844, %848 : vector<2x16xf32>
    %c80_232 = arith.constant 80 : index
    %c0_233 = arith.constant 0 : index
    %850 = vector.load %arg1[%c80_232, %c0_233] : memref<864x64xf32, #tpu.memory_space<vmem>>, vector<16x64xf32>
    %cst_234 = arith.constant dense<0.000000e+00> : vector<2x64xf32>
    %851 = tpu.matmul %849, %850, %cst_234 {dimension_numbers = #tpu.dot_dimension_numbers<[1], [0], [0], [1], [0, 0, 1, 1], [], []>} : vector<2x16xf32>, vector<16x64xf32>, vector<2x64xf32> -> vector<2x64xf32>
    %852 = vector.extract_strided_slice %851 {offsets = [0, 0], sizes = [2, 16], strides = [1, 1]} : vector<2x64xf32> to vector<2x16xf32>
    %853 = vector.broadcast %10 : vector<1x16xf32> to vector<2x16xf32>
    %854 = arith.addf %852, %853 : vector<2x16xf32>
    %cst_235 = arith.constant dense<0xFF800000> : vector<2xf32>
    %855 = vector.multi_reduction <maximumf>, %854, %cst_235 [1] : vector<2x16xf32> to vector<2xf32>
    %cst_236 = arith.constant 0xFF800000 : f32
    %856 = vector.broadcast %cst_236 : f32 to vector<2xf32>
    %857 = arith.maximumf %856, %855 : vector<2xf32>
    %858 = vector.shape_cast %857 : vector<2xf32> to vector<2x1xf32>
    %859 = vector.broadcast %858 : vector<2x1xf32> to vector<2x16xf32>
    %860 = arith.subf %854, %859 : vector<2x16xf32>
    %861 = math.exp %860 : vector<2x16xf32>
    %cst_237 = arith.constant dense<0.000000e+00> : vector<2xf32>
    %862 = vector.multi_reduction <add>, %861, %cst_237 [1] : vector<2x16xf32> to vector<2xf32>
    %863 = vector.shape_cast %862 : vector<2xf32> to vector<2x1xf32>
    %864 = vector.broadcast %863 : vector<2x1xf32> to vector<2x16xf32>
    %865 = arith.divf %861, %864 : vector<2x16xf32>
    %cst_238 = arith.constant 4.000000e+00 : f32
    %866 = vector.broadcast %cst_238 : f32 to vector<2x16xf32>
    %867 = arith.mulf %865, %866 : vector<2x16xf32>
    %868 = math.absf %758 : vector<2x1xf32>
    %869 = arith.addf %726, %868 : vector<2x1xf32>
    %cst_239 = arith.constant 2.000000e+00 : f32
    %870 = vector.broadcast %cst_239 : f32 to vector<2x1xf32>
    %871 = arith.addf %869, %870 : vector<2x1xf32>
    %cst_240 = arith.constant 2.500000e-01 : f32
    %872 = vector.broadcast %cst_240 : f32 to vector<2x1xf32>
    %873 = arith.mulf %871, %872 : vector<2x1xf32>
    %cst_241 = arith.constant 1.000000e+00 : f32
    %874 = vector.broadcast %cst_241 : f32 to vector<2x1xf32>
    %875 = arith.minimumf %873, %874 : vector<2x1xf32>
    %876 = vector.broadcast %875 : vector<2x1xf32> to vector<2x16xf32>
    %877 = arith.mulf %867, %876 : vector<2x16xf32>
    %cst_242 = arith.constant 1.000000e+00 : f32
    %878 = vector.broadcast %cst_242 : f32 to vector<2x1xf32>
    %879 = arith.subf %878, %875 : vector<2x1xf32>
    %880 = vector.broadcast %879 : vector<2x1xf32> to vector<2x16xf32>
    %881 = arith.mulf %739, %880 : vector<2x16xf32>
    %882 = arith.addf %877, %881 : vector<2x16xf32>
    %883 = arith.mulf %882, %781 : vector<2x16xf32>
    %884 = arith.mulf %882, %779 : vector<2x16xf32>
    %885 = vector.broadcast %7 : vector<1x16xf32> to vector<2x16xf32>
    %886 = arith.mulf %883, %885 : vector<2x16xf32>
    %887 = vector.broadcast %8 : vector<1x16xf32> to vector<2x16xf32>
    %888 = arith.mulf %882, %887 : vector<2x16xf32>
    %889 = arith.addf %886, %888 : vector<2x16xf32>
    %cst_243 = arith.constant dense<0.000000e+00> : vector<2xf32>
    %890 = vector.multi_reduction <add>, %889, %cst_243 [1] : vector<2x16xf32> to vector<2xf32>
    %891 = vector.shape_cast %890 : vector<2xf32> to vector<2x1xf32>
    %892 = vector.extract_strided_slice %884 {offsets = [0, 0], sizes = [2, 4], strides = [1, 1]} : vector<2x16xf32> to vector<2x4xf32>
    %893 = vector.extract_strided_slice %884 {offsets = [0, 4], sizes = [2, 4], strides = [1, 1]} : vector<2x16xf32> to vector<2x4xf32>
    %894 = arith.addf %892, %893 : vector<2x4xf32>
    %895 = vector.extract_strided_slice %884 {offsets = [0, 8], sizes = [2, 4], strides = [1, 1]} : vector<2x16xf32> to vector<2x4xf32>
    %896 = arith.addf %894, %895 : vector<2x4xf32>
    %897 = vector.extract_strided_slice %884 {offsets = [0, 12], sizes = [2, 4], strides = [1, 1]} : vector<2x16xf32> to vector<2x4xf32>
    %898 = arith.addf %896, %897 : vector<2x4xf32>
    %899 = tpu.concatenate %898, %898, %898, %898 in 1 : vector<2x4xf32>, vector<2x4xf32>, vector<2x4xf32>, vector<2x4xf32> -> vector<2x16xf32>
    %900 = vector.extract_strided_slice %1 {offsets = [0, 6], sizes = [2, 1], strides = [1, 1]} : vector<2x8xf32> to vector<2x1xf32>
    %901 = arith.subf %900, %891 : vector<2x1xf32>
    %c64_244 = arith.constant 64 : index
    %c0_245 = arith.constant 0 : index
    %902 = vector.load %arg1[%c64_244, %c0_245] : memref<864x64xf32, #tpu.memory_space<vmem>>, vector<16x64xf32>
    %903 = vector.broadcast %900 : vector<2x1xf32> to vector<2x64xf32>
    %904 = vector.broadcast %4 : vector<1x64xf32> to vector<2x64xf32>
    %905 = arith.mulf %903, %904 : vector<2x64xf32>
    %cst_246 = arith.constant dense<0.000000e+00> : vector<2x64xf32>
    %906 = tpu.matmul %883, %902, %cst_246 {dimension_numbers = #tpu.dot_dimension_numbers<[1], [0], [0], [1], [0, 0, 1, 1], [], []>} : vector<2x16xf32>, vector<16x64xf32>, vector<2x64xf32> -> vector<2x64xf32>
    %907 = arith.addf %905, %906 : vector<2x64xf32>
    %908 = vector.broadcast %5 : vector<1x64xf32> to vector<2x64xf32>
    %909 = arith.addf %907, %908 : vector<2x64xf32>
    %910 = arith.negf %909 : vector<2x64xf32>
    %911 = math.exp %910 : vector<2x64xf32>
    %cst_247 = arith.constant 1.000000e+00 : f32
    %912 = vector.broadcast %cst_247 : f32 to vector<2x64xf32>
    %913 = arith.addf %912, %911 : vector<2x64xf32>
    %914 = arith.divf %912, %913 : vector<2x64xf32>
    %915 = math.tanh %909 : vector<2x64xf32>
    %916 = vector.extract_strided_slice %914 {offsets = [0, 0], sizes = [2, 16], strides = [1, 1]} : vector<2x64xf32> to vector<2x16xf32>
    %917 = vector.extract_strided_slice %914 {offsets = [0, 16], sizes = [2, 16], strides = [1, 1]} : vector<2x64xf32> to vector<2x16xf32>
    %918 = vector.extract_strided_slice %915 {offsets = [0, 32], sizes = [2, 16], strides = [1, 1]} : vector<2x64xf32> to vector<2x16xf32>
    %919 = vector.extract_strided_slice %914 {offsets = [0, 48], sizes = [2, 16], strides = [1, 1]} : vector<2x64xf32> to vector<2x16xf32>
    %920 = arith.mulf %917, %899 : vector<2x16xf32>
    %921 = arith.mulf %916, %918 : vector<2x16xf32>
    %922 = arith.addf %920, %921 : vector<2x16xf32>
    %923 = math.tanh %922 : vector<2x16xf32>
    %924 = arith.mulf %919, %923 : vector<2x16xf32>
    %c32_i32_248 = arith.constant 32 : i32
    %925 = tpu.dynamic_rotate %796 by %c32_i32_248 dim 1 : vector<2x640xf32>, i32 -> vector<2x640xf32>
    %cst_249 = arith.constant 0.000000e+00 : f32
    %926 = vector.broadcast %cst_249 : f32 to vector<2x624xf32>
    %927 = tpu.concatenate %924, %926 in 1 : vector<2x16xf32>, vector<2x624xf32> -> vector<2x640xf32>
    %c16_i32_250 = arith.constant 16 : i32
    %928 = vector.broadcast %c16_i32_250 : i32 to vector<2x640xi32>
    %929 = arith.cmpi slt, %20, %928 : vector<2x640xi32>
    %c16_i32_251 = arith.constant 16 : i32
    %930 = vector.broadcast %c16_i32_251 : i32 to vector<2x640xi32>
    %931 = arith.cmpi eq, %20, %930 : vector<2x640xi32>
    %c32_i32_252 = arith.constant 32 : i32
    %932 = vector.broadcast %c32_i32_252 : i32 to vector<2x640xi32>
    %933 = arith.cmpi slt, %20, %932 : vector<2x640xi32>
    %cst_253 = arith.constant 0.000000e+00 : f32
    %934 = vector.broadcast %cst_253 : f32 to vector<2x640xf32>
    %935 = arith.select %933, %934, %925 : vector<2x640xi1>, vector<2x640xf32>
    %936 = vector.shape_cast %901 : vector<2x1xf32> to vector<2x1xf32>
    %937 = vector.broadcast %936 : vector<2x1xf32> to vector<2x640xf32>
    %938 = arith.select %931, %937, %935 : vector<2x640xi1>, vector<2x640xf32>
    %939 = arith.select %929, %927, %938 : vector<2x640xi1>, vector<2x640xf32>
    %c224_254 = arith.constant 224 : index
    %c0_255 = arith.constant 0 : index
    %940 = vector.load %arg1[%c224_254, %c0_255] : memref<864x64xf32, #tpu.memory_space<vmem>>, vector<640x64xf32>
    %cst_256 = arith.constant dense<0.000000e+00> : vector<2x64xf32>
    %941 = tpu.matmul %939, %940, %cst_256 {dimension_numbers = #tpu.dot_dimension_numbers<[1], [0], [0], [1], [0, 0, 1, 1], [], []>} : vector<2x640xf32>, vector<640x64xf32>, vector<2x64xf32> -> vector<2x64xf32>
    %942 = vector.broadcast %6 : vector<1x64xf32> to vector<2x64xf32>
    %943 = arith.addf %941, %942 : vector<2x64xf32>
    %cst_257 = arith.constant 0.000000e+00 : f32
    %944 = vector.broadcast %cst_257 : f32 to vector<2x64xf32>
    %945 = arith.maximumf %943, %944 : vector<2x64xf32>
    %c96_258 = arith.constant 96 : index
    %c0_259 = arith.constant 0 : index
    %946 = vector.load %arg1[%c96_258, %c0_259] : memref<864x64xf32, #tpu.memory_space<vmem>>, vector<64x64xf32>
    %cst_260 = arith.constant dense<0.000000e+00> : vector<2x64xf32>
    %947 = tpu.matmul %945, %946, %cst_260 {dimension_numbers = #tpu.dot_dimension_numbers<[1], [0], [0], [1], [0, 0, 1, 1], [], []>} : vector<2x64xf32>, vector<64x64xf32>, vector<2x64xf32> -> vector<2x64xf32>
    %948 = vector.extract_strided_slice %947 {offsets = [0, 0], sizes = [2, 16], strides = [1, 1]} : vector<2x64xf32> to vector<2x16xf32>
    %949 = vector.broadcast %9 : vector<1x16xf32> to vector<2x16xf32>
    %950 = arith.addf %948, %949 : vector<2x16xf32>
    %cst_261 = arith.constant 0.000000e+00 : f32
    %951 = vector.broadcast %cst_261 : f32 to vector<2x16xf32>
    %952 = arith.maximumf %950, %951 : vector<2x16xf32>
    %c160_262 = arith.constant 160 : index
    %c0_263 = arith.constant 0 : index
    %953 = vector.load %arg1[%c160_262, %c0_263] : memref<864x64xf32, #tpu.memory_space<vmem>>, vector<32x64xf32>
    %954 = tpu.concatenate %952, %829 in 1 : vector<2x16xf32>, vector<2x16xf32> -> vector<2x32xf32>
    %cst_264 = arith.constant dense<0.000000e+00> : vector<2x64xf32>
    %955 = tpu.matmul %954, %953, %cst_264 {dimension_numbers = #tpu.dot_dimension_numbers<[1], [0], [0], [1], [0, 0, 1, 1], [], []>} : vector<2x32xf32>, vector<32x64xf32>, vector<2x64xf32> -> vector<2x64xf32>
    %956 = vector.broadcast %11 : vector<1x64xf32> to vector<2x64xf32>
    %957 = arith.addf %955, %956 : vector<2x64xf32>
    %958 = arith.negf %957 : vector<2x64xf32>
    %959 = math.exp %958 : vector<2x64xf32>
    %cst_265 = arith.constant 1.000000e+00 : f32
    %960 = vector.broadcast %cst_265 : f32 to vector<2x64xf32>
    %961 = arith.addf %960, %959 : vector<2x64xf32>
    %962 = arith.divf %960, %961 : vector<2x64xf32>
    %963 = math.tanh %957 : vector<2x64xf32>
    %964 = vector.extract_strided_slice %962 {offsets = [0, 0], sizes = [2, 16], strides = [1, 1]} : vector<2x64xf32> to vector<2x16xf32>
    %965 = vector.extract_strided_slice %962 {offsets = [0, 16], sizes = [2, 16], strides = [1, 1]} : vector<2x64xf32> to vector<2x16xf32>
    %966 = vector.extract_strided_slice %963 {offsets = [0, 32], sizes = [2, 16], strides = [1, 1]} : vector<2x64xf32> to vector<2x16xf32>
    %967 = vector.extract_strided_slice %962 {offsets = [0, 48], sizes = [2, 16], strides = [1, 1]} : vector<2x64xf32> to vector<2x16xf32>
    %968 = arith.mulf %965, %827 : vector<2x16xf32>
    %969 = arith.mulf %964, %966 : vector<2x16xf32>
    %970 = arith.addf %968, %969 : vector<2x16xf32>
    %971 = math.tanh %970 : vector<2x16xf32>
    %972 = arith.mulf %967, %971 : vector<2x16xf32>
    %c192_266 = arith.constant 192 : index
    %c0_267 = arith.constant 0 : index
    %973 = vector.load %arg1[%c192_266, %c0_267] : memref<864x64xf32, #tpu.memory_space<vmem>>, vector<32x64xf32>
    %974 = tpu.concatenate %972, %849 in 1 : vector<2x16xf32>, vector<2x16xf32> -> vector<2x32xf32>
    %cst_268 = arith.constant dense<0.000000e+00> : vector<2x64xf32>
    %975 = tpu.matmul %974, %973, %cst_268 {dimension_numbers = #tpu.dot_dimension_numbers<[1], [0], [0], [1], [0, 0, 1, 1], [], []>} : vector<2x32xf32>, vector<32x64xf32>, vector<2x64xf32> -> vector<2x64xf32>
    %976 = vector.broadcast %12 : vector<1x64xf32> to vector<2x64xf32>
    %977 = arith.addf %975, %976 : vector<2x64xf32>
    %978 = arith.negf %977 : vector<2x64xf32>
    %979 = math.exp %978 : vector<2x64xf32>
    %cst_269 = arith.constant 1.000000e+00 : f32
    %980 = vector.broadcast %cst_269 : f32 to vector<2x64xf32>
    %981 = arith.addf %980, %979 : vector<2x64xf32>
    %982 = arith.divf %980, %981 : vector<2x64xf32>
    %983 = math.tanh %977 : vector<2x64xf32>
    %984 = vector.extract_strided_slice %982 {offsets = [0, 0], sizes = [2, 16], strides = [1, 1]} : vector<2x64xf32> to vector<2x16xf32>
    %985 = vector.extract_strided_slice %982 {offsets = [0, 16], sizes = [2, 16], strides = [1, 1]} : vector<2x64xf32> to vector<2x16xf32>
    %986 = vector.extract_strided_slice %983 {offsets = [0, 32], sizes = [2, 16], strides = [1, 1]} : vector<2x64xf32> to vector<2x16xf32>
    %987 = vector.extract_strided_slice %982 {offsets = [0, 48], sizes = [2, 16], strides = [1, 1]} : vector<2x64xf32> to vector<2x16xf32>
    %988 = arith.mulf %985, %847 : vector<2x16xf32>
    %989 = arith.mulf %984, %986 : vector<2x16xf32>
    %990 = arith.addf %988, %989 : vector<2x16xf32>
    %991 = math.tanh %990 : vector<2x16xf32>
    %992 = arith.mulf %987, %991 : vector<2x16xf32>
    %c80_270 = arith.constant 80 : index
    %c0_271 = arith.constant 0 : index
    %993 = vector.load %arg1[%c80_270, %c0_271] : memref<864x64xf32, #tpu.memory_space<vmem>>, vector<16x64xf32>
    %cst_272 = arith.constant dense<0.000000e+00> : vector<2x64xf32>
    %994 = tpu.matmul %992, %993, %cst_272 {dimension_numbers = #tpu.dot_dimension_numbers<[1], [0], [0], [1], [0, 0, 1, 1], [], []>} : vector<2x16xf32>, vector<16x64xf32>, vector<2x64xf32> -> vector<2x64xf32>
    %995 = vector.extract_strided_slice %994 {offsets = [0, 0], sizes = [2, 16], strides = [1, 1]} : vector<2x64xf32> to vector<2x16xf32>
    %996 = vector.broadcast %10 : vector<1x16xf32> to vector<2x16xf32>
    %997 = arith.addf %995, %996 : vector<2x16xf32>
    %cst_273 = arith.constant dense<0xFF800000> : vector<2xf32>
    %998 = vector.multi_reduction <maximumf>, %997, %cst_273 [1] : vector<2x16xf32> to vector<2xf32>
    %cst_274 = arith.constant 0xFF800000 : f32
    %999 = vector.broadcast %cst_274 : f32 to vector<2xf32>
    %1000 = arith.maximumf %999, %998 : vector<2xf32>
    %1001 = vector.shape_cast %1000 : vector<2xf32> to vector<2x1xf32>
    %1002 = vector.broadcast %1001 : vector<2x1xf32> to vector<2x16xf32>
    %1003 = arith.subf %997, %1002 : vector<2x16xf32>
    %1004 = math.exp %1003 : vector<2x16xf32>
    %cst_275 = arith.constant dense<0.000000e+00> : vector<2xf32>
    %1005 = vector.multi_reduction <add>, %1004, %cst_275 [1] : vector<2x16xf32> to vector<2xf32>
    %1006 = vector.shape_cast %1005 : vector<2xf32> to vector<2x1xf32>
    %1007 = vector.broadcast %1006 : vector<2x1xf32> to vector<2x16xf32>
    %1008 = arith.divf %1004, %1007 : vector<2x16xf32>
    %cst_276 = arith.constant 4.000000e+00 : f32
    %1009 = vector.broadcast %cst_276 : f32 to vector<2x16xf32>
    %1010 = arith.mulf %1008, %1009 : vector<2x16xf32>
    %1011 = math.absf %901 : vector<2x1xf32>
    %1012 = arith.addf %869, %1011 : vector<2x1xf32>
    %cst_277 = arith.constant 1.500000e+00 : f32
    %1013 = vector.broadcast %cst_277 : f32 to vector<2x1xf32>
    %1014 = arith.addf %1012, %1013 : vector<2x1xf32>
    %cst_278 = arith.constant 2.500000e-01 : f32
    %1015 = vector.broadcast %cst_278 : f32 to vector<2x1xf32>
    %1016 = arith.mulf %1014, %1015 : vector<2x1xf32>
    %cst_279 = arith.constant 1.000000e+00 : f32
    %1017 = vector.broadcast %cst_279 : f32 to vector<2x1xf32>
    %1018 = arith.minimumf %1016, %1017 : vector<2x1xf32>
    %1019 = vector.broadcast %1018 : vector<2x1xf32> to vector<2x16xf32>
    %1020 = arith.mulf %1010, %1019 : vector<2x16xf32>
    %cst_280 = arith.constant 1.000000e+00 : f32
    %1021 = vector.broadcast %cst_280 : f32 to vector<2x1xf32>
    %1022 = arith.subf %1021, %1018 : vector<2x1xf32>
    %1023 = vector.broadcast %1022 : vector<2x1xf32> to vector<2x16xf32>
    %1024 = arith.mulf %882, %1023 : vector<2x16xf32>
    %1025 = arith.addf %1020, %1024 : vector<2x16xf32>
    %1026 = arith.mulf %1025, %924 : vector<2x16xf32>
    %1027 = arith.mulf %1025, %922 : vector<2x16xf32>
    %1028 = vector.broadcast %7 : vector<1x16xf32> to vector<2x16xf32>
    %1029 = arith.mulf %1026, %1028 : vector<2x16xf32>
    %1030 = vector.broadcast %8 : vector<1x16xf32> to vector<2x16xf32>
    %1031 = arith.mulf %1025, %1030 : vector<2x16xf32>
    %1032 = arith.addf %1029, %1031 : vector<2x16xf32>
    %cst_281 = arith.constant dense<0.000000e+00> : vector<2xf32>
    %1033 = vector.multi_reduction <add>, %1032, %cst_281 [1] : vector<2x16xf32> to vector<2xf32>
    %1034 = vector.shape_cast %1033 : vector<2xf32> to vector<2x1xf32>
    %1035 = vector.extract_strided_slice %1027 {offsets = [0, 0], sizes = [2, 4], strides = [1, 1]} : vector<2x16xf32> to vector<2x4xf32>
    %1036 = vector.extract_strided_slice %1027 {offsets = [0, 4], sizes = [2, 4], strides = [1, 1]} : vector<2x16xf32> to vector<2x4xf32>
    %1037 = arith.addf %1035, %1036 : vector<2x4xf32>
    %1038 = vector.extract_strided_slice %1027 {offsets = [0, 8], sizes = [2, 4], strides = [1, 1]} : vector<2x16xf32> to vector<2x4xf32>
    %1039 = arith.addf %1037, %1038 : vector<2x4xf32>
    %1040 = vector.extract_strided_slice %1027 {offsets = [0, 12], sizes = [2, 4], strides = [1, 1]} : vector<2x16xf32> to vector<2x4xf32>
    %1041 = arith.addf %1039, %1040 : vector<2x4xf32>
    %1042 = tpu.concatenate %1041, %1041, %1041, %1041 in 1 : vector<2x4xf32>, vector<2x4xf32>, vector<2x4xf32>, vector<2x4xf32> -> vector<2x16xf32>
    %1043 = vector.extract_strided_slice %1 {offsets = [0, 7], sizes = [2, 1], strides = [1, 1]} : vector<2x8xf32> to vector<2x1xf32>
    %1044 = arith.subf %1043, %1034 : vector<2x1xf32>
    %c64_282 = arith.constant 64 : index
    %c0_283 = arith.constant 0 : index
    %1045 = vector.load %arg1[%c64_282, %c0_283] : memref<864x64xf32, #tpu.memory_space<vmem>>, vector<16x64xf32>
    %1046 = vector.broadcast %1043 : vector<2x1xf32> to vector<2x64xf32>
    %1047 = vector.broadcast %4 : vector<1x64xf32> to vector<2x64xf32>
    %1048 = arith.mulf %1046, %1047 : vector<2x64xf32>
    %cst_284 = arith.constant dense<0.000000e+00> : vector<2x64xf32>
    %1049 = tpu.matmul %1026, %1045, %cst_284 {dimension_numbers = #tpu.dot_dimension_numbers<[1], [0], [0], [1], [0, 0, 1, 1], [], []>} : vector<2x16xf32>, vector<16x64xf32>, vector<2x64xf32> -> vector<2x64xf32>
    %1050 = arith.addf %1048, %1049 : vector<2x64xf32>
    %1051 = vector.broadcast %5 : vector<1x64xf32> to vector<2x64xf32>
    %1052 = arith.addf %1050, %1051 : vector<2x64xf32>
    %1053 = arith.negf %1052 : vector<2x64xf32>
    %1054 = math.exp %1053 : vector<2x64xf32>
    %cst_285 = arith.constant 1.000000e+00 : f32
    %1055 = vector.broadcast %cst_285 : f32 to vector<2x64xf32>
    %1056 = arith.addf %1055, %1054 : vector<2x64xf32>
    %1057 = arith.divf %1055, %1056 : vector<2x64xf32>
    %1058 = math.tanh %1052 : vector<2x64xf32>
    %1059 = vector.extract_strided_slice %1057 {offsets = [0, 0], sizes = [2, 16], strides = [1, 1]} : vector<2x64xf32> to vector<2x16xf32>
    %1060 = vector.extract_strided_slice %1057 {offsets = [0, 16], sizes = [2, 16], strides = [1, 1]} : vector<2x64xf32> to vector<2x16xf32>
    %1061 = vector.extract_strided_slice %1058 {offsets = [0, 32], sizes = [2, 16], strides = [1, 1]} : vector<2x64xf32> to vector<2x16xf32>
    %1062 = vector.extract_strided_slice %1057 {offsets = [0, 48], sizes = [2, 16], strides = [1, 1]} : vector<2x64xf32> to vector<2x16xf32>
    %1063 = arith.mulf %1060, %1042 : vector<2x16xf32>
    %1064 = arith.mulf %1059, %1061 : vector<2x16xf32>
    %1065 = arith.addf %1063, %1064 : vector<2x16xf32>
    %1066 = math.tanh %1065 : vector<2x16xf32>
    %1067 = arith.mulf %1062, %1066 : vector<2x16xf32>
    %c32_i32_286 = arith.constant 32 : i32
    %1068 = tpu.dynamic_rotate %939 by %c32_i32_286 dim 1 : vector<2x640xf32>, i32 -> vector<2x640xf32>
    %cst_287 = arith.constant 0.000000e+00 : f32
    %1069 = vector.broadcast %cst_287 : f32 to vector<2x624xf32>
    %1070 = tpu.concatenate %1067, %1069 in 1 : vector<2x16xf32>, vector<2x624xf32> -> vector<2x640xf32>
    %c16_i32_288 = arith.constant 16 : i32
    %1071 = vector.broadcast %c16_i32_288 : i32 to vector<2x640xi32>
    %1072 = arith.cmpi slt, %20, %1071 : vector<2x640xi32>
    %c16_i32_289 = arith.constant 16 : i32
    %1073 = vector.broadcast %c16_i32_289 : i32 to vector<2x640xi32>
    %1074 = arith.cmpi eq, %20, %1073 : vector<2x640xi32>
    %c32_i32_290 = arith.constant 32 : i32
    %1075 = vector.broadcast %c32_i32_290 : i32 to vector<2x640xi32>
    %1076 = arith.cmpi slt, %20, %1075 : vector<2x640xi32>
    %cst_291 = arith.constant 0.000000e+00 : f32
    %1077 = vector.broadcast %cst_291 : f32 to vector<2x640xf32>
    %1078 = arith.select %1076, %1077, %1068 : vector<2x640xi1>, vector<2x640xf32>
    %1079 = vector.shape_cast %1044 : vector<2x1xf32> to vector<2x1xf32>
    %1080 = vector.broadcast %1079 : vector<2x1xf32> to vector<2x640xf32>
    %1081 = arith.select %1074, %1080, %1078 : vector<2x640xi1>, vector<2x640xf32>
    %1082 = arith.select %1072, %1070, %1081 : vector<2x640xi1>, vector<2x640xf32>
    %c224_292 = arith.constant 224 : index
    %c0_293 = arith.constant 0 : index
    %1083 = vector.load %arg1[%c224_292, %c0_293] : memref<864x64xf32, #tpu.memory_space<vmem>>, vector<640x64xf32>
    %cst_294 = arith.constant dense<0.000000e+00> : vector<2x64xf32>
    %1084 = tpu.matmul %1082, %1083, %cst_294 {dimension_numbers = #tpu.dot_dimension_numbers<[1], [0], [0], [1], [0, 0, 1, 1], [], []>} : vector<2x640xf32>, vector<640x64xf32>, vector<2x64xf32> -> vector<2x64xf32>
    %1085 = vector.broadcast %6 : vector<1x64xf32> to vector<2x64xf32>
    %1086 = arith.addf %1084, %1085 : vector<2x64xf32>
    %cst_295 = arith.constant 0.000000e+00 : f32
    %1087 = vector.broadcast %cst_295 : f32 to vector<2x64xf32>
    %1088 = arith.maximumf %1086, %1087 : vector<2x64xf32>
    %c96_296 = arith.constant 96 : index
    %c0_297 = arith.constant 0 : index
    %1089 = vector.load %arg1[%c96_296, %c0_297] : memref<864x64xf32, #tpu.memory_space<vmem>>, vector<64x64xf32>
    %cst_298 = arith.constant dense<0.000000e+00> : vector<2x64xf32>
    %1090 = tpu.matmul %1088, %1089, %cst_298 {dimension_numbers = #tpu.dot_dimension_numbers<[1], [0], [0], [1], [0, 0, 1, 1], [], []>} : vector<2x64xf32>, vector<64x64xf32>, vector<2x64xf32> -> vector<2x64xf32>
    %1091 = vector.extract_strided_slice %1090 {offsets = [0, 0], sizes = [2, 16], strides = [1, 1]} : vector<2x64xf32> to vector<2x16xf32>
    %1092 = vector.broadcast %9 : vector<1x16xf32> to vector<2x16xf32>
    %1093 = arith.addf %1091, %1092 : vector<2x16xf32>
    %cst_299 = arith.constant 0.000000e+00 : f32
    %1094 = vector.broadcast %cst_299 : f32 to vector<2x16xf32>
    %1095 = arith.maximumf %1093, %1094 : vector<2x16xf32>
    %c160_300 = arith.constant 160 : index
    %c0_301 = arith.constant 0 : index
    %1096 = vector.load %arg1[%c160_300, %c0_301] : memref<864x64xf32, #tpu.memory_space<vmem>>, vector<32x64xf32>
    %1097 = tpu.concatenate %1095, %972 in 1 : vector<2x16xf32>, vector<2x16xf32> -> vector<2x32xf32>
    %cst_302 = arith.constant dense<0.000000e+00> : vector<2x64xf32>
    %1098 = tpu.matmul %1097, %1096, %cst_302 {dimension_numbers = #tpu.dot_dimension_numbers<[1], [0], [0], [1], [0, 0, 1, 1], [], []>} : vector<2x32xf32>, vector<32x64xf32>, vector<2x64xf32> -> vector<2x64xf32>
    %1099 = vector.broadcast %11 : vector<1x64xf32> to vector<2x64xf32>
    %1100 = arith.addf %1098, %1099 : vector<2x64xf32>
    %1101 = arith.negf %1100 : vector<2x64xf32>
    %1102 = math.exp %1101 : vector<2x64xf32>
    %cst_303 = arith.constant 1.000000e+00 : f32
    %1103 = vector.broadcast %cst_303 : f32 to vector<2x64xf32>
    %1104 = arith.addf %1103, %1102 : vector<2x64xf32>
    %1105 = arith.divf %1103, %1104 : vector<2x64xf32>
    %1106 = math.tanh %1100 : vector<2x64xf32>
    %1107 = vector.extract_strided_slice %1105 {offsets = [0, 0], sizes = [2, 16], strides = [1, 1]} : vector<2x64xf32> to vector<2x16xf32>
    %1108 = vector.extract_strided_slice %1105 {offsets = [0, 16], sizes = [2, 16], strides = [1, 1]} : vector<2x64xf32> to vector<2x16xf32>
    %1109 = vector.extract_strided_slice %1106 {offsets = [0, 32], sizes = [2, 16], strides = [1, 1]} : vector<2x64xf32> to vector<2x16xf32>
    %1110 = vector.extract_strided_slice %1105 {offsets = [0, 48], sizes = [2, 16], strides = [1, 1]} : vector<2x64xf32> to vector<2x16xf32>
    %1111 = arith.mulf %1108, %970 : vector<2x16xf32>
    %1112 = arith.mulf %1107, %1109 : vector<2x16xf32>
    %1113 = arith.addf %1111, %1112 : vector<2x16xf32>
    %1114 = math.tanh %1113 : vector<2x16xf32>
    %1115 = arith.mulf %1110, %1114 : vector<2x16xf32>
    %c192_304 = arith.constant 192 : index
    %c0_305 = arith.constant 0 : index
    %1116 = vector.load %arg1[%c192_304, %c0_305] : memref<864x64xf32, #tpu.memory_space<vmem>>, vector<32x64xf32>
    %1117 = tpu.concatenate %1115, %992 in 1 : vector<2x16xf32>, vector<2x16xf32> -> vector<2x32xf32>
    %cst_306 = arith.constant dense<0.000000e+00> : vector<2x64xf32>
    %1118 = tpu.matmul %1117, %1116, %cst_306 {dimension_numbers = #tpu.dot_dimension_numbers<[1], [0], [0], [1], [0, 0, 1, 1], [], []>} : vector<2x32xf32>, vector<32x64xf32>, vector<2x64xf32> -> vector<2x64xf32>
    %1119 = vector.broadcast %12 : vector<1x64xf32> to vector<2x64xf32>
    %1120 = arith.addf %1118, %1119 : vector<2x64xf32>
    %1121 = arith.negf %1120 : vector<2x64xf32>
    %1122 = math.exp %1121 : vector<2x64xf32>
    %cst_307 = arith.constant 1.000000e+00 : f32
    %1123 = vector.broadcast %cst_307 : f32 to vector<2x64xf32>
    %1124 = arith.addf %1123, %1122 : vector<2x64xf32>
    %1125 = arith.divf %1123, %1124 : vector<2x64xf32>
    %1126 = math.tanh %1120 : vector<2x64xf32>
    %1127 = vector.extract_strided_slice %1125 {offsets = [0, 0], sizes = [2, 16], strides = [1, 1]} : vector<2x64xf32> to vector<2x16xf32>
    %1128 = vector.extract_strided_slice %1125 {offsets = [0, 16], sizes = [2, 16], strides = [1, 1]} : vector<2x64xf32> to vector<2x16xf32>
    %1129 = vector.extract_strided_slice %1126 {offsets = [0, 32], sizes = [2, 16], strides = [1, 1]} : vector<2x64xf32> to vector<2x16xf32>
    %1130 = vector.extract_strided_slice %1125 {offsets = [0, 48], sizes = [2, 16], strides = [1, 1]} : vector<2x64xf32> to vector<2x16xf32>
    %1131 = arith.mulf %1128, %990 : vector<2x16xf32>
    %1132 = arith.mulf %1127, %1129 : vector<2x16xf32>
    %1133 = arith.addf %1131, %1132 : vector<2x16xf32>
    %1134 = math.tanh %1133 : vector<2x16xf32>
    %1135 = arith.mulf %1130, %1134 : vector<2x16xf32>
    %c80_308 = arith.constant 80 : index
    %c0_309 = arith.constant 0 : index
    %1136 = vector.load %arg1[%c80_308, %c0_309] : memref<864x64xf32, #tpu.memory_space<vmem>>, vector<16x64xf32>
    %cst_310 = arith.constant dense<0.000000e+00> : vector<2x64xf32>
    %1137 = tpu.matmul %1135, %1136, %cst_310 {dimension_numbers = #tpu.dot_dimension_numbers<[1], [0], [0], [1], [0, 0, 1, 1], [], []>} : vector<2x16xf32>, vector<16x64xf32>, vector<2x64xf32> -> vector<2x64xf32>
    %1138 = vector.extract_strided_slice %1137 {offsets = [0, 0], sizes = [2, 16], strides = [1, 1]} : vector<2x64xf32> to vector<2x16xf32>
    %1139 = vector.broadcast %10 : vector<1x16xf32> to vector<2x16xf32>
    %1140 = arith.addf %1138, %1139 : vector<2x16xf32>
    %cst_311 = arith.constant dense<0xFF800000> : vector<2xf32>
    %1141 = vector.multi_reduction <maximumf>, %1140, %cst_311 [1] : vector<2x16xf32> to vector<2xf32>
    %cst_312 = arith.constant 0xFF800000 : f32
    %1142 = vector.broadcast %cst_312 : f32 to vector<2xf32>
    %1143 = arith.maximumf %1142, %1141 : vector<2xf32>
    %1144 = vector.shape_cast %1143 : vector<2xf32> to vector<2x1xf32>
    %1145 = vector.broadcast %1144 : vector<2x1xf32> to vector<2x16xf32>
    %1146 = arith.subf %1140, %1145 : vector<2x16xf32>
    %1147 = math.exp %1146 : vector<2x16xf32>
    %cst_313 = arith.constant dense<0.000000e+00> : vector<2xf32>
    %1148 = vector.multi_reduction <add>, %1147, %cst_313 [1] : vector<2x16xf32> to vector<2xf32>
    %1149 = vector.shape_cast %1148 : vector<2xf32> to vector<2x1xf32>
    %1150 = vector.broadcast %1149 : vector<2x1xf32> to vector<2x16xf32>
    %1151 = arith.divf %1147, %1150 : vector<2x16xf32>
    %cst_314 = arith.constant 4.000000e+00 : f32
    %1152 = vector.broadcast %cst_314 : f32 to vector<2x16xf32>
    %1153 = arith.mulf %1151, %1152 : vector<2x16xf32>
    %1154 = math.absf %1044 : vector<2x1xf32>
    %1155 = arith.addf %1012, %1154 : vector<2x1xf32>
    %cst_315 = arith.constant 1.000000e+00 : f32
    %1156 = vector.broadcast %cst_315 : f32 to vector<2x1xf32>
    %1157 = arith.addf %1155, %1156 : vector<2x1xf32>
    %cst_316 = arith.constant 2.500000e-01 : f32
    %1158 = vector.broadcast %cst_316 : f32 to vector<2x1xf32>
    %1159 = arith.mulf %1157, %1158 : vector<2x1xf32>
    %cst_317 = arith.constant 1.000000e+00 : f32
    %1160 = vector.broadcast %cst_317 : f32 to vector<2x1xf32>
    %1161 = arith.minimumf %1159, %1160 : vector<2x1xf32>
    %1162 = vector.broadcast %1161 : vector<2x1xf32> to vector<2x16xf32>
    %1163 = arith.mulf %1153, %1162 : vector<2x16xf32>
    %cst_318 = arith.constant 1.000000e+00 : f32
    %1164 = vector.broadcast %cst_318 : f32 to vector<2x1xf32>
    %1165 = arith.subf %1164, %1161 : vector<2x1xf32>
    %1166 = vector.broadcast %1165 : vector<2x1xf32> to vector<2x16xf32>
    %1167 = arith.mulf %1025, %1166 : vector<2x16xf32>
    %1168 = arith.addf %1163, %1167 : vector<2x16xf32>
    %1169 = arith.mulf %1168, %1067 : vector<2x16xf32>
    %1170 = vector.broadcast %7 : vector<1x16xf32> to vector<2x16xf32>
    %1171 = arith.mulf %1169, %1170 : vector<2x16xf32>
    %1172 = vector.broadcast %8 : vector<1x16xf32> to vector<2x16xf32>
    %1173 = arith.mulf %1168, %1172 : vector<2x16xf32>
    %1174 = arith.addf %1171, %1173 : vector<2x16xf32>
    %cst_319 = arith.constant dense<0.000000e+00> : vector<2xf32>
    %1175 = vector.multi_reduction <add>, %1174, %cst_319 [1] : vector<2x16xf32> to vector<2xf32>
    %1176 = vector.shape_cast %1175 : vector<2xf32> to vector<2x1xf32>
    %1177 = tpu.concatenate %176, %319, %462, %605, %748, %891, %1034, %1176 in 1 : vector<2x1xf32>, vector<2x1xf32>, vector<2x1xf32>, vector<2x1xf32>, vector<2x1xf32>, vector<2x1xf32>, vector<2x1xf32>, vector<2x1xf32> -> vector<2x8xf32>
    %c0_320 = arith.constant 0 : index
    %c0_321 = arith.constant 0 : index
    %1178 = vector.load %arg2[%c0_320, %c0_321] : memref<2x8xf32, #tpu.memory_space<vmem>>, vector<2x8xf32>
    tpu.vector_store %arg2[%c0_320, %c0_321], %1177 {strides = array<i32>} : memref<2x8xf32, #tpu.memory_space<vmem>>, vector<2x8xf32>,
    return
  }
}

</mosaic_0001>

<bundles_post_ra>
// kernel: tpu_custom_call.1
= control target key start
LH: loop header
LB: loop body
LE: loop exit
PB: predicated region body
PF: predicated region fallthrough
CT: control target
= control target key end

     0   :  { %v11991_v2 = vmov 0.0|0.0   ;;  %vm9613_vm0 = vmmov 0   ;;  %v11983_v4 = vmov 0.0   ;;  %s11978_s0 = inlined_call_operand.vmem [shape: f32[2,32], index: 0, kind: input, shape index: {}]   ;;  %s11979_s1 = inlined_call_operand.vmem [shape: f32[864,64], index: 1, kind: input, shape index: {}]   ;;  %s11980_s2 = inlined_call_operand.hbm [shape: f32[2,8], index: 2, kind: output, shape index: {}]  }
   0x1   :  { %v103_v0 = vld [vmem:[%s11979_s1 + $0x40] sm:$0xff]  ;;  %v104_v1 = vld [vmem:[%s11979_s1 + $0x48] sm:$0xff]  ;;  %8256 = vmatprep.subr.bf16.mxu0 %v11991_v2  ;;  %7540 = vmatprep.mubr.msk.f32.mxu0 %vm9613_vm0, %v11983_v4 }
   0x2   :  { %v9663_v3 = vpack.c.bf16 %v104_v1, %v103_v0  ;;  %v9670_v5 = vld [vmem:[%s11978_s0] sm:$0x3] }
   0x4   :  { %12070 = vst [vmem:[#allocation5_spill] sm:$0xff] %v9663_v3 }
   0x5   :  { %7 = vsyncpa [#allocation3], 0  ;;  %v11981_v6 = vmov 0   ;;  %8258 = vmatpush3.bf16.msra.mxu0 %v9663_v3  ;;  %v9680_v7 = vld [vmem:[%s11979_s1] ss:$0 sm:$0xff]  ;;  %s9616_s19 = smov 96   ;;  %v22_v22 = vlaneseq }
   0x6   :  { %9229 = vset.pattern.permute.xlu0 %v11981_v6  ;;  %9230 = vset.pattern.permute.xlu1 %v11981_v6  ;;  %v9686_v10 = vld [vmem:[%s11979_s1 + $0x8] ss:$0 sm:$0xff]  ;;  %s9617_s20 = smov 16   ;;  %s9618_s21 = smov 120   ;;  %v321_v36 = vld [vmem:[%s11979_s1 + $0x260] sm:$0xff]  ;;  %v323_v52 = vld [vmem:[%s11979_s1 + $0x270] sm:$0xff] }
   0x7   :  { %106 = vperm.xlu0 %9229, %v9670_v5   ;;  %v9696_v23 = vand.u32 127, %v22_v22  ;;  %v322_v37 = vld [vmem:[%s11979_s1 + $0x268] sm:$0xff]  ;;  %v289_v38 = vld [vmem:[%s11979_s1 + $0x160] sm:$0xff]  ;;  %v324_v54 = vld [vmem:[%s11979_s1 + $0x278] sm:$0xff]  ;;  %s9619_s17 = smov 32   ;;  %s9620_s29 = smov 80  }
   0x8   :  { %7541 = vmatmul.mubr.f32.vlgmr.msra.gmra.mrb[0].mxu0 %v11983_v4  ;;  %v9724_v42 = vpack.c.bf16 %v322_v37, %v321_v36  ;;  %v290_v43 = vld [vmem:[%s11979_s1 + $0x168] sm:$0xff]  ;;  %v305_v44 = vld [vmem:[%s11979_s1 + $0x1e0] sm:$0xff]  ;;  %v291_v55 = vld [vmem:[%s11979_s1 + $0x170] sm:$0xff]  ;;  %v9777_v59 = vpack.c.bf16 %v324_v54, %v323_v52  ;;  %vm114_vm7 = vcmask 130048   ;;  %vm576_vm10 = vcmask 523264   ;;  %s9621_s11 = smov 112  }
   0x9   :  { %v24_v24 = vadd.s32 128, %v9696_v23  ;;  %v25_v25 = vadd.s32 256, %v9696_v23  ;;  %v26_v26 = vadd.s32 384, %v9696_v23  ;;  %v27_v28 = vadd.s32 512, %v9696_v23  ;;  %v306_v45 = vld [vmem:[%s11979_s1 + $0x1e8] sm:$0xff]  ;;  %v273_v50 = vld [vmem:[%s11979_s1 + $0xe0] sm:$0xff] }
   0xa   :  { %v32_v34 = vand.u32 31, %v9696_v23  ;;  %12075 = vst [vmem:[#allocation6_spill] sm:$0xff] %v9724_v42  ;;  %v9742_v48 = vpack.c.bf16 %v290_v43, %v289_v38  ;;  %v9744_v49 = vpack.c.bf16 %v306_v45, %v305_v44  ;;  %v274_v51 = vld [vmem:[%s11979_s1 + $0xe8] sm:$0xff]  ;;  %8292 = vmatprep.subr.bf16.mxu0 %v9724_v42  ;;  %v292_v56 = vld [vmem:[%s11979_s1 + $0x178] sm:$0xff]  ;;  %v307_v61 = vld [vmem:[%s11979_s1 + $0x1f0] sm:$0xff]  ;;  %vm228_vm6 = vcmp.lt.s32.totalorder %v9696_v23, 32 }
   0xb   :  { %v39_v30 = vand.u32 31, %v24_v24  ;;  %v46_v31 = vand.u32 31, %v25_v25  ;;  %v53_v33 = vand.u32 31, %v26_v26  ;;  %v60_v35 = vand.u32 31, %v27_v28  ;;  %v308_v62 = vld [vmem:[%s11979_s1 + $0x1f8] sm:$0xff]  ;;  %v275_v63 = vld [vmem:[%s11979_s1 + $0xf0] sm:$0xff] }
   0xc   :  { %12079 = vst [vmem:[#allocation8_spill] sm:$0xff] %v9742_v48  ;;  %v9756_v53 = vpack.c.bf16 %v274_v51, %v273_v50  ;;  %vm9768_vm4 = vcmp.eq.s32.totalorder %v32_v34, 16  ;;  %8260 = vmatprep.subr.bf16.mxu1 %v9742_v48  ;;  %v9779_v60 = vpack.c.bf16 %v292_v56, %v291_v55  ;;  %8294 = vmatpush3.bf16.msra.mxu0 %v9744_v49  ;;  %v277_v22 = vld [vmem:[%s11979_s1 + $0x100] sm:$0xff]  ;;  %v278_v24 = vld [vmem:[%s11979_s1 + $0x108] sm:$0xff]  ;;  %v327_v28 = vld [vmem:[%s11979_s1 + $0x290] sm:$0xff]  ;;  %vm244_vm8 = vcmp.eq.s32.totalorder %v9696_v23, 16 }
   0xd   :  { %vm9716_vm1 = vcmp.eq.s32.totalorder %v39_v30, 16  ;;  %vm9720_vm2 = vcmp.eq.s32.totalorder %v46_v31, 16  ;;  %vm9738_vm3 = vcmp.eq.s32.totalorder %v53_v33, 16  ;;  %vm9772_vm5 = vcmp.eq.s32.totalorder %v60_v35, 16  ;;  %8296 = vmatprep.subr.bf16.mxu0 %v9777_v59  ;;  %v295_v30 = vld [vmem:[%s11979_s1 + $0x190] sm:$0xff]  ;;  %v296_v34 = vld [vmem:[%s11979_s1 + $0x198] sm:$0xff] }
   0xe   :  { %v94_v0 = vsel %vm9716_vm1, 0.5, %v11983_v4  ;;  %v95_v1 = vsel %vm9720_vm2, 0.5, %v11983_v4  ;;  %8262 = vmatpush3.bf16.msra.mxu1 %v9756_v53  ;;  %v93_v25 = vsel %vm9768_vm4, 0.5, %v11983_v4  ;;  %v97_v26 = vsel %vm9772_vm5, 0.5, %v11983_v4  ;;  %v311_v35 = vld [vmem:[%s11979_s1 + $0x210] sm:$0xff]  ;;  %v312_v36 = vld [vmem:[%s11979_s1 + $0x218] sm:$0xff] }
   0xf   :  { %8264 = vmatprep.subr.bf16.mxu1 %v9779_v60  ;;  %v9858_v33 = vpack.c.bf16 %v278_v24, %v277_v22  ;;  %v279_v40 = vld [vmem:[%s11979_s1 + $0x110] sm:$0xff]  ;;  %v280_v41 = vld [vmem:[%s11979_s1 + $0x118] sm:$0xff]  ;;  %v329_v43 = vld [vmem:[%s11979_s1 + $0x2a0] sm:$0xff]  ;;  %v9231_v44 = vpack.i.bf16 %v97_v26, %v93_v25  ;;  %v9897_v51 = vpack.c.bf16 %v312_v36, %v311_v35  ;;  %vm239_vm9 = vcmp.lt.s32.totalorder %v9696_v23, 16  ;;  %s9623_s12 = smov 116   ;;  %s9624_s13 = smov 124  }
  0x10   :  { %v330_v45 = vld [vmem:[%s11979_s1 + $0x2a8] sm:$0xff]  ;;  %v297_v47 = vld [vmem:[%s11979_s1 + $0x1a0] sm:$0xff]  ;;  %v9899_v52 = vpack.c.bf16 %v280_v41, %v279_v40  ;;  %v335_v40 = vld [vmem:[%s11979_s1 + $0x2d0] sm:$0xff]  ;;  %vm665_vm11 = vcmask 261120   ;;  %vm955_vm12 = vcmask 123904   ;;  %s9625_s14 = smov 8  }
  0x11   :  { %v298_v50 = vld [vmem:[%s11979_s1 + $0x1a8] sm:$0xff]  ;;  %v313_v54 = vld [vmem:[%s11979_s1 + $0x220] sm:$0xff]  ;;  %v9909_v56 = vpack.c.bf16 %v330_v45, %v329_v43  ;;  %v336_v41 = vld [vmem:[%s11979_s1 + $0x2d8] sm:$0xff]  ;;  %s9626_s15 = smov 4   ;;  %s9627_s16 = smov 12   ;;  %vm1034_vm13 = vcmask 31744  }
  0x12   :  { %v314_v55 = vld [vmem:[%s11979_s1 + $0x228] sm:$0xff]  ;;  %v9911_v57 = vpack.c.bf16 %v298_v50, %v297_v47  ;;  %v281_v58 = vld [vmem:[%s11979_s1 + $0x120] sm:$0xff]  ;;  %v303_v43 = vld [vmem:[%s11979_s1 + $0x1d0] sm:$0xff]  ;;  %vm1036_vm14 = vcmask 64512   ;;  %vm1038_vm15 = vcmask 97280   ;;  %s9628_s27 = smov 127  }
  0x13   :  { %v333_v22 = vld [vmem:[%s11979_s1 + $0x2c0] sm:$0xff]  ;;  %v334_v24 = vld [vmem:[%s11979_s1 + $0x2c8] sm:$0xff]  ;;  %v319_v50 = vld [vmem:[%s11979_s1 + $0x250] sm:$0xff]  ;;  %s9630_s23 = smov 126   ;;  %s9632_s5 = smov 125   ;;  %vm6541_vm1 = vcmask 15360  }
  0x14   :  { %v301_v25 = vld [vmem:[%s11979_s1 + $0x1c0] sm:$0xff]  ;;  %v302_v26 = vld [vmem:[%s11979_s1 + $0x1c8] sm:$0xff]  ;;  %s9635_s9 = smov 123   ;;  %vm6543_vm2 = vcmask 23552   ;;  %vm6548_vm4 = vcmask 48128   ;;  %vm6550_vm5 = vcmask 56320  }
  0x15   :  { %v9984_v35 = vpack.c.bf16 %v302_v26, %v301_v25  ;;  %v285_v36 = vld [vmem:[%s11979_s1 + $0x140] sm:$0xff]  ;;  %v573_v6 = vld [vmem:[%s11979_s1 + $0x88] sm:$0xff] }
  0x86   :  { %v107_v8 = vpop.permute.xlu0 %106 }
  0x87   :  { %v113_v9 = vmul.f32 %v9680_v7, %v107_v8  ;;  %v96_v8 = vsel %vm9738_vm3, 0.5, %v11983_v4  ;;  %vm6546_vm3 = vcmask 39936  }
  0xdb   :  { %v184_v11 = vpop.f32.mrb[0].mxu0 }
  0xdc   :  { %v188_v12 = vadd.f32 %v184_v11, %v113_v9  ;;  %v7542_v13 = vpop.f32.mrb[1].mxu0  ;;  %v9801_v9 = vpack.c.bf16 %v308_v62, %v307_v61  ;;  %v276_v11 = vld [vmem:[%s11979_s1 + $0xf8] sm:$0xff]  ;;  %v282_v61 = vld [vmem:[%s11979_s1 + $0x128] sm:$0xff]  ;;  %v331_v62 = vld [vmem:[%s11979_s1 + $0x2b0] sm:$0xff] }
  0xdd   :  { %v326_v13 = vld [vmem:[%s11979_s1 + $0x288] sm:$0xff] }
  0xde   :  { %v193_v14 = vadd.f32 %v9686_v10, %v188_v12  ;;  %v325_v12 = vld [vmem:[%s11979_s1 + $0x280] sm:$0xff]  ;;  %8298 = vmatpush3.bf16.msra.mxu0 %v9801_v9 }
  0xe0   :  { %9333 = vtanh.f32 %v193_v14  ;;  %v6570_v16 = vmul.f32 -1.442695, %v193_v14  ;;  %v9814_v14 = vpack.c.bf16 %v276_v11, %v275_v63  ;;  %v332_v63 = vld [vmem:[%s11979_s1 + $0x2b8] sm:$0xff]  ;;  %v9936_v11 = vpack.c.bf16 %v282_v61, %v281_v58  ;;  %v287_v61 = vld [vmem:[%s11979_s1 + $0x150] sm:$0xff] }
  0xe1   :  { %v320_v58 = vld [vmem:[%s11979_s1 + $0x258] sm:$0xff] }
  0xe2   :  { %9335 = vpow2.f32 %v6570_v16  ;;  %v293_v16 = vld [vmem:[%s11979_s1 + $0x180] sm:$0xff]  ;;  %8266 = vmatpush3.bf16.msra.mxu1 %v9814_v14 }
  0xea   :  { %v9334_v15 = vpop.eup %9333 }
  0xeb   :  { %203 = vrot.lane.b32.xlu0 %v9334_v15, %s9616_s19  ;;  %v9816_v15 = vpack.c.bf16 %v326_v13, %v325_v12  ;;  %v315_v12 = vld [vmem:[%s11979_s1 + $0x230] sm:$0xff]  ;;  %v316_v13 = vld [vmem:[%s11979_s1 + $0x238] sm:$0xff] }
  0xec   :  { %v9336_v17 = vpop.eup %9335 }
  0xed   :  { %v197_v18 = vadd.f32 1.0, %v9336_v17  ;;  %v294_v17 = vld [vmem:[%s11979_s1 + $0x188] sm:$0xff]  ;;  %8300 = vmatprep.subr.bf16.mxu0 %v9816_v15 }
  0xef   :  { %9337 = vrcp.f32 %v197_v18  ;;  %v309_v18 = vld [vmem:[%s11979_s1 + $0x200] sm:$0xff] }
  0xf9   :  { %v9690_v19 = vpop.eup %9337 }
  0xfa   :  { %v201_v27 = vmul.f32 0.0, %v9690_v19 }
 0x15d   :  { %v204_v20 = vpop.permute.xlu0 %203 }
 0x15e   :  { %v206_v21 = vmul.f32 %v9690_v19, %v204_v20  ;;  %v9827_v20 = vpack.c.bf16 %v294_v17, %v293_v16  ;;  %v9946_v16 = vpack.c.bf16 %v332_v63, %v331_v62  ;;  %v288_v62 = vld [vmem:[%s11979_s1 + $0x158] sm:$0xff]  ;;  %v10030_v63 = vpack.c.bf16 %v320_v58, %v319_v50 }
 0x160   :  { %208 = vrot.lane.b32.xlu1 %v206_v21, %s9617_s20  ;;  %v310_v21 = vld [vmem:[%s11979_s1 + $0x208] sm:$0xff]  ;;  %8268 = vmatprep.subr.bf16.mxu1 %v9827_v20  ;;  %12086 = vst [vmem:[#allocation11_spill] sm:$0xff] %v10030_v63 }
 0x161   :  { %v9856_v31 = vpack.c.bf16 %v310_v21, %v309_v18  ;;  %8270 = vmatpush3.bf16.msra.mxu1 %v9858_v33  ;;  %v283_v18 = vld [vmem:[%s11979_s1 + $0x130] sm:$0xff]  ;;  %v284_v21 = vld [vmem:[%s11979_s1 + $0x138] sm:$0xff] }
 0x163   :  { %8302 = vmatpush3.bf16.msra.mxu0 %v9856_v31 }
 0x164   :  { %99 = vrot.lane.b32.xlu1 %v9670_v5, %s9618_s21 }
 0x1d2   :  { %v209_v29 = vpop.permute.xlu1 %208 }
 0x1d3   :  { %v9703_v32 = vadd.f32 %v209_v29, %v201_v27  ;;  %v9236_v27 = vpack.i.bf16 %v96_v8, %v95_v1  ;;  %v328_v29 = vld [vmem:[%s11979_s1 + $0x298] sm:$0xff]  ;;  %v9934_v8 = vpack.c.bf16 %v314_v55, %v313_v54  ;;  %v10015_v54 = vpack.c.bf16 %v336_v41, %v335_v40  ;;  %v337_v41 = vld [vmem:[%s11979_s1 + $0x2e0] sm:$0xff] }
 0x1d4   :  { %v9871_v38 = vpack.c.bf16 %v328_v29, %v327_v28  ;;  %v300_v1 = vld [vmem:[%s11979_s1 + $0x1b8] sm:$0xff]  ;;  %v9972_v28 = vpack.c.bf16 %v284_v21, %v283_v18  ;;  %v317_v29 = vld [vmem:[%s11979_s1 + $0x240] sm:$0xff] }
 0x1d5   :  { %9339 = vtanh.f32 %v9703_v32 }
 0x1d6   :  { %v100_v39 = vpop.permute.xlu1 %99  ;;  %8304 = vmatprep.subr.bf16.mxu0 %v9871_v38 }
 0x1d7   :  { %v9736_v46 = vsub.f32 %v9670_v5, %v100_v39  ;;  %v9873_v39 = vpack.c.bf16 %v296_v34, %v295_v30  ;;  %8306 = vmatpush3.bf16.msra.mxu0 %v9897_v51  ;;  %v318_v30 = vld [vmem:[%s11979_s1 + $0x248] sm:$0xff]  ;;  %v9982_v34 = vpack.c.bf16 %v334_v24, %v333_v22 }
 0x1d8   :  { %8308 = vmatprep.subr.bf16.mxu0 %v9909_v56  ;;  %v10006_v45 = vpack.c.bf16 %v318_v30, %v317_v29 }
 0x1d9   :  { %12076 = vst [vmem:[#allocation7_spill] sm:$0xff] %v9736_v46  ;;  %260 = vperm.xlu1 %9230, %v9736_v46   ;;  %8272 = vmatprep.subr.bf16.mxu1 %v9873_v39 }
 0x1da   :  { %8274 = vmatpush3.bf16.msra.mxu1 %v9899_v52 }
 0x1db   :  { %8276 = vmatprep.subr.bf16.mxu1 %v9911_v57  ;;  %8310 = vmatpush3.bf16.msra.mxu0 %v9934_v8 }
 0x1dc   :  { %8312 = vmatprep.subr.bf16.mxu0 %v9946_v16 }
 0x1dd   :  { %220 = vrot.lane.b32.xlu1 %v94_v0, %s9619_s17  ;;  %v299_v0 = vld [vmem:[%s11979_s1 + $0x1b0] sm:$0xff] }
 0x1de   :  { %v9948_v17 = vpack.c.bf16 %v300_v1, %v299_v0  ;;  %8278 = vmatpush3.bf16.msra.mxu1 %v9936_v11  ;;  %v10032_v0 = vpack.c.bf16 %v288_v62, %v287_v61 }
 0x1df   :  { %v9340_v37 = vpop.eup %9339 }
 0x1e0   :  { %214 = vrot.lane.b32.xlu0 %v9340_v37, %s9619_s17  ;;  %8280 = vmatprep.subr.bf16.mxu1 %v9948_v17  ;;  %v286_v37 = vld [vmem:[%s11979_s1 + $0x148] sm:$0xff]  ;;  %12087 = vst [vmem:[#allocation12_spill] sm:$0xff] %v10032_v0 }
 0x1e1   :  { %9237 = vrot.lane.b32.xlu1 %v9236_v27, %s9619_s17  ;;  %v9970_v27 = vpack.c.bf16 %v316_v13, %v315_v12  ;;  %v10008_v47 = vpack.c.bf16 %v286_v37, %v285_v36  ;;  %v572_v36 = vld [vmem:[%s11979_s1 + $0x80] sm:$0xff] }
 0x1e2   :  { %8282 = vmatpush3.bf16.msra.mxu1 %v9972_v28 }
 0x1e3   :  { %8314 = vmatpush3.bf16.msra.mxu0 %v9970_v27  ;;  %12084 = vst [vmem:[#allocation9_spill] sm:$0xff] %v10008_v47  ;;  %8284 = vmatprep.subr.bf16.mxu1 %v9984_v35 }
 0x1e4   :  { %9232 = vrot.lane.b32.xlu0 %v9231_v44, %s9619_s17  ;;  %v304_v44 = vld [vmem:[%s11979_s1 + $0x1d8] sm:$0xff]  ;;  %8316 = vmatprep.subr.bf16.mxu0 %v9982_v34 }
 0x1e5   :  { %v10017_v55 = vpack.c.bf16 %v304_v44, %v303_v43  ;;  %v338_v43 = vld [vmem:[%s11979_s1 + $0x2e8] sm:$0xff] }
 0x1e6   :  { %8286 = vmatpush3.bf16.msra.mxu1 %v10008_v47  ;;  %v10076_v58 = vpack.c.bf16 %v338_v43, %v337_v41  ;;  %v345_v43 = vld [vmem:[%s11979_s1 + $0x320] sm:$0xff] }
 0x1e7   :  { %12085 = vst [vmem:[#allocation10_spill] sm:$0xff] %v10017_v55  ;;  %8318 = vmatpush3.bf16.msra.mxu0 %v10006_v45  ;;  %8288 = vmatprep.subr.bf16.mxu1 %v10017_v55 }
 0x1e8   :  { %8320 = vmatprep.subr.bf16.mxu0 %v10015_v54  ;;  %12088 = vst [vmem:[#allocation13_spill] sm:$0xff] %v10076_v58 }
 0x1ea   :  { %8290 = vmatpush3.bf16.msra.mxu1 %v10032_v0 }
 0x1eb   :  { %8322 = vmatpush3.bf16.msra.mxu0 %v10030_v63  ;;  %8323 = vmatprep.subr.bf16.mxu1 %v11991_v2 }
 0x1ec   :  { %8347 = vmatprep.subr.bf16.mxu0 %v11991_v2 }
 0x252   :  { %v215_v1 = vpop.permute.xlu0 %214 }
 0x253   :  { %v217_v12 = vmul.f32 %v9690_v19, %v215_v1  ;;  %v339_v1 = vld [vmem:[%s11979_s1 + $0x2f0] sm:$0xff] }
 0x255   :  { %235 = vrot.lane.b32.xlu0 %v217_v12, %s9620_s29  ;;  %v340_v12 = vld [vmem:[%s11979_s1 + $0x2f8] sm:$0xff] }
 0x256   :  { %v9233_v18 = vpop.permute.xlu0 %9232 }
 0x257   :  { %v9234_v21 = vunpack.i.l.bf16 %v9233_v18  ;;  %v9235_v37 = vunpack.i.h.bf16 %v9233_v18 }
 0x258   :  { %v261_v13 = vpop.permute.xlu1 %260 }
 0x259   :  { %v233_v40 = vsel %vm228_vm6, %v9235_v37, %v9234_v21 }
 0x25a   :  { %v253_v44 = vsel %vm228_vm6, 0.0, %v233_v40  ;;  %v344_v40 = vld [vmem:[%s11979_s1 + $0x318] sm:$0xff] }
 0x25b   :  { %v263_v62 = vsel %vm244_vm8, %v261_v13, %v253_v44  ;;  %v10100_v13 = vpack.c.bf16 %v340_v12, %v339_v1  ;;  %v346_v44 = vld [vmem:[%s11979_s1 + $0x328] sm:$0xff]  ;;  %v348_v1 = vld [vmem:[%s11979_s1 + $0x338] sm:$0xff] }
 0x25c   :  { %v221_v22 = vpop.permute.xlu1 %220 }
 0x25d   :  { %v10045_v24 = vsel %vm228_vm6, %v9234_v21, %v221_v22  ;;  %12089 = vst [vmem:[#allocation14_spill] sm:$0xff] %v10100_v13 }
 0x25e   :  { %421 = vmatprep.mubr.f32.mxu1 %v10045_v24 }
 0x260   :  { %v9238_v25 = vpop.permute.xlu1 %9237 }
 0x261   :  { %v9240_v26 = vunpack.i.h.bf16 %v9238_v25  ;;  %v9239_v29 = vunpack.i.l.bf16 %v9238_v25  ;;  %v341_v25 = vld [vmem:[%s11979_s1 + $0x300] sm:$0xff] }
 0x263   :  { %v10050_v19 = vsel %vm228_vm6, %v9239_v29, %v9240_v26  ;;  %v10054_v30 = vsel %vm228_vm6, %v221_v22, %v9239_v29  ;;  %v10090_v18 = vsel %vm228_vm6, %v9240_v26, %v9235_v37  ;;  %v342_v26 = vld [vmem:[%s11979_s1 + $0x308] sm:$0xff]  ;;  %v343_v37 = vld [vmem:[%s11979_s1 + $0x310] sm:$0xff] }
 0x264   :  { %491 = vmatprep.mubr.f32.mxu0 %v10050_v19  ;;  %v10112_v29 = vpack.c.bf16 %v342_v26, %v341_v25  ;;  %v10122_v41 = vpack.c.bf16 %v344_v40, %v343_v37  ;;  %v349_v25 = vld [vmem:[%s11979_s1 + $0x340] sm:$0xff]  ;;  %v350_v26 = vld [vmem:[%s11979_s1 + $0x348] sm:$0xff]  ;;  %v351_v40 = vld [vmem:[%s11979_s1 + $0x350] sm:$0xff] }
 0x265   :  { %492 = vmatmul.mubr.f32.vlgmr.msra.gmra.mrb[2].mxu0 %v10054_v30  ;;  %v10152_v37 = vpack.c.bf16 %v350_v26, %v349_v25  ;;  %v570_v25 = vld [vmem:[%s11979_s1 + $0x70] sm:$0xff] }
 0x266   :  { %7594 = vmatprep.mubr.msk.f32.mxu0 %vm9613_vm0, %v11983_v4  ;;  %12090 = vst [vmem:[#allocation15_spill] sm:$0xff] %v10112_v29  ;;  %12091 = vst [vmem:[#allocation16_spill] sm:$0xff] %v10122_v41  ;;  %v574_v22 = vld [vmem:[%s11979_s1 + $0x90] sm:$0xff] }
 0x267   :  { %12094 = vst [vmem:[#allocation19_spill] sm:$0xff] %v10152_v37 }
 0x2c7   :  { %v10074_v50 = vpop.permute.xlu0 %235 }
 0x2c8   :  { %v238_v61 = vsel %vm114_vm7, %v10074_v50, 0.0 }
 0x2c9   :  { %v10094_v21 = vsel %vm239_vm9, %v238_v61, %v263_v62  ;;  %v10132_v61 = vpack.c.bf16 %v346_v44, %v345_v43  ;;  %v347_v62 = vld [vmem:[%s11979_s1 + $0x330] sm:$0xff]  ;;  %v352_v43 = vld [vmem:[%s11979_s1 + $0x358] sm:$0xff] }
 0x2ca   :  { %422 = vmatmul.mubr.f32.vlgmr.msra.gmra.mrb[0].mxu1 %v10094_v21  ;;  %v10142_v12 = vpack.c.bf16 %v348_v1, %v347_v62  ;;  %v10162_v44 = vpack.c.bf16 %v352_v43, %v351_v40  ;;  %v568_v62 = vld [vmem:[%s11979_s1 + $0x60] sm:$0xff]  ;;  %v569_v1 = vld [vmem:[%s11979_s1 + $0x68] sm:$0xff]  ;;  %v571_v40 = vld [vmem:[%s11979_s1 + $0x78] sm:$0xff] }
 0x2cb   :  { %8325 = vmatpush3.bf16.msra.mxu1 %v10076_v58  ;;  %7575 = vmatprep.mubr.msk.f32.mxu1 %vm9613_vm0, %v11983_v4  ;;  %12092 = vst [vmem:[#allocation17_spill] sm:$0xff] %v10132_v61  ;;  %v10179_v26 = vpack.c.bf16 %v569_v1, %v568_v62  ;;  %v10185_v43 = vpack.c.bf16 %v571_v40, %v570_v25 }
 0x2cc   :  { %8326 = vmatprep.subr.bf16.mxu1 %v11991_v2  ;;  %12093 = vst [vmem:[#allocation18_spill] sm:$0xff] %v10142_v12  ;;  %12095 = vst [vmem:[#allocation20_spill] sm:$0xff] %v10162_v44  ;;  %v10195_v62 = vpack.c.bf16 %v573_v6, %v572_v36  ;;  %v10213_v36 = vld [vmem:[%s11979_s1 + $0x10] ss:$0 sm:$0xff] }
 0x2cd   :  { %12096 = vst [vmem:[#allocation21_spill] sm:$0xff] %v10179_v26  ;;  %8349 = vmatpush3.bf16.msra.mxu0 %v10179_v26  ;;  %12097 = vst [vmem:[#allocation22_spill] sm:$0xff] %v10185_v43 }
 0x2ce   :  { %8350 = vmatprep.subr.bf16.mxu0 %v11991_v2  ;;  %12098 = vst [vmem:[#allocation23_spill] sm:$0xff] %v10195_v62  ;;  %12100 = vst [vmem:[#allocation25_spill] sm:$0xff] %v10213_v36 }
 0x2cf   :  { %8328 = vmatpush3.bf16.msra.mxu1 %v10100_v13 }
 0x2d0   :  { %8329 = vmatprep.subr.bf16.mxu1 %v11991_v2 }
 0x2d1   :  { %8352 = vmatpush3.bf16.msra.mxu0 %v10185_v43 }
 0x2d2   :  { %8353 = vmatprep.subr.bf16.mxu0 %v11991_v2 }
 0x2d3   :  { %8331 = vmatpush3.bf16.msra.mxu1 %v10112_v29 }
 0x2d4   :  { %8332 = vmatprep.subr.bf16.mxu1 %v11991_v2 }
 0x2d5   :  { %8355 = vmatpush3.bf16.msra.mxu0 %v10195_v62 }
 0x2d6   :  { %8356 = vmatprep.subr.bf16.mxu0 %v11991_v2 }
 0x2d7   :  { %8334 = vmatpush3.bf16.msra.mxu1 %v10122_v41 }
 0x2d8   :  { %8335 = vmatprep.subr.bf16.mxu1 %v11991_v2 }
 0x2db   :  { %8337 = vmatpush3.bf16.msra.mxu1 %v10132_v61 }
 0x2dc   :  { %8338 = vmatprep.subr.bf16.mxu1 %v11991_v2 }
 0x2df   :  { %8340 = vmatpush3.bf16.msra.mxu1 %v10142_v12 }
 0x2e0   :  { %8341 = vmatprep.subr.bf16.mxu1 %v11991_v2 }
 0x2e3   :  { %8343 = vmatpush3.bf16.msra.mxu1 %v10152_v37 }
 0x2e4   :  { %8344 = vmatprep.subr.bf16.mxu1 %v11991_v2 }
 0x2e7   :  { %8346 = vmatpush3.bf16.msra.mxu1 %v10162_v44 }
 0x2e8   :  { %8371 = vmatprep.subr.bf16.mxu1 %v11991_v2 }
 0x2ea   :  { %7576 = vmatmul.mubr.f32.vlgmr.msra.gmra.mrb[2].mxu1 %v10090_v18 }
 0x2eb   :  { %7623 = vmatprep.mubr.msk.f32.mxu1 %vm9613_vm0, %v11983_v4  ;;  %v575_v4 = vld [vmem:[%s11979_s1 + $0x98] sm:$0xff] }
 0x2ec   :  { %v10206_v44 = vpack.c.bf16 %v575_v4, %v574_v22  ;;  %v656_v4 = vld [vmem:[%s11979_s1 + $0xa0] sm:$0xff]  ;;  %v657_v22 = vld [vmem:[%s11979_s1 + $0xa8] sm:$0xff] }
 0x2ed   :  { %v10222_v62 = vpack.c.bf16 %v657_v22, %v656_v4  ;;  %v10252_v22 = vld [vmem:[%s11979_s1 + $0x38] ss:$0 sm:$0xff] }
 0x2ee   :  { %12099 = vst [vmem:[#allocation24_spill] sm:$0xff] %v10206_v44  ;;  %8358 = vmatpush3.bf16.msra.mxu0 %v10206_v44  ;;  %12106 = vst [vmem:[#allocation29_spill] sm:$0xff] %v10252_v22 }
 0x2ef   :  { %8359 = vmatprep.subr.bf16.mxu0 %v11991_v2  ;;  %12101 = vst [vmem:[#allocation26_spill] sm:$0xff] %v10222_v62 }
 0x338   :  { %v6710_v1 = vpop.f32.mrb[2].mxu0 }
 0x339   :  { %v6711_v25 = vpop.f32.mrb[3].mxu0 }
 0x33a   :  { %v6712_v40 = vadd.f32 %v6711_v25, %v6710_v1 }
 0x39d   :  { %v6675_v6 = vpop.f32.mrb[0].mxu1 }
 0x39e   :  { %v6676_v1 = vpop.f32.mrb[1].mxu1 }
 0x39f   :  { %v6677_v25 = vadd.f32 %v6676_v1, %v6675_v6  ;;  %v658_v6 = vld [vmem:[%s11979_s1 + $0xb0] sm:$0xff] }
 0x3a1   :  { %v424_v37 = vadd.f32 %v6677_v25, %v10213_v36 }
 0x3a3   :  { %v494_v12 = vadd.f32 %v6712_v40, %v424_v37  ;;  %v12102_v37 = vmov 0.0   ;;  %v12103_v40 = vmov 0.0|0.0  }
 0x3bd   :  { %v563_v2 = vpop.f32.mrb[2].mxu1 }
 0x3be   :  { %v564_v44 = vadd.f32 %v563_v2, %v494_v12  ;;  %v7577_v61 = vpop.f32.mrb[3].mxu1  ;;  %v659_v2 = vld [vmem:[%s11979_s1 + $0xb8] sm:$0xff] }
 0x3bf   :  { %v10235_v61 = vpack.c.bf16 %v659_v2, %v658_v6 }
 0x3c0   :  { %v567_v41 = vmax.f32 %v564_v44, 0.0 }
 0x3c1   :  { %12104 = vst [vmem:[#allocation27_spill] sm:$0xff] %v10235_v61 }
 0x3c2   :  { %7595 = vmatmul.mubr.msk.f32.vlgmr.msra.gmra.mrb[4].mxu0 %vm576_vm10, %v567_v41  ;;  %v10242_v41 = vld [vmem:[%s11979_s1 + $0x28] ss:$0 sm:$0xff] }
 0x3c3   :  { %8361 = vmatpush3.bf16.msra.mxu0 %v10222_v62  ;;  %7605 = vmatprep.mubr.msk.f32.mxu0 %vm9613_vm0, %v12102_v37  ;;  %12105 = vst [vmem:[#allocation28_spill] sm:$0xff] %v10242_v41 }
 0x3c4   :  { %8362 = vmatprep.subr.bf16.mxu0 %v12103_v40 }
 0x3c7   :  { %8364 = vmatpush3.bf16.msra.mxu0 %v10235_v61 }
 0x3c8   :  { %8365 = vmatprep.subr.bf16.mxu0 %v12103_v40 }
 0x495   :  { %v646_v12 = vpop.f32.mrb[4].mxu0 }
 0x496   :  { %v654_v44 = vadd.f32 %v10242_v41, %v646_v12  ;;  %v7596_v1 = vpop.f32.mrb[5].mxu0 }
 0x498   :  { %v655_v25 = vmax.f32 %v654_v44, 0.0 }
 0x49a   :  { %v660_v4 = vsel %vm114_vm7, %v655_v25, 0.0 }
 0x49b   :  { %7606 = vmatmul.mubr.msk.f32.vlgmr.msra.gmra.mrb[6].mxu0 %vm665_vm11, %v660_v4 }
 0x49c   :  { %7616 = vmatprep.mubr.msk.f32.mxu0 %vm9613_vm0, %v12102_v37 }
 0x56e   :  { %v735_v6 = vpop.f32.mrb[6].mxu0 }
 0x56f   :  { %v736_v2 = vadd.f32 %v10252_v22, %v735_v6  ;;  %v7607_v61 = vpop.f32.mrb[7].mxu0  ;;  %v764_v6 = vld [vmem:[%s11979_s1 + $0xc8] sm:$0xff] }
 0x570   :  { %v763_v61 = vld [vmem:[%s11979_s1 + $0xc0] sm:$0xff] }
 0x571   :  { %9341 = vtanh.f32 %v736_v2  ;;  %v6576_v44 = vmul.f32 -1.442695, %v736_v2  ;;  %v10269_v2 = vpack.c.bf16 %v764_v6, %v763_v61 }
 0x573   :  { %9343 = vpow2.f32 %v6576_v44  ;;  %12108 = vst [vmem:[#allocation31_spill] sm:$0xff] %v10269_v2  ;;  %8367 = vmatpush3.bf16.msra.mxu0 %v10269_v2 }
 0x574   :  { %8368 = vmatprep.subr.bf16.mxu0 %v12103_v40 }
 0x57b   :  { %v9342_v12 = vpop.eup %9341 }
 0x57c   :  { %748 = vrot.lane.b32.xlu0 %v9342_v12, %s9616_s19 }
 0x57d   :  { %v9344_v1 = vpop.eup %9343 }
 0x57e   :  { %v742_v25 = vadd.f32 1.0, %v9344_v1 }
 0x580   :  { %9345 = vrcp.f32 %v742_v25 }
 0x58a   :  { %v9346_v4 = vpop.eup %9345 }
 0x58b   :  { %v746_v36 = vmul.f32 0.0, %v9346_v4 }
 0x5ee   :  { %v749_v41 = vpop.permute.xlu0 %748 }
 0x5ef   :  { %v751_v62 = vmul.f32 %v9346_v4, %v749_v41  ;;  %v765_v41 = vld [vmem:[%s11979_s1 + $0xd0] sm:$0xff] }
 0x5f1   :  { %753 = vrot.lane.b32.xlu1 %v751_v62, %s9617_s20 }
 0x663   :  { %v754_v43 = vpop.permute.xlu1 %753 }
 0x664   :  { %v10257_v29 = vadd.f32 %v754_v43, %v746_v36  ;;  %v766_v43 = vld [vmem:[%s11979_s1 + $0xd8] sm:$0xff] }
 0x665   :  { %v10275_v62 = vpack.c.bf16 %v766_v43, %v765_v41 }
 0x666   :  { %12107 = vst [vmem:[#allocation30_spill] sm:$0xff] %v10257_v29  ;;  %9347 = vtanh.f32 %v10257_v29 }
 0x667   :  { %12109 = vst [vmem:[#allocation32_spill] sm:$0xff] %v10275_v62  ;;  %8370 = vmatpush3.bf16.msra.mxu0 %v10275_v62 }
 0x668   :  { %8374 = vmatprep.subr.bf16.mxu0 %v12103_v40 }
 0x670   :  { %v9348_v36 = vpop.eup %9347 }
 0x671   :  { %759 = vrot.lane.b32.xlu0 %v9348_v36, %s9619_s17 }
 0x6e3   :  { %v760_v12 = vpop.permute.xlu0 %759 }
 0x6e4   :  { %v10281_v44 = vmul.f32 %v9346_v4, %v760_v12  ;;  %v10294_v4 = vld [vmem:[%s11979_s1 + $0x39] ss:$0 sm:$0xff] }
 0x6e6   :  { %768 = vrot.lane.b32.xlu1 %v10281_v44, %s9620_s29 }
 0x758   :  { %v769_v1 = vpop.permute.xlu1 %768 }
 0x759   :  { %v771_v25 = vsel %vm114_vm7, %v769_v1, 0.0 }
 0x75a   :  { %7617 = vmatmul.mubr.msk.f32.vlgmr.msra.gmra.mrb[8].mxu0 %vm665_vm11, %v771_v25 }
 0x75b   :  { %8376 = vmatpush3.bf16.msra.mxu0 %v9663_v3  ;;  %7630 = vmatprep.mubr.msk.f32.mxu0 %vm9613_vm0, %v12102_v37 }
 0x75c   :  { %8410 = vmatprep.subr.bf16.mxu0 %v9724_v42 }
 0x82d   :  { %v845_v61 = vpop.f32.mrb[8].mxu0 }
 0x82e   :  { %v846_v6 = vadd.f32 %v10294_v4, %v845_v61  ;;  %v7618_v41 = vpop.f32.mrb[9].mxu0  ;;  %v873_v61 = vld [vmem:[%s11979_s1 + $0x50] sm:$0xff] }
 0x830   :  { %9349 = vtanh.f32 %v846_v6  ;;  %v6579_v36 = vmul.f32 -1.442695, %v846_v6  ;;  %v874_v6 = vld [vmem:[%s11979_s1 + $0x58] sm:$0xff] }
 0x831   :  { %v10308_v41 = vpack.c.bf16 %v874_v6, %v873_v61 }
 0x832   :  { %9351 = vpow2.f32 %v6579_v36 }
 0x833   :  { %12110 = vst [vmem:[#allocation33_spill] sm:$0xff] %v10308_v41  ;;  %8373 = vmatpush3.bf16.msra.mxu1 %v10308_v41 }
 0x834   :  { %8378 = vmatprep.subr.bf16.mxu1 %v9742_v48 }
 0x83a   :  { %v9350_v43 = vpop.eup %9349 }
 0x83b   :  { %858 = vrot.lane.b32.xlu0 %v9350_v43, %s9616_s19 }
 0x83c   :  { %v9352_v12 = vpop.eup %9351 }
 0x83d   :  { %v852_v1 = vadd.f32 1.0, %v9352_v12 }
 0x83f   :  { %9353 = vrcp.f32 %v852_v1 }
 0x849   :  { %v9354_v25 = vpop.eup %9353 }
 0x84a   :  { %v856_v29 = vmul.f32 0.0, %v9354_v25 }
 0x8ad   :  { %v859_v42 = vpop.permute.xlu0 %858 }
 0x8ae   :  { %v861_v3 = vmul.f32 %v9354_v25, %v859_v42  ;;  %v12019_v42 = vand.u32 2147483647, %v9736_v46 }
 0x8b0   :  { %863 = vrot.lane.b32.xlu1 %v861_v3, %s9617_s20 }
 0x922   :  { %v864_v22 = vpop.permute.xlu1 %863 }
 0x923   :  { %v10299_v62 = vadd.f32 %v864_v22, %v856_v29  ;;  %v970_v29 = vadd.f32 4.5, %v12019_v42 }
 0x925   :  { %9355 = vtanh.f32 %v10299_v62  ;;  %v971_v22 = vmul.f32 0.25, %v970_v29 }
 0x927   :  { %v972_v12 = vmin.f32 %v971_v22, 1.0 }
 0x929   :  { %v979_v1 = vsub.f32 1.0, %v972_v12 }
 0x92f   :  { %v9356_v3 = vpop.eup %9355 }
 0x930   :  { %869 = vrot.lane.b32.xlu0 %v9356_v3, %s9619_s17 }
 0x9a2   :  { %v870_v43 = vpop.permute.xlu0 %869 }
 0x9a3   :  { %v10316_v36 = vmul.f32 %v9354_v25, %v870_v43  ;;  %v10340_v25 = vld [vmem:[%s11979_s1 + $0x30] ss:$0 sm:$0xff] }
 0x9a4   :  { %12111 = vst [vmem:[#allocation34_spill] sm:$0xff] %v10340_v25 }
 0x9a5   :  { %876 = vrot.lane.b32.xlu1 %v10316_v36, %s9620_s29 }
 0x9a9   :  { %982 = vperm.xlu1 %9230, %v979_v1  }
 0xa17   :  { %v877_v61 = vpop.permute.xlu1 %876 }
 0xa18   :  { %7624 = vmatmul.mubr.msk.f32.vlgmr.msra.gmra.mrb[4].mxu1 %vm114_vm7, %v877_v61 }
 0xa19   :  { %8380 = vmatpush3.bf16.msra.mxu1 %v9756_v53 }
 0xa1a   :  { %8382 = vmatprep.subr.bf16.mxu1 %v9779_v60 }
 0xa1d   :  { %8384 = vmatpush3.bf16.msra.mxu1 %v9814_v14 }
 0xa1e   :  { %8386 = vmatprep.subr.bf16.mxu1 %v9827_v20 }
 0xa21   :  { %8388 = vmatpush3.bf16.msra.mxu1 %v9858_v33 }
 0xa22   :  { %8390 = vmatprep.subr.bf16.mxu1 %v9873_v39 }
 0xa25   :  { %8392 = vmatpush3.bf16.msra.mxu1 %v9899_v52 }
 0xa26   :  { %8394 = vmatprep.subr.bf16.mxu1 %v9911_v57 }
 0xa29   :  { %8396 = vmatpush3.bf16.msra.mxu1 %v9936_v11 }
 0xa2a   :  { %8398 = vmatprep.subr.bf16.mxu1 %v9948_v17 }
 0xa2d   :  { %8400 = vmatpush3.bf16.msra.mxu1 %v9972_v28 }
 0xa2e   :  { %8402 = vmatprep.subr.bf16.mxu1 %v9984_v35 }
 0xa31   :  { %8404 = vmatpush3.bf16.msra.mxu1 %v10008_v47 }
 0xa32   :  { %8406 = vmatprep.subr.bf16.mxu1 %v10017_v55 }
 0xa35   :  { %8408 = vmatpush3.bf16.msra.mxu1 %v10032_v0  ;;  %v983_v0 = vpop.permute.xlu1 %982 }
 0xa36   :  { %8441 = vmatprep.subr.bf16.mxu1 %v12103_v40 }
 0xaeb   :  { %v946_v6 = vpop.f32.mrb[4].mxu1 }
 0xaec   :  { %v954_v3 = vadd.f32 %v10340_v25, %v946_v6  ;;  %v7625_v29 = vpop.f32.mrb[5].mxu1  ;;  %v985_v6 = vmul.f32 %v983_v0, %v9670_v5 }
 0xaed   :  { %v9622_v29 = vmov 1  }
 0xaee   :  { %v956_v22 = vsel %vm955_vm12, %v954_v3, -inf }
 0xaef   :  { %957 = vmax.xlane.f32.xlu0 %v956_v22 }
 0xb05   :  { %975 = vperm.xlu0 %9229, %v972_v12  }
 0xb09   :  { %993 = vrot.lane.b32.xlu0 %v9703_v32, %s9621_s11 }
 0xb0a   :  { %9241 = vset.pattern.permute.xlu0 %v9622_v29 }
 0xb0d   :  { %1042 = vperm.xlu0 %9241, %v9670_v5  }
 0xb7c   :  { %v958_v43 = vpop.xlane.xlu0 %957 }
 0xb7d   :  { %v959_v1 = vsub.f32 %v954_v3, %v958_v43 }
 0xb7f   :  { %v960_v61 = vmul.f32 1.442695, %v959_v1 }
 0xb81   :  { %9357 = vpow2.f32 %v960_v61 }
 0xb84   :  { %v976_v3 = vpop.permute.xlu0 %975 }
 0xb8b   :  { %v9358_v42 = vpop.eup %9357 }
 0xb8c   :  { %v962_v46 = vsel %vm955_vm12, %v9358_v42, 0.0 }
 0xb8d   :  { %963 = vadd.xlane.f32.xlu1 %v962_v46  ;;  %v994_v46 = vpop.permute.xlu0 %993 }
 0xb91   :  { %v1043_v5 = vpop.permute.xlu0 %1042 }
 0xb9e   :  { %987 = vrot.lane.b32.xlu1 %v985_v6, %s9621_s11 }
 0xc1a   :  { %v964_v12 = vpop.xlane.xlu1 %963 }
 0xc1b   :  { %9359 = vrcp.f32 %v964_v12 }
 0xc1e   :  { %v988_v61 = vpop.permute.xlu1 %987 }
 0xc25   :  { %v9360_v32 = vpop.eup %9359 }
 0xc26   :  { %v966_v22 = vmul.f32 %v9360_v32, %v9358_v42 }
 0xc28   :  { %v967_v43 = vmul.f32 4.0, %v966_v22 }
 0xc2a   :  { %v978_v1 = vmul.f32 %v976_v3, %v967_v43  ;;  %v1045_v3 = vmul.f32 %v9680_v7, %v1043_v5  ;;  %v10393_v5 = vld [vmem:[%s11979_s1 + $0x20] ss:$0 sm:$0xff] }
 0xc2c   :  { %v10350_v25 = vadd.f32 %v988_v61, %v978_v1 }
 0xc2e   :  { %v991_v0 = vmul.f32 %v10350_v25, %v10074_v50  ;;  %v996_v29 = vmul.f32 %v994_v46, %v10350_v25 }
 0xc30   :  { %1020 = vrot.lane.b32.xlu0 %v996_v29, %s9623_s12  ;;  %1012 = vrot.lane.b32.xlu1 %v996_v29, %s9624_s13 }
 0xc31   :  { %7631 = vmatmul.mubr.msk.f32.vlgmr.msra.gmra.mrb[10].mxu0 %vm114_vm7, %v991_v0 }
 0xc32   :  { %8412 = vmatpush3.bf16.msra.mxu0 %v9744_v49 }
 0xc33   :  { %8414 = vmatprep.subr.bf16.mxu0 %v9777_v59 }
 0xc34   :  { %1016 = vrot.lane.b32.xlu1 %v996_v29, %s9618_s21 }
 0xc36   :  { %8416 = vmatpush3.bf16.msra.mxu0 %v9801_v9 }
 0xc37   :  { %8418 = vmatprep.subr.bf16.mxu0 %v9816_v15 }
 0xc3a   :  { %8420 = vmatpush3.bf16.msra.mxu0 %v9856_v31 }
 0xc3b   :  { %8422 = vmatprep.subr.bf16.mxu0 %v9871_v38 }
 0xc3e   :  { %8424 = vmatpush3.bf16.msra.mxu0 %v9897_v51 }
 0xc3f   :  { %8426 = vmatprep.subr.bf16.mxu0 %v9909_v56 }
 0xc42   :  { %8428 = vmatpush3.bf16.msra.mxu0 %v9934_v8 }
 0xc43   :  { %8430 = vmatprep.subr.bf16.mxu0 %v9946_v16 }
 0xc46   :  { %8432 = vmatpush3.bf16.msra.mxu0 %v9970_v27 }
 0xc47   :  { %8434 = vmatprep.subr.bf16.mxu0 %v9982_v34 }
 0xc4a   :  { %8436 = vmatpush3.bf16.msra.mxu0 %v10006_v45 }
 0xc4b   :  { %8438 = vmatprep.subr.bf16.mxu0 %v10015_v54 }
 0xc4e   :  { %8440 = vmatpush3.bf16.msra.mxu0 %v10030_v63 }
 0xc4f   :  { %8465 = vmatprep.subr.bf16.mxu0 %v12103_v40 }
 0xca2   :  { %v1013_v50 = vpop.permute.xlu1 %1012  ;;  %v1021_v32 = vpop.permute.xlu0 %1020 }
 0xca3   :  { %v1015_v42 = vadd.f32 %v1013_v50, %v996_v29 }
 0xca6   :  { %v1017_v6 = vpop.permute.xlu1 %1016 }
 0xca7   :  { %v1019_v12 = vadd.f32 %v1017_v6, %v1015_v42 }
 0xca9   :  { %v1023_v22 = vadd.f32 %v1021_v32, %v1019_v12 }
 0xcab   :  { %1028 = vrot.lane.b32.xlu0 %v1023_v22, %s9625_s14  ;;  %1025 = vrot.lane.b32.xlu1 %v1023_v22, %s9626_s15 }
 0xcaf   :  { %1031 = vrot.lane.b32.xlu1 %v1023_v22, %s9627_s16 }
 0xd04   :  { %v1115_v43 = vpop.f32.mrb[10].mxu0 }
 0xd05   :  { %v1119_v1 = vadd.f32 %v1115_v43, %v1045_v3  ;;  %v7632_v61 = vpop.f32.mrb[11].mxu0  ;;  %v1006_v3 = vmul.f32 %v10393_v5, %v10350_v25 }
 0xd07   :  { %v1120_v46 = vadd.f32 %v9686_v10, %v1119_v1  ;;  %v10388_v10 = vld [vmem:[%s11979_s1 + $0x18] ss:$0 sm:$0xff] }
 0xd08   :  { %12112 = vst [vmem:[#allocation35_spill] sm:$0xff] %v10388_v10 }
 0xd09   :  { %9361 = vtanh.f32 %v1120_v46  ;;  %v6585_v61 = vmul.f32 -1.442695, %v1120_v46  ;;  %v10409_v46 = vld [vmem:[%s11978_s0] sm:$0x3] }
 0xd0b   :  { %9363 = vpow2.f32 %v6585_v61  ;;  %v12115_v61 = vmov 0  }
 0xd13   :  { %v9362_v29 = vpop.eup %9361 }
 0xd14   :  { %1134 = vrot.lane.b32.xlu0 %v9362_v29, %s9616_s19 }
 0xd15   :  { %v9364_v29 = vpop.eup %9363 }
 0xd1d   :  { %v1026_v50 = vpop.permute.xlu1 %1025  ;;  %v1029_v42 = vpop.permute.xlu0 %1028 }
 0xd1e   :  { %v1035_v6 = vsel %vm1034_vm13, %v1023_v22, %v1026_v50  ;;  %v1001_v22 = vmul.f32 %v10388_v10, %v991_v0  ;;  %v1124_v50 = vadd.f32 1.0, %v9364_v29 }
 0xd1f   :  { %v1037_v32 = vsel %vm1036_vm14, %v1035_v6, %v1029_v42 }
 0xd20   :  { %v1007_v43 = vadd.f32 %v1006_v3, %v1001_v22  ;;  %9365 = vrcp.f32 %v1124_v50 }
 0xd21   :  { %v1032_v12 = vpop.permute.xlu1 %1031 }
 0xd22   :  { %v1039_v7 = vsel %vm1038_vm15, %v1037_v32, %v1032_v12  ;;  %v1008_v1 = vsel %vm955_vm12, %v1007_v43, 0.0 }
 0xd23   :  { %1129 = vrot.lane.b32.xlu1 %v1039_v7, %s9617_s20 }
 0xd2a   :  { %v9366_v42 = vpop.eup %9365 }
 0xd47   :  { %1009 = vadd.xlane.f32.xlu1 %v1008_v1  ;;  %v12114_v1 = vpack.i.bf16 %v10090_v18, %v10094_v21 }
 0xd86   :  { %v1135_v6 = vpop.permute.xlu0 %1134 }
 0xd87   :  { %v1137_v12 = vmul.f32 %v9366_v42, %v1135_v6  ;;  %v12116_v6 = vpack.i.bf16 %v10050_v19, %v10054_v30 }
 0xd89   :  { %1139 = vrot.lane.b32.xlu0 %v1137_v12, %s9617_s20 }
 0xd95   :  { %v1130_v32 = vpop.permute.xlu1 %1129 }
 0xd96   :  { %v1132_v7 = vmul.f32 %v9366_v42, %v1130_v32 }
 0xdd4   :  { %v10403_v3 = vpop.xlane.xlu1 %1009 }
 0xdd5   :  { %12113 = vst [vmem:[#allocation36_spill] sm:$0xff] %v10403_v3  ;;  %v10413_v43 = vsub.f32 %v10409_v46, %v10403_v3 }
 0xdfb   :  { %v1140_v0 = vpop.permute.xlu0 %1139 }
 0xdfc   :  { %v10400_v10 = vadd.f32 %v1140_v0, %v1132_v7 }
 0xdfe   :  { %9367 = vtanh.f32 %v10400_v10 }
 0xe08   :  { %v9368_v22 = vpop.eup %9367 }
 0xe09   :  { %1145 = vrot.lane.b32.xlu0 %v9368_v22, %s9619_s17 }
 0xe0d   :  { %1176 = vperm.xlu0 %9241, %v10413_v43  }
 0xe11   :  { %9243 = vrot.lane.b32.xlu0 %v12114_v1, %s9619_s17 }
 0xe12   :  { %9252 = vset.pattern.permute.xlu0 %v12115_v61 }
 0xe15   :  { %1151 = vrot.lane.b32.xlu0 %v10045_v24, %s9619_s17 }
 0xe7b   :  { %v1146_v29 = vpop.permute.xlu0 %1145 }
 0xe7c   :  { %v1148_v50 = vmul.f32 %v9366_v42, %v1146_v29 }
 0xe7e   :  { %1165 = vrot.lane.b32.xlu0 %v1148_v50, %s9620_s29 }
 0xe82   :  { %9248 = vrot.lane.b32.xlu0 %v12116_v6, %s9619_s17 }
 0xe86   :  { %1475 = vrot.lane.b32.xlu0 %v10281_v44, %s9616_s19 }
 0xe8c   :  { %v1177_v12 = vpop.permute.xlu0 %1176 }
 0xe90   :  { %v9244_v18 = vpop.permute.xlu0 %9243 }
 0xe91   :  { %v9245_v21 = vunpack.i.l.bf16 %v9244_v18  ;;  %v9246_v24 = vunpack.i.h.bf16 %v9244_v18 }
 0xe93   :  { %v1163_v42 = vsel %vm228_vm6, %v9246_v24, %v9245_v21 }
 0xe94   :  { %v1152_v32 = vpop.permute.xlu0 %1151  ;;  %v1169_v19 = vsel %vm228_vm6, 0.0, %v1163_v42 }
 0xe95   :  { %v10432_v7 = vsel %vm228_vm6, %v9245_v21, %v1152_v32  ;;  %v1179_v0 = vsel %vm244_vm8, %v1177_v12, %v1169_v19  ;;  %v12119_v19 = vld [vmem:[#allocation16_spill] sm:$0xff] }
 0xe96   :  { %1253 = vmatprep.mubr.f32.mxu1 %v10432_v7  ;;  %v12125_v21 = vld [vmem:[#allocation20_spill] sm:$0xff] }
 0xef0   :  { %v10439_v30 = vpop.permute.xlu0 %1165 }
 0xef1   :  { %v1168_v44 = vsel %vm114_vm7, %v10439_v30, 0.0 }
 0xef2   :  { %v10447_v22 = vsel %vm239_vm9, %v1168_v44, %v1179_v0  ;;  %v12120_v44 = vld [vmem:[#allocation23_spill] sm:$0xff]  ;;  %v12121_v0 = vld [vmem:[#allocation17_spill] sm:$0xff] }
 0xef3   :  { %1254 = vmatmul.mubr.f32.vlgmr.msra.gmra.mrb[6].mxu1 %v10447_v22 }
 0xef4   :  { %8443 = vmatpush3.bf16.msra.mxu1 %v10076_v58  ;;  %v9249_v1 = vpop.permute.xlu0 %9248  ;;  %7665 = vmatprep.mubr.msk.f32.mxu1 %vm9613_vm0, %v12102_v37 }
 0xef5   :  { %v9251_v29 = vunpack.i.h.bf16 %v9249_v1  ;;  %v9250_v50 = vunpack.i.l.bf16 %v9249_v1  ;;  %8444 = vmatprep.subr.bf16.mxu1 %v12103_v40  ;;  %v12122_v1 = vld [vmem:[#allocation24_spill] sm:$0xff] }
 0xef7   :  { %v10456_v6 = vsel %vm228_vm6, %v9250_v50, %v9251_v29  ;;  %v10460_v12 = vsel %vm228_vm6, %v1152_v32, %v9250_v50  ;;  %v10464_v18 = vsel %vm228_vm6, %v9251_v29, %v9246_v24  ;;  %v12117_v32 = vld [vmem:[#allocation15_spill] sm:$0xff]  ;;  %v12118_v24 = vld [vmem:[#allocation22_spill] sm:$0xff] }
 0xef8   :  { %8446 = vmatpush3.bf16.msra.mxu1 %v10100_v13  ;;  %1323 = vmatprep.mubr.f32.mxu0 %v10456_v6  ;;  %v12123_v29 = vld [vmem:[#allocation18_spill] sm:$0xff]  ;;  %v12124_v50 = vld [vmem:[#allocation19_spill] sm:$0xff] }
 0xef9   :  { %1324 = vmatmul.mubr.f32.vlgmr.msra.gmra.mrb[12].mxu0 %v10460_v12  ;;  %8447 = vmatprep.subr.bf16.mxu1 %v12103_v40 }
 0xefa   :  { %8467 = vmatpush3.bf16.msra.mxu0 %v10179_v26  ;;  %7684 = vmatprep.mubr.msk.f32.mxu0 %vm9613_vm0, %v12102_v37 }
 0xefb   :  { %8468 = vmatprep.subr.bf16.mxu0 %v12103_v40 }
 0xefc   :  { %8449 = vmatpush3.bf16.msra.mxu1 %v12117_v32 }
 0xefd   :  { %8450 = vmatprep.subr.bf16.mxu1 %v12103_v40 }
 0xefe   :  { %8470 = vmatpush3.bf16.msra.mxu0 %v12118_v24 }
 0xeff   :  { %8471 = vmatprep.subr.bf16.mxu0 %v12103_v40 }
 0xf00   :  { %8452 = vmatpush3.bf16.msra.mxu1 %v12119_v19 }
 0xf01   :  { %8453 = vmatprep.subr.bf16.mxu1 %v12103_v40 }
 0xf02   :  { %8473 = vmatpush3.bf16.msra.mxu0 %v12120_v44 }
 0xf03   :  { %8474 = vmatprep.subr.bf16.mxu0 %v12103_v40 }
 0xf04   :  { %8455 = vmatpush3.bf16.msra.mxu1 %v12121_v0  ;;  %v12126_v0 = vld [vmem:[#allocation25_spill] sm:$0xff] }
 0xf05   :  { %8456 = vmatprep.subr.bf16.mxu1 %v12103_v40 }
 0xf06   :  { %8476 = vmatpush3.bf16.msra.mxu0 %v12122_v1 }
 0xf07   :  { %8477 = vmatprep.subr.bf16.mxu0 %v12103_v40 }
 0xf08   :  { %8458 = vmatpush3.bf16.msra.mxu1 %v12123_v29 }
 0xf09   :  { %8459 = vmatprep.subr.bf16.mxu1 %v12103_v40 }
 0xf0c   :  { %8461 = vmatpush3.bf16.msra.mxu1 %v12124_v50 }
 0xf0d   :  { %8462 = vmatprep.subr.bf16.mxu1 %v12103_v40 }
 0xf10   :  { %8464 = vmatpush3.bf16.msra.mxu1 %v12125_v21 }
 0xf11   :  { %8489 = vmatprep.subr.bf16.mxu1 %v12103_v40 }
 0xf13   :  { %7666 = vmatmul.mubr.f32.vlgmr.msra.gmra.mrb[8].mxu1 %v10464_v18 }
 0xf14   :  { %8491 = vmatpush3.bf16.msra.mxu1 %v10308_v41  ;;  %7713 = vmatprep.mubr.msk.f32.mxu1 %vm9613_vm0, %v12102_v37  ;;  %v12127_v41 = vld [vmem:[#allocation26_spill] sm:$0xff] }
 0xf15   :  { %8496 = vmatprep.subr.bf16.mxu1 %v9742_v48 }
 0xfc6   :  { %v6787_v42 = vpop.f32.mrb[6].mxu1 }
 0xfc7   :  { %v6788_v3 = vpop.f32.mrb[7].mxu1 }
 0xfc8   :  { %v6789_v29 = vadd.f32 %v6788_v3, %v6787_v42  ;;  %v12128_v3 = vld [vmem:[#allocation27_spill] sm:$0xff] }
 0xfca   :  { %v1256_v44 = vadd.f32 %v6789_v29, %v12126_v0  ;;  %v12129_v0 = vld [vmem:[#allocation28_spill] sm:$0xff] }
 0xfcc   :  { %v6822_v1 = vpop.f32.mrb[12].mxu0 }
 0xfcd   :  { %v6823_v50 = vpop.f32.mrb[13].mxu0 }
 0xfce   :  { %v6824_v19 = vadd.f32 %v6823_v50, %v6822_v1  ;;  %v12131_v1 = vld [vmem:[#allocation29_spill] sm:$0xff] }
 0xfd0   :  { %v1326_v21 = vadd.f32 %v6824_v19, %v1256_v44 }
 0xfe6   :  { %v1395_v24 = vpop.f32.mrb[8].mxu1 }
 0xfe7   :  { %v1396_v32 = vadd.f32 %v1395_v24, %v1326_v21  ;;  %v7667_v26 = vpop.f32.mrb[9].mxu1 }
 0xfe8   :  { %v1476_v26 = vpop.permute.xlu0 %1475 }
 0xfe9   :  { %v1399_v13 = vmax.f32 %v1396_v32, 0.0 }
 0xfeb   :  { %7685 = vmatmul.mubr.msk.f32.vlgmr.msra.gmra.mrb[14].mxu0 %vm576_vm10, %v1399_v13  ;;  %v12130_v13 = vld [vmem:[#allocation32_spill] sm:$0xff] }
 0xfec   :  { %8479 = vmatpush3.bf16.msra.mxu0 %v12127_v41  ;;  %7695 = vmatprep.mubr.msk.f32.mxu0 %vm9613_vm0, %v12102_v37 }
 0xfed   :  { %8480 = vmatprep.subr.bf16.mxu0 %v12103_v40 }
 0xff0   :  { %8482 = vmatpush3.bf16.msra.mxu0 %v12128_v3 }
 0xff1   :  { %8483 = vmatprep.subr.bf16.mxu0 %v12103_v40 }
0x10be   :  { %v1469_v42 = vpop.f32.mrb[14].mxu0 }
0x10bf   :  { %v1473_v19 = vadd.f32 %v12129_v0, %v1469_v42  ;;  %v7686_v44 = vpop.f32.mrb[15].mxu0 }
0x10c1   :  { %v1474_v21 = vmax.f32 %v1473_v19, 0.0 }
0x10c3   :  { %v1478_v32 = vsel %vm114_vm7, %v1474_v21, %v1476_v26 }
0x10c4   :  { %7696 = vmatmul.mubr.msk.f32.vlgmr.msra.gmra.mrb[16].mxu0 %vm665_vm11, %v1478_v32 }
0x10c5   :  { %8485 = vmatpush3.bf16.msra.mxu0 %v10269_v2  ;;  %7706 = vmatprep.mubr.msk.f32.mxu0 %vm9613_vm0, %v12102_v37 }
0x10c6   :  { %8486 = vmatprep.subr.bf16.mxu0 %v12103_v40 }
0x10c9   :  { %8488 = vmatpush3.bf16.msra.mxu0 %v12130_v13  ;;  %v12132_v13 = vld [vmem:[#allocation30_spill] sm:$0xff] }
0x10ca   :  { %8492 = vmatprep.subr.bf16.mxu0 %v12103_v40 }
0x1197   :  { %v1548_v24 = vpop.f32.mrb[16].mxu0 }
0x1198   :  { %v1549_v29 = vadd.f32 %v12131_v1, %v1548_v24  ;;  %v7697_v50 = vpop.f32.mrb[17].mxu0 }
0x119a   :  { %9369 = vtanh.f32 %v1549_v29  ;;  %v6588_v0 = vmul.f32 -1.442695, %v1549_v29 }
0x119c   :  { %9371 = vpow2.f32 %v6588_v0 }
0x11a4   :  { %v9370_v42 = vpop.eup %9369 }
0x11a5   :  { %1561 = vrot.lane.b32.xlu0 %v9370_v42, %s9616_s19 }
0x11a6   :  { %v9372_v19 = vpop.eup %9371 }
0x11a7   :  { %v1555_v44 = vadd.f32 1.0, %v9372_v19 }
0x11a9   :  { %9373 = vrcp.f32 %v1555_v44 }
0x11b3   :  { %v9374_v21 = vpop.eup %9373 }
0x11b4   :  { %v1559_v2 = vmul.f32 %v9374_v21, %v12132_v13 }
0x1217   :  { %v1562_v26 = vpop.permute.xlu0 %1561 }
0x1218   :  { %v1564_v32 = vmul.f32 %v9374_v21, %v1562_v26 }
0x121a   :  { %1566 = vrot.lane.b32.xlu0 %v1564_v32, %s9617_s20 }
0x128c   :  { %v1567_v3 = vpop.permute.xlu0 %1566 }
0x128d   :  { %v10522_v41 = vadd.f32 %v1567_v3, %v1559_v2  ;;  %v12133_v2 = vld [vmem:[#allocation5_spill] sm:$0xff]  ;;  %v12134_v3 = vld [vmem:[#allocation6_spill] sm:$0xff] }
0x128f   :  { %9375 = vtanh.f32 %v10522_v41 }
0x1299   :  { %v9376_v24 = vpop.eup %9375 }
0x129a   :  { %1572 = vrot.lane.b32.xlu1 %v9376_v24, %s9619_s17 }
0x130c   :  { %v1573_v1 = vpop.permute.xlu1 %1572 }
0x130d   :  { %v10526_v29 = vmul.f32 %v9374_v21, %v1573_v1 }
0x130f   :  { %1577 = vrot.lane.b32.xlu0 %v10526_v29, %s9620_s29 }
0x1313   :  { %1580 = vrot.lane.b32.xlu0 %v10316_v36, %s9616_s19 }
0x1381   :  { %v1578_v50 = vpop.permute.xlu0 %1577 }
0x1385   :  { %v1581_v42 = vpop.permute.xlu0 %1580 }
0x1386   :  { %v1583_v13 = vsel %vm114_vm7, %v1578_v50, %v1581_v42 }
0x1387   :  { %7707 = vmatmul.mubr.msk.f32.vlgmr.msra.gmra.mrb[18].mxu0 %vm665_vm11, %v1583_v13 }
0x1388   :  { %8494 = vmatpush3.bf16.msra.mxu0 %v12133_v2  ;;  %7720 = vmatprep.mubr.msk.f32.mxu0 %vm9613_vm0, %v12102_v37 }
0x1389   :  { %8528 = vmatprep.subr.bf16.mxu0 %v12134_v3 }
0x145a   :  { %v1653_v0 = vpop.f32.mrb[18].mxu0 }
0x145b   :  { %v1654_v19 = vadd.f32 %v10294_v4, %v1653_v0  ;;  %v7708_v44 = vpop.f32.mrb[19].mxu0 }
0x145c   :  { %v1769_v44 = vand.u32 2147483647, %v10413_v43 }
0x145d   :  { %9377 = vtanh.f32 %v1654_v19  ;;  %v6590_v36 = vmul.f32 -1.442695, %v1654_v19 }
0x145f   :  { %9379 = vpow2.f32 %v6590_v36  ;;  %v12136_v36 = vld [vmem:[#allocation34_spill] sm:$0xff] }
0x1467   :  { %v9378_v21 = vpop.eup %9377 }
0x1468   :  { %1666 = vrot.lane.b32.xlu0 %v9378_v21, %s9616_s19 }
0x1469   :  { %v9380_v26 = vpop.eup %9379 }
0x146a   :  { %v1660_v32 = vadd.f32 1.0, %v9380_v26 }
0x146c   :  { %9381 = vrcp.f32 %v1660_v32 }
0x1476   :  { %v9382_v24 = vpop.eup %9381 }
0x1477   :  { %v1664_v42 = vmul.f32 %v9382_v24, %v10299_v62  ;;  %v12135_v62 = vld [vmem:[#allocation12_spill] sm:$0xff] }
0x14da   :  { %v1667_v1 = vpop.permute.xlu0 %1666 }
0x14db   :  { %v1669_v50 = vmul.f32 %v9382_v24, %v1667_v1 }
0x14dd   :  { %1671 = vrot.lane.b32.xlu0 %v1669_v50, %s9617_s20  ;;  %v12137_v50 = vld [vmem:[#allocation7_spill] sm:$0xff] }
0x154f   :  { %v1672_v13 = vpop.permute.xlu0 %1671 }
0x1550   :  { %v10542_v3 = vadd.f32 %v1672_v13, %v1664_v42  ;;  %v12138_v42 = vand.u32 2147483647, %v12137_v50 }
0x1552   :  { %9383 = vtanh.f32 %v10542_v3 }
0x155c   :  { %v9384_v4 = vpop.eup %9383 }
0x155d   :  { %1677 = vrot.lane.b32.xlu1 %v9384_v4, %s9619_s17 }
0x15cf   :  { %v1678_v0 = vpop.permute.xlu1 %1677 }
0x15d0   :  { %v10546_v19 = vmul.f32 %v9382_v24, %v1678_v0 }
0x15d2   :  { %1682 = vrot.lane.b32.xlu0 %v10546_v19, %s9620_s29 }
0x15d6   :  { %1771 = vrot.lane.b32.xlu0 %v1769_v44, %s9628_s27 }
0x1644   :  { %v1683_v21 = vpop.permute.xlu0 %1682 }
0x1645   :  { %7714 = vmatmul.mubr.msk.f32.vlgmr.msra.gmra.mrb[10].mxu1 %vm114_vm7, %v1683_v21 }
0x1646   :  { %8498 = vmatpush3.bf16.msra.mxu1 %v9756_v53 }
0x1647   :  { %8500 = vmatprep.subr.bf16.mxu1 %v9779_v60 }
0x1648   :  { %v1772_v1 = vpop.permute.xlu0 %1771 }
0x1649   :  { %v10572_v13 = vadd.f32 %v1772_v1, %v12138_v42 }
0x164a   :  { %8502 = vmatpush3.bf16.msra.mxu1 %v9814_v14 }
0x164b   :  { %8504 = vmatprep.subr.bf16.mxu1 %v9827_v20  ;;  %12139 = vst [vmem:[#allocation25_spill] sm:$0xff] %v10572_v13  ;;  %v1775_v4 = vadd.f32 4.0, %v10572_v13 }
0x164d   :  { %v1776_v0 = vmul.f32 0.25, %v1775_v4 }
0x164e   :  { %8506 = vmatpush3.bf16.msra.mxu1 %v9858_v33 }
0x164f   :  { %8508 = vmatprep.subr.bf16.mxu1 %v9873_v39  ;;  %v1777_v44 = vmin.f32 %v1776_v0, 1.0 }
0x1651   :  { %v1784_v1 = vsub.f32 1.0, %v1777_v44 }
0x1652   :  { %8510 = vmatpush3.bf16.msra.mxu1 %v9899_v52 }
0x1653   :  { %8512 = vmatprep.subr.bf16.mxu1 %v9911_v57 }
0x1656   :  { %8514 = vmatpush3.bf16.msra.mxu1 %v9936_v11 }
0x1657   :  { %8516 = vmatprep.subr.bf16.mxu1 %v9948_v17 }
0x165a   :  { %8518 = vmatpush3.bf16.msra.mxu1 %v9972_v28 }
0x165b   :  { %8520 = vmatprep.subr.bf16.mxu1 %v9984_v35 }
0x165e   :  { %8522 = vmatpush3.bf16.msra.mxu1 %v10008_v47 }
0x165f   :  { %8524 = vmatprep.subr.bf16.mxu1 %v10017_v55 }
0x1662   :  { %8526 = vmatpush3.bf16.msra.mxu1 %v12135_v62 }
0x1663   :  { %8559 = vmatprep.subr.bf16.mxu1 %v12103_v40 }
0x1718   :  { %v1752_v43 = vpop.f32.mrb[10].mxu1 }
0x1719   :  { %v1756_v26 = vadd.f32 %v12136_v36, %v1752_v43  ;;  %v7715_v32 = vpop.f32.mrb[11].mxu1 }
0x171b   :  { %v1757_v24 = vsel %vm955_vm12, %v1756_v26, -inf }
0x171c   :  { %1758 = vmax.xlane.f32.xlu1 %v1757_v24  ;;  %v9629_v24 = vmov 2  }
0x172d   :  { %1780 = vperm.xlu1 %9230, %v1777_v44  }
0x1731   :  { %1794 = vrot.lane.b32.xlu1 %v10400_v10, %s9621_s11 }
0x1732   :  { %9253 = vset.pattern.permute.xlu1 %v9629_v24 }
0x1735   :  { %1832 = vperm.xlu1 %9253, %v10409_v46  }
0x1739   :  { %9265 = vset.pattern.permute.xlu1 %v12115_v61 }
0x17a9   :  { %v1759_v21 = vpop.xlane.xlu1 %1758 }
0x17aa   :  { %v1760_v62 = vsub.f32 %v1756_v26, %v1759_v21 }
0x17ac   :  { %v1761_v43 = vmul.f32 1.442695, %v1760_v62 }
0x17ad   :  { %v1781_v26 = vpop.permute.xlu1 %1780 }
0x17ae   :  { %9385 = vpow2.f32 %v1761_v43 }
0x17b8   :  { %v9386_v36 = vpop.eup %9385 }
0x17b9   :  { %v1763_v32 = vsel %vm955_vm12, %v9386_v36, 0.0 }
0x17ba   :  { %1764 = vadd.xlane.f32.xlu0 %v1763_v32  ;;  %v1795_v32 = vpop.permute.xlu1 %1794 }
0x17d0   :  { %1787 = vperm.xlu0 %9252, %v1784_v1  }
0x17d4   :  { %9254 = vset.pattern.permute.xlu0 %v9629_v24 }
0x1847   :  { %v1765_v50 = vpop.xlane.xlu0 %1764 }
0x1848   :  { %9387 = vrcp.f32 %v1765_v50 }
0x184f   :  { %v1788_v62 = vpop.permute.xlu0 %1787 }
0x1850   :  { %v1790_v21 = vmul.f32 %v1788_v62, %v10350_v25  ;;  %v1833_v25 = vpop.permute.xlu1 %1832 }
0x1852   :  { %v9388_v10 = vpop.eup %9387 }
0x1853   :  { %v1767_v42 = vmul.f32 %v9388_v10, %v9386_v36 }
0x1855   :  { %v1768_v4 = vmul.f32 4.0, %v1767_v42  ;;  %v10612_v42 = vld [vmem:[%s11979_s1] ss:$0 sm:$0xff] }
0x1856   :  { %12140 = vst [vmem:[#allocation28_spill] sm:$0xff] %v10612_v42 }
0x1857   :  { %v1783_v0 = vmul.f32 %v1781_v26, %v1768_v4  ;;  %v1835_v26 = vmul.f32 %v10612_v42, %v1833_v25 }
0x1859   :  { %v10581_v43 = vadd.f32 %v1790_v21, %v1783_v0 }
0x185b   :  { %v1792_v44 = vmul.f32 %v10581_v43, %v10439_v30  ;;  %v1797_v13 = vmul.f32 %v1795_v32, %v10581_v43 }
0x185d   :  { %1805 = vrot.lane.b32.xlu1 %v1797_v13, %s9624_s13  ;;  %7721 = vmatmul.mubr.msk.f32.vlgmr.msra.gmra.mrb[20].mxu0 %vm114_vm7, %v1792_v44 }
0x185e   :  { %8530 = vmatpush3.bf16.msra.mxu0 %v9744_v49 }
0x185f   :  { %8532 = vmatprep.subr.bf16.mxu0 %v9777_v59 }
0x1861   :  { %1809 = vrot.lane.b32.xlu1 %v1797_v13, %s9618_s21 }
0x1862   :  { %8534 = vmatpush3.bf16.msra.mxu0 %v9801_v9 }
0x1863   :  { %8536 = vmatprep.subr.bf16.mxu0 %v9816_v15 }
0x1865   :  { %1813 = vrot.lane.b32.xlu1 %v1797_v13, %s9623_s12 }
0x1866   :  { %8538 = vmatpush3.bf16.msra.mxu0 %v9856_v31 }
0x1867   :  { %8540 = vmatprep.subr.bf16.mxu0 %v9871_v38 }
0x186a   :  { %8542 = vmatpush3.bf16.msra.mxu0 %v9897_v51 }
0x186b   :  { %8544 = vmatprep.subr.bf16.mxu0 %v9909_v56 }
0x186e   :  { %8546 = vmatpush3.bf16.msra.mxu0 %v9934_v8 }
0x186f   :  { %8548 = vmatprep.subr.bf16.mxu0 %v9946_v16 }
0x1872   :  { %8550 = vmatpush3.bf16.msra.mxu0 %v9970_v27 }
0x1873   :  { %8552 = vmatprep.subr.bf16.mxu0 %v9982_v34 }
0x1876   :  { %8554 = vmatpush3.bf16.msra.mxu0 %v10006_v45 }
0x1877   :  { %8556 = vmatprep.subr.bf16.mxu0 %v10015_v54 }
0x187a   :  { %8558 = vmatpush3.bf16.msra.mxu0 %v10030_v63 }
0x187b   :  { %8583 = vmatprep.subr.bf16.mxu0 %v12103_v40 }
0x18cf   :  { %v1806_v30 = vpop.permute.xlu1 %1805 }
0x18d0   :  { %v1808_v24 = vadd.f32 %v1806_v30, %v1797_v13  ;;  %v10618_v13 = vld [vmem:[%s11979_s1 + $0x8] ss:$0 sm:$0xff] }
0x18d1   :  { %12141 = vst [vmem:[#allocation29_spill] sm:$0xff] %v10618_v13 }
0x18d3   :  { %v1810_v36 = vpop.permute.xlu1 %1809 }
0x18d4   :  { %v1812_v1 = vadd.f32 %v1810_v36, %v1808_v24 }
0x18d7   :  { %v1814_v50 = vpop.permute.xlu1 %1813 }
0x18d8   :  { %v1816_v10 = vadd.f32 %v1814_v50, %v1812_v1 }
0x18da   :  { %1818 = vrot.lane.b32.xlu1 %v1816_v10, %s9626_s15 }
0x18de   :  { %1821 = vrot.lane.b32.xlu1 %v1816_v10, %s9625_s14 }
0x18e2   :  { %1824 = vrot.lane.b32.xlu1 %v1816_v10, %s9627_s16 }
0x1930   :  { %v1905_v62 = vpop.f32.mrb[20].mxu0 }
0x1931   :  { %v1909_v4 = vadd.f32 %v1905_v62, %v1835_v26  ;;  %v7722_v0 = vpop.f32.mrb[21].mxu0  ;;  %v12142_v26 = vld [vmem:[#allocation35_spill] sm:$0xff] }
0x1932   :  { %v1798_v62 = vmul.f32 %v12142_v26, %v1792_v44 }
0x1933   :  { %v1910_v21 = vadd.f32 %v10618_v13, %v1909_v4  ;;  %v1799_v4 = vmul.f32 %v10393_v5, %v10581_v43 }
0x1935   :  { %9389 = vtanh.f32 %v1910_v21  ;;  %v1800_v0 = vadd.f32 %v1799_v4, %v1798_v62  ;;  %v12145_v4 = vpack.i.bf16 %v10456_v6, %v10460_v12 }
0x1937   :  { %v1801_v13 = vsel %vm955_vm12, %v1800_v0, 0.0 }
0x193f   :  { %v9390_v32 = vpop.eup %9389 }
0x1940   :  { %1924 = vrot.lane.b32.xlu0 %v9390_v32, %s9616_s19  ;;  %v6593_v32 = vmul.f32 -1.442695, %v1910_v21 }
0x1942   :  { %9391 = vpow2.f32 %v6593_v32 }
0x194c   :  { %v1819_v30 = vpop.permute.xlu1 %1818  ;;  %v9392_v42 = vpop.eup %9391 }
0x194d   :  { %v1827_v24 = vsel %vm1034_vm13, %v1816_v10, %v1819_v30  ;;  %v1914_v10 = vadd.f32 1.0, %v9392_v42 }
0x194f   :  { %9393 = vrcp.f32 %v1914_v10 }
0x1950   :  { %v1822_v36 = vpop.permute.xlu1 %1821 }
0x1951   :  { %v1828_v25 = vsel %vm1036_vm14, %v1827_v24, %v1822_v36 }
0x1954   :  { %v1825_v1 = vpop.permute.xlu1 %1824 }
0x1955   :  { %v1829_v50 = vsel %vm1038_vm15, %v1828_v25, %v1825_v1 }
0x1956   :  { %1919 = vrot.lane.b32.xlu1 %v1829_v50, %s9617_s20 }
0x1959   :  { %v9394_v30 = vpop.eup %9393 }
0x197a   :  { %1802 = vadd.xlane.f32.xlu1 %v1801_v13  ;;  %v12144_v13 = vpack.i.bf16 %v10464_v18, %v10447_v22 }
0x19b2   :  { %v1925_v36 = vpop.permute.xlu0 %1924 }
0x19b3   :  { %v1927_v24 = vmul.f32 %v9394_v30, %v1925_v36 }
0x19b5   :  { %1929 = vrot.lane.b32.xlu0 %v1927_v24, %s9617_s20 }
0x19c8   :  { %v1920_v25 = vpop.permute.xlu1 %1919 }
0x19c9   :  { %v1922_v1 = vmul.f32 %v9394_v30, %v1920_v25 }
0x1a07   :  { %v10634_v26 = vpop.xlane.xlu1 %1802 }
0x1a08   :  { %12143 = vst [vmem:[#allocation30_spill] sm:$0xff] %v10634_v26  ;;  %v10639_v42 = vsub.f32 %v10409_v46, %v10634_v26 }
0x1a27   :  { %v1930_v44 = vpop.permute.xlu0 %1929 }
0x1a28   :  { %v10631_v50 = vadd.f32 %v1930_v44, %v1922_v1 }
0x1a2a   :  { %9395 = vtanh.f32 %v10631_v50 }
0x1a34   :  { %v9396_v5 = vpop.eup %9395 }
0x1a35   :  { %1935 = vrot.lane.b32.xlu0 %v9396_v5, %s9619_s17 }
0x1a39   :  { %1966 = vperm.xlu0 %9254, %v10639_v42  }
0x1a3d   :  { %9256 = vrot.lane.b32.xlu0 %v12144_v13, %s9619_s17 }
0x1a3e   :  { %9266 = vset.pattern.permute.xlu0 %v12115_v61 }
0x1a41   :  { %1941 = vrot.lane.b32.xlu0 %v10432_v7, %s9619_s17 }
0x1aa7   :  { %v1936_v21 = vpop.permute.xlu0 %1935 }
0x1aa8   :  { %v1938_v62 = vmul.f32 %v9394_v30, %v1936_v21 }
0x1aaa   :  { %1955 = vrot.lane.b32.xlu0 %v1938_v62, %s9620_s29  ;;  %v12146_v62 = vld [vmem:[#allocation14_spill] sm:$0xff] }
0x1aae   :  { %9261 = vrot.lane.b32.xlu0 %v12145_v4, %s9619_s17 }
0x1ab2   :  { %2265 = vrot.lane.b32.xlu0 %v10526_v29, %s9616_s19 }
0x1ab8   :  { %v1967_v0 = vpop.permute.xlu0 %1966 }
0x1abc   :  { %v9257_v22 = vpop.permute.xlu0 %9256 }
0x1abd   :  { %v9258_v18 = vunpack.i.l.bf16 %v9257_v22  ;;  %v9259_v7 = vunpack.i.h.bf16 %v9257_v22  ;;  %v12147_v22 = vld [vmem:[#allocation21_spill] sm:$0xff] }
0x1abf   :  { %v1953_v30 = vsel %vm228_vm6, %v9259_v7, %v9258_v18 }
0x1ac0   :  { %v1942_v32 = vpop.permute.xlu0 %1941  ;;  %v1959_v6 = vsel %vm228_vm6, 0.0, %v1953_v30  ;;  %v12151_v30 = vld [vmem:[#allocation23_spill] sm:$0xff] }
0x1ac1   :  { %v10658_v10 = vsel %vm228_vm6, %v9258_v18, %v1942_v32  ;;  %v1969_v36 = vsel %vm244_vm8, %v1967_v0, %v1959_v6  ;;  %v12148_v18 = vld [vmem:[#allocation15_spill] sm:$0xff]  ;;  %v12152_v6 = vld [vmem:[#allocation17_spill] sm:$0xff] }
0x1ac2   :  { %2043 = vmatprep.mubr.f32.mxu1 %v10658_v10 }
0x1b1c   :  { %v10665_v12 = vpop.permute.xlu0 %1955 }
0x1b1d   :  { %v1958_v29 = vsel %vm114_vm7, %v10665_v12, 0.0 }
0x1b1e   :  { %v10673_v24 = vsel %vm239_vm9, %v1958_v29, %v1969_v36  ;;  %v12153_v29 = vld [vmem:[#allocation24_spill] sm:$0xff]  ;;  %v12154_v36 = vld [vmem:[#allocation18_spill] sm:$0xff] }
0x1b1f   :  { %2044 = vmatmul.mubr.f32.vlgmr.msra.gmra.mrb[12].mxu1 %v10673_v24 }
0x1b20   :  { %8561 = vmatpush3.bf16.msra.mxu1 %v10076_v58  ;;  %v9262_v25 = vpop.permute.xlu0 %9261  ;;  %7755 = vmatprep.mubr.msk.f32.mxu1 %vm9613_vm0, %v12102_v37 }
0x1b21   :  { %v9264_v1 = vunpack.i.h.bf16 %v9262_v25  ;;  %v9263_v44 = vunpack.i.l.bf16 %v9262_v25  ;;  %8562 = vmatprep.subr.bf16.mxu1 %v12103_v40  ;;  %v12155_v25 = vld [vmem:[#allocation19_spill] sm:$0xff] }
0x1b23   :  { %v10682_v5 = vsel %vm228_vm6, %v9263_v44, %v9264_v1  ;;  %v10686_v13 = vsel %vm228_vm6, %v1942_v32, %v9263_v44  ;;  %v10690_v21 = vsel %vm228_vm6, %v9264_v1, %v9259_v7  ;;  %v12149_v32 = vld [vmem:[#allocation22_spill] sm:$0xff]  ;;  %v12150_v7 = vld [vmem:[#allocation16_spill] sm:$0xff]  ;;  %v12157_v44 = vld [vmem:[#allocation33_spill] sm:$0xff] }
0x1b24   :  { %8564 = vmatpush3.bf16.msra.mxu1 %v12146_v62  ;;  %2113 = vmatprep.mubr.f32.mxu0 %v10682_v5  ;;  %v12156_v1 = vld [vmem:[#allocation20_spill] sm:$0xff] }
0x1b25   :  { %2114 = vmatmul.mubr.f32.vlgmr.msra.gmra.mrb[22].mxu0 %v10686_v13  ;;  %8565 = vmatprep.subr.bf16.mxu1 %v12103_v40 }
0x1b26   :  { %8585 = vmatpush3.bf16.msra.mxu0 %v12147_v22  ;;  %7774 = vmatprep.mubr.msk.f32.mxu0 %vm9613_vm0, %v12102_v37 }
0x1b27   :  { %8586 = vmatprep.subr.bf16.mxu0 %v12103_v40 }
0x1b28   :  { %8567 = vmatpush3.bf16.msra.mxu1 %v12148_v18 }
0x1b29   :  { %8568 = vmatprep.subr.bf16.mxu1 %v12103_v40 }
0x1b2a   :  { %8588 = vmatpush3.bf16.msra.mxu0 %v12149_v32 }
0x1b2b   :  { %8589 = vmatprep.subr.bf16.mxu0 %v12103_v40 }
0x1b2c   :  { %8570 = vmatpush3.bf16.msra.mxu1 %v12150_v7 }
0x1b2d   :  { %8571 = vmatprep.subr.bf16.mxu1 %v12103_v40 }
0x1b2e   :  { %8591 = vmatpush3.bf16.msra.mxu0 %v12151_v30 }
0x1b2f   :  { %8592 = vmatprep.subr.bf16.mxu0 %v12103_v40 }
0x1b30   :  { %8573 = vmatpush3.bf16.msra.mxu1 %v12152_v6 }
0x1b31   :  { %8574 = vmatprep.subr.bf16.mxu1 %v12103_v40 }
0x1b32   :  { %8594 = vmatpush3.bf16.msra.mxu0 %v12153_v29 }
0x1b33   :  { %8595 = vmatprep.subr.bf16.mxu0 %v12103_v40 }
0x1b34   :  { %8576 = vmatpush3.bf16.msra.mxu1 %v12154_v36 }
0x1b35   :  { %8577 = vmatprep.subr.bf16.mxu1 %v12103_v40 }
0x1b38   :  { %8579 = vmatpush3.bf16.msra.mxu1 %v12155_v25 }
0x1b39   :  { %8580 = vmatprep.subr.bf16.mxu1 %v12103_v40 }
0x1b3c   :  { %8582 = vmatpush3.bf16.msra.mxu1 %v12156_v1  ;;  %v10730_v1 = vld [vmem:[%s11979_s1 + $0x10] ss:$0 sm:$0xff] }
0x1b3d   :  { %8607 = vmatprep.subr.bf16.mxu1 %v12103_v40  ;;  %12158 = vst [vmem:[#allocation34_spill] sm:$0xff] %v10730_v1 }
0x1b3f   :  { %7756 = vmatmul.mubr.f32.vlgmr.msra.gmra.mrb[14].mxu1 %v10690_v21 }
0x1b40   :  { %8609 = vmatpush3.bf16.msra.mxu1 %v12157_v44  ;;  %7803 = vmatprep.mubr.msk.f32.mxu1 %vm9613_vm0, %v12102_v37 }
0x1b41   :  { %8614 = vmatprep.subr.bf16.mxu1 %v9742_v48  ;;  %v12159_v48 = vld [vmem:[#allocation26_spill] sm:$0xff] }
0x1bf2   :  { %v6899_v4 = vpop.f32.mrb[12].mxu1 }
0x1bf3   :  { %v6900_v0 = vpop.f32.mrb[13].mxu1 }
0x1bf4   :  { %v6901_v26 = vadd.f32 %v6900_v0, %v6899_v4  ;;  %v12160_v4 = vld [vmem:[#allocation27_spill] sm:$0xff]  ;;  %v10743_v0 = vld [vmem:[%s11979_s1 + $0x28] ss:$0 sm:$0xff] }
0x1bf5   :  { %12161 = vst [vmem:[#allocation7_spill] sm:$0xff] %v10743_v0 }
0x1bf6   :  { %v2046_v29 = vadd.f32 %v10730_v1, %v6901_v26 }
0x1bf8   :  { %v6934_v36 = vpop.f32.mrb[22].mxu0 }
0x1bf9   :  { %v6935_v25 = vpop.f32.mrb[23].mxu0 }
0x1bfa   :  { %v6936_v6 = vadd.f32 %v6935_v25, %v6934_v36  ;;  %v12163_v36 = vld [vmem:[#allocation32_spill] sm:$0xff] }
0x1bfc   :  { %v2116_v30 = vadd.f32 %v6936_v6, %v2046_v29  ;;  %v12162_v29 = vld [vmem:[#allocation31_spill] sm:$0xff] }
0x1c12   :  { %v2185_v44 = vpop.f32.mrb[14].mxu1 }
0x1c13   :  { %v2186_v7 = vadd.f32 %v2185_v44, %v2116_v30  ;;  %v7757_v32 = vpop.f32.mrb[15].mxu1  ;;  %v2266_v30 = vpop.permute.xlu0 %2265  ;;  %v10757_v44 = vld [vmem:[%s11979_s1 + $0x38] ss:$0 sm:$0xff] }
0x1c15   :  { %v2189_v18 = vmax.f32 %v2186_v7, 0.0 }
0x1c17   :  { %7775 = vmatmul.mubr.msk.f32.vlgmr.msra.gmra.mrb[24].mxu0 %vm576_vm10, %v2189_v18 }
0x1c18   :  { %8597 = vmatpush3.bf16.msra.mxu0 %v12159_v48  ;;  %7785 = vmatprep.mubr.msk.f32.mxu0 %vm9613_vm0, %v12102_v37 }
0x1c19   :  { %8598 = vmatprep.subr.bf16.mxu0 %v12103_v40 }
0x1c1c   :  { %8600 = vmatpush3.bf16.msra.mxu0 %v12160_v4 }
0x1c1d   :  { %8601 = vmatprep.subr.bf16.mxu0 %v12103_v40 }
0x1cea   :  { %v2259_v26 = vpop.f32.mrb[24].mxu0 }
0x1ceb   :  { %v2263_v32 = vadd.f32 %v10743_v0, %v2259_v26  ;;  %v7776_v18 = vpop.f32.mrb[25].mxu0 }
0x1ced   :  { %v2264_v7 = vmax.f32 %v2263_v32, 0.0 }
0x1cef   :  { %v2268_v6 = vsel %vm114_vm7, %v2264_v7, %v2266_v30 }
0x1cf0   :  { %7786 = vmatmul.mubr.msk.f32.vlgmr.msra.gmra.mrb[26].mxu0 %vm665_vm11, %v2268_v6 }
0x1cf1   :  { %8603 = vmatpush3.bf16.msra.mxu0 %v12162_v29  ;;  %7796 = vmatprep.mubr.msk.f32.mxu0 %vm9613_vm0, %v12102_v37 }
0x1cf2   :  { %8604 = vmatprep.subr.bf16.mxu0 %v12103_v40 }
0x1cf5   :  { %8606 = vmatpush3.bf16.msra.mxu0 %v12163_v36 }
0x1cf6   :  { %8610 = vmatprep.subr.bf16.mxu0 %v12103_v40 }
0x1dc3   :  { %v2338_v25 = vpop.f32.mrb[26].mxu0 }
0x1dc4   :  { %v2339_v26 = vadd.f32 %v10757_v44, %v2338_v25  ;;  %v7787_v32 = vpop.f32.mrb[27].mxu0 }
0x1dc6   :  { %9397 = vtanh.f32 %v2339_v26  ;;  %v6596_v7 = vmul.f32 -1.442695, %v2339_v26 }
0x1dc8   :  { %9399 = vpow2.f32 %v6596_v7 }
0x1dd0   :  { %v9398_v18 = vpop.eup %9397 }
0x1dd1   :  { %2351 = vrot.lane.b32.xlu0 %v9398_v18, %s9616_s19 }
0x1dd2   :  { %v9400_v30 = vpop.eup %9399 }
0x1dd3   :  { %v2345_v6 = vadd.f32 1.0, %v9400_v30 }
0x1dd5   :  { %9401 = vrcp.f32 %v2345_v6 }
0x1ddf   :  { %v9402_v36 = vpop.eup %9401 }
0x1de0   :  { %v2349_v4 = vmul.f32 %v9402_v36, %v10522_v41 }
0x1e43   :  { %v2352_v29 = vpop.permute.xlu0 %2351 }
0x1e44   :  { %v2354_v0 = vmul.f32 %v9402_v36, %v2352_v29 }
0x1e46   :  { %2356 = vrot.lane.b32.xlu1 %v2354_v0, %s9617_s20 }
0x1eb8   :  { %v2357_v48 = vpop.permute.xlu1 %2356 }
0x1eb9   :  { %v10763_v1 = vadd.f32 %v2357_v48, %v2349_v4  ;;  %v12164_v48 = vld [vmem:[#allocation6_spill] sm:$0xff] }
0x1ebb   :  { %9403 = vtanh.f32 %v10763_v1 }
0x1ec5   :  { %v9404_v25 = vpop.eup %9403 }
0x1ec6   :  { %2362 = vrot.lane.b32.xlu0 %v9404_v25, %s9619_s17 }
0x1f38   :  { %v2363_v26 = vpop.permute.xlu0 %2362 }
0x1f39   :  { %v10767_v32 = vmul.f32 %v9402_v36, %v2363_v26  ;;  %v10782_v36 = vld [vmem:[%s11979_s1 + $0x39] ss:$0 sm:$0xff] }
0x1f3b   :  { %2367 = vrot.lane.b32.xlu0 %v10767_v32, %s9620_s29 }
0x1f3f   :  { %2370 = vrot.lane.b32.xlu0 %v10546_v19, %s9616_s19 }
0x1fad   :  { %v2368_v0 = vpop.permute.xlu0 %2367 }
0x1fb1   :  { %v2371_v29 = vpop.permute.xlu0 %2370 }
0x1fb2   :  { %v2373_v41 = vsel %vm114_vm7, %v2368_v0, %v2371_v29 }
0x1fb3   :  { %7797 = vmatmul.mubr.msk.f32.vlgmr.msra.gmra.mrb[28].mxu0 %vm665_vm11, %v2373_v41 }
0x1fb4   :  { %8612 = vmatpush3.bf16.msra.mxu0 %v12133_v2  ;;  %7810 = vmatprep.mubr.msk.f32.mxu0 %vm9613_vm0, %v12102_v37 }
0x1fb5   :  { %8646 = vmatprep.subr.bf16.mxu0 %v12164_v48 }
0x2086   :  { %v2443_v4 = vpop.f32.mrb[28].mxu0 }
0x2087   :  { %v2444_v19 = vadd.f32 %v10782_v36, %v2443_v4  ;;  %v7798_v18 = vpop.f32.mrb[29].mxu0 }
0x2089   :  { %9405 = vtanh.f32 %v2444_v19  ;;  %v6598_v30 = vmul.f32 -1.442695, %v2444_v19 }
0x208b   :  { %9407 = vpow2.f32 %v6598_v30 }
0x2093   :  { %v9406_v7 = vpop.eup %9405 }
0x2094   :  { %2456 = vrot.lane.b32.xlu0 %v9406_v7, %s9616_s19  ;;  %v2559_v7 = vand.u32 2147483647, %v10639_v42 }
0x2095   :  { %v9408_v6 = vpop.eup %9407 }
0x2096   :  { %v2450_v25 = vadd.f32 1.0, %v9408_v6 }
0x2098   :  { %9409 = vrcp.f32 %v2450_v25 }
0x20a2   :  { %v9410_v26 = vpop.eup %9409 }
0x20a3   :  { %v2454_v41 = vmul.f32 %v9410_v26, %v10542_v3  ;;  %v12165_v3 = vld [vmem:[#allocation12_spill] sm:$0xff] }
0x2106   :  { %v2457_v0 = vpop.permute.xlu0 %2456 }
0x2107   :  { %v2459_v29 = vmul.f32 %v9410_v26, %v2457_v0 }
0x2109   :  { %2461 = vrot.lane.b32.xlu0 %v2459_v29, %s9617_s20  ;;  %v12166_v29 = vld [vmem:[#allocation25_spill] sm:$0xff] }
0x217b   :  { %v2462_v48 = vpop.permute.xlu0 %2461 }
0x217c   :  { %v10788_v2 = vadd.f32 %v2462_v48, %v2454_v41  ;;  %v10817_v48 = vld [vmem:[%s11979_s1 + $0x30] ss:$0 sm:$0xff] }
0x217e   :  { %9411 = vtanh.f32 %v10788_v2 }
0x2188   :  { %v9412_v4 = vpop.eup %9411 }
0x2189   :  { %2467 = vrot.lane.b32.xlu1 %v9412_v4, %s9619_s17 }
0x21fb   :  { %v2468_v19 = vpop.permute.xlu1 %2467 }
0x21fc   :  { %v10792_v18 = vmul.f32 %v9410_v26, %v2468_v19 }
0x21fe   :  { %2472 = vrot.lane.b32.xlu0 %v10792_v18, %s9620_s29 }
0x2202   :  { %2561 = vrot.lane.b32.xlu0 %v2559_v7, %s9630_s23 }
0x2270   :  { %v2473_v30 = vpop.permute.xlu0 %2472 }
0x2271   :  { %7804 = vmatmul.mubr.msk.f32.vlgmr.msra.gmra.mrb[16].mxu1 %vm114_vm7, %v2473_v30 }
0x2272   :  { %8616 = vmatpush3.bf16.msra.mxu1 %v9756_v53 }
0x2273   :  { %8618 = vmatprep.subr.bf16.mxu1 %v9779_v60 }
0x2274   :  { %v2562_v0 = vpop.permute.xlu0 %2561 }
0x2275   :  { %v10822_v41 = vadd.f32 %v2562_v0, %v12166_v29 }
0x2276   :  { %8620 = vmatpush3.bf16.msra.mxu1 %v9814_v14 }
0x2277   :  { %8622 = vmatprep.subr.bf16.mxu1 %v9827_v20  ;;  %12167 = vst [vmem:[#allocation35_spill] sm:$0xff] %v10822_v41  ;;  %v2565_v4 = vadd.f32 3.5, %v10822_v41 }
0x2279   :  { %v2566_v19 = vmul.f32 0.25, %v2565_v4 }
0x227a   :  { %8624 = vmatpush3.bf16.msra.mxu1 %v9858_v33 }
0x227b   :  { %8626 = vmatprep.subr.bf16.mxu1 %v9873_v39  ;;  %v2567_v7 = vmin.f32 %v2566_v19, 1.0 }
0x227d   :  { %v2574_v0 = vsub.f32 1.0, %v2567_v7 }
0x227e   :  { %8628 = vmatpush3.bf16.msra.mxu1 %v9899_v52 }
0x227f   :  { %8630 = vmatprep.subr.bf16.mxu1 %v9911_v57 }
0x2282   :  { %8632 = vmatpush3.bf16.msra.mxu1 %v9936_v11 }
0x2283   :  { %8634 = vmatprep.subr.bf16.mxu1 %v9948_v17 }
0x2286   :  { %8636 = vmatpush3.bf16.msra.mxu1 %v9972_v28 }
0x2287   :  { %8638 = vmatprep.subr.bf16.mxu1 %v9984_v35 }
0x228a   :  { %8640 = vmatpush3.bf16.msra.mxu1 %v10008_v47 }
0x228b   :  { %8642 = vmatprep.subr.bf16.mxu1 %v10017_v55 }
0x228e   :  { %8644 = vmatpush3.bf16.msra.mxu1 %v12165_v3 }
0x228f   :  { %8677 = vmatprep.subr.bf16.mxu1 %v12103_v40 }
0x2344   :  { %v2542_v42 = vpop.f32.mrb[16].mxu1 }
0x2345   :  { %v2546_v6 = vadd.f32 %v10817_v48, %v2542_v42  ;;  %v7805_v25 = vpop.f32.mrb[17].mxu1 }
0x2347   :  { %v2547_v26 = vsel %vm955_vm12, %v2546_v6, -inf }
0x2348   :  { %2548 = vmax.xlane.f32.xlu1 %v2547_v26  ;;  %v9631_v26 = vmov 3  }
0x2359   :  { %2570 = vperm.xlu1 %9265, %v2567_v7  }
0x235d   :  { %2584 = vrot.lane.b32.xlu1 %v10631_v50, %s9621_s11 }
0x235e   :  { %9267 = vset.pattern.permute.xlu1 %v9631_v26 }
0x2361   :  { %2622 = vperm.xlu1 %9267, %v10409_v46  }
0x2365   :  { %9280 = vset.pattern.permute.xlu1 %v12115_v61 }
0x23d5   :  { %v2549_v30 = vpop.xlane.xlu1 %2548 }
0x23d6   :  { %v2550_v3 = vsub.f32 %v2546_v6, %v2549_v30 }
0x23d8   :  { %v2551_v55 = vmul.f32 1.442695, %v2550_v3 }
0x23d9   :  { %v2571_v6 = vpop.permute.xlu1 %2570 }
0x23da   :  { %9413 = vpow2.f32 %v2551_v55 }
0x23dd   :  { %v2585_v41 = vpop.permute.xlu1 %2584 }
0x23e4   :  { %v9414_v42 = vpop.eup %9413 }
0x23e5   :  { %v2553_v25 = vsel %vm955_vm12, %v9414_v42, 0.0 }
0x23e6   :  { %2554 = vadd.xlane.f32.xlu0 %v2553_v25 }
0x23fc   :  { %2577 = vperm.xlu0 %9266, %v2574_v0  }
0x2400   :  { %9268 = vset.pattern.permute.xlu0 %v9631_v26 }
0x2473   :  { %v2555_v29 = vpop.xlane.xlu0 %2554 }
0x2474   :  { %9415 = vrcp.f32 %v2555_v29 }
0x247b   :  { %v2578_v3 = vpop.permute.xlu0 %2577 }
0x247c   :  { %v2580_v30 = vmul.f32 %v2578_v3, %v10581_v43  ;;  %v2623_v43 = vpop.permute.xlu1 %2622 }
0x247e   :  { %v9416_v50 = vpop.eup %9415 }
0x247f   :  { %v2557_v4 = vmul.f32 %v9416_v50, %v9414_v42  ;;  %v12168_v50 = vld [vmem:[#allocation28_spill] sm:$0xff] }
0x2481   :  { %v2558_v55 = vmul.f32 4.0, %v2557_v4  ;;  %v2625_v4 = vmul.f32 %v12168_v50, %v2623_v43  ;;  %v10869_v43 = vld [vmem:[%s11979_s1 + $0x18] ss:$0 sm:$0xff] }
0x2483   :  { %v2573_v19 = vmul.f32 %v2571_v6, %v2558_v55 }
0x2485   :  { %v10831_v25 = vadd.f32 %v2580_v30, %v2573_v19  ;;  %v12169_v19 = vld [vmem:[#allocation29_spill] sm:$0xff] }
0x2487   :  { %v2582_v46 = vmul.f32 %v10831_v25, %v10665_v12  ;;  %v2587_v7 = vmul.f32 %v2585_v41, %v10831_v25 }
0x2489   :  { %2595 = vrot.lane.b32.xlu1 %v2587_v7, %s9624_s13  ;;  %7811 = vmatmul.mubr.msk.f32.vlgmr.msra.gmra.mrb[30].mxu0 %vm114_vm7, %v2582_v46  ;;  %v2588_v50 = vmul.f32 %v10869_v43, %v2582_v46 }
0x248a   :  { %8648 = vmatpush3.bf16.msra.mxu0 %v9744_v49 }
0x248b   :  { %8650 = vmatprep.subr.bf16.mxu0 %v9777_v59 }
0x248d   :  { %2599 = vrot.lane.b32.xlu1 %v2587_v7, %s9618_s21 }
0x248e   :  { %8652 = vmatpush3.bf16.msra.mxu0 %v9801_v9 }
0x248f   :  { %8654 = vmatprep.subr.bf16.mxu0 %v9816_v15 }
0x2491   :  { %2603 = vrot.lane.b32.xlu1 %v2587_v7, %s9623_s12 }
0x2492   :  { %8656 = vmatpush3.bf16.msra.mxu0 %v9856_v31 }
0x2493   :  { %8658 = vmatprep.subr.bf16.mxu0 %v9871_v38 }
0x2496   :  { %8660 = vmatpush3.bf16.msra.mxu0 %v9897_v51 }
0x2497   :  { %8662 = vmatprep.subr.bf16.mxu0 %v9909_v56 }
0x249a   :  { %8664 = vmatpush3.bf16.msra.mxu0 %v9934_v8 }
0x249b   :  { %8666 = vmatprep.subr.bf16.mxu0 %v9946_v16 }
0x249e   :  { %8668 = vmatpush3.bf16.msra.mxu0 %v9970_v27 }
0x249f   :  { %8670 = vmatprep.subr.bf16.mxu0 %v9982_v34 }
0x24a2   :  { %8672 = vmatpush3.bf16.msra.mxu0 %v10006_v45 }
0x24a3   :  { %8674 = vmatprep.subr.bf16.mxu0 %v10015_v54 }
0x24a6   :  { %8676 = vmatpush3.bf16.msra.mxu0 %v10030_v63 }
0x24a7   :  { %8701 = vmatprep.subr.bf16.mxu0 %v12103_v40 }
0x24fb   :  { %v2596_v12 = vpop.permute.xlu1 %2595 }
0x24fc   :  { %v2598_v42 = vadd.f32 %v2596_v12, %v2587_v7 }
0x24ff   :  { %v2600_v41 = vpop.permute.xlu1 %2599 }
0x2500   :  { %v2602_v26 = vadd.f32 %v2600_v41, %v2598_v42 }
0x2503   :  { %v2604_v0 = vpop.permute.xlu1 %2603 }
0x2504   :  { %v2606_v29 = vadd.f32 %v2604_v0, %v2602_v26 }
0x2506   :  { %2608 = vrot.lane.b32.xlu1 %v2606_v29, %s9626_s15 }
0x250a   :  { %2611 = vrot.lane.b32.xlu1 %v2606_v29, %s9625_s14 }
0x250e   :  { %2614 = vrot.lane.b32.xlu1 %v2606_v29, %s9627_s16 }
0x255c   :  { %v2695_v6 = vpop.f32.mrb[30].mxu0 }
0x255d   :  { %v2699_v3 = vadd.f32 %v2695_v6, %v2625_v4  ;;  %v7812_v55 = vpop.f32.mrb[31].mxu0 }
0x255f   :  { %v2700_v30 = vadd.f32 %v12169_v19, %v2699_v3 }
0x2561   :  { %9417 = vtanh.f32 %v2700_v30  ;;  %v6601_v3 = vmul.f32 -1.442695, %v2700_v30  ;;  %v10890_v30 = vld [vmem:[%s11978_s0] sm:$0x3] }
0x2563   :  { %9419 = vpow2.f32 %v6601_v3 }
0x256b   :  { %v9418_v63 = vpop.eup %9417 }
0x256c   :  { %2714 = vrot.lane.b32.xlu0 %v9418_v63, %s9616_s19  ;;  %v10875_v63 = vld [vmem:[%s11979_s1 + $0x20] ss:$0 sm:$0xff] }
0x256d   :  { %v9420_v55 = vpop.eup %9419 }
0x256e   :  { %v2704_v19 = vadd.f32 1.0, %v9420_v55 }
0x2570   :  { %9421 = vrcp.f32 %v2704_v19  ;;  %v12172_v19 = vpack.i.bf16 %v10682_v5, %v10686_v13 }
0x2578   :  { %v2609_v7 = vpop.permute.xlu1 %2608 }
0x2579   :  { %v2617_v41 = vsel %vm1034_vm13, %v2606_v29, %v2609_v7  ;;  %v2589_v29 = vmul.f32 %v10875_v63, %v10831_v25 }
0x257a   :  { %v9422_v7 = vpop.eup %9421 }
0x257b   :  { %v2590_v4 = vadd.f32 %v2589_v29, %v2588_v50 }
0x257c   :  { %v2612_v12 = vpop.permute.xlu1 %2611 }
0x257d   :  { %v2618_v42 = vsel %vm1036_vm14, %v2617_v41, %v2612_v12  ;;  %v2591_v6 = vsel %vm955_vm12, %v2590_v4, 0.0 }
0x2580   :  { %v2615_v26 = vpop.permute.xlu1 %2614 }
0x2581   :  { %v2619_v0 = vsel %vm1038_vm15, %v2618_v42, %v2615_v26 }
0x2582   :  { %2709 = vrot.lane.b32.xlu1 %v2619_v0, %s9617_s20 }
0x25a6   :  { %2592 = vadd.xlane.f32.xlu1 %v2591_v6  ;;  %v12171_v6 = vpack.i.bf16 %v10690_v21, %v10673_v24 }
0x25de   :  { %v2715_v12 = vpop.permute.xlu0 %2714 }
0x25df   :  { %v2717_v46 = vmul.f32 %v9422_v7, %v2715_v12 }
0x25e1   :  { %2719 = vrot.lane.b32.xlu0 %v2717_v46, %s9617_s20 }
0x25f4   :  { %v2710_v41 = vpop.permute.xlu1 %2709 }
0x25f5   :  { %v2712_v42 = vmul.f32 %v9422_v7, %v2710_v41 }
0x2633   :  { %v10884_v29 = vpop.xlane.xlu1 %2592 }
0x2634   :  { %12170 = vst [vmem:[#allocation25_spill] sm:$0xff] %v10884_v29  ;;  %v10894_v4 = vsub.f32 %v10890_v30, %v10884_v29 }
0x2653   :  { %v2720_v26 = vpop.permute.xlu0 %2719 }
0x2654   :  { %v10881_v0 = vadd.f32 %v2720_v26, %v2712_v42 }
0x2656   :  { %9423 = vtanh.f32 %v10881_v0 }
0x2660   :  { %v9424_v50 = vpop.eup %9423 }
0x2661   :  { %2725 = vrot.lane.b32.xlu0 %v9424_v50, %s9619_s17 }
0x2665   :  { %2756 = vperm.xlu0 %9268, %v10894_v4  }
0x2669   :  { %9270 = vrot.lane.b32.xlu0 %v12171_v6, %s9619_s17 }
0x266a   :  { %9279 = vset.pattern.permute.xlu0 %v12115_v61 }
0x266d   :  { %2731 = vrot.lane.b32.xlu0 %v10658_v10, %s9619_s17 }
0x26d3   :  { %v2726_v3 = vpop.permute.xlu0 %2725 }
0x26d4   :  { %v2728_v55 = vmul.f32 %v9422_v7, %v2726_v3 }
0x26d6   :  { %2745 = vrot.lane.b32.xlu0 %v2728_v55, %s9620_s29 }
0x26da   :  { %9275 = vrot.lane.b32.xlu0 %v12172_v19, %s9619_s17 }
0x26de   :  { %3055 = vrot.lane.b32.xlu0 %v10767_v32, %s9616_s19 }
0x26e4   :  { %v2757_v12 = vpop.permute.xlu0 %2756 }
0x26e8   :  { %v9271_v24 = vpop.permute.xlu0 %9270 }
0x26e9   :  { %v9272_v21 = vunpack.i.l.bf16 %v9271_v24  ;;  %v9273_v10 = vunpack.i.h.bf16 %v9271_v24  ;;  %v12182_v24 = vld [vmem:[#allocation33_spill] sm:$0xff] }
0x26eb   :  { %v2743_v7 = vsel %vm228_vm6, %v9273_v10, %v9272_v21 }
0x26ec   :  { %v2732_v46 = vpop.permute.xlu0 %2731  ;;  %v2749_v5 = vsel %vm228_vm6, 0.0, %v2743_v7  ;;  %v12175_v7 = vld [vmem:[#allocation16_spill] sm:$0xff] }
0x26ed   :  { %v10913_v41 = vsel %vm228_vm6, %v9272_v21, %v2732_v46  ;;  %v2759_v42 = vsel %vm244_vm8, %v2757_v12, %v2749_v5  ;;  %v12176_v5 = vld [vmem:[#allocation23_spill] sm:$0xff]  ;;  %v12183_v21 = vld [vmem:[#allocation8_spill] sm:$0xff] }
0x26ee   :  { %2833 = vmatprep.mubr.f32.mxu1 %v10913_v41 }
0x2748   :  { %v10920_v13 = vpop.permute.xlu0 %2745 }
0x2749   :  { %v2748_v32 = vsel %vm114_vm7, %v10920_v13, 0.0 }
0x274a   :  { %v10928_v26 = vsel %vm239_vm9, %v2748_v32, %v2759_v42  ;;  %v12177_v32 = vld [vmem:[#allocation17_spill] sm:$0xff]  ;;  %v12178_v42 = vld [vmem:[#allocation24_spill] sm:$0xff] }
0x274b   :  { %2834 = vmatmul.mubr.f32.vlgmr.msra.gmra.mrb[18].mxu1 %v10928_v26 }
0x274c   :  { %8679 = vmatpush3.bf16.msra.mxu1 %v10076_v58  ;;  %v9276_v50 = vpop.permute.xlu0 %9275  ;;  %7845 = vmatprep.mubr.msk.f32.mxu1 %vm9613_vm0, %v12102_v37 }
0x274d   :  { %v9278_v6 = vunpack.i.h.bf16 %v9276_v50  ;;  %v9277_v3 = vunpack.i.l.bf16 %v9276_v50  ;;  %8680 = vmatprep.subr.bf16.mxu1 %v12103_v40  ;;  %v12179_v50 = vld [vmem:[#allocation18_spill] sm:$0xff] }
0x274f   :  { %v10937_v55 = vsel %vm228_vm6, %v9277_v3, %v9278_v6  ;;  %v10941_v19 = vsel %vm228_vm6, %v2732_v46, %v9277_v3  ;;  %v10945_v12 = vsel %vm228_vm6, %v9278_v6, %v9273_v10  ;;  %v12173_v46 = vld [vmem:[#allocation15_spill] sm:$0xff]  ;;  %v12174_v10 = vld [vmem:[#allocation22_spill] sm:$0xff]  ;;  %v12181_v3 = vld [vmem:[#allocation20_spill] sm:$0xff] }
0x2750   :  { %8682 = vmatpush3.bf16.msra.mxu1 %v12146_v62  ;;  %2903 = vmatprep.mubr.f32.mxu0 %v10937_v55  ;;  %v12180_v6 = vld [vmem:[#allocation19_spill] sm:$0xff] }
0x2751   :  { %2904 = vmatmul.mubr.f32.vlgmr.msra.gmra.mrb[32].mxu0 %v10941_v19  ;;  %8683 = vmatprep.subr.bf16.mxu1 %v12103_v40 }
0x2752   :  { %8703 = vmatpush3.bf16.msra.mxu0 %v12147_v22  ;;  %7864 = vmatprep.mubr.msk.f32.mxu0 %vm9613_vm0, %v12102_v37 }
0x2753   :  { %8704 = vmatprep.subr.bf16.mxu0 %v12103_v40 }
0x2754   :  { %8685 = vmatpush3.bf16.msra.mxu1 %v12173_v46 }
0x2755   :  { %8686 = vmatprep.subr.bf16.mxu1 %v12103_v40 }
0x2756   :  { %8706 = vmatpush3.bf16.msra.mxu0 %v12174_v10 }
0x2757   :  { %8707 = vmatprep.subr.bf16.mxu0 %v12103_v40 }
0x2758   :  { %8688 = vmatpush3.bf16.msra.mxu1 %v12175_v7 }
0x2759   :  { %8689 = vmatprep.subr.bf16.mxu1 %v12103_v40 }
0x275a   :  { %8709 = vmatpush3.bf16.msra.mxu0 %v12176_v5  ;;  %v12184_v5 = vld [vmem:[#allocation34_spill] sm:$0xff] }
0x275b   :  { %8710 = vmatprep.subr.bf16.mxu0 %v12103_v40 }
0x275c   :  { %8691 = vmatpush3.bf16.msra.mxu1 %v12177_v32 }
0x275d   :  { %8692 = vmatprep.subr.bf16.mxu1 %v12103_v40 }
0x275e   :  { %8712 = vmatpush3.bf16.msra.mxu0 %v12178_v42 }
0x275f   :  { %8713 = vmatprep.subr.bf16.mxu0 %v12103_v40 }
0x2760   :  { %8694 = vmatpush3.bf16.msra.mxu1 %v12179_v50 }
0x2761   :  { %8695 = vmatprep.subr.bf16.mxu1 %v12103_v40 }
0x2764   :  { %8697 = vmatpush3.bf16.msra.mxu1 %v12180_v6 }
0x2765   :  { %8698 = vmatprep.subr.bf16.mxu1 %v12103_v40 }
0x2768   :  { %8700 = vmatpush3.bf16.msra.mxu1 %v12181_v3 }
0x2769   :  { %8725 = vmatprep.subr.bf16.mxu1 %v12103_v40 }
0x276b   :  { %7846 = vmatmul.mubr.f32.vlgmr.msra.gmra.mrb[20].mxu1 %v10945_v12 }
0x276c   :  { %8727 = vmatpush3.bf16.msra.mxu1 %v12182_v24  ;;  %7893 = vmatprep.mubr.msk.f32.mxu1 %vm9613_vm0, %v12102_v37  ;;  %v12185_v24 = vld [vmem:[#allocation26_spill] sm:$0xff] }
0x276d   :  { %8732 = vmatprep.subr.bf16.mxu1 %v12183_v21 }
0x281e   :  { %v7011_v29 = vpop.f32.mrb[18].mxu1 }
0x281f   :  { %v7012_v50 = vpop.f32.mrb[19].mxu1 }
0x2820   :  { %v7013_v42 = vadd.f32 %v7012_v50, %v7011_v29  ;;  %v12186_v29 = vld [vmem:[#allocation27_spill] sm:$0xff] }
0x2822   :  { %v2836_v7 = vadd.f32 %v12184_v5, %v7013_v42  ;;  %v12189_v42 = vld [vmem:[#allocation32_spill] sm:$0xff] }
0x2824   :  { %v7046_v32 = vpop.f32.mrb[32].mxu0 }
0x2825   :  { %v7047_v6 = vpop.f32.mrb[33].mxu0 }
0x2826   :  { %v7048_v10 = vadd.f32 %v7047_v6, %v7046_v32  ;;  %v12187_v32 = vld [vmem:[#allocation7_spill] sm:$0xff] }
0x2828   :  { %v2906_v3 = vadd.f32 %v7048_v10, %v2836_v7 }
0x283e   :  { %v2975_v46 = vpop.f32.mrb[20].mxu1 }
0x283f   :  { %v2976_v22 = vadd.f32 %v2975_v46, %v2906_v3  ;;  %v7847_v62 = vpop.f32.mrb[21].mxu1 }
0x2840   :  { %v3056_v62 = vpop.permute.xlu0 %3055 }
0x2841   :  { %v2979_v58 = vmax.f32 %v2976_v22, 0.0 }
0x2843   :  { %7865 = vmatmul.mubr.msk.f32.vlgmr.msra.gmra.mrb[34].mxu0 %vm576_vm10, %v2979_v58  ;;  %v12188_v58 = vld [vmem:[#allocation31_spill] sm:$0xff] }
0x2844   :  { %8715 = vmatpush3.bf16.msra.mxu0 %v12185_v24  ;;  %7875 = vmatprep.mubr.msk.f32.mxu0 %vm9613_vm0, %v12102_v37 }
0x2845   :  { %8716 = vmatprep.subr.bf16.mxu0 %v12103_v40 }
0x2848   :  { %8718 = vmatpush3.bf16.msra.mxu0 %v12186_v29 }
0x2849   :  { %8719 = vmatprep.subr.bf16.mxu0 %v12103_v40 }
0x2916   :  { %v3049_v5 = vpop.f32.mrb[34].mxu0 }
0x2917   :  { %v3053_v10 = vadd.f32 %v12187_v32, %v3049_v5  ;;  %v7866_v7 = vpop.f32.mrb[35].mxu0 }
0x2919   :  { %v3054_v46 = vmax.f32 %v3053_v10, 0.0 }
0x291b   :  { %v3058_v22 = vsel %vm114_vm7, %v3054_v46, %v3056_v62 }
0x291c   :  { %7876 = vmatmul.mubr.msk.f32.vlgmr.msra.gmra.mrb[36].mxu0 %vm665_vm11, %v3058_v22 }
0x291d   :  { %8721 = vmatpush3.bf16.msra.mxu0 %v12188_v58  ;;  %7886 = vmatprep.mubr.msk.f32.mxu0 %vm9613_vm0, %v12102_v37 }
0x291e   :  { %8722 = vmatprep.subr.bf16.mxu0 %v12103_v40 }
0x2921   :  { %8724 = vmatpush3.bf16.msra.mxu0 %v12189_v42 }
0x2922   :  { %8728 = vmatprep.subr.bf16.mxu0 %v12103_v40 }
0x29ef   :  { %v3128_v50 = vpop.f32.mrb[36].mxu0 }
0x29f0   :  { %v3129_v6 = vadd.f32 %v10757_v44, %v3128_v50  ;;  %v7877_v3 = vpop.f32.mrb[37].mxu0 }
0x29f2   :  { %9425 = vtanh.f32 %v3129_v6  ;;  %v6604_v32 = vmul.f32 -1.442695, %v3129_v6 }
0x29f4   :  { %9427 = vpow2.f32 %v6604_v32 }
0x29fc   :  { %v9426_v5 = vpop.eup %9425 }
0x29fd   :  { %3141 = vrot.lane.b32.xlu0 %v9426_v5, %s9616_s19 }
0x29fe   :  { %v9428_v10 = vpop.eup %9427 }
0x29ff   :  { %v3135_v7 = vadd.f32 1.0, %v9428_v10 }
0x2a01   :  { %9429 = vrcp.f32 %v3135_v7 }
0x2a0b   :  { %v9430_v46 = vpop.eup %9429 }
0x2a0c   :  { %v3139_v42 = vmul.f32 %v9430_v46, %v10763_v1 }
0x2a6f   :  { %v3142_v62 = vpop.permute.xlu0 %3141 }
0x2a70   :  { %v3144_v22 = vmul.f32 %v9430_v46, %v3142_v62 }
0x2a72   :  { %3146 = vrot.lane.b32.xlu1 %v3144_v22, %s9617_s20 }
0x2ae4   :  { %v3147_v58 = vpop.permute.xlu1 %3146 }
0x2ae5   :  { %v11003_v29 = vadd.f32 %v3147_v58, %v3139_v42  ;;  %v12190_v58 = vld [vmem:[#allocation5_spill] sm:$0xff]  ;;  %v12191_v42 = vld [vmem:[#allocation6_spill] sm:$0xff] }
0x2ae7   :  { %9431 = vtanh.f32 %v11003_v29 }
0x2af1   :  { %v9432_v44 = vpop.eup %9431 }
0x2af2   :  { %3152 = vrot.lane.b32.xlu0 %v9432_v44, %s9619_s17 }
0x2b64   :  { %v3153_v50 = vpop.permute.xlu0 %3152 }
0x2b65   :  { %v11007_v6 = vmul.f32 %v9430_v46, %v3153_v50 }
0x2b67   :  { %3157 = vrot.lane.b32.xlu0 %v11007_v6, %s9620_s29 }
0x2b6b   :  { %3160 = vrot.lane.b32.xlu0 %v10792_v18, %s9616_s19 }
0x2bd9   :  { %v3158_v3 = vpop.permute.xlu0 %3157 }
0x2bdd   :  { %v3161_v5 = vpop.permute.xlu0 %3160 }
0x2bde   :  { %v3163_v1 = vsel %vm114_vm7, %v3158_v3, %v3161_v5 }
0x2bdf   :  { %7887 = vmatmul.mubr.msk.f32.vlgmr.msra.gmra.mrb[38].mxu0 %vm665_vm11, %v3163_v1 }
0x2be0   :  { %8730 = vmatpush3.bf16.msra.mxu0 %v12190_v58  ;;  %7900 = vmatprep.mubr.msk.f32.mxu0 %vm9613_vm0, %v12102_v37 }
0x2be1   :  { %8764 = vmatprep.subr.bf16.mxu0 %v12191_v42 }
0x2cb2   :  { %v3233_v32 = vpop.f32.mrb[38].mxu0 }
0x2cb3   :  { %v3234_v10 = vadd.f32 %v10782_v36, %v3233_v32  ;;  %v7888_v7 = vpop.f32.mrb[39].mxu0 }
0x2cb4   :  { %v3349_v7 = vand.u32 2147483647, %v10894_v4  ;;  %v12193_v4 = vld [vmem:[#allocation12_spill] sm:$0xff] }
0x2cb5   :  { %9433 = vtanh.f32 %v3234_v10  ;;  %v6606_v18 = vmul.f32 -1.442695, %v3234_v10 }
0x2cb7   :  { %9435 = vpow2.f32 %v6606_v18 }
0x2cbf   :  { %v9434_v46 = vpop.eup %9433 }
0x2cc0   :  { %3246 = vrot.lane.b32.xlu0 %v9434_v46, %s9616_s19 }
0x2cc1   :  { %v9436_v62 = vpop.eup %9435 }
0x2cc2   :  { %v3240_v22 = vadd.f32 1.0, %v9436_v62 }
0x2cc4   :  { %9437 = vrcp.f32 %v3240_v22 }
0x2cce   :  { %v9438_v44 = vpop.eup %9437 }
0x2ccf   :  { %v3244_v5 = vmul.f32 %v9438_v44, %v10788_v2  ;;  %v12192_v2 = vld [vmem:[#allocation10_spill] sm:$0xff] }
0x2d32   :  { %v3247_v50 = vpop.permute.xlu0 %3246 }
0x2d33   :  { %v3249_v3 = vmul.f32 %v9438_v44, %v3247_v50 }
0x2d35   :  { %3251 = vrot.lane.b32.xlu1 %v3249_v3, %s9617_s20  ;;  %v12194_v3 = vld [vmem:[#allocation35_spill] sm:$0xff] }
0x2da7   :  { %v3252_v1 = vpop.permute.xlu1 %3251 }
0x2da8   :  { %v11023_v42 = vadd.f32 %v3252_v1, %v3244_v5 }
0x2daa   :  { %9439 = vtanh.f32 %v11023_v42 }
0x2db4   :  { %v9440_v36 = vpop.eup %9439 }
0x2db5   :  { %3257 = vrot.lane.b32.xlu0 %v9440_v36, %s9619_s17 }
0x2e27   :  { %v3258_v32 = vpop.permute.xlu0 %3257 }
0x2e28   :  { %v11027_v10 = vmul.f32 %v9438_v44, %v3258_v32 }
0x2e2a   :  { %3262 = vrot.lane.b32.xlu1 %v11027_v10, %s9620_s29 }
0x2e2e   :  { %3351 = vrot.lane.b32.xlu1 %v3349_v7, %s9632_s5  ;;  %s9637_s5 = smov 122  }
0x2e9c   :  { %v3263_v46 = vpop.permute.xlu1 %3262 }
0x2e9d   :  { %7894 = vmatmul.mubr.msk.f32.vlgmr.msra.gmra.mrb[22].mxu1 %vm114_vm7, %v3263_v46 }
0x2e9e   :  { %8734 = vmatpush3.bf16.msra.mxu1 %v9756_v53 }
0x2e9f   :  { %8736 = vmatprep.subr.bf16.mxu1 %v9779_v60 }
0x2ea0   :  { %v3352_v50 = vpop.permute.xlu1 %3351 }
0x2ea1   :  { %v11052_v5 = vadd.f32 %v3352_v50, %v12194_v3 }
0x2ea2   :  { %8738 = vmatpush3.bf16.msra.mxu1 %v9814_v14 }
0x2ea3   :  { %8740 = vmatprep.subr.bf16.mxu1 %v9827_v20  ;;  %v3355_v1 = vadd.f32 3.0, %v11052_v5 }
0x2ea5   :  { %v3356_v36 = vmul.f32 0.25, %v3355_v1 }
0x2ea6   :  { %8742 = vmatpush3.bf16.msra.mxu1 %v9858_v33 }
0x2ea7   :  { %8744 = vmatprep.subr.bf16.mxu1 %v9873_v39  ;;  %v3357_v32 = vmin.f32 %v3356_v36, 1.0 }
0x2eaa   :  { %8746 = vmatpush3.bf16.msra.mxu1 %v9899_v52 }
0x2eab   :  { %8748 = vmatprep.subr.bf16.mxu1 %v9911_v57 }
0x2eae   :  { %8750 = vmatpush3.bf16.msra.mxu1 %v9936_v11 }
0x2eaf   :  { %8752 = vmatprep.subr.bf16.mxu1 %v9948_v17 }
0x2eb2   :  { %8754 = vmatpush3.bf16.msra.mxu1 %v9972_v28 }
0x2eb3   :  { %8756 = vmatprep.subr.bf16.mxu1 %v9984_v35 }
0x2eb6   :  { %8758 = vmatpush3.bf16.msra.mxu1 %v10008_v47 }
0x2eb7   :  { %8760 = vmatprep.subr.bf16.mxu1 %v12192_v2 }
0x2eba   :  { %8762 = vmatpush3.bf16.msra.mxu1 %v12193_v4 }
0x2ebb   :  { %8795 = vmatprep.subr.bf16.mxu1 %v12103_v40 }
0x2f70   :  { %v3332_v18 = vpop.f32.mrb[22].mxu1 }
0x2f71   :  { %v3336_v62 = vadd.f32 %v10817_v48, %v3332_v18  ;;  %v7895_v22 = vpop.f32.mrb[23].mxu1  ;;  %v3364_v18 = vsub.f32 1.0, %v3357_v32 }
0x2f72   :  { %v9633_v22 = vmov 4  }
0x2f73   :  { %v3337_v44 = vsel %vm955_vm12, %v3336_v62, -inf }
0x2f74   :  { %3338 = vmax.xlane.f32.xlu0 %v3337_v44 }
0x2f8a   :  { %3360 = vperm.xlu0 %9279, %v3357_v32  }
0x2f8e   :  { %9282 = vset.pattern.permute.xlu0 %v9633_v22 }
0x3001   :  { %v3339_v7 = vpop.xlane.xlu0 %3338 }
0x3002   :  { %v3340_v46 = vsub.f32 %v3336_v62, %v3339_v7 }
0x3004   :  { %v3341_v4 = vmul.f32 1.442695, %v3340_v46 }
0x3006   :  { %9441 = vpow2.f32 %v3341_v4 }
0x3009   :  { %v3361_v1 = vpop.permute.xlu0 %3360 }
0x3010   :  { %v9442_v2 = vpop.eup %9441 }
0x3011   :  { %v3343_v48 = vsel %vm955_vm12, %v9442_v2, 0.0 }
0x3012   :  { %3344 = vadd.xlane.f32.xlu1 %v3343_v48 }
0x3023   :  { %3367 = vperm.xlu1 %9280, %v3364_v18  }
0x3027   :  { %3374 = vrot.lane.b32.xlu1 %v10881_v0, %s9621_s11 }
0x3028   :  { %9281 = vset.pattern.permute.xlu1 %v9633_v22 }
0x302b   :  { %3412 = vperm.xlu1 %9281, %v10890_v30  }
0x302f   :  { %9294 = vset.pattern.permute.xlu1 %v12115_v61 }
0x309f   :  { %v3345_v44 = vpop.xlane.xlu1 %3344 }
0x30a0   :  { %9443 = vrcp.f32 %v3345_v44 }
0x30a3   :  { %v3368_v50 = vpop.permute.xlu1 %3367 }
0x30a4   :  { %v3370_v32 = vmul.f32 %v3368_v50, %v10831_v25  ;;  %v12195_v25 = vld [vmem:[#allocation11_spill] sm:$0xff]  ;;  %v11092_v50 = vld [vmem:[%s11979_s1] ss:$0 sm:$0xff] }
0x30a5   :  { %12196 = vst [vmem:[#allocation28_spill] sm:$0xff] %v11092_v50 }
0x30a7   :  { %v3375_v46 = vpop.permute.xlu1 %3374 }
0x30aa   :  { %v9444_v62 = vpop.eup %9443 }
0x30ab   :  { %v3347_v4 = vmul.f32 %v9444_v62, %v9442_v2 }
0x30ad   :  { %v3348_v3 = vmul.f32 4.0, %v3347_v4 }
0x30af   :  { %v3363_v36 = vmul.f32 %v3361_v1, %v3348_v3 }
0x30b1   :  { %v11061_v7 = vadd.f32 %v3370_v32, %v3363_v36 }
0x30b3   :  { %v3372_v0 = vmul.f32 %v11061_v7, %v10920_v13  ;;  %v3377_v48 = vmul.f32 %v3375_v46, %v11061_v7  ;;  %v3413_v13 = vpop.permute.xlu1 %3412  ;;  %v11098_v46 = vld [vmem:[%s11979_s1 + $0x8] ss:$0 sm:$0xff] }
0x30b4   :  { %v3415_v3 = vmul.f32 %v11092_v50, %v3413_v13  ;;  %12197 = vst [vmem:[#allocation29_spill] sm:$0xff] %v11098_v46 }
0x30b5   :  { %7901 = vmatmul.mubr.msk.f32.vlgmr.msra.gmra.mrb[40].mxu0 %vm114_vm7, %v3372_v0  ;;  %3393 = vrot.lane.b32.xlu0 %v3377_v48, %s9623_s12 }
0x30b6   :  { %3385 = vrot.lane.b32.xlu1 %v3377_v48, %s9624_s13  ;;  %8766 = vmatpush3.bf16.msra.mxu0 %v9744_v49 }
0x30b7   :  { %8768 = vmatprep.subr.bf16.mxu0 %v9777_v59 }
0x30ba   :  { %3389 = vrot.lane.b32.xlu1 %v3377_v48, %s9618_s21  ;;  %8770 = vmatpush3.bf16.msra.mxu0 %v9801_v9 }
0x30bb   :  { %8772 = vmatprep.subr.bf16.mxu0 %v9816_v15 }
0x30be   :  { %8774 = vmatpush3.bf16.msra.mxu0 %v9856_v31 }
0x30bf   :  { %8776 = vmatprep.subr.bf16.mxu0 %v9871_v38 }
0x30c2   :  { %8778 = vmatpush3.bf16.msra.mxu0 %v9897_v51 }
0x30c3   :  { %8780 = vmatprep.subr.bf16.mxu0 %v9909_v56 }
0x30c6   :  { %8782 = vmatpush3.bf16.msra.mxu0 %v9934_v8 }
0x30c7   :  { %8784 = vmatprep.subr.bf16.mxu0 %v9946_v16 }
0x30ca   :  { %8786 = vmatpush3.bf16.msra.mxu0 %v9970_v27 }
0x30cb   :  { %8788 = vmatprep.subr.bf16.mxu0 %v9982_v34 }
0x30ce   :  { %8790 = vmatpush3.bf16.msra.mxu0 %v10006_v45 }
0x30cf   :  { %8792 = vmatprep.subr.bf16.mxu0 %v10015_v54 }
0x30d2   :  { %8794 = vmatpush3.bf16.msra.mxu0 %v12195_v25 }
0x30d3   :  { %8819 = vmatprep.subr.bf16.mxu0 %v12103_v40 }
0x3127   :  { %v3394_v62 = vpop.permute.xlu0 %3393 }
0x3128   :  { %v3386_v2 = vpop.permute.xlu1 %3385 }
0x3129   :  { %v3388_v18 = vadd.f32 %v3386_v2, %v3377_v48 }
0x312c   :  { %v3390_v22 = vpop.permute.xlu1 %3389 }
0x312d   :  { %v3392_v44 = vadd.f32 %v3390_v22, %v3388_v18 }
0x312f   :  { %v3396_v4 = vadd.f32 %v3394_v62, %v3392_v44 }
0x3131   :  { %3401 = vrot.lane.b32.xlu0 %v3396_v4, %s9625_s14  ;;  %3398 = vrot.lane.b32.xlu1 %v3396_v4, %s9626_s15 }
0x3135   :  { %3404 = vrot.lane.b32.xlu1 %v3396_v4, %s9627_s16 }
0x3188   :  { %v3485_v1 = vpop.f32.mrb[40].mxu0 }
0x3189   :  { %v3489_v36 = vadd.f32 %v3485_v1, %v3415_v3  ;;  %v7902_v32 = vpop.f32.mrb[41].mxu0  ;;  %v3378_v1 = vmul.f32 %v10869_v43, %v3372_v0 }
0x318b   :  { %v3490_v48 = vadd.f32 %v11098_v46, %v3489_v36  ;;  %v3379_v36 = vmul.f32 %v10875_v63, %v11061_v7 }
0x318d   :  { %9445 = vtanh.f32 %v3490_v48  ;;  %v3380_v32 = vadd.f32 %v3379_v36, %v3378_v1  ;;  %v12200_v36 = vpack.i.bf16 %v10937_v55, %v10941_v19 }
0x318f   :  { %v3381_v46 = vsel %vm955_vm12, %v3380_v32, 0.0 }
0x3197   :  { %v9446_v2 = vpop.eup %9445 }
0x3198   :  { %3504 = vrot.lane.b32.xlu0 %v9446_v2, %s9616_s19  ;;  %v6609_v2 = vmul.f32 -1.442695, %v3490_v48 }
0x319a   :  { %9447 = vpow2.f32 %v6609_v2 }
0x31a3   :  { %v3399_v18 = vpop.permute.xlu1 %3398  ;;  %v3402_v22 = vpop.permute.xlu0 %3401 }
0x31a4   :  { %v3407_v44 = vsel %vm1034_vm13, %v3396_v4, %v3399_v18  ;;  %v9448_v50 = vpop.eup %9447 }
0x31a5   :  { %v3408_v13 = vsel %vm1036_vm14, %v3407_v44, %v3402_v22  ;;  %v3494_v4 = vadd.f32 1.0, %v9448_v50 }
0x31a7   :  { %v3405_v62 = vpop.permute.xlu1 %3404  ;;  %9449 = vrcp.f32 %v3494_v4 }
0x31a8   :  { %v3409_v3 = vsel %vm1038_vm15, %v3408_v13, %v3405_v62 }
0x31a9   :  { %3499 = vrot.lane.b32.xlu1 %v3409_v3, %s9617_s20 }
0x31b1   :  { %v9450_v18 = vpop.eup %9449 }
0x31cd   :  { %3382 = vadd.xlane.f32.xlu1 %v3381_v46  ;;  %v12199_v46 = vpack.i.bf16 %v10945_v12, %v10928_v26 }
0x320a   :  { %v3505_v22 = vpop.permute.xlu0 %3504 }
0x320b   :  { %v3507_v44 = vmul.f32 %v9450_v18, %v3505_v22 }
0x320d   :  { %3509 = vrot.lane.b32.xlu0 %v3507_v44, %s9617_s20 }
0x321b   :  { %v3500_v13 = vpop.permute.xlu1 %3499 }
0x321c   :  { %v3502_v62 = vmul.f32 %v9450_v18, %v3500_v13  ;;  %v12201_v13 = vld [vmem:[#allocation13_spill] sm:$0xff] }
0x325a   :  { %v11114_v3 = vpop.xlane.xlu1 %3382 }
0x325b   :  { %12198 = vst [vmem:[#allocation8_spill] sm:$0xff] %v11114_v3  ;;  %v11119_v50 = vsub.f32 %v10890_v30, %v11114_v3 }
0x327f   :  { %v3510_v43 = vpop.permute.xlu0 %3509 }
0x3280   :  { %v11111_v0 = vadd.f32 %v3510_v43, %v3502_v62 }
0x3282   :  { %9451 = vtanh.f32 %v11111_v0 }
0x328c   :  { %v9452_v63 = vpop.eup %9451 }
0x328d   :  { %3515 = vrot.lane.b32.xlu0 %v9452_v63, %s9619_s17 }
0x3291   :  { %3546 = vperm.xlu0 %9282, %v11119_v50  }
0x3295   :  { %9284 = vrot.lane.b32.xlu0 %v12199_v46, %s9619_s17 }
0x3296   :  { %9293 = vset.pattern.permute.xlu0 %v12115_v61 }
0x3299   :  { %3521 = vrot.lane.b32.xlu0 %v10913_v41, %s9619_s17 }
0x32ff   :  { %v3516_v48 = vpop.permute.xlu0 %3515 }
0x3300   :  { %v3518_v1 = vmul.f32 %v9450_v18, %v3516_v48 }
0x3302   :  { %3535 = vrot.lane.b32.xlu0 %v3518_v1, %s9620_s29 }
0x3306   :  { %9289 = vrot.lane.b32.xlu0 %v12200_v36, %s9619_s17  ;;  %v12202_v36 = vld [vmem:[#allocation14_spill] sm:$0xff] }
0x330a   :  { %3845 = vrot.lane.b32.xlu0 %v11007_v6, %s9616_s19 }
0x3310   :  { %v3547_v32 = vpop.permute.xlu0 %3546 }
0x3314   :  { %v9285_v26 = vpop.permute.xlu0 %9284 }
0x3315   :  { %v9286_v12 = vunpack.i.l.bf16 %v9285_v26  ;;  %v9287_v41 = vunpack.i.h.bf16 %v9285_v26 }
0x3317   :  { %v3533_v18 = vsel %vm228_vm6, %v9287_v41, %v9286_v12 }
0x3318   :  { %v3522_v2 = vpop.permute.xlu0 %3521  ;;  %v3539_v55 = vsel %vm228_vm6, 0.0, %v3533_v18  ;;  %v12206_v18 = vld [vmem:[#allocation16_spill] sm:$0xff] }
0x3319   :  { %v11138_v4 = vsel %vm228_vm6, %v9286_v12, %v3522_v2  ;;  %v3549_v22 = vsel %vm244_vm8, %v3547_v32, %v3539_v55  ;;  %v12203_v12 = vld [vmem:[#allocation21_spill] sm:$0xff]  ;;  %v12207_v55 = vld [vmem:[#allocation23_spill] sm:$0xff] }
0x331a   :  { %3623 = vmatprep.mubr.f32.mxu1 %v11138_v4  ;;  %v12213_v32 = vld [vmem:[#allocation33_spill] sm:$0xff] }
0x3374   :  { %v11145_v19 = vpop.permute.xlu0 %3535 }
0x3375   :  { %v3538_v6 = vsel %vm114_vm7, %v11145_v19, 0.0 }
0x3376   :  { %v11153_v44 = vsel %vm239_vm9, %v3538_v6, %v3549_v22  ;;  %v12208_v6 = vld [vmem:[#allocation17_spill] sm:$0xff]  ;;  %v12209_v22 = vld [vmem:[#allocation24_spill] sm:$0xff] }
0x3377   :  { %3624 = vmatmul.mubr.f32.vlgmr.msra.gmra.mrb[24].mxu1 %v11153_v44 }
0x3378   :  { %8797 = vmatpush3.bf16.msra.mxu1 %v12201_v13  ;;  %v9290_v62 = vpop.permute.xlu0 %9289  ;;  %7935 = vmatprep.mubr.msk.f32.mxu1 %vm9613_vm0, %v12102_v37 }
0x3379   :  { %v9292_v43 = vunpack.i.h.bf16 %v9290_v62  ;;  %v9291_v63 = vunpack.i.l.bf16 %v9290_v62  ;;  %8798 = vmatprep.subr.bf16.mxu1 %v12103_v40  ;;  %v12210_v62 = vld [vmem:[#allocation18_spill] sm:$0xff] }
0x337b   :  { %v11162_v46 = vsel %vm228_vm6, %v9291_v63, %v9292_v43  ;;  %v11166_v48 = vsel %vm228_vm6, %v3522_v2, %v9291_v63  ;;  %v11170_v1 = vsel %vm228_vm6, %v9292_v43, %v9287_v41  ;;  %v12204_v2 = vld [vmem:[#allocation15_spill] sm:$0xff]  ;;  %v12205_v41 = vld [vmem:[#allocation22_spill] sm:$0xff]  ;;  %v12212_v63 = vld [vmem:[#allocation20_spill] sm:$0xff] }
0x337c   :  { %8800 = vmatpush3.bf16.msra.mxu1 %v12202_v36  ;;  %3693 = vmatprep.mubr.f32.mxu0 %v11162_v46  ;;  %v12211_v43 = vld [vmem:[#allocation19_spill] sm:$0xff] }
0x337d   :  { %3694 = vmatmul.mubr.f32.vlgmr.msra.gmra.mrb[42].mxu0 %v11166_v48  ;;  %8801 = vmatprep.subr.bf16.mxu1 %v12103_v40 }
0x337e   :  { %8821 = vmatpush3.bf16.msra.mxu0 %v12203_v12  ;;  %7954 = vmatprep.mubr.msk.f32.mxu0 %vm9613_vm0, %v12102_v37 }
0x337f   :  { %8822 = vmatprep.subr.bf16.mxu0 %v12103_v40 }
0x3380   :  { %8803 = vmatpush3.bf16.msra.mxu1 %v12204_v2 }
0x3381   :  { %8804 = vmatprep.subr.bf16.mxu1 %v12103_v40 }
0x3382   :  { %8824 = vmatpush3.bf16.msra.mxu0 %v12205_v41 }
0x3383   :  { %8825 = vmatprep.subr.bf16.mxu0 %v12103_v40 }
0x3384   :  { %8806 = vmatpush3.bf16.msra.mxu1 %v12206_v18 }
0x3385   :  { %8807 = vmatprep.subr.bf16.mxu1 %v12103_v40 }
0x3386   :  { %8827 = vmatpush3.bf16.msra.mxu0 %v12207_v55 }
0x3387   :  { %8828 = vmatprep.subr.bf16.mxu0 %v12103_v40 }
0x3388   :  { %8809 = vmatpush3.bf16.msra.mxu1 %v12208_v6 }
0x3389   :  { %8810 = vmatprep.subr.bf16.mxu1 %v12103_v40 }
0x338a   :  { %8830 = vmatpush3.bf16.msra.mxu0 %v12209_v22 }
0x338b   :  { %8831 = vmatprep.subr.bf16.mxu0 %v12103_v40 }
0x338c   :  { %8812 = vmatpush3.bf16.msra.mxu1 %v12210_v62 }
0x338d   :  { %8813 = vmatprep.subr.bf16.mxu1 %v12103_v40 }
0x3390   :  { %8815 = vmatpush3.bf16.msra.mxu1 %v12211_v43 }
0x3391   :  { %8816 = vmatprep.subr.bf16.mxu1 %v12103_v40 }
0x3394   :  { %8818 = vmatpush3.bf16.msra.mxu1 %v12212_v63  ;;  %v11210_v63 = vld [vmem:[%s11979_s1 + $0x10] ss:$0 sm:$0xff] }
0x3395   :  { %8843 = vmatprep.subr.bf16.mxu1 %v12103_v40  ;;  %12214 = vst [vmem:[#allocation34_spill] sm:$0xff] %v11210_v63 }
0x3397   :  { %7936 = vmatmul.mubr.f32.vlgmr.msra.gmra.mrb[26].mxu1 %v11170_v1 }
0x3398   :  { %8845 = vmatpush3.bf16.msra.mxu1 %v12213_v32  ;;  %7983 = vmatprep.mubr.msk.f32.mxu1 %vm9613_vm0, %v12102_v37 }
0x3399   :  { %8850 = vmatprep.subr.bf16.mxu1 %v12183_v21 }
0x344a   :  { %v7123_v26 = vpop.f32.mrb[24].mxu1 }
0x344b   :  { %v7124_v3 = vpop.f32.mrb[25].mxu1 }
0x344c   :  { %v7125_v62 = vadd.f32 %v7124_v3, %v7123_v26  ;;  %v12215_v3 = vld [vmem:[#allocation27_spill] sm:$0xff] }
0x344e   :  { %v3626_v6 = vadd.f32 %v11210_v63, %v7125_v62 }
0x3450   :  { %v7158_v22 = vpop.f32.mrb[42].mxu0 }
0x3451   :  { %v7159_v43 = vpop.f32.mrb[43].mxu0 }
0x3452   :  { %v7160_v55 = vadd.f32 %v7159_v43, %v7158_v22  ;;  %v12218_v22 = vld [vmem:[#allocation32_spill] sm:$0xff]  ;;  %v11237_v43 = vld [vmem:[%s11979_s1 + $0x38] ss:$0 sm:$0xff] }
0x3454   :  { %v3696_v18 = vadd.f32 %v7160_v55, %v3626_v6  ;;  %v12217_v6 = vld [vmem:[#allocation31_spill] sm:$0xff] }
0x346a   :  { %v3765_v32 = vpop.f32.mrb[26].mxu1 }
0x346b   :  { %v3766_v41 = vadd.f32 %v3765_v32, %v3696_v18  ;;  %v7937_v2 = vpop.f32.mrb[27].mxu1  ;;  %v11223_v32 = vld [vmem:[%s11979_s1 + $0x28] ss:$0 sm:$0xff]  ;;  %v3846_v18 = vpop.permute.xlu0 %3845 }
0x346c   :  { %12216 = vst [vmem:[#allocation7_spill] sm:$0xff] %v11223_v32 }
0x346d   :  { %v3769_v12 = vmax.f32 %v3766_v41, 0.0 }
0x346f   :  { %7955 = vmatmul.mubr.msk.f32.vlgmr.msra.gmra.mrb[44].mxu0 %vm576_vm10, %v3769_v12 }
0x3470   :  { %8833 = vmatpush3.bf16.msra.mxu0 %v12185_v24  ;;  %7965 = vmatprep.mubr.msk.f32.mxu0 %vm9613_vm0, %v12102_v37 }
0x3471   :  { %8834 = vmatprep.subr.bf16.mxu0 %v12103_v40 }
0x3474   :  { %8836 = vmatpush3.bf16.msra.mxu0 %v12215_v3 }
0x3475   :  { %8837 = vmatprep.subr.bf16.mxu0 %v12103_v40 }
0x3542   :  { %v3839_v26 = vpop.f32.mrb[44].mxu0 }
0x3543   :  { %v3843_v2 = vadd.f32 %v11223_v32, %v3839_v26  ;;  %v7956_v12 = vpop.f32.mrb[45].mxu0 }
0x3545   :  { %v3844_v41 = vmax.f32 %v3843_v2, 0.0 }
0x3547   :  { %v3848_v55 = vsel %vm114_vm7, %v3844_v41, %v3846_v18 }
0x3548   :  { %7966 = vmatmul.mubr.msk.f32.vlgmr.msra.gmra.mrb[46].mxu0 %vm665_vm11, %v3848_v55 }
0x3549   :  { %8839 = vmatpush3.bf16.msra.mxu0 %v12217_v6  ;;  %7976 = vmatprep.mubr.msk.f32.mxu0 %vm9613_vm0, %v12102_v37 }
0x354a   :  { %8840 = vmatprep.subr.bf16.mxu0 %v12103_v40 }
0x354d   :  { %8842 = vmatpush3.bf16.msra.mxu0 %v12218_v22 }
0x354e   :  { %8846 = vmatprep.subr.bf16.mxu0 %v12103_v40 }
0x361b   :  { %v3918_v62 = vpop.f32.mrb[46].mxu0 }
0x361c   :  { %v3919_v26 = vadd.f32 %v11237_v43, %v3918_v62  ;;  %v7967_v2 = vpop.f32.mrb[47].mxu0 }
0x361e   :  { %9453 = vtanh.f32 %v3919_v26  ;;  %v6612_v41 = vmul.f32 -1.442695, %v3919_v26 }
0x3620   :  { %9455 = vpow2.f32 %v6612_v41 }
0x3628   :  { %v9454_v12 = vpop.eup %9453 }
0x3629   :  { %3931 = vrot.lane.b32.xlu0 %v9454_v12, %s9616_s19 }
0x362a   :  { %v9456_v18 = vpop.eup %9455 }
0x362b   :  { %v3925_v55 = vadd.f32 1.0, %v9456_v18 }
0x362d   :  { %9457 = vrcp.f32 %v3925_v55 }
0x3637   :  { %v9458_v22 = vpop.eup %9457 }
0x3638   :  { %v3929_v3 = vmul.f32 %v9458_v22, %v11003_v29 }
0x369b   :  { %v3932_v6 = vpop.permute.xlu0 %3931 }
0x369c   :  { %v3934_v32 = vmul.f32 %v9458_v22, %v3932_v6 }
0x369e   :  { %3936 = vrot.lane.b32.xlu1 %v3934_v32, %s9617_s20 }
0x3710   :  { %v3937_v24 = vpop.permute.xlu1 %3936 }
0x3711   :  { %v11243_v63 = vadd.f32 %v3937_v24, %v3929_v3  ;;  %v12219_v24 = vld [vmem:[#allocation6_spill] sm:$0xff] }
0x3713   :  { %9459 = vtanh.f32 %v11243_v63 }
0x371d   :  { %v9460_v62 = vpop.eup %9459 }
0x371e   :  { %3942 = vrot.lane.b32.xlu0 %v9460_v62, %s9619_s17 }
0x3790   :  { %v3943_v26 = vpop.permute.xlu0 %3942 }
0x3791   :  { %v11247_v2 = vmul.f32 %v9458_v22, %v3943_v26  ;;  %v11262_v22 = vld [vmem:[%s11979_s1 + $0x39] ss:$0 sm:$0xff] }
0x3793   :  { %3947 = vrot.lane.b32.xlu0 %v11247_v2, %s9620_s29 }
0x3797   :  { %3950 = vrot.lane.b32.xlu0 %v11027_v10, %s9616_s19 }
0x3805   :  { %v3948_v32 = vpop.permute.xlu0 %3947 }
0x3809   :  { %v3951_v6 = vpop.permute.xlu0 %3950 }
0x380a   :  { %v3953_v29 = vsel %vm114_vm7, %v3948_v32, %v3951_v6 }
0x380b   :  { %7977 = vmatmul.mubr.msk.f32.vlgmr.msra.gmra.mrb[48].mxu0 %vm665_vm11, %v3953_v29 }
0x380c   :  { %8848 = vmatpush3.bf16.msra.mxu0 %v12190_v58  ;;  %7990 = vmatprep.mubr.msk.f32.mxu0 %vm9613_vm0, %v12102_v37 }
0x380d   :  { %8882 = vmatprep.subr.bf16.mxu0 %v12219_v24 }
0x38de   :  { %v4023_v3 = vpop.f32.mrb[48].mxu0 }
0x38df   :  { %v4024_v10 = vadd.f32 %v11262_v22, %v4023_v3  ;;  %v7978_v12 = vpop.f32.mrb[49].mxu0 }
0x38e1   :  { %9461 = vtanh.f32 %v4024_v10  ;;  %v6614_v18 = vmul.f32 -1.442695, %v4024_v10 }
0x38e3   :  { %9463 = vpow2.f32 %v6614_v18 }
0x38eb   :  { %v9462_v41 = vpop.eup %9461 }
0x38ec   :  { %4036 = vrot.lane.b32.xlu0 %v9462_v41, %s9616_s19  ;;  %v4139_v41 = vand.u32 2147483647, %v11119_v50  ;;  %v12221_v50 = vld [vmem:[#allocation12_spill] sm:$0xff] }
0x38ed   :  { %v9464_v55 = vpop.eup %9463 }
0x38ee   :  { %v4030_v62 = vadd.f32 1.0, %v9464_v55  ;;  %v11298_v55 = vld [vmem:[%s11979_s1 + $0x30] ss:$0 sm:$0xff] }
0x38ef   :  { %12222 = vst [vmem:[#allocation35_spill] sm:$0xff] %v11298_v55 }
0x38f0   :  { %9465 = vrcp.f32 %v4030_v62 }
0x38fa   :  { %v9466_v26 = vpop.eup %9465 }
0x38fb   :  { %v4034_v29 = vmul.f32 %v9466_v26, %v11023_v42  ;;  %v12220_v42 = vld [vmem:[#allocation10_spill] sm:$0xff] }
0x395e   :  { %v4037_v32 = vpop.permute.xlu0 %4036 }
0x395f   :  { %v4039_v6 = vmul.f32 %v9466_v26, %v4037_v32 }
0x3961   :  { %4041 = vrot.lane.b32.xlu1 %v4039_v6, %s9617_s20 }
0x39d3   :  { %v4042_v24 = vpop.permute.xlu1 %4041 }
0x39d4   :  { %v11268_v58 = vadd.f32 %v4042_v24, %v4034_v29 }
0x39d6   :  { %9467 = vtanh.f32 %v11268_v58 }
0x39e0   :  { %v9468_v3 = vpop.eup %9467 }
0x39e1   :  { %4047 = vrot.lane.b32.xlu0 %v9468_v3, %s9619_s17 }
0x3a53   :  { %v4048_v10 = vpop.permute.xlu0 %4047 }
0x3a54   :  { %v11272_v12 = vmul.f32 %v9466_v26, %v4048_v10 }
0x3a56   :  { %4052 = vrot.lane.b32.xlu1 %v11272_v12, %s9620_s29 }
0x3a5a   :  { %4141 = vrot.lane.b32.xlu1 %v4139_v41, %s9624_s13 }
0x3ac8   :  { %v4053_v18 = vpop.permute.xlu1 %4052 }
0x3ac9   :  { %7984 = vmatmul.mubr.msk.f32.vlgmr.msra.gmra.mrb[28].mxu1 %vm114_vm7, %v4053_v18 }
0x3aca   :  { %8852 = vmatpush3.bf16.msra.mxu1 %v9756_v53 }
0x3acb   :  { %8854 = vmatprep.subr.bf16.mxu1 %v9779_v60 }
0x3acc   :  { %v4142_v6 = vpop.permute.xlu1 %4141 }
0x3acd   :  { %v11303_v29 = vadd.f32 %v4142_v6, %v11052_v5 }
0x3ace   :  { %8856 = vmatpush3.bf16.msra.mxu1 %v9814_v14 }
0x3acf   :  { %8858 = vmatprep.subr.bf16.mxu1 %v9827_v20  ;;  %v4145_v3 = vadd.f32 2.5, %v11303_v29 }
0x3ad1   :  { %v4146_v10 = vmul.f32 0.25, %v4145_v3 }
0x3ad2   :  { %8860 = vmatpush3.bf16.msra.mxu1 %v9858_v33 }
0x3ad3   :  { %8862 = vmatprep.subr.bf16.mxu1 %v9873_v39  ;;  %v4147_v41 = vmin.f32 %v4146_v10, 1.0 }
0x3ad6   :  { %8864 = vmatpush3.bf16.msra.mxu1 %v9899_v52 }
0x3ad7   :  { %8866 = vmatprep.subr.bf16.mxu1 %v9911_v57 }
0x3ada   :  { %8868 = vmatpush3.bf16.msra.mxu1 %v9936_v11 }
0x3adb   :  { %8870 = vmatprep.subr.bf16.mxu1 %v9948_v17 }
0x3ade   :  { %8872 = vmatpush3.bf16.msra.mxu1 %v9972_v28 }
0x3adf   :  { %8874 = vmatprep.subr.bf16.mxu1 %v9984_v35 }
0x3ae2   :  { %8876 = vmatpush3.bf16.msra.mxu1 %v10008_v47 }
0x3ae3   :  { %8878 = vmatprep.subr.bf16.mxu1 %v12220_v42 }
0x3ae6   :  { %8880 = vmatpush3.bf16.msra.mxu1 %v12221_v50 }
0x3ae7   :  { %8913 = vmatprep.subr.bf16.mxu1 %v12103_v40 }
0x3b9c   :  { %v4122_v24 = vpop.f32.mrb[28].mxu1 }
0x3b9d   :  { %v4126_v62 = vadd.f32 %v11298_v55, %v4122_v24  ;;  %v7985_v26 = vpop.f32.mrb[29].mxu1  ;;  %v9634_v55 = vmov 5  }
0x3b9e   :  { %v4154_v26 = vsub.f32 1.0, %v4147_v41 }
0x3b9f   :  { %v4127_v32 = vsel %vm955_vm12, %v4126_v62, -inf }
0x3ba0   :  { %4128 = vmax.xlane.f32.xlu0 %v4127_v32 }
0x3bb6   :  { %4150 = vperm.xlu0 %9293, %v4147_v41  }
0x3bba   :  { %9296 = vset.pattern.permute.xlu0 %v9634_v55 }
0x3c2d   :  { %v4129_v18 = vpop.xlane.xlu0 %4128 }
0x3c2e   :  { %v4130_v50 = vsub.f32 %v4126_v62, %v4129_v18 }
0x3c30   :  { %v4131_v42 = vmul.f32 1.442695, %v4130_v50 }
0x3c32   :  { %9469 = vpow2.f32 %v4131_v42 }
0x3c35   :  { %v4151_v6 = vpop.permute.xlu0 %4150 }
0x3c3c   :  { %v9470_v47 = vpop.eup %9469 }
0x3c3d   :  { %v4133_v24 = vsel %vm955_vm12, %v9470_v47, 0.0 }
0x3c3e   :  { %4134 = vadd.xlane.f32.xlu1 %v4133_v24 }
0x3c4f   :  { %4157 = vperm.xlu1 %9294, %v4154_v26  }
0x3c53   :  { %4164 = vrot.lane.b32.xlu1 %v11111_v0, %s9621_s11 }
0x3c54   :  { %9295 = vset.pattern.permute.xlu1 %v9634_v55 }
0x3c57   :  { %4202 = vperm.xlu1 %9295, %v10890_v30  }
0x3c5b   :  { %9308 = vset.pattern.permute.xlu1 %v12115_v61 }
0x3ccb   :  { %v4135_v5 = vpop.xlane.xlu1 %4134 }
0x3ccc   :  { %9471 = vrcp.f32 %v4135_v5 }
0x3ccf   :  { %v4158_v62 = vpop.permute.xlu1 %4157 }
0x3cd0   :  { %v4160_v10 = vmul.f32 %v4158_v62, %v11061_v7 }
0x3cd3   :  { %v4165_v18 = vpop.permute.xlu1 %4164 }
0x3cd6   :  { %v9472_v50 = vpop.eup %9471 }
0x3cd7   :  { %v4137_v42 = vmul.f32 %v9472_v50, %v9470_v47  ;;  %v4203_v47 = vpop.permute.xlu1 %4202  ;;  %v12223_v50 = vld [vmem:[#allocation28_spill] sm:$0xff] }
0x3cd9   :  { %v4138_v32 = vmul.f32 4.0, %v4137_v42  ;;  %v4205_v42 = vmul.f32 %v12223_v50, %v4203_v47  ;;  %v11350_v47 = vld [vmem:[%s11979_s1 + $0x18] ss:$0 sm:$0xff] }
0x3cdb   :  { %v4153_v3 = vmul.f32 %v4151_v6, %v4138_v32 }
0x3cdd   :  { %v11312_v41 = vadd.f32 %v4160_v10, %v4153_v3  ;;  %v12224_v3 = vld [vmem:[#allocation29_spill] sm:$0xff] }
0x3cdf   :  { %v4162_v0 = vmul.f32 %v11312_v41, %v11145_v19  ;;  %v4167_v30 = vmul.f32 %v4165_v18, %v11312_v41 }
0x3ce1   :  { %7991 = vmatmul.mubr.msk.f32.vlgmr.msra.gmra.mrb[50].mxu0 %vm114_vm7, %v4162_v0  ;;  %4183 = vrot.lane.b32.xlu0 %v4167_v30, %s9623_s12  ;;  %v4168_v50 = vmul.f32 %v11350_v47, %v4162_v0 }
0x3ce2   :  { %4175 = vrot.lane.b32.xlu1 %v4167_v30, %s9624_s13  ;;  %8884 = vmatpush3.bf16.msra.mxu0 %v9744_v49 }
0x3ce3   :  { %8886 = vmatprep.subr.bf16.mxu0 %v9777_v59 }
0x3ce6   :  { %4179 = vrot.lane.b32.xlu1 %v4167_v30, %s9618_s21  ;;  %8888 = vmatpush3.bf16.msra.mxu0 %v9801_v9 }
0x3ce7   :  { %8890 = vmatprep.subr.bf16.mxu0 %v9816_v15 }
0x3cea   :  { %8892 = vmatpush3.bf16.msra.mxu0 %v9856_v31 }
0x3ceb   :  { %8894 = vmatprep.subr.bf16.mxu0 %v9871_v38 }
0x3cee   :  { %8896 = vmatpush3.bf16.msra.mxu0 %v9897_v51 }
0x3cef   :  { %8898 = vmatprep.subr.bf16.mxu0 %v9909_v56 }
0x3cf2   :  { %8900 = vmatpush3.bf16.msra.mxu0 %v9934_v8 }
0x3cf3   :  { %8902 = vmatprep.subr.bf16.mxu0 %v9946_v16 }
0x3cf6   :  { %8904 = vmatpush3.bf16.msra.mxu0 %v9970_v27 }
0x3cf7   :  { %8906 = vmatprep.subr.bf16.mxu0 %v9982_v34 }
0x3cfa   :  { %8908 = vmatpush3.bf16.msra.mxu0 %v10006_v45 }
0x3cfb   :  { %8910 = vmatprep.subr.bf16.mxu0 %v10015_v54 }
0x3cfe   :  { %8912 = vmatpush3.bf16.msra.mxu0 %v12195_v25 }
0x3cff   :  { %8937 = vmatprep.subr.bf16.mxu0 %v12103_v40 }
0x3d53   :  { %v4184_v26 = vpop.permute.xlu0 %4183 }
0x3d54   :  { %v4176_v7 = vpop.permute.xlu1 %4175 }
0x3d55   :  { %v4178_v19 = vadd.f32 %v4176_v7, %v4167_v30 }
0x3d58   :  { %v4180_v55 = vpop.permute.xlu1 %4179 }
0x3d59   :  { %v4182_v24 = vadd.f32 %v4180_v55, %v4178_v19 }
0x3d5b   :  { %v4186_v5 = vadd.f32 %v4184_v26, %v4182_v24 }
0x3d5d   :  { %4191 = vrot.lane.b32.xlu0 %v4186_v5, %s9625_s14  ;;  %4188 = vrot.lane.b32.xlu1 %v4186_v5, %s9626_s15 }
0x3d61   :  { %4194 = vrot.lane.b32.xlu1 %v4186_v5, %s9627_s16 }
0x3db4   :  { %v4275_v62 = vpop.f32.mrb[50].mxu0 }
0x3db5   :  { %v4279_v32 = vadd.f32 %v4275_v62, %v4205_v42  ;;  %v7992_v6 = vpop.f32.mrb[51].mxu0  ;;  %v11356_v42 = vld [vmem:[%s11979_s1 + $0x20] ss:$0 sm:$0xff] }
0x3db7   :  { %v4280_v10 = vadd.f32 %v12224_v3, %v4279_v32 }
0x3db9   :  { %9473 = vtanh.f32 %v4280_v10  ;;  %v6617_v6 = vmul.f32 -1.442695, %v4280_v10  ;;  %v11371_v10 = vld [vmem:[%s11978_s0] sm:$0x3] }
0x3dbb   :  { %9475 = vpow2.f32 %v6617_v6 }
0x3dc3   :  { %v9474_v18 = vpop.eup %9473 }
0x3dc4   :  { %4294 = vrot.lane.b32.xlu0 %v9474_v18, %s9616_s19 }
0x3dc5   :  { %v9476_v3 = vpop.eup %9475 }
0x3dc6   :  { %v4284_v18 = vadd.f32 1.0, %v9476_v3 }
0x3dc8   :  { %9477 = vrcp.f32 %v4284_v18  ;;  %v12227_v18 = vpack.i.bf16 %v11162_v46, %v11166_v48 }
0x3dcf   :  { %v4189_v30 = vpop.permute.xlu1 %4188  ;;  %v4192_v7 = vpop.permute.xlu0 %4191 }
0x3dd0   :  { %v4197_v19 = vsel %vm1034_vm13, %v4186_v5, %v4189_v30  ;;  %v4169_v5 = vmul.f32 %v11356_v42, %v11312_v41 }
0x3dd1   :  { %v4198_v55 = vsel %vm1036_vm14, %v4197_v19, %v4192_v7 }
0x3dd2   :  { %v4170_v62 = vadd.f32 %v4169_v5, %v4168_v50  ;;  %v9478_v30 = vpop.eup %9477 }
0x3dd3   :  { %v4195_v24 = vpop.permute.xlu1 %4194 }
0x3dd4   :  { %v4199_v26 = vsel %vm1038_vm15, %v4198_v55, %v4195_v24  ;;  %v4171_v32 = vsel %vm955_vm12, %v4170_v62, 0.0 }
0x3dd5   :  { %4289 = vrot.lane.b32.xlu1 %v4199_v26, %s9617_s20 }
0x3df9   :  { %4172 = vadd.xlane.f32.xlu1 %v4171_v32  ;;  %v12226_v32 = vpack.i.bf16 %v11170_v1, %v11153_v44 }
0x3e36   :  { %v4295_v7 = vpop.permute.xlu0 %4294 }
0x3e37   :  { %v4297_v0 = vmul.f32 %v9478_v30, %v4295_v7 }
0x3e39   :  { %4299 = vrot.lane.b32.xlu0 %v4297_v0, %s9617_s20 }
0x3e47   :  { %v4290_v19 = vpop.permute.xlu1 %4289 }
0x3e48   :  { %v4292_v55 = vmul.f32 %v9478_v30, %v4290_v19 }
0x3e86   :  { %v11365_v5 = vpop.xlane.xlu1 %4172 }
0x3e87   :  { %12225 = vst [vmem:[#allocation11_spill] sm:$0xff] %v11365_v5  ;;  %v11375_v62 = vsub.f32 %v11371_v10, %v11365_v5 }
0x3eab   :  { %v4300_v24 = vpop.permute.xlu0 %4299 }
0x3eac   :  { %v11362_v26 = vadd.f32 %v4300_v24, %v4292_v55 }
0x3eae   :  { %9479 = vtanh.f32 %v11362_v26 }
0x3eb8   :  { %v9480_v50 = vpop.eup %9479 }
0x3eb9   :  { %4305 = vrot.lane.b32.xlu0 %v9480_v50, %s9619_s17 }
0x3ebd   :  { %4336 = vperm.xlu0 %9296, %v11375_v62  }
0x3ec1   :  { %9298 = vrot.lane.b32.xlu0 %v12226_v32, %s9619_s17 }
0x3ec2   :  { %9307 = vset.pattern.permute.xlu0 %v12115_v61 }
0x3ec5   :  { %4311 = vrot.lane.b32.xlu0 %v11138_v4, %s9619_s17 }
0x3f2b   :  { %v4306_v6 = vpop.permute.xlu0 %4305 }
0x3f2c   :  { %v4308_v3 = vmul.f32 %v9478_v30, %v4306_v6 }
0x3f2e   :  { %4325 = vrot.lane.b32.xlu0 %v4308_v3, %s9620_s29 }
0x3f32   :  { %9303 = vrot.lane.b32.xlu0 %v12227_v18, %s9619_s17 }
0x3f36   :  { %4635 = vrot.lane.b32.xlu0 %v11247_v2, %s9616_s19 }
0x3f3c   :  { %v4337_v7 = vpop.permute.xlu0 %4336 }
0x3f40   :  { %v9299_v44 = vpop.permute.xlu0 %9298 }
0x3f41   :  { %v9301_v1 = vunpack.i.h.bf16 %v9299_v44  ;;  %v9300_v0 = vunpack.i.l.bf16 %v9299_v44  ;;  %v12237_v44 = vld [vmem:[#allocation20_spill] sm:$0xff] }
0x3f43   :  { %v4323_v19 = vsel %vm228_vm6, %v9301_v1, %v9300_v0 }
0x3f44   :  { %v4329_v4 = vsel %vm228_vm6, 0.0, %v4323_v19  ;;  %v4312_v30 = vpop.permute.xlu0 %4311  ;;  %v12228_v19 = vld [vmem:[#allocation21_spill] sm:$0xff] }
0x3f45   :  { %v11398_v55 = vsel %vm228_vm6, %v9300_v0, %v4312_v30  ;;  %v4339_v46 = vsel %vm244_vm8, %v4337_v7, %v4329_v4  ;;  %v12230_v4 = vld [vmem:[#allocation22_spill] sm:$0xff]  ;;  %v12238_v0 = vld [vmem:[#allocation33_spill] sm:$0xff] }
0x3f46   :  { %4413 = vmatprep.mubr.f32.mxu1 %v11398_v55 }
0x3fa0   :  { %v11403_v48 = vpop.permute.xlu0 %4325 }
0x3fa1   :  { %v4328_v2 = vsel %vm114_vm7, %v11403_v48, 0.0 }
0x3fa2   :  { %v11409_v24 = vsel %vm239_vm9, %v4328_v2, %v4339_v46  ;;  %v12232_v46 = vld [vmem:[#allocation23_spill] sm:$0xff]  ;;  %v12233_v2 = vld [vmem:[#allocation17_spill] sm:$0xff] }
0x3fa3   :  { %4414 = vmatmul.mubr.f32.vlgmr.msra.gmra.mrb[30].mxu1 %v11409_v24 }
0x3fa4   :  { %8915 = vmatpush3.bf16.msra.mxu1 %v12201_v13  ;;  %v9304_v50 = vpop.permute.xlu0 %9303  ;;  %8025 = vmatprep.mubr.msk.f32.mxu1 %vm9613_vm0, %v12102_v37 }
0x3fa5   :  { %v9306_v32 = vunpack.i.h.bf16 %v9304_v50  ;;  %v9305_v6 = vunpack.i.l.bf16 %v9304_v50  ;;  %8916 = vmatprep.subr.bf16.mxu1 %v12103_v40  ;;  %v12234_v50 = vld [vmem:[#allocation24_spill] sm:$0xff] }
0x3fa7   :  { %v11418_v3 = vsel %vm228_vm6, %v9305_v6, %v9306_v32  ;;  %v11422_v18 = vsel %vm228_vm6, %v4312_v30, %v9305_v6  ;;  %v11426_v7 = vsel %vm228_vm6, %v9306_v32, %v9301_v1  ;;  %v12229_v1 = vld [vmem:[#allocation15_spill] sm:$0xff]  ;;  %v12231_v30 = vld [vmem:[#allocation16_spill] sm:$0xff]  ;;  %v12235_v32 = vld [vmem:[#allocation18_spill] sm:$0xff] }
0x3fa8   :  { %8918 = vmatpush3.bf16.msra.mxu1 %v12202_v36  ;;  %4483 = vmatprep.mubr.f32.mxu0 %v11418_v3  ;;  %v12236_v6 = vld [vmem:[#allocation19_spill] sm:$0xff] }
0x3fa9   :  { %4484 = vmatmul.mubr.f32.vlgmr.msra.gmra.mrb[52].mxu0 %v11422_v18  ;;  %8919 = vmatprep.subr.bf16.mxu1 %v12103_v40 }
0x3faa   :  { %8939 = vmatpush3.bf16.msra.mxu0 %v12228_v19  ;;  %8044 = vmatprep.mubr.msk.f32.mxu0 %vm9613_vm0, %v12102_v37 }
0x3fab   :  { %8940 = vmatprep.subr.bf16.mxu0 %v12103_v40 }
0x3fac   :  { %8921 = vmatpush3.bf16.msra.mxu1 %v12229_v1 }
0x3fad   :  { %8922 = vmatprep.subr.bf16.mxu1 %v12103_v40 }
0x3fae   :  { %8942 = vmatpush3.bf16.msra.mxu0 %v12230_v4 }
0x3faf   :  { %8943 = vmatprep.subr.bf16.mxu0 %v12103_v40 }
0x3fb0   :  { %8924 = vmatpush3.bf16.msra.mxu1 %v12231_v30 }
0x3fb1   :  { %8925 = vmatprep.subr.bf16.mxu1 %v12103_v40 }
0x3fb2   :  { %8945 = vmatpush3.bf16.msra.mxu0 %v12232_v46  ;;  %v12239_v46 = vld [vmem:[#allocation34_spill] sm:$0xff] }
0x3fb3   :  { %8946 = vmatprep.subr.bf16.mxu0 %v12103_v40 }
0x3fb4   :  { %8927 = vmatpush3.bf16.msra.mxu1 %v12233_v2 }
0x3fb5   :  { %8928 = vmatprep.subr.bf16.mxu1 %v12103_v40 }
0x3fb6   :  { %8948 = vmatpush3.bf16.msra.mxu0 %v12234_v50 }
0x3fb7   :  { %8949 = vmatprep.subr.bf16.mxu0 %v12103_v40 }
0x3fb8   :  { %8930 = vmatpush3.bf16.msra.mxu1 %v12235_v32 }
0x3fb9   :  { %8931 = vmatprep.subr.bf16.mxu1 %v12103_v40 }
0x3fbc   :  { %8933 = vmatpush3.bf16.msra.mxu1 %v12236_v6 }
0x3fbd   :  { %8934 = vmatprep.subr.bf16.mxu1 %v12103_v40 }
0x3fc0   :  { %8936 = vmatpush3.bf16.msra.mxu1 %v12237_v44 }
0x3fc1   :  { %8961 = vmatprep.subr.bf16.mxu1 %v12103_v40 }
0x3fc3   :  { %8026 = vmatmul.mubr.f32.vlgmr.msra.gmra.mrb[32].mxu1 %v11426_v7 }
0x3fc4   :  { %8963 = vmatpush3.bf16.msra.mxu1 %v12238_v0  ;;  %8073 = vmatprep.mubr.msk.f32.mxu1 %vm9613_vm0, %v12102_v37  ;;  %v12240_v0 = vld [vmem:[#allocation26_spill] sm:$0xff] }
0x3fc5   :  { %8968 = vmatprep.subr.bf16.mxu1 %v12183_v21 }
0x4076   :  { %v7235_v5 = vpop.f32.mrb[30].mxu1 }
0x4077   :  { %v7236_v32 = vpop.f32.mrb[31].mxu1 }
0x4078   :  { %v7237_v50 = vadd.f32 %v7236_v32, %v7235_v5  ;;  %v12241_v5 = vld [vmem:[#allocation27_spill] sm:$0xff] }
0x407a   :  { %v4416_v30 = vadd.f32 %v12239_v46, %v7237_v50 }
0x407c   :  { %v7270_v2 = vpop.f32.mrb[52].mxu0 }
0x407d   :  { %v7271_v6 = vpop.f32.mrb[53].mxu0 }
0x407e   :  { %v7272_v4 = vadd.f32 %v7271_v6, %v7270_v2  ;;  %v12242_v2 = vld [vmem:[#allocation7_spill] sm:$0xff] }
0x4080   :  { %v4486_v44 = vadd.f32 %v7272_v4, %v4416_v30 }
0x4096   :  { %v4555_v1 = vpop.f32.mrb[32].mxu1 }
0x4097   :  { %v4556_v19 = vadd.f32 %v4555_v1, %v4486_v44  ;;  %v8027_v36 = vpop.f32.mrb[33].mxu1  ;;  %v12244_v1 = vld [vmem:[#allocation32_spill] sm:$0xff] }
0x4098   :  { %v4636_v36 = vpop.permute.xlu0 %4635 }
0x4099   :  { %v4559_v13 = vmax.f32 %v4556_v19, 0.0 }
0x409b   :  { %8045 = vmatmul.mubr.msk.f32.vlgmr.msra.gmra.mrb[54].mxu0 %vm576_vm10, %v4559_v13  ;;  %v12243_v13 = vld [vmem:[#allocation31_spill] sm:$0xff] }
0x409c   :  { %8951 = vmatpush3.bf16.msra.mxu0 %v12240_v0  ;;  %8055 = vmatprep.mubr.msk.f32.mxu0 %vm9613_vm0, %v12102_v37 }
0x409d   :  { %8952 = vmatprep.subr.bf16.mxu0 %v12103_v40 }
0x40a0   :  { %8954 = vmatpush3.bf16.msra.mxu0 %v12241_v5 }
0x40a1   :  { %8955 = vmatprep.subr.bf16.mxu0 %v12103_v40 }
0x416e   :  { %v4629_v46 = vpop.f32.mrb[54].mxu0 }
0x416f   :  { %v4633_v4 = vadd.f32 %v12242_v2, %v4629_v46  ;;  %v8046_v30 = vpop.f32.mrb[55].mxu0 }
0x4171   :  { %v4634_v44 = vmax.f32 %v4633_v4, 0.0 }
0x4173   :  { %v4638_v19 = vsel %vm114_vm7, %v4634_v44, %v4636_v36 }
0x4174   :  { %8056 = vmatmul.mubr.msk.f32.vlgmr.msra.gmra.mrb[56].mxu0 %vm665_vm11, %v4638_v19 }
0x4175   :  { %8957 = vmatpush3.bf16.msra.mxu0 %v12243_v13  ;;  %8066 = vmatprep.mubr.msk.f32.mxu0 %vm9613_vm0, %v12102_v37 }
0x4176   :  { %8958 = vmatprep.subr.bf16.mxu0 %v12103_v40 }
0x4179   :  { %8960 = vmatpush3.bf16.msra.mxu0 %v12244_v1 }
0x417a   :  { %8964 = vmatprep.subr.bf16.mxu0 %v12103_v40 }
0x4247   :  { %v4708_v50 = vpop.f32.mrb[56].mxu0 }
0x4248   :  { %v4709_v32 = vadd.f32 %v11237_v43, %v4708_v50  ;;  %v8057_v6 = vpop.f32.mrb[57].mxu0 }
0x424a   :  { %9481 = vtanh.f32 %v4709_v32  ;;  %v6620_v2 = vmul.f32 -1.442695, %v4709_v32 }
0x424c   :  { %9483 = vpow2.f32 %v6620_v2 }
0x4254   :  { %v9482_v46 = vpop.eup %9481 }
0x4255   :  { %4721 = vrot.lane.b32.xlu0 %v9482_v46, %s9616_s19 }
0x4256   :  { %v9484_v4 = vpop.eup %9483 }
0x4257   :  { %v4715_v30 = vadd.f32 1.0, %v9484_v4 }
0x4259   :  { %9485 = vrcp.f32 %v4715_v30 }
0x4263   :  { %v9486_v44 = vpop.eup %9485 }
0x4264   :  { %v4719_v1 = vmul.f32 %v9486_v44, %v11243_v63 }
0x42c7   :  { %v4722_v36 = vpop.permute.xlu0 %4721 }
0x42c8   :  { %v4724_v19 = vmul.f32 %v9486_v44, %v4722_v36 }
0x42ca   :  { %4726 = vrot.lane.b32.xlu1 %v4724_v19, %s9617_s20 }
0x433c   :  { %v4727_v13 = vpop.permute.xlu1 %4726 }
0x433d   :  { %v11484_v5 = vadd.f32 %v4727_v13, %v4719_v1  ;;  %v12245_v13 = vld [vmem:[#allocation5_spill] sm:$0xff]  ;;  %v12246_v1 = vld [vmem:[#allocation6_spill] sm:$0xff] }
0x433f   :  { %9487 = vtanh.f32 %v11484_v5 }
0x4349   :  { %v9488_v43 = vpop.eup %9487 }
0x434a   :  { %4732 = vrot.lane.b32.xlu0 %v9488_v43, %s9619_s17 }
0x43bc   :  { %v4733_v50 = vpop.permute.xlu0 %4732 }
0x43bd   :  { %v11488_v32 = vmul.f32 %v9486_v44, %v4733_v50 }
0x43bf   :  { %4737 = vrot.lane.b32.xlu0 %v11488_v32, %s9620_s29 }
0x43c3   :  { %4740 = vrot.lane.b32.xlu0 %v11272_v12, %s9616_s19 }
0x4431   :  { %v4738_v6 = vpop.permute.xlu0 %4737 }
0x4435   :  { %v4741_v46 = vpop.permute.xlu0 %4740 }
0x4436   :  { %v4743_v63 = vsel %vm114_vm7, %v4738_v6, %v4741_v46 }
0x4437   :  { %8067 = vmatmul.mubr.msk.f32.vlgmr.msra.gmra.mrb[58].mxu0 %vm665_vm11, %v4743_v63 }
0x4438   :  { %8966 = vmatpush3.bf16.msra.mxu0 %v12245_v13  ;;  %8080 = vmatprep.mubr.msk.f32.mxu0 %vm9613_vm0, %v12102_v37 }
0x4439   :  { %9000 = vmatprep.subr.bf16.mxu0 %v12246_v1 }
0x450a   :  { %v4813_v2 = vpop.f32.mrb[58].mxu0 }
0x450b   :  { %v4814_v4 = vadd.f32 %v11262_v22, %v4813_v2  ;;  %v8068_v30 = vpop.f32.mrb[59].mxu0 }
0x450c   :  { %v4929_v30 = vand.u32 2147483647, %v11375_v62  ;;  %v12248_v62 = vld [vmem:[#allocation10_spill] sm:$0xff] }
0x450d   :  { %9489 = vtanh.f32 %v4814_v4  ;;  %v6622_v12 = vmul.f32 -1.442695, %v4814_v4 }
0x450f   :  { %9491 = vpow2.f32 %v6622_v12  ;;  %v12249_v12 = vld [vmem:[#allocation12_spill] sm:$0xff] }
0x4517   :  { %v9490_v44 = vpop.eup %9489 }
0x4518   :  { %4826 = vrot.lane.b32.xlu0 %v9490_v44, %s9616_s19 }
0x4519   :  { %v9492_v36 = vpop.eup %9491 }
0x451a   :  { %v4820_v19 = vadd.f32 1.0, %v9492_v36 }
0x451c   :  { %9493 = vrcp.f32 %v4820_v19  ;;  %v12250_v19 = vld [vmem:[#allocation35_spill] sm:$0xff] }
0x4526   :  { %v9494_v43 = vpop.eup %9493 }
0x4527   :  { %v4824_v46 = vmul.f32 %v9494_v43, %v11268_v58  ;;  %v12247_v58 = vld [vmem:[#allocation9_spill] sm:$0xff] }
0x458a   :  { %v4827_v50 = vpop.permute.xlu0 %4826 }
0x458b   :  { %v4829_v6 = vmul.f32 %v9494_v43, %v4827_v50 }
0x458d   :  { %4831 = vrot.lane.b32.xlu1 %v4829_v6, %s9617_s20 }
0x45ff   :  { %v4832_v63 = vpop.permute.xlu1 %4831 }
0x4600   :  { %v11504_v1 = vadd.f32 %v4832_v63, %v4824_v46 }
0x4602   :  { %9495 = vtanh.f32 %v11504_v1 }
0x460c   :  { %v9496_v22 = vpop.eup %9495 }
0x460d   :  { %4837 = vrot.lane.b32.xlu0 %v9496_v22, %s9619_s17 }
0x467f   :  { %v4838_v2 = vpop.permute.xlu0 %4837 }
0x4680   :  { %v11508_v4 = vmul.f32 %v9494_v43, %v4838_v2 }
0x4682   :  { %4842 = vrot.lane.b32.xlu1 %v11508_v4, %s9620_s29 }
0x4686   :  { %4931 = vrot.lane.b32.xlu1 %v4929_v30, %s9635_s9 }
0x46f4   :  { %v4843_v44 = vpop.permute.xlu1 %4842 }
0x46f5   :  { %8074 = vmatmul.mubr.msk.f32.vlgmr.msra.gmra.mrb[34].mxu1 %vm114_vm7, %v4843_v44 }
0x46f6   :  { %8970 = vmatpush3.bf16.msra.mxu1 %v9756_v53 }
0x46f7   :  { %8972 = vmatprep.subr.bf16.mxu1 %v9779_v60 }
0x46f8   :  { %v4932_v46 = vpop.permute.xlu1 %4931 }
0x46f9   :  { %v11533_v63 = vadd.f32 %v4932_v46, %v11303_v29  ;;  %v9636_v29 = vmov 6  }
0x46fa   :  { %8974 = vmatpush3.bf16.msra.mxu1 %v9814_v14 }
0x46fb   :  { %8976 = vmatprep.subr.bf16.mxu1 %v9827_v20  ;;  %v4935_v22 = vadd.f32 2.0, %v11533_v63 }
0x46fd   :  { %v4936_v2 = vmul.f32 0.25, %v4935_v22 }
0x46fe   :  { %8978 = vmatpush3.bf16.msra.mxu1 %v9858_v33 }
0x46ff   :  { %8980 = vmatprep.subr.bf16.mxu1 %v9873_v39  ;;  %v4937_v30 = vmin.f32 %v4936_v2, 1.0 }
0x4702   :  { %8982 = vmatpush3.bf16.msra.mxu1 %v9899_v52 }
0x4703   :  { %8984 = vmatprep.subr.bf16.mxu1 %v9911_v57 }
0x4706   :  { %8986 = vmatpush3.bf16.msra.mxu1 %v9936_v11 }
0x4707   :  { %8988 = vmatprep.subr.bf16.mxu1 %v9948_v17 }
0x470a   :  { %8990 = vmatpush3.bf16.msra.mxu1 %v9972_v28 }
0x470b   :  { %8992 = vmatprep.subr.bf16.mxu1 %v9984_v35 }
0x470e   :  { %8994 = vmatpush3.bf16.msra.mxu1 %v12247_v58 }
0x470f   :  { %8996 = vmatprep.subr.bf16.mxu1 %v12248_v62 }
0x4712   :  { %8998 = vmatpush3.bf16.msra.mxu1 %v12249_v12 }
0x4713   :  { %9031 = vmatprep.subr.bf16.mxu1 %v12103_v40 }
0x47c8   :  { %v4912_v36 = vpop.f32.mrb[34].mxu1 }
0x47c9   :  { %v4916_v43 = vadd.f32 %v12250_v19, %v4912_v36  ;;  %v8075_v50 = vpop.f32.mrb[35].mxu1  ;;  %v4944_v19 = vsub.f32 1.0, %v4937_v30 }
0x47cb   :  { %v4917_v6 = vsel %vm955_vm12, %v4916_v43, -inf }
0x47cc   :  { %4918 = vmax.xlane.f32.xlu0 %v4917_v6 }
0x47e2   :  { %4940 = vperm.xlu0 %9307, %v4937_v30  }
0x4859   :  { %v4919_v44 = vpop.xlane.xlu0 %4918 }
0x485a   :  { %v4920_v12 = vsub.f32 %v4916_v43, %v4919_v44 }
0x485c   :  { %v4921_v62 = vmul.f32 1.442695, %v4920_v12 }
0x485e   :  { %9497 = vpow2.f32 %v4921_v62 }
0x4861   :  { %v4941_v62 = vpop.permute.xlu0 %4940 }
0x4868   :  { %v9498_v58 = vpop.eup %9497 }
0x4869   :  { %v4923_v36 = vsel %vm955_vm12, %v9498_v58, 0.0 }
0x486a   :  { %4924 = vadd.xlane.f32.xlu1 %v4923_v36 }
0x487b   :  { %4947 = vperm.xlu1 %9308, %v4944_v19  }
0x487f   :  { %4954 = vrot.lane.b32.xlu1 %v11362_v26, %s9621_s11 }
0x4880   :  { %9309 = vset.pattern.permute.xlu1 %v9636_v29 }
0x4883   :  { %4992 = vperm.xlu1 %9309, %v11371_v10  }
0x48f7   :  { %v4925_v50 = vpop.xlane.xlu1 %4924 }
0x48f8   :  { %9499 = vrcp.f32 %v4925_v50 }
0x48fb   :  { %v4948_v43 = vpop.permute.xlu1 %4947 }
0x48fc   :  { %v4950_v2 = vmul.f32 %v4948_v43, %v11312_v41 }
0x48ff   :  { %v4955_v30 = vpop.permute.xlu1 %4954 }
0x4902   :  { %v9500_v6 = vpop.eup %9499 }
0x4903   :  { %v4927_v46 = vmul.f32 %v9500_v6, %v9498_v58  ;;  %v4993_v41 = vpop.permute.xlu1 %4992 }
0x4905   :  { %v4928_v12 = vmul.f32 4.0, %v4927_v46  ;;  %v11572_v46 = vld [vmem:[%s11979_s1] ss:$0 sm:$0xff] }
0x4906   :  { %v4995_v43 = vmul.f32 %v11572_v46, %v4993_v41 }
0x4907   :  { %v4943_v22 = vmul.f32 %v4941_v62, %v4928_v12 }
0x4909   :  { %v11541_v44 = vadd.f32 %v4950_v2, %v4943_v22  ;;  %v11578_v2 = vld [vmem:[%s11979_s1 + $0x8] ss:$0 sm:$0xff] }
0x490a   :  { %12251 = vst [vmem:[#allocation28_spill] sm:$0xff] %v11578_v2 }
0x490b   :  { %v4952_v26 = vmul.f32 %v11541_v44, %v11403_v48  ;;  %v4957_v36 = vmul.f32 %v4955_v30, %v11541_v44 }
0x490d   :  { %8081 = vmatmul.mubr.msk.f32.vlgmr.msra.gmra.mrb[60].mxu0 %vm114_vm7, %v4952_v26  ;;  %4965 = vrot.lane.b32.xlu1 %v4957_v36, %s9624_s13 }
0x490e   :  { %9002 = vmatpush3.bf16.msra.mxu0 %v9744_v49 }
0x490f   :  { %9004 = vmatprep.subr.bf16.mxu0 %v9777_v59 }
0x4911   :  { %4969 = vrot.lane.b32.xlu1 %v4957_v36, %s9618_s21 }
0x4912   :  { %9006 = vmatpush3.bf16.msra.mxu0 %v9801_v9 }
0x4913   :  { %9008 = vmatprep.subr.bf16.mxu0 %v9816_v15 }
0x4915   :  { %4973 = vrot.lane.b32.xlu1 %v4957_v36, %s9623_s12 }
0x4916   :  { %9010 = vmatpush3.bf16.msra.mxu0 %v9856_v31 }
0x4917   :  { %9012 = vmatprep.subr.bf16.mxu0 %v9871_v38 }
0x491a   :  { %9014 = vmatpush3.bf16.msra.mxu0 %v9897_v51 }
0x491b   :  { %9016 = vmatprep.subr.bf16.mxu0 %v9909_v56 }
0x491e   :  { %9018 = vmatpush3.bf16.msra.mxu0 %v9934_v8 }
0x491f   :  { %9020 = vmatprep.subr.bf16.mxu0 %v9946_v16 }
0x4922   :  { %9022 = vmatpush3.bf16.msra.mxu0 %v9970_v27 }
0x4923   :  { %9024 = vmatprep.subr.bf16.mxu0 %v9982_v34 }
0x4926   :  { %9026 = vmatpush3.bf16.msra.mxu0 %v10006_v45 }
0x4927   :  { %9028 = vmatprep.subr.bf16.mxu0 %v10015_v54 }
0x492a   :  { %9030 = vmatpush3.bf16.msra.mxu0 %v12195_v25 }
0x492b   :  { %9055 = vmatprep.subr.bf16.mxu0 %v12103_v40 }
0x497f   :  { %v4966_v48 = vpop.permute.xlu1 %4965 }
0x4980   :  { %v4968_v19 = vadd.f32 %v4966_v48, %v4957_v36 }
0x4983   :  { %v4970_v58 = vpop.permute.xlu1 %4969 }
0x4984   :  { %v4972_v29 = vadd.f32 %v4970_v58, %v4968_v19 }
0x4987   :  { %v4974_v50 = vpop.permute.xlu1 %4973 }
0x4988   :  { %v4976_v6 = vadd.f32 %v4974_v50, %v4972_v29 }
0x498a   :  { %4981 = vrot.lane.b32.xlu1 %v4976_v6, %s9625_s14  ;;  %4978 = vrot.lane.b32.xlu0 %v4976_v6, %s9626_s15 }
0x498e   :  { %4984 = vrot.lane.b32.xlu0 %v4976_v6, %s9627_s16 }
0x49e0   :  { %v5065_v12 = vpop.f32.mrb[60].mxu0 }
0x49e1   :  { %v5069_v62 = vadd.f32 %v5065_v12, %v4995_v43  ;;  %v8082_v22 = vpop.f32.mrb[61].mxu0  ;;  %v4958_v43 = vmul.f32 %v11350_v47, %v4952_v26  ;;  %v4959_v12 = vmul.f32 %v11356_v42, %v11541_v44 }
0x49e3   :  { %v5070_v30 = vadd.f32 %v11578_v2, %v5069_v62  ;;  %v4960_v62 = vadd.f32 %v4959_v12, %v4958_v43 }
0x49e5   :  { %9501 = vtanh.f32 %v5070_v30  ;;  %v4961_v22 = vsel %vm955_vm12, %v4960_v62, 0.0  ;;  %v12254_v62 = vpack.i.bf16 %v11418_v3, %v11422_v18 }
0x49ef   :  { %v9502_v36 = vpop.eup %9501 }
0x49f0   :  { %5084 = vrot.lane.b32.xlu1 %v9502_v36, %s9616_s19  ;;  %v6625_v36 = vmul.f32 -1.442695, %v5070_v30  ;;  %v12253_v30 = vpack.i.bf16 %v11426_v7, %v11409_v24 }
0x49f2   :  { %9503 = vpow2.f32 %v6625_v36 }
0x49fc   :  { %v4979_v48 = vpop.permute.xlu0 %4978  ;;  %v4982_v58 = vpop.permute.xlu1 %4981 }
0x49fd   :  { %v4987_v19 = vsel %vm1034_vm13, %v4976_v6, %v4979_v48  ;;  %v9504_v2 = vpop.eup %9503 }
0x49fe   :  { %v4988_v41 = vsel %vm1036_vm14, %v4987_v19, %v4982_v58  ;;  %v5074_v6 = vadd.f32 1.0, %v9504_v2 }
0x4a00   :  { %v4985_v29 = vpop.permute.xlu0 %4984  ;;  %9505 = vrcp.f32 %v5074_v6 }
0x4a01   :  { %v4989_v50 = vsel %vm1038_vm15, %v4988_v41, %v4985_v29 }
0x4a02   :  { %5079 = vrot.lane.b32.xlu0 %v4989_v50, %s9617_s20 }
0x4a0a   :  { %v9506_v48 = vpop.eup %9505 }
0x4a21   :  { %4962 = vadd.xlane.f32.xlu0 %v4961_v22 }
0x4a62   :  { %v5085_v58 = vpop.permute.xlu1 %5084 }
0x4a63   :  { %v5087_v19 = vmul.f32 %v9506_v48, %v5085_v58 }
0x4a65   :  { %5089 = vrot.lane.b32.xlu1 %v5087_v19, %s9617_s20 }
0x4a74   :  { %v5080_v41 = vpop.permute.xlu0 %5079 }
0x4a75   :  { %v5082_v29 = vmul.f32 %v9506_v48, %v5080_v41  ;;  %v12255_v41 = vld [vmem:[#allocation13_spill] sm:$0xff] }
0x4aae   :  { %v11594_v50 = vpop.xlane.xlu0 %4962 }
0x4aaf   :  { %12252 = vst [vmem:[#allocation29_spill] sm:$0xff] %v11594_v50  ;;  %v11599_v2 = vsub.f32 %v11371_v10, %v11594_v50 }
0x4ad7   :  { %v5090_v47 = vpop.permute.xlu1 %5089 }
0x4ad8   :  { %v11591_v26 = vadd.f32 %v5090_v47, %v5082_v29 }
0x4ada   :  { %9507 = vtanh.f32 %v11591_v26 }
0x4ae4   :  { %v9508_v42 = vpop.eup %9507 }
0x4ae5   :  { %5095 = vrot.lane.b32.xlu1 %v9508_v42, %s9619_s17 }
0x4ae9   :  { %5126 = vperm.xlu1 %9309, %v11599_v2  }
0x4aed   :  { %9311 = vrot.lane.b32.xlu1 %v12253_v30, %s9619_s17 }
0x4aee   :  { %9320 = vset.pattern.permute.xlu1 %v12115_v61 }
0x4af1   :  { %5101 = vrot.lane.b32.xlu1 %v11398_v55, %s9619_s17 }
0x4b57   :  { %v5096_v43 = vpop.permute.xlu1 %5095 }
0x4b58   :  { %v5098_v12 = vmul.f32 %v9506_v48, %v5096_v43 }
0x4b5a   :  { %5115 = vrot.lane.b32.xlu1 %v5098_v12, %s9620_s29 }
0x4b5e   :  { %9316 = vrot.lane.b32.xlu1 %v12254_v62, %s9619_s17  ;;  %v12256_v62 = vld [vmem:[#allocation14_spill] sm:$0xff] }
0x4b62   :  { %5425 = vrot.lane.b32.xlu1 %v11488_v32, %s9616_s19 }
0x4b68   :  { %v5127_v22 = vpop.permute.xlu1 %5126 }
0x4b6c   :  { %v9312_v24 = vpop.permute.xlu1 %9311 }
0x4b6d   :  { %v9314_v7 = vunpack.i.h.bf16 %v9312_v24  ;;  %v9313_v36 = vunpack.i.l.bf16 %v9312_v24 }
0x4b6f   :  { %v5113_v6 = vsel %vm228_vm6, %v9314_v7, %v9313_v36 }
0x4b70   :  { %v5119_v55 = vsel %vm228_vm6, 0.0, %v5113_v6  ;;  %v5102_v48 = vpop.permute.xlu1 %5101  ;;  %v12259_v6 = vld [vmem:[#allocation22_spill] sm:$0xff] }
0x4b71   :  { %v11622_v58 = vsel %vm228_vm6, %v9313_v36, %v5102_v48  ;;  %v5129_v3 = vsel %vm244_vm8, %v5127_v22, %v5119_v55  ;;  %v12257_v36 = vld [vmem:[#allocation21_spill] sm:$0xff]  ;;  %v12260_v55 = vld [vmem:[#allocation16_spill] sm:$0xff] }
0x4b72   :  { %5203 = vmatprep.mubr.f32.mxu1 %v11622_v58  ;;  %v12267_v22 = vld [vmem:[#allocation33_spill] sm:$0xff] }
0x4bcc   :  { %v11627_v18 = vpop.permute.xlu1 %5115 }
0x4bcd   :  { %v5118_v32 = vsel %vm114_vm7, %v11627_v18, 0.0 }
0x4bce   :  { %v11633_v19 = vsel %vm239_vm9, %v5118_v32, %v5129_v3  ;;  %v12262_v3 = vld [vmem:[#allocation17_spill] sm:$0xff]  ;;  %v12263_v32 = vld [vmem:[#allocation24_spill] sm:$0xff] }
0x4bcf   :  { %5204 = vmatmul.mubr.f32.vlgmr.msra.gmra.mrb[36].mxu1 %v11633_v19 }
0x4bd0   :  { %9033 = vmatpush3.bf16.msra.mxu1 %v12255_v41  ;;  %v9317_v29 = vpop.permute.xlu1 %9316  ;;  %8115 = vmatprep.mubr.msk.f32.mxu1 %vm9613_vm0, %v12102_v37 }
0x4bd1   :  { %v9319_v47 = vunpack.i.h.bf16 %v9317_v29  ;;  %v9318_v42 = vunpack.i.l.bf16 %v9317_v29  ;;  %9034 = vmatprep.subr.bf16.mxu1 %v12103_v40  ;;  %v12264_v29 = vld [vmem:[#allocation18_spill] sm:$0xff] }
0x4bd3   :  { %v11642_v30 = vsel %vm228_vm6, %v9318_v42, %v9319_v47  ;;  %v11646_v43 = vsel %vm228_vm6, %v5102_v48, %v9318_v42  ;;  %v11650_v12 = vsel %vm228_vm6, %v9319_v47, %v9314_v7  ;;  %v12258_v7 = vld [vmem:[#allocation15_spill] sm:$0xff]  ;;  %v12266_v42 = vld [vmem:[#allocation20_spill] sm:$0xff] }
0x4bd4   :  { %9036 = vmatpush3.bf16.msra.mxu1 %v12256_v62  ;;  %5273 = vmatprep.mubr.f32.mxu0 %v11642_v30  ;;  %v12261_v48 = vld [vmem:[#allocation23_spill] sm:$0xff] }
0x4bd5   :  { %5274 = vmatmul.mubr.f32.vlgmr.msra.gmra.mrb[62].mxu0 %v11646_v43  ;;  %9037 = vmatprep.subr.bf16.mxu1 %v12103_v40  ;;  %v12265_v47 = vld [vmem:[#allocation19_spill] sm:$0xff] }
0x4bd6   :  { %9057 = vmatpush3.bf16.msra.mxu0 %v12257_v36  ;;  %8134 = vmatprep.mubr.msk.f32.mxu0 %vm9613_vm0, %v12102_v37 }
0x4bd7   :  { %9058 = vmatprep.subr.bf16.mxu0 %v12103_v40 }
0x4bd8   :  { %9039 = vmatpush3.bf16.msra.mxu1 %v12258_v7 }
0x4bd9   :  { %9040 = vmatprep.subr.bf16.mxu1 %v12103_v40 }
0x4bda   :  { %9060 = vmatpush3.bf16.msra.mxu0 %v12259_v6 }
0x4bdb   :  { %9061 = vmatprep.subr.bf16.mxu0 %v12103_v40 }
0x4bdc   :  { %9042 = vmatpush3.bf16.msra.mxu1 %v12260_v55 }
0x4bdd   :  { %9043 = vmatprep.subr.bf16.mxu1 %v12103_v40 }
0x4bde   :  { %9063 = vmatpush3.bf16.msra.mxu0 %v12261_v48 }
0x4bdf   :  { %9064 = vmatprep.subr.bf16.mxu0 %v12103_v40 }
0x4be0   :  { %9045 = vmatpush3.bf16.msra.mxu1 %v12262_v3 }
0x4be1   :  { %9046 = vmatprep.subr.bf16.mxu1 %v12103_v40 }
0x4be2   :  { %9066 = vmatpush3.bf16.msra.mxu0 %v12263_v32 }
0x4be3   :  { %9067 = vmatprep.subr.bf16.mxu0 %v12103_v40 }
0x4be4   :  { %9048 = vmatpush3.bf16.msra.mxu1 %v12264_v29 }
0x4be5   :  { %9049 = vmatprep.subr.bf16.mxu1 %v12103_v40 }
0x4be8   :  { %9051 = vmatpush3.bf16.msra.mxu1 %v12265_v47 }
0x4be9   :  { %9052 = vmatprep.subr.bf16.mxu1 %v12103_v40 }
0x4bec   :  { %9054 = vmatpush3.bf16.msra.mxu1 %v12266_v42  ;;  %v11690_v42 = vld [vmem:[%s11979_s1 + $0x10] ss:$0 sm:$0xff] }
0x4bed   :  { %9079 = vmatprep.subr.bf16.mxu1 %v12103_v40 }
0x4bef   :  { %8116 = vmatmul.mubr.f32.vlgmr.msra.gmra.mrb[38].mxu1 %v11650_v12 }
0x4bf0   :  { %9081 = vmatpush3.bf16.msra.mxu1 %v12267_v22  ;;  %8163 = vmatprep.mubr.msk.f32.mxu1 %vm9613_vm0, %v12102_v37 }
0x4bf1   :  { %9086 = vmatprep.subr.bf16.mxu1 %v12183_v21  ;;  %v12268_v21 = vld [vmem:[#allocation27_spill] sm:$0xff] }
0x4ca2   :  { %v7347_v24 = vpop.f32.mrb[36].mxu1 }
0x4ca3   :  { %v7348_v50 = vpop.f32.mrb[37].mxu1 }
0x4ca4   :  { %v7349_v29 = vadd.f32 %v7348_v50, %v7347_v24 }
0x4ca6   :  { %v5206_v3 = vadd.f32 %v11690_v42, %v7349_v29  ;;  %v11717_v29 = vld [vmem:[%s11979_s1 + $0x38] ss:$0 sm:$0xff] }
0x4ca8   :  { %v7382_v32 = vpop.f32.mrb[62].mxu0 }
0x4ca9   :  { %v7383_v47 = vpop.f32.mrb[63].mxu0 }
0x4caa   :  { %v7384_v48 = vadd.f32 %v7383_v47, %v7382_v32 }
0x4cac   :  { %v5276_v55 = vadd.f32 %v7384_v48, %v5206_v3  ;;  %v12270_v48 = vld [vmem:[#allocation31_spill] sm:$0xff]  ;;  %v12271_v3 = vld [vmem:[#allocation32_spill] sm:$0xff] }
0x4cc2   :  { %v5345_v22 = vpop.f32.mrb[38].mxu1 }
0x4cc3   :  { %v5346_v6 = vadd.f32 %v5345_v22, %v5276_v55  ;;  %v8117_v7 = vpop.f32.mrb[39].mxu1  ;;  %v11703_v22 = vld [vmem:[%s11979_s1 + $0x28] ss:$0 sm:$0xff] }
0x4cc4   :  { %12269 = vst [vmem:[#allocation34_spill] sm:$0xff] %v11703_v22 }
0x4cc5   :  { %v5349_v36 = vmax.f32 %v5346_v6, 0.0  ;;  %v5426_v6 = vpop.permute.xlu1 %5425 }
0x4cc7   :  { %8135 = vmatmul.mubr.msk.f32.vlgmr.msra.gmra.mrb[64].mxu0 %vm576_vm10, %v5349_v36 }
0x4cc8   :  { %9069 = vmatpush3.bf16.msra.mxu0 %v12240_v0  ;;  %8145 = vmatprep.mubr.msk.f32.mxu0 %vm9613_vm0, %v12102_v37 }
0x4cc9   :  { %9070 = vmatprep.subr.bf16.mxu0 %v12103_v40 }
0x4ccc   :  { %9072 = vmatpush3.bf16.msra.mxu0 %v12268_v21 }
0x4ccd   :  { %9073 = vmatprep.subr.bf16.mxu0 %v12103_v40 }
0x4d9a   :  { %v5419_v50 = vpop.f32.mrb[64].mxu0 }
0x4d9b   :  { %v5423_v24 = vadd.f32 %v11703_v22, %v5419_v50  ;;  %v8136_v36 = vpop.f32.mrb[65].mxu0 }
0x4d9d   :  { %v5424_v7 = vmax.f32 %v5423_v24, 0.0 }
0x4d9f   :  { %v5428_v55 = vsel %vm114_vm7, %v5424_v7, %v5426_v6 }
0x4da0   :  { %8146 = vmatmul.mubr.msk.f32.vlgmr.msra.gmra.mrb[66].mxu0 %vm665_vm11, %v5428_v55 }
0x4da1   :  { %9075 = vmatpush3.bf16.msra.mxu0 %v12270_v48  ;;  %8156 = vmatprep.mubr.msk.f32.mxu0 %vm9613_vm0, %v12102_v37 }
0x4da2   :  { %9076 = vmatprep.subr.bf16.mxu0 %v12103_v40 }
0x4da5   :  { %9078 = vmatpush3.bf16.msra.mxu0 %v12271_v3 }
0x4da6   :  { %9082 = vmatprep.subr.bf16.mxu0 %v12103_v40 }
0x4e73   :  { %v5498_v32 = vpop.f32.mrb[66].mxu0 }
0x4e74   :  { %v5499_v47 = vadd.f32 %v11717_v29, %v5498_v32  ;;  %v8147_v50 = vpop.f32.mrb[67].mxu0 }
0x4e76   :  { %9509 = vtanh.f32 %v5499_v47  ;;  %v6628_v36 = vmul.f32 -1.442695, %v5499_v47 }
0x4e78   :  { %9511 = vpow2.f32 %v6628_v36 }
0x4e80   :  { %v9510_v24 = vpop.eup %9509 }
0x4e81   :  { %5511 = vrot.lane.b32.xlu0 %v9510_v24, %s9616_s19  ;;  %v11742_v24 = vld [vmem:[%s11979_s1 + $0x39] ss:$0 sm:$0xff] }
0x4e82   :  { %v9512_v7 = vpop.eup %9511 }
0x4e83   :  { %v5505_v6 = vadd.f32 1.0, %v9512_v7 }
0x4e85   :  { %9513 = vrcp.f32 %v5505_v6 }
0x4e8f   :  { %v9514_v55 = vpop.eup %9513 }
0x4e90   :  { %v5509_v22 = vmul.f32 %v9514_v55, %v11484_v5 }
0x4ef3   :  { %v5512_v3 = vpop.permute.xlu0 %5511 }
0x4ef4   :  { %v5514_v48 = vmul.f32 %v9514_v55, %v5512_v3 }
0x4ef6   :  { %5516 = vrot.lane.b32.xlu1 %v5514_v48, %s9617_s20 }
0x4f68   :  { %v5517_v21 = vpop.permute.xlu1 %5516 }
0x4f69   :  { %v11723_v0 = vadd.f32 %v5517_v21, %v5509_v22  ;;  %v12272_v21 = vld [vmem:[#allocation6_spill] sm:$0xff] }
0x4f6b   :  { %9515 = vtanh.f32 %v11723_v0 }
0x4f75   :  { %v9516_v32 = vpop.eup %9515 }
0x4f76   :  { %5522 = vrot.lane.b32.xlu1 %v9516_v32, %s9619_s17 }
0x4fe8   :  { %v5523_v47 = vpop.permute.xlu1 %5522 }
0x4fe9   :  { %v11727_v50 = vmul.f32 %v9514_v55, %v5523_v47 }
0x4feb   :  { %5527 = vrot.lane.b32.xlu1 %v11727_v50, %s9620_s29 }
0x4fef   :  { %5530 = vrot.lane.b32.xlu1 %v11508_v4, %s9616_s19 }
0x505d   :  { %v5528_v48 = vpop.permute.xlu1 %5527 }
0x5061   :  { %v5531_v3 = vpop.permute.xlu1 %5530 }
0x5062   :  { %v5533_v5 = vsel %vm114_vm7, %v5528_v48, %v5531_v3 }
0x5063   :  { %8157 = vmatmul.mubr.msk.f32.vlgmr.msra.gmra.mrb[68].mxu0 %vm665_vm11, %v5533_v5 }
0x5064   :  { %9084 = vmatpush3.bf16.msra.mxu0 %v12245_v13  ;;  %8170 = vmatprep.mubr.msk.f32.mxu0 %vm9613_vm0, %v12102_v37 }
0x5065   :  { %9118 = vmatprep.subr.bf16.mxu0 %v12272_v21 }
0x5136   :  { %v5603_v22 = vpop.f32.mrb[68].mxu0 }
0x5137   :  { %v5604_v4 = vadd.f32 %v11742_v24, %v5603_v22  ;;  %v8158_v36 = vpop.f32.mrb[69].mxu0 }
0x5139   :  { %9517 = vtanh.f32 %v5604_v4  ;;  %v6630_v6 = vmul.f32 -1.442695, %v5604_v4 }
0x513b   :  { %9519 = vpow2.f32 %v6630_v6 }
0x5143   :  { %v9518_v7 = vpop.eup %9517 }
0x5144   :  { %5616 = vrot.lane.b32.xlu1 %v9518_v7, %s9616_s19  ;;  %v5719_v7 = vand.u32 2147483647, %v11599_v2 }
0x5145   :  { %v9520_v13 = vpop.eup %9519 }
0x5146   :  { %v5610_v55 = vadd.f32 1.0, %v9520_v13 }
0x5148   :  { %9521 = vrcp.f32 %v5610_v55 }
0x5152   :  { %v9522_v32 = vpop.eup %9521 }
0x5153   :  { %v5614_v3 = vmul.f32 %v9522_v32, %v11504_v1 }
0x51b6   :  { %v5617_v47 = vpop.permute.xlu1 %5616 }
0x51b7   :  { %v5619_v48 = vmul.f32 %v9522_v32, %v5617_v47 }
0x51b9   :  { %5621 = vrot.lane.b32.xlu1 %v5619_v48, %s9617_s20 }
0x522b   :  { %v5622_v5 = vpop.permute.xlu1 %5621 }
0x522c   :  { %v11748_v21 = vadd.f32 %v5622_v5, %v5614_v3  ;;  %v9638_v3 = vmov 7  }
0x522e   :  { %9523 = vtanh.f32 %v11748_v21 }
0x5238   :  { %v9524_v22 = vpop.eup %9523 }
0x5239   :  { %5627 = vrot.lane.b32.xlu0 %v9524_v22, %s9619_s17 }
0x52ab   :  { %v5628_v4 = vpop.permute.xlu0 %5627 }
0x52ac   :  { %v11752_v36 = vmul.f32 %v9522_v32, %v5628_v4 }
0x52ae   :  { %5632 = vrot.lane.b32.xlu1 %v11752_v36, %s9620_s29 }
0x52b2   :  { %5721 = vrot.lane.b32.xlu1 %v5719_v7, %s9637_s5 }
0x5320   :  { %v5633_v6 = vpop.permute.xlu1 %5632 }
0x5321   :  { %8164 = vmatmul.mubr.msk.f32.vlgmr.msra.gmra.mrb[40].mxu1 %vm114_vm7, %v5633_v6 }
0x5322   :  { %9088 = vmatpush3.bf16.msra.mxu1 %v9756_v53  ;;  %v12273_v53 = vld [vmem:[#allocation9_spill] sm:$0xff] }
0x5323   :  { %9090 = vmatprep.subr.bf16.mxu1 %v9779_v60  ;;  %v12274_v60 = vld [vmem:[#allocation10_spill] sm:$0xff] }
0x5326   :  { %9092 = vmatpush3.bf16.msra.mxu1 %v9814_v14  ;;  %v12275_v14 = vld [vmem:[#allocation12_spill] sm:$0xff] }
0x5327   :  { %9094 = vmatprep.subr.bf16.mxu1 %v9827_v20 }
0x532a   :  { %9096 = vmatpush3.bf16.msra.mxu1 %v9858_v33  ;;  %v11777_v33 = vld [vmem:[%s11979_s1 + $0x30] ss:$0 sm:$0xff] }
0x532b   :  { %9098 = vmatprep.subr.bf16.mxu1 %v9873_v39 }
0x532e   :  { %9100 = vmatpush3.bf16.msra.mxu1 %v9899_v52 }
0x532f   :  { %9102 = vmatprep.subr.bf16.mxu1 %v9911_v57 }
0x5332   :  { %9104 = vmatpush3.bf16.msra.mxu1 %v9936_v11  ;;  %v5722_v11 = vpop.permute.xlu1 %5721 }
0x5333   :  { %9106 = vmatprep.subr.bf16.mxu1 %v9948_v17  ;;  %v11782_v17 = vadd.f32 %v5722_v11, %v11533_v63 }
0x5336   :  { %9108 = vmatpush3.bf16.msra.mxu1 %v9972_v28  ;;  %v5725_v28 = vadd.f32 1.5, %v11782_v17 }
0x5337   :  { %9110 = vmatprep.subr.bf16.mxu1 %v9984_v35 }
0x5338   :  { %v5726_v35 = vmul.f32 0.25, %v5725_v28  ;;  %v11834_v28 = vld [vmem:[%s11979_s1 + $0x20] ss:$0 sm:$0xff] }
0x533a   :  { %9112 = vmatpush3.bf16.msra.mxu1 %v12273_v53  ;;  %v5727_v1 = vmin.f32 %v5726_v35, 1.0 }
0x533b   :  { %9114 = vmatprep.subr.bf16.mxu1 %v12274_v60 }
0x533c   :  { %v5734_v48 = vsub.f32 1.0, %v5727_v1 }
0x533e   :  { %9116 = vmatpush3.bf16.msra.mxu1 %v12275_v14 }
0x533f   :  { %9149 = vmatprep.subr.bf16.mxu1 %v12103_v40 }
0x53f4   :  { %v5702_v20 = vpop.f32.mrb[40].mxu1 }
0x53f5   :  { %v5706_v39 = vadd.f32 %v11777_v33, %v5702_v20  ;;  %v8165_v52 = vpop.f32.mrb[41].mxu1 }
0x53f7   :  { %v5707_v57 = vsel %vm955_vm12, %v5706_v39, -inf }
0x53f8   :  { %5708 = vmax.xlane.f32.xlu0 %v5707_v57 }
0x540e   :  { %5730 = vperm.xlu0 %9307, %v5727_v1  }
0x5412   :  { %5744 = vrot.lane.b32.xlu0 %v11591_v26, %s9621_s11 }
0x5413   :  { %9321 = vset.pattern.permute.xlu0 %v9638_v3 }
0x5416   :  { %5782 = vperm.xlu0 %9321, %v11371_v10  }
0x5485   :  { %v5709_v2 = vpop.xlane.xlu0 %5708 }
0x5486   :  { %v5710_v13 = vsub.f32 %v5706_v39, %v5709_v2 }
0x5488   :  { %v5711_v55 = vmul.f32 1.442695, %v5710_v13 }
0x548a   :  { %9525 = vpow2.f32 %v5711_v55 }
0x548d   :  { %v5731_v4 = vpop.permute.xlu0 %5730 }
0x5491   :  { %v5745_v14 = vpop.permute.xlu0 %5744 }
0x5494   :  { %v9526_v32 = vpop.eup %9525 }
0x5495   :  { %v5713_v47 = vsel %vm955_vm12, %v9526_v32, 0.0 }
0x5496   :  { %5714 = vadd.xlane.f32.xlu1 %v5713_v47 }
0x54a7   :  { %5737 = vperm.xlu1 %9320, %v5734_v48  }
0x5523   :  { %v5715_v63 = vpop.xlane.xlu1 %5714 }
0x5524   :  { %9527 = vrcp.f32 %v5715_v63 }
0x5527   :  { %v5738_v26 = vpop.permute.xlu1 %5737 }
0x5528   :  { %v5740_v53 = vmul.f32 %v5738_v26, %v11541_v44 }
0x552e   :  { %v9528_v5 = vpop.eup %9527 }
0x552f   :  { %v5717_v22 = vmul.f32 %v9528_v5, %v9526_v32 }
0x5531   :  { %v5718_v7 = vmul.f32 4.0, %v5717_v22 }
0x5533   :  { %v5733_v6 = vmul.f32 %v5731_v4, %v5718_v7 }
0x5535   :  { %v11790_v60 = vadd.f32 %v5740_v53, %v5733_v6  ;;  %v9587_v6 = vld [vmem:[%s11978_s0] sm:$0x3]  ;;  %s9639_s0 = smov 121  }
0x5537   :  { %v5742_v20 = vmul.f32 %v11790_v60, %v11627_v18  ;;  %v5747_v39 = vmul.f32 %v5745_v14, %v11790_v60  ;;  %v5749_v35 = vmul.f32 %v11834_v28, %v11790_v60  ;;  %v12277_v14 = vpack.i.bf16 %v11650_v12, %v11633_v19 }
0x5539   :  { %5763 = vrot.lane.b32.xlu0 %v5747_v39, %s9623_s12  ;;  %5755 = vrot.lane.b32.xlu1 %v5747_v39, %s9624_s13 }
0x553a   :  { %8171 = vmatmul.mubr.msk.f32.vlgmr.msra.gmra.mrb[70].mxu0 %vm114_vm7, %v5742_v20 }
0x553b   :  { %9120 = vmatpush3.bf16.msra.mxu0 %v9744_v49  ;;  %v5783_v49 = vpop.permute.xlu0 %5782 }
0x553c   :  { %9122 = vmatprep.subr.bf16.mxu0 %v9777_v59 }
0x553d   :  { %5759 = vrot.lane.b32.xlu1 %v5747_v39, %s9618_s21 }
0x553f   :  { %9124 = vmatpush3.bf16.msra.mxu0 %v9801_v9 }
0x5540   :  { %9126 = vmatprep.subr.bf16.mxu0 %v9816_v15 }
0x5543   :  { %9128 = vmatpush3.bf16.msra.mxu0 %v9856_v31 }
0x5544   :  { %9130 = vmatprep.subr.bf16.mxu0 %v9871_v38 }
0x5547   :  { %9132 = vmatpush3.bf16.msra.mxu0 %v9897_v51 }
0x5548   :  { %9134 = vmatprep.subr.bf16.mxu0 %v9909_v56  ;;  %v5785_v56 = vmul.f32 %v11572_v46, %v5783_v49  ;;  %v11828_v46 = vld [vmem:[%s11979_s1 + $0x18] ss:$0 sm:$0xff]  ;;  %v12278_v49 = vpack.i.bf16 %v11642_v30, %v11646_v43 }
0x5549   :  { %v5748_v11 = vmul.f32 %v11828_v46, %v5742_v20 }
0x554b   :  { %9136 = vmatpush3.bf16.msra.mxu0 %v9934_v8  ;;  %v5750_v1 = vadd.f32 %v5749_v35, %v5748_v11  ;;  %v12289_v11 = vld [vmem:[#allocation33_spill] sm:$0xff] }
0x554c   :  { %9138 = vmatprep.subr.bf16.mxu0 %v9946_v16 }
0x554d   :  { %v5751_v2 = vsel %vm955_vm12, %v5750_v1, 0.0 }
0x554f   :  { %9140 = vmatpush3.bf16.msra.mxu0 %v9970_v27 }
0x5550   :  { %9142 = vmatprep.subr.bf16.mxu0 %v9982_v34  ;;  %v12276_v34 = vld [vmem:[#allocation28_spill] sm:$0xff] }
0x5553   :  { %9144 = vmatpush3.bf16.msra.mxu0 %v10006_v45 }
0x5554   :  { %9146 = vmatprep.subr.bf16.mxu0 %v10015_v54 }
0x5557   :  { %9148 = vmatpush3.bf16.msra.mxu0 %v12195_v25 }
0x5558   :  { %9173 = vmatprep.subr.bf16.mxu0 %v12103_v40 }
0x55ab   :  { %v5756_v59 = vpop.permute.xlu1 %5755  ;;  %v5764_v38 = vpop.permute.xlu0 %5763 }
0x55ac   :  { %v5758_v9 = vadd.f32 %v5756_v59, %v5747_v39 }
0x55af   :  { %v5760_v15 = vpop.permute.xlu1 %5759 }
0x55b0   :  { %v5762_v31 = vadd.f32 %v5760_v15, %v5758_v9 }
0x55b2   :  { %v5766_v51 = vadd.f32 %v5764_v38, %v5762_v31 }
0x55b4   :  { %5771 = vrot.lane.b32.xlu0 %v5766_v51, %s9625_s14  ;;  %5768 = vrot.lane.b32.xlu1 %v5766_v51, %s9626_s15 }
0x55b8   :  { %5774 = vrot.lane.b32.xlu1 %v5766_v51, %s9627_s16 }
0x560d   :  { %v5855_v8 = vpop.f32.mrb[70].mxu0 }
0x560e   :  { %v5859_v16 = vadd.f32 %v5855_v8, %v5785_v56  ;;  %v8172_v27 = vpop.f32.mrb[71].mxu0 }
0x5610   :  { %v5860_v45 = vadd.f32 %v12276_v34, %v5859_v16  ;;  %v12280_v34 = vld [vmem:[#allocation15_spill] sm:$0xff] }
0x5612   :  { %9529 = vtanh.f32 %v5860_v45  ;;  %v6633_v13 = vmul.f32 -1.442695, %v5860_v45  ;;  %v12281_v45 = vld [vmem:[#allocation22_spill] sm:$0xff] }
0x5614   :  { %9531 = vpow2.f32 %v6633_v13 }
0x561c   :  { %v9530_v54 = vpop.eup %9529 }
0x561d   :  { %5874 = vrot.lane.b32.xlu0 %v9530_v54, %s9616_s19  ;;  %v12283_v54 = vld [vmem:[#allocation23_spill] sm:$0xff] }
0x561e   :  { %v9532_v55 = vpop.eup %9531 }
0x561f   :  { %v5864_v32 = vadd.f32 1.0, %v9532_v55 }
0x5621   :  { %9533 = vrcp.f32 %v5864_v32 }
0x5626   :  { %v5769_v25 = vpop.permute.xlu1 %5768  ;;  %v5772_v10 = vpop.permute.xlu0 %5771 }
0x5627   :  { %v5777_v44 = vsel %vm1034_vm13, %v5766_v51, %v5769_v25  ;;  %v12284_v25 = vld [vmem:[#allocation17_spill] sm:$0xff] }
0x5628   :  { %v5778_v18 = vsel %vm1036_vm14, %v5777_v44, %v5772_v10  ;;  %v12285_v10 = vld [vmem:[#allocation24_spill] sm:$0xff]  ;;  %v12286_v44 = vld [vmem:[#allocation18_spill] sm:$0xff] }
0x562a   :  { %v5775_v52 = vpop.permute.xlu1 %5774 }
0x562b   :  { %v5779_v57 = vsel %vm1038_vm15, %v5778_v18, %v5775_v52  ;;  %v9534_v47 = vpop.eup %9533  ;;  %v12287_v18 = vld [vmem:[#allocation19_spill] sm:$0xff]  ;;  %v12288_v52 = vld [vmem:[#allocation20_spill] sm:$0xff] }
0x562c   :  { %5869 = vrot.lane.b32.xlu1 %v5779_v57, %s9617_s20 }
0x5650   :  { %5752 = vadd.xlane.f32.xlu1 %v5751_v2 }
0x568f   :  { %v5875_v48 = vpop.permute.xlu0 %5874 }
0x5690   :  { %v5877_v3 = vmul.f32 %v9534_v47, %v5875_v48 }
0x5692   :  { %5879 = vrot.lane.b32.xlu0 %v5877_v3, %s9617_s20 }
0x569e   :  { %v5870_v63 = vpop.permute.xlu1 %5869 }
0x569f   :  { %v5872_v5 = vmul.f32 %v9534_v47, %v5870_v63 }
0x56dd   :  { %v11840_v7 = vpop.xlane.xlu1 %5752 }
0x56de   :  { %v11847_v53 = vsub.f32 %v9587_v6, %v11840_v7 }
0x5704   :  { %v5880_v22 = vpop.permute.xlu0 %5879 }
0x5705   :  { %v5882_v4 = vadd.f32 %v5880_v22, %v5872_v5  ;;  %v12290_v22 = vld [vmem:[#allocation26_spill] sm:$0xff] }
0x5707   :  { %9535 = vtanh.f32 %v5882_v4  ;;  %v12291_v4 = vld [vmem:[#allocation27_spill] sm:$0xff] }
0x5711   :  { %v9536_v26 = vpop.eup %9535 }
0x5712   :  { %5885 = vrot.lane.b32.xlu0 %v9536_v26, %s9619_s17  ;;  %v12292_v26 = vld [vmem:[#allocation34_spill] sm:$0xff] }
0x5716   :  { %5916 = vperm.xlu0 %9321, %v11847_v53  }
0x571a   :  { %9323 = vrot.lane.b32.xlu0 %v12277_v14, %s9619_s17 }
0x571b   :  { %9332 = vset.pattern.permute.xlu0 %v12115_v61 }
0x571e   :  { %5891 = vrot.lane.b32.xlu0 %v11622_v58, %s9619_s17 }
0x5784   :  { %v5886_v20 = vpop.permute.xlu0 %5885 }
0x5785   :  { %v5888_v39 = vmul.f32 %v9534_v47, %v5886_v20 }
0x5787   :  { %5905 = vrot.lane.b32.xlu0 %v5888_v39, %s9620_s29 }
0x578b   :  { %9328 = vrot.lane.b32.xlu0 %v12278_v49, %s9619_s17 }
0x578f   :  { %6215 = vrot.lane.b32.xlu0 %v11727_v50, %s9616_s19 }
0x5795   :  { %v5917_v59 = vpop.permute.xlu0 %5916 }
0x5799   :  { %v9324_v19 = vpop.permute.xlu0 %9323 }
0x579a   :  { %v9326_v12 = vunpack.i.h.bf16 %v9324_v19  ;;  %v9325_v9 = vunpack.i.l.bf16 %v9324_v19  ;;  %v12294_v19 = vld [vmem:[#allocation32_spill] sm:$0xff] }
0x579c   :  { %v5903_v61 = vsel %vm228_vm6, %v9326_v12, %v9325_v9 }
0x579d   :  { %v5909_v58 = vsel %vm228_vm6, 0.0, %v5903_v61  ;;  %v5892_v15 = vpop.permute.xlu0 %5891 }
0x579e   :  { %v5902_v31 = vsel %vm228_vm6, %v9325_v9, %v5892_v15  ;;  %v5919_v30 = vsel %vm244_vm8, %v5917_v59, %v5909_v58  ;;  %v12293_v59 = vld [vmem:[#allocation31_spill] sm:$0xff] }
0x579f   :  { %5993 = vmatprep.mubr.f32.mxu1 %v5902_v31 }
0x57f9   :  { %v11872_v43 = vpop.permute.xlu0 %5905 }
0x57fa   :  { %v5908_v50 = vsel %vm114_vm7, %v11872_v43, 0.0 }
0x57fb   :  { %v5924_v38 = vsel %vm239_vm9, %v5908_v50, %v5919_v30 }
0x57fc   :  { %5994 = vmatmul.mubr.f32.vlgmr.msra.gmra.mrb[42].mxu1 %v5924_v38 }
0x57fd   :  { %9151 = vmatpush3.bf16.msra.mxu1 %v12255_v41  ;;  %v9329_v51 = vpop.permute.xlu0 %9328  ;;  %8205 = vmatprep.mubr.msk.f32.mxu1 %vm9613_vm0, %v12102_v37  ;;  %v12279_v41 = vld [vmem:[#allocation21_spill] sm:$0xff] }
0x57fe   :  { %v9331_v56 = vunpack.i.h.bf16 %v9329_v51  ;;  %v9330_v8 = vunpack.i.l.bf16 %v9329_v51  ;;  %9152 = vmatprep.subr.bf16.mxu1 %v12103_v40 }
0x5800   :  { %v5900_v16 = vsel %vm228_vm6, %v9330_v8, %v9331_v56  ;;  %v5901_v27 = vsel %vm228_vm6, %v5892_v15, %v9330_v8  ;;  %v5899_v57 = vsel %vm228_vm6, %v9331_v56, %v9326_v12  ;;  %vm6552_vm6 = vcmask 58368  }
0x5801   :  { %9154 = vmatpush3.bf16.msra.mxu1 %v12256_v62  ;;  %6063 = vmatprep.mubr.f32.mxu0 %v5900_v16  ;;  %v12282_v62 = vld [vmem:[#allocation16_spill] sm:$0xff]  ;;  %v6216_v39 = vpop.permute.xlu0 %6215 }
0x5802   :  { %6064 = vmatmul.mubr.f32.vlgmr.msra.gmra.mrb[72].mxu0 %v5901_v27  ;;  %9155 = vmatprep.subr.bf16.mxu1 %v12103_v40 }
0x5803   :  { %9175 = vmatpush3.bf16.msra.mxu0 %v12279_v41  ;;  %8224 = vmatprep.mubr.msk.f32.mxu0 %vm9613_vm0, %v12102_v37 }
0x5804   :  { %9176 = vmatprep.subr.bf16.mxu0 %v12103_v40 }
0x5805   :  { %9157 = vmatpush3.bf16.msra.mxu1 %v12280_v34 }
0x5806   :  { %9158 = vmatprep.subr.bf16.mxu1 %v12103_v40 }
0x5807   :  { %9178 = vmatpush3.bf16.msra.mxu0 %v12281_v45 }
0x5808   :  { %9179 = vmatprep.subr.bf16.mxu0 %v12103_v40 }
0x5809   :  { %9160 = vmatpush3.bf16.msra.mxu1 %v12282_v62 }
0x580a   :  { %9161 = vmatprep.subr.bf16.mxu1 %v12103_v40 }
0x580b   :  { %9181 = vmatpush3.bf16.msra.mxu0 %v12283_v54 }
0x580c   :  { %9182 = vmatprep.subr.bf16.mxu0 %v12103_v40 }
0x580d   :  { %9163 = vmatpush3.bf16.msra.mxu1 %v12284_v25 }
0x580e   :  { %9164 = vmatprep.subr.bf16.mxu1 %v12103_v40 }
0x580f   :  { %9184 = vmatpush3.bf16.msra.mxu0 %v12285_v10 }
0x5810   :  { %9185 = vmatprep.subr.bf16.mxu0 %v12103_v40 }
0x5811   :  { %9166 = vmatpush3.bf16.msra.mxu1 %v12286_v44 }
0x5812   :  { %9167 = vmatprep.subr.bf16.mxu1 %v12103_v40 }
0x5815   :  { %9169 = vmatpush3.bf16.msra.mxu1 %v12287_v18 }
0x5816   :  { %9170 = vmatprep.subr.bf16.mxu1 %v12103_v40 }
0x5819   :  { %9172 = vmatpush3.bf16.msra.mxu1 %v12288_v52 }
0x581a   :  { %9197 = vmatprep.subr.bf16.mxu1 %v12103_v40 }
0x581c   :  { %8206 = vmatmul.mubr.f32.vlgmr.msra.gmra.mrb[44].mxu1 %v5899_v57 }
0x581d   :  { %9199 = vmatpush3.bf16.msra.mxu1 %v12289_v11  ;;  %8253 = vmatprep.mubr.msk.f32.mxu1 %vm9613_vm0, %v12102_v37 }
0x58cf   :  { %v7459_v35 = vpop.f32.mrb[42].mxu1 }
0x58d0   :  { %v7460_v1 = vpop.f32.mrb[43].mxu1 }
0x58d1   :  { %v7461_v2 = vadd.f32 %v7460_v1, %v7459_v35 }
0x58d3   :  { %v5996_v32 = vadd.f32 %v11690_v42, %v7461_v2 }
0x58d5   :  { %v7494_v13 = vpop.f32.mrb[72].mxu0 }
0x58d6   :  { %v7495_v55 = vpop.f32.mrb[73].mxu0 }
0x58d7   :  { %v7496_v47 = vadd.f32 %v7495_v55, %v7494_v13  ;;  %v6509_v13 = vand.u32 2147483647, %v11847_v53 }
0x58d9   :  { %v6066_v48 = vadd.f32 %v7496_v47, %v5996_v32 }
0x58ef   :  { %v6135_v3 = vpop.f32.mrb[44].mxu1 }
0x58f0   :  { %v6136_v63 = vadd.f32 %v6135_v3, %v6066_v48  ;;  %v8207_v5 = vpop.f32.mrb[45].mxu1 }
0x58f2   :  { %v6139_v23 = vmax.f32 %v6136_v63, 0.0 }
0x58f4   :  { %8225 = vmatmul.mubr.msk.f32.vlgmr.msra.gmra.mrb[74].mxu0 %vm576_vm10, %v6139_v23 }
0x58f5   :  { %9187 = vmatpush3.bf16.msra.mxu0 %v12290_v22  ;;  %8235 = vmatprep.mubr.msk.f32.mxu0 %vm9613_vm0, %v12102_v37 }
0x58f6   :  { %9188 = vmatprep.subr.bf16.mxu0 %v12103_v40 }
0x58f9   :  { %9190 = vmatpush3.bf16.msra.mxu0 %v12291_v4 }
0x58fa   :  { %9191 = vmatprep.subr.bf16.mxu0 %v12103_v40 }
0x59c7   :  { %v6209_v42 = vpop.f32.mrb[74].mxu0 }
0x59c8   :  { %v6213_v6 = vadd.f32 %v12292_v26, %v6209_v42  ;;  %v8226_v14 = vpop.f32.mrb[75].mxu0 }
0x59ca   :  { %v6214_v20 = vmax.f32 %v6213_v6, 0.0 }
0x59cc   :  { %v6218_v49 = vsel %vm114_vm7, %v6214_v20, %v6216_v39 }
0x59cd   :  { %8236 = vmatmul.mubr.msk.f32.vlgmr.msra.gmra.mrb[76].mxu0 %vm665_vm11, %v6218_v49 }
0x59ce   :  { %9193 = vmatpush3.bf16.msra.mxu0 %v12293_v59  ;;  %8246 = vmatprep.mubr.msk.f32.mxu0 %vm9613_vm0, %v12102_v37  ;;  %vm6539_vm0 = vcmask 7168  }
0x59cf   :  { %9194 = vmatprep.subr.bf16.mxu0 %v12103_v40 }
0x59d2   :  { %9196 = vmatpush3.bf16.msra.mxu0 %v12294_v19 }
0x5aa0   :  { %v6288_v12 = vpop.f32.mrb[76].mxu0 }
0x5aa1   :  { %v6289_v9 = vadd.f32 %v11717_v29, %v6288_v12  ;;  %v8237_v61 = vpop.f32.mrb[77].mxu0 }
0x5aa3   :  { %9537 = vtanh.f32 %v6289_v9  ;;  %v6636_v15 = vmul.f32 -1.442695, %v6289_v9 }
0x5aa5   :  { %9539 = vpow2.f32 %v6636_v15 }
0x5aad   :  { %v9538_v58 = vpop.eup %9537 }
0x5aae   :  { %6301 = vrot.lane.b32.xlu0 %v9538_v58, %s9616_s19 }
0x5aaf   :  { %v9540_v31 = vpop.eup %9539 }
0x5ab0   :  { %v6295_v30 = vadd.f32 1.0, %v9540_v31 }
0x5ab2   :  { %9541 = vrcp.f32 %v6295_v30 }
0x5abc   :  { %v9542_v50 = vpop.eup %9541 }
0x5abd   :  { %v6299_v40 = vmul.f32 %v9542_v50, %v11723_v0 }
0x5b20   :  { %v6302_v38 = vpop.permute.xlu0 %6301 }
0x5b21   :  { %v6304_v37 = vmul.f32 %v9542_v50, %v6302_v38  ;;  %v12296_v38 = vld [vmem:[#allocation36_spill] sm:$0xff] }
0x5b23   :  { %6306 = vrot.lane.b32.xlu0 %v6304_v37, %s9617_s20 }
0x5b95   :  { %v6307_v51 = vpop.permute.xlu0 %6306 }
0x5b96   :  { %v6309_v56 = vadd.f32 %v6307_v51, %v6299_v40  ;;  %v12297_v40 = vld [vmem:[#allocation25_spill] sm:$0xff]  ;;  %v12298_v51 = vld [vmem:[#allocation8_spill] sm:$0xff] }
0x5b98   :  { %9543 = vtanh.f32 %v6309_v56 }
0x5ba2   :  { %v9544_v29 = vpop.eup %9543 }
0x5ba3   :  { %6312 = vrot.lane.b32.xlu1 %v9544_v29, %s9619_s17 }
0x5c15   :  { %v6313_v8 = vpop.permute.xlu1 %6312 }
0x5c16   :  { %v6315_v16 = vmul.f32 %v9542_v50, %v6313_v8  ;;  %v12295_v50 = vld [vmem:[#allocation30_spill] sm:$0xff] }
0x5c17   :  { %v6540_v37 = vsel %vm6539_vm0, %v12296_v38, %v12295_v50 }
0x5c18   :  { %6317 = vrot.lane.b32.xlu0 %v6315_v16, %s9620_s29 }
0x5c1c   :  { %6320 = vrot.lane.b32.xlu0 %v11752_v36, %s9616_s19 }
0x5c8a   :  { %v6318_v27 = vpop.permute.xlu0 %6317 }
0x5c8e   :  { %v6321_v41 = vpop.permute.xlu0 %6320 }
0x5c8f   :  { %v6323_v34 = vsel %vm114_vm7, %v6318_v27, %v6321_v41 }
0x5c90   :  { %8247 = vmatmul.mubr.msk.f32.vlgmr.msra.gmra.mrb[78].mxu0 %vm665_vm11, %v6323_v34 }
0x5d63   :  { %v6393_v0 = vpop.f32.mrb[78].mxu0 }
0x5d64   :  { %v6394_v45 = vadd.f32 %v11742_v24, %v6393_v0  ;;  %v8248_v62 = vpop.f32.mrb[79].mxu0 }
0x5d66   :  { %9545 = vtanh.f32 %v6394_v45  ;;  %v6638_v25 = vmul.f32 -1.442695, %v6394_v45 }
0x5d68   :  { %9547 = vpow2.f32 %v6638_v25 }
0x5d70   :  { %v9546_v54 = vpop.eup %9545 }
0x5d71   :  { %6406 = vrot.lane.b32.xlu0 %v9546_v54, %s9616_s19  ;;  %s9640_s19 = smov [#allocation2]  }
0x5d72   :  { %v9548_v10 = vpop.eup %9547 }
0x5d73   :  { %v6400_v44 = vadd.f32 1.0, %v9548_v10 }
0x5d75   :  { %9549 = vrcp.f32 %v6400_v44 }
0x5d7f   :  { %v9550_v36 = vpop.eup %9549 }
0x5d80   :  { %v6404_v57 = vmul.f32 %v9550_v36, %v11748_v21 }
0x5de3   :  { %v6407_v18 = vpop.permute.xlu0 %6406 }
0x5de4   :  { %v6409_v52 = vmul.f32 %v9550_v36, %v6407_v18 }
0x5de6   :  { %6411 = vrot.lane.b32.xlu0 %v6409_v52, %s9617_s20  ;;  %s6560_s20 = sshll.u32 %s9640_s19, 4  ;;  %s6561_s20 = int_to_ptr.vmem [resolvable:$true] %s6560_s20 }
0x5de7   :  { %p9593_p1 = scmp.lt.s32.totalorder %s6561_s20, %s6561_s20 }
0x5e58   :  { %v6412_v11 = vpop.permute.xlu0 %6411 }
0x5e59   :  { %v6414_v35 = vadd.f32 %v6412_v11, %v6404_v57 }
0x5e5b   :  { %9551 = vtanh.f32 %v6414_v35 }
0x5e65   :  { %v9552_v24 = vpop.eup %9551 }
0x5e66   :  { %6417 = vrot.lane.b32.xlu1 %v9552_v24, %s9619_s17  ;;  %s9588_s17 = scalar_lea.vmem %s6561_s20, 32 }
0x5e67   :  { %p9589_p0 = scmp.ne.s32.totalorder %s6561_s20, %s9588_s17  ;;  %p9594_p2 = scmp.lt.s32.totalorder %s9588_s17, %s9588_s17 }
0x5e69   :  { %p9595_p3 = por %p9594_p2, %p9593_p1 }
0x5e6b   :  { %p9596_p4 = pnand %p9595_p3, %p9589_p0 }
0x5ed8   :  { %v6418_v1 = vpop.permute.xlu1 %6417 }
0x5ed9   :  { %v6420_v2 = vmul.f32 %v9550_v36, %v6418_v1 }
0x5edb   :  { %6422 = vrot.lane.b32.xlu0 %v6420_v2, %s9620_s29 }
0x5edf   :  { %6511 = vrot.lane.b32.xlu0 %v6509_v13, %s9639_s0 }
0x5f4d   :  { %v6423_v55 = vpop.permute.xlu0 %6422 }
0x5f4e   :  { %8254 = vmatmul.mubr.msk.f32.vlgmr.msra.gmra.mrb[46].mxu1 %vm114_vm7, %v6423_v55 }
0x5f51   :  { %v6512_v32 = vpop.permute.xlu0 %6511 }
0x5f52   :  { %v6514_v3 = vadd.f32 %v6512_v32, %v11782_v17 }
0x5f54   :  { %v6515_v5 = vadd.f32 1.0, %v6514_v3 }
0x5f56   :  { %v6516_v23 = vmul.f32 0.25, %v6515_v5 }
0x5f58   :  { %v6517_v22 = vmin.f32 %v6516_v23, 1.0 }
0x5f5a   :  { %v6524_v4 = vsub.f32 1.0, %v6517_v22 }
0x6021   :  { %v6492_v47 = vpop.f32.mrb[46].mxu1 }
0x6022   :  { %v6496_v21 = vadd.f32 %v11777_v33, %v6492_v47  ;;  %v8255_v48 = vpop.f32.mrb[47].mxu1 }
0x6024   :  { %v6497_v63 = vsel %vm955_vm12, %v6496_v21, -inf }
0x6025   :  { %6498 = vmax.xlane.f32.xlu1 %v6497_v63 }
0x6036   :  { %6527 = vperm.xlu1 %9320, %v6524_v4  }
0x60b2   :  { %v6499_v53 = vpop.xlane.xlu1 %6498 }
0x60b3   :  { %v6500_v42 = vsub.f32 %v6496_v21, %v6499_v53 }
0x60b5   :  { %v6501_v26 = vmul.f32 1.442695, %v6500_v42 }
0x60b6   :  { %v6528_v39 = vpop.permute.xlu1 %6527 }
0x60b7   :  { %9553 = vpow2.f32 %v6501_v26  ;;  %v6530_v19 = vmul.f32 %v6528_v39, %v11790_v60  ;;  %v6542_v60 = vsel %vm6541_vm1, %v6540_v37, %v12297_v40 }
0x60b8   :  { %v6544_v56 = vsel %vm6543_vm2, %v6542_v60, %v12298_v51 }
0x60c1   :  { %v9554_v6 = vpop.eup %9553 }
0x60c2   :  { %v6503_v14 = vsel %vm955_vm12, %v9554_v6, 0.0 }
0x60c3   :  { %6504 = vadd.xlane.f32.xlu0 %v6503_v14 }
0x60d9   :  { %6520 = vperm.xlu0 %9332, %v6517_v22  }
0x6150   :  { %v6505_v33 = vpop.xlane.xlu0 %6504 }
0x6151   :  { %9555 = vrcp.f32 %v6505_v33 }
0x6158   :  { %v6521_v59 = vpop.permute.xlu0 %6520 }
0x615b   :  { %v9556_v17 = vpop.eup %9555 }
0x615c   :  { %v6507_v20 = vmul.f32 %v9556_v17, %v9554_v6 }
0x615e   :  { %v6508_v49 = vmul.f32 4.0, %v6507_v20 }
0x6160   :  { %v6523_v12 = vmul.f32 %v6521_v59, %v6508_v49 }
0x6162   :  { %v6531_v9 = vadd.f32 %v6530_v19, %v6523_v12 }
0x6164   :  { %v6532_v61 = vmul.f32 %v6531_v9, %v11872_v43  ;;  %v6534_v58 = vmul.f32 %v11834_v28, %v6531_v9  ;;  %v12299_v28 = vld [vmem:[#allocation11_spill] sm:$0xff]  ;;  %v12300_v43 = vld [vmem:[#allocation29_spill] sm:$0xff] }
0x6166   :  { %v6533_v15 = vmul.f32 %v11828_v46, %v6532_v61  ;;  %v6545_v46 = vsel %vm1034_vm13, %v6544_v56, %v12299_v28 }
0x6167   :  { %v6547_v29 = vsel %vm6546_vm3, %v6545_v46, %v12300_v43 }
0x6168   :  { %v6535_v31 = vadd.f32 %v6534_v58, %v6533_v15  ;;  %v6549_v8 = vsel %vm6548_vm4, %v6547_v29, %v11840_v7 }
0x616a   :  { %v6536_v30 = vsel %vm955_vm12, %v6535_v31, 0.0 }
0x616b   :  { %6537 = vadd.xlane.f32.xlu1 %v6536_v30 }
0x61f8   :  { %v6538_v16 = vpop.xlane.xlu1 %6537 }
0x61f9   :  { %v6551_v27 = vsel %vm6550_vm5, %v6549_v8, %v6538_v16 }
0x61fa   :  { %6553 = vst.msk [vmem:[#allocation2] sm:$0x3] %vm6552_vm6, %v6551_v27 }
0x61fb   :  { %9599 = shalt.err (!%p9596_p4)
}
0x61fc   :  { %s9600_s16 = scalar_lea.hbm %s11980_s2, 32 }
0x61fd   :  { %p9601_p5 = scmp.ne.s32.totalorder %s11980_s2, %s9600_s16  ;;  %p9604_p6 = scmp.lt.u32.totalorder %s9600_s16, %s11980_s2 }
0x61ff   :  { %p9606_p7 = pnand %p9604_p6, %p9601_p5 }
0x6201   :  { %9609 = shalt.err (!%p9606_p7)
}
0x6202   :  { %6563 = dma.vmem_to_hbm [thread:$0]  %s6561_s20, 32, %s11980_s2, [#allocation3]  }
0x6203   :  { %9610 = dma.done.wait [#allocation3], 32  }
0x6204   :  { %9611 = vsyncadd [#allocation3], 4294967264 }
0x6205   :  { %6567 = vsyncpa [#allocation3], 1 }

</bundles_post_ra>
